<compile_context>
chip_gen: v7x
topology: tpu7x:2x2x1
jax: 0.10.0
libtpu: 0.0.40
codegen_flags: <defaults>
</compile_context>

<pallas_src>
import functools
from math import ceil

import jax
import jax.numpy as jnp
from jax import lax
from jax.experimental import pallas as pl
from jax.experimental.pallas import tpu as pltpu

EPS = 1e-15
BN_EPS = 1e-5
SLAB_W = 128  # lane width of the packed small-parameter slab


def _sum_all(v):
    """Full reduction of a 2-D value -> (1, 1) array (stays 2-D throughout)."""
    return jnp.sum(jnp.sum(v, axis=-1, keepdims=True), axis=0, keepdims=True)


# ----------------------------------------------------------------------------
# Static architecture / packing layout
# ----------------------------------------------------------------------------
def make_config(B, max_nodes, in_dim, num_classes):
    n1 = ceil(0.25 * max_nodes)
    n2 = ceil(0.25 * n1)
    n2a = ceil(9)
    hid = 64
    # (cin, hid, c3, has_lin) per GNN stage, in execution order.
    stages = (
        (in_dim, hid, n1, True),     # gnn1_pool
        (in_dim, hid, hid, False),   # gnn1_embed
        (3 * hid, hid, n2, True),    # gnn2_pool
        (3 * hid, hid, hid, False),  # gnn2_embed
        (3 * hid, hid, n2a, True),   # gnn2a_pool
        (3 * hid, hid, hid, False),  # gnn2a_embed
        (3 * hid, hid, hid, False),  # gnn3_embed
    )

    widths = []           # width of each slab row (static)

    def add(w):
        widths.append(w)
        return len(widths) - 1

    stage_rows = []
    stage_woff = []
    woff = 0
    for (cin, h, c3, has_lin) in stages:
        rows = dict(
            b1=add(h), g1=add(h), be1=add(h),
            b2=add(h), g2=add(h), be2=add(h),
            b3=add(c3), g3=add(c3), be3=add(c3))
        if has_lin:
            rows['bl'] = add(c3)
        stage_rows.append(rows)
        stage_woff.append(woff)
        woff += 4 if has_lin else 3
    r_lin1b = add(hid)
    r_lin2b = add(num_classes)

    return dict(B=B, N0=max_nodes, in_dim=in_dim, num_classes=num_classes,
                hid=hid, stages=stages, widths=tuple(widths),
                stage_rows=tuple(stage_rows), stage_woff=tuple(stage_woff),
                r_lin1b=r_lin1b, r_lin2b=r_lin2b,
                iw_lin1=woff, iw_lin2=woff + 1, n_weights=woff + 2)


# ----------------------------------------------------------------------------
# Parameter initialization (weights + packed small-vector slab)
# ----------------------------------------------------------------------------
def init_net(key, cfg, scale=0.1):
    keys = iter(jax.random.split(key, 256))

    def dense(cin, cout):
        return jax.random.normal(next(keys), (cin, cout), jnp.float32) * scale

    def vecp(c):
        return jax.random.normal(next(keys), (c,), jnp.float32) * scale

    weights = []
    vecs = []
    for (cin, hid, c3, has_lin) in cfg['stages']:
        # Stacked [W_rel; W_root] parameterization of DenseSAGEConv.
        weights.append(dense(2 * cin, hid))     # conv1
        weights.append(dense(2 * hid, hid))     # conv2
        weights.append(dense(2 * hid, c3))      # conv3
        if has_lin:
            weights.append(dense(2 * hid + c3, c3))
        # Slab order must match make_config: b,g,be per conv, then lin bias.
        vecs += [vecp(hid), jnp.ones((hid,), jnp.float32), jnp.zeros((hid,), jnp.float32),
                 vecp(hid), jnp.ones((hid,), jnp.float32), jnp.zeros((hid,), jnp.float32),
                 vecp(c3), jnp.ones((c3,), jnp.float32), jnp.zeros((c3,), jnp.float32)]
        if has_lin:
            vecs.append(vecp(c3))
    weights.append(dense(3 * cfg['hid'], cfg['hid']))        # lin1
    weights.append(dense(cfg['hid'], cfg['num_classes']))    # lin2
    vecs.append(vecp(cfg['hid']))                            # lin1 bias
    vecs.append(vecp(cfg['num_classes']))                    # lin2 bias

    assert len(weights) == cfg['n_weights']
    assert len(vecs) == len(cfg['widths'])
    assert all(int(v.shape[0]) == w for v, w in zip(vecs, cfg['widths']))
    slab = jnp.stack([jnp.pad(v, (0, SLAB_W - v.shape[0])) for v in vecs])
    return dict(weights=tuple(weights), slab=slab)


# ----------------------------------------------------------------------------
# The single fused kernel
# ----------------------------------------------------------------------------
def _make_kernel(cfg):
    B = cfg['B']
    N0 = cfg['N0']
    stages = cfg['stages']
    widths = cfg['widths']
    stage_rows = cfg['stage_rows']
    stage_woff = cfg['stage_woff']
    n_w = cfg['n_weights']
    iw_lin1 = cfg['iw_lin1']
    iw_lin2 = cfg['iw_lin2']
    r_lin1b = cfg['r_lin1b']
    r_lin2b = cfg['r_lin2b']
    f32 = jnp.float32

    def kernel(x_ref, adj_ref, mask_ref, slab_ref, *rest):
        w_refs = rest[:n_w]
        out_ref, aux_ref = rest[n_w], rest[n_w + 1]

        def vec(r):
            # (1, width_r) slice out of the packed parameter slab.
            return slab_ref[r:r + 1, :widths[r]]

        def deg_inv(A):
            # 1 / clamp(deg, 1) of a (block-diagonal) adjacency.
            return pl.reciprocal(
                jnp.maximum(jnp.sum(A, axis=-1, keepdims=True), 1.0), approx=True)

        def conv_bn(X, A, dinv, msk, w_ref, rb, rg, rbe):
            """DenseSAGEConv -> relu -> (mask) -> BatchNorm1d (training stats)."""
            cin = X.shape[1]
            agg = jnp.dot(A, X, preferred_element_type=f32) * dinv
            z = (jnp.dot(agg, w_ref[0:cin, :], preferred_element_type=f32)
                 + jnp.dot(X, w_ref[cin:2 * cin, :], preferred_element_type=f32)
                 + vec(rb))
            z = jnp.maximum(z, 0.0)
            if msk is not None:
                z = z * msk
            inv_m = 1.0 / float(z.shape[0])
            mean = jnp.sum(z, axis=0, keepdims=True) * inv_m
            var = jnp.sum(z * z, axis=0, keepdims=True) * inv_m - mean * mean
            scale = lax.rsqrt(var + BN_EPS) * vec(rg)
            shift = vec(rbe) - mean * scale
            return z * scale + shift

        def gnn(X, A, dinv, msk, si):
            _, _, c3, has_lin = stages[si]
            rows = stage_rows[si]
            wo = stage_woff[si]
            x1 = conv_bn(X, A, dinv, msk, w_refs[wo + 0], rows['b1'], rows['g1'], rows['be1'])
            x2 = conv_bn(x1, A, dinv, msk, w_refs[wo + 1], rows['b2'], rows['g2'], rows['be2'])
            x3 = conv_bn(x2, A, dinv, msk, w_refs[wo + 2], rows['b3'], rows['g3'], rows['be3'])
            xc = jnp.concatenate([x1, x2, x3], axis=-1)
            if has_lin:
                xc = jnp.maximum(
                    jnp.dot(xc, w_refs[wo + 3][...], preferred_element_type=f32)
                    + vec(rows['bl']), 0.0)
            return xc

        def diff_pool(X, A, s_logits, msk, N, K, with_losses):
            """dense_diff_pool on batch-stacked features / block-diag adjacency."""
            sl = s_logits - jnp.max(s_logits, axis=-1, keepdims=True)
            e = jnp.exp(sl)
            s = e * pl.reciprocal(jnp.sum(e, axis=-1, keepdims=True), approx=True)
            if msk is not None:
                X = X * msk
                s = s * msk
            # Block-diagonal assignment matrix S of shape (B*N, B*K).
            s_tiled = jnp.concatenate([s] * B, axis=1)
            row_b = jnp.concatenate(
                [jnp.full((N, 1), b, jnp.int32) for b in range(B)], axis=0)
            col_b = jnp.concatenate(
                [jnp.full((1, K), b, jnp.int32) for b in range(B)], axis=1)
            S = jnp.where(row_b == col_b, s_tiled, 0.0)
            St = S.T                                                 # (B*K, B*N)
            ox = jnp.dot(St, X, preferred_element_type=f32)          # (B*K, C)
            oA = jnp.dot(jnp.dot(St, A, preferred_element_type=f32), S,
                         preferred_element_type=f32)                 # (B*K, B*K)
            if not with_losses:
                return ox, oA, None, None
            # link loss: sum_b ||adj_b - s_b s_b^T||_F^2
            #          = ||A||^2 - 2*tr(S^T A S) + ||S^T S||^2  (adj symmetric here)
            BK = B * K
            adj_sq = _sum_all(A * A)
            eye = (lax.broadcasted_iota(jnp.int32, (BK, BK), 0)
                   == lax.broadcasted_iota(jnp.int32, (BK, BK), 1))
            trace = _sum_all(jnp.where(eye, oA, 0.0))
            StS = jnp.dot(St, S, preferred_element_type=f32)
            link_sq = jnp.maximum(adj_sq - 2.0 * trace + _sum_all(StS * StS), 0.0)
            link = jnp.sqrt(link_sq) * (1.0 / float(B * N * N))
            ent = _sum_all(-s * jnp.log(s + EPS)) * (1.0 / float(B * N))
            return ox, oA, link, ent

        # ------------------- level 1 -------------------
        N = N0
        X = x_ref[...]                                  # (B*N0, in_dim)
        mask = mask_ref[...]                            # (B*N0, 1)
        zero = jnp.zeros((N, N), f32)
        A = jnp.concatenate(
            [jnp.concatenate([adj_ref[b] if bb == b else zero for bb in range(B)],
                             axis=1) for b in range(B)], axis=0)   # (B*N0, B*N0)
        dinv = deg_inv(A)
        s = gnn(X, A, dinv, mask, 0)                    # gnn1_pool
        xe = gnn(X, A, dinv, mask, 1)                   # gnn1_embed
        X, A, l1, e1 = diff_pool(xe, A, s, mask, N, stages[0][2], True)

        # ------------------- level 2 -------------------
        N = stages[0][2]
        dinv = deg_inv(A)
        s = gnn(X, A, dinv, None, 2)                    # gnn2_pool
        xe = gnn(X, A, dinv, None, 3)                   # gnn2_embed
        # The reference overwrites this level's l2/e2, so their values are dead.
        X, A, _, _ = diff_pool(xe, A, s, None, N, stages[2][2], False)

        # ------------------- level 2a ------------------
        N = stages[2][2]
        dinv = deg_inv(A)
        s = gnn(X, A, dinv, None, 4)                    # gnn2a_pool
        xe = gnn(X, A, dinv, None, 5)                   # gnn2a_embed
        X, A, l2, e2 = diff_pool(xe, A, s, None, N, stages[4][2], True)

        # ------------------- final embed + head --------
        N = stages[4][2]
        dinv = deg_inv(A)
        X = gnn(X, A, dinv, None, 6)                    # (B*N, 192)
        # Per-batch node mean via an MXU-friendly pooling matrix (no slicing).
        col = lax.broadcasted_iota(jnp.int32, (B, B * N), 1)
        row = lax.broadcasted_iota(jnp.int32, (B, B * N), 0)
        sel = col - row * N
        P = jnp.where((sel >= 0) & (sel < N), 1.0 / float(N), 0.0)
        xm = jnp.dot(P, X, preferred_element_type=f32)  # (B, 192)
        h = jnp.maximum(
            jnp.dot(xm, w_refs[iw_lin1][...], preferred_element_type=f32)
            + vec(r_lin1b), 0.0)
        z = (jnp.dot(h, w_refs[iw_lin2][...], preferred_element_type=f32)
             + vec(r_lin2b))
        z = z - jnp.max(z, axis=-1, keepdims=True)
        out_ref[...] = z - jnp.log(jnp.sum(jnp.exp(z), axis=-1, keepdims=True))
        aux_ref[...] = jnp.concatenate([l1 + l2, e1 + e2], axis=1)

    return kernel


# ----------------------------------------------------------------------------
# Wrapper: one pallas_call for the whole forward pass
# ----------------------------------------------------------------------------
def net_forward(params, x, adj, mask, *, cfg):
    B, N, C = x.shape
    assert B == cfg['B'] and N == cfg['N0'] and C == cfg['in_dim']
    nc = cfg['num_classes']

    x2 = x.reshape(B * N, C)
    m2 = mask.astype(jnp.float32).reshape(B * N, 1)
    args = [x2, adj, m2, params['slab']] + list(params['weights'])

    def full_spec(a):
        nd = a.ndim
        return pl.BlockSpec(a.shape, lambda i, _nd=nd: (0,) * _nd)

    out, aux = pl.pallas_call(
        _make_kernel(cfg),
        out_shape=(jax.ShapeDtypeStruct((B, nc), jnp.float32),
                   jax.ShapeDtypeStruct((1, 2), jnp.float32)),
        grid=(1,),
        in_specs=[full_spec(a) for a in args],
        out_specs=(pl.BlockSpec((B, nc), lambda i: (0, 0)),
                   pl.BlockSpec((1, 2), lambda i: (0, 0))),
        compiler_params=pltpu.CompilerParams(
            dimension_semantics=("arbitrary",)),
    )(*args)
    meta = (aux[0, 0], aux[0, 1])      # (l1 + l2, e1 + e2)
    return out, meta


# ----------------------------------------------------------------------------
if __name__ == "__main__":
    key = jax.random.PRNGKey(0)
    B, N, IN_DIM, NUM_CLASSES = 2, 32, 3, 9
    kx, ka, kp = jax.random.split(key, 3)

    x = jax.random.normal(kx, (B, N, IN_DIM), jnp.float32)
    adj = (jax.random.uniform(ka, (B, N, N)) < 0.3).astype(jnp.float32)
    adj = jnp.maximum(adj, jnp.swapaxes(adj, 1, 2))        # symmetric adjacency
    num_valid = jnp.array([N, N - 4])
    mask = jnp.arange(N)[None, :] < num_valid[:, None]     # (B, N) bool

    cfg = make_config(B, max_nodes=N, in_dim=IN_DIM, num_classes=NUM_CLASSES)
    params = init_net(kp, cfg)

    fwd = jax.jit(functools.partial(net_forward, cfg=cfg))
    out, meta = fwd(params, x, adj, mask)
    jax.block_until_ready(out)
    jax.block_until_ready(meta)
    assert out.shape == (B, NUM_CLASSES)
    print("KERNEL_OK")
</pallas_src>

<mosaic_0001>
module attributes {stable_mosaic.version = 11 : i64} {
  func.func @kernel(%arg0: i32, %arg1: memref<64x3xf32, #tpu.memory_space<vmem>>, %arg2: memref<2x32x32xf32, #tpu.memory_space<vmem>>, %arg3: memref<64x1xf32, #tpu.memory_space<vmem>>, %arg4: memref<68x128xf32, #tpu.memory_space<vmem>>, %arg5: memref<6x64xf32, #tpu.memory_space<vmem>>, %arg6: memref<128x64xf32, #tpu.memory_space<vmem>>, %arg7: memref<128x8xf32, #tpu.memory_space<vmem>>, %arg8: memref<136x8xf32, #tpu.memory_space<vmem>>, %arg9: memref<6x64xf32, #tpu.memory_space<vmem>>, %arg10: memref<128x64xf32, #tpu.memory_space<vmem>>, %arg11: memref<128x64xf32, #tpu.memory_space<vmem>>, %arg12: memref<384x64xf32, #tpu.memory_space<vmem>>, %arg13: memref<128x64xf32, #tpu.memory_space<vmem>>, %arg14: memref<128x2xf32, #tpu.memory_space<vmem>>, %arg15: memref<130x2xf32, #tpu.memory_space<vmem>>, %arg16: memref<384x64xf32, #tpu.memory_space<vmem>>, %arg17: memref<128x64xf32, #tpu.memory_space<vmem>>, %arg18: memref<128x64xf32, #tpu.memory_space<vmem>>, %arg19: memref<384x64xf32, #tpu.memory_space<vmem>>, %arg20: memref<128x64xf32, #tpu.memory_space<vmem>>, %arg21: memref<128x9xf32, #tpu.memory_space<vmem>>, %arg22: memref<137x9xf32, #tpu.memory_space<vmem>>, %arg23: memref<384x64xf32, #tpu.memory_space<vmem>>, %arg24: memref<128x64xf32, #tpu.memory_space<vmem>>, %arg25: memref<128x64xf32, #tpu.memory_space<vmem>>, %arg26: memref<384x64xf32, #tpu.memory_space<vmem>>, %arg27: memref<128x64xf32, #tpu.memory_space<vmem>>, %arg28: memref<128x64xf32, #tpu.memory_space<vmem>>, %arg29: memref<192x64xf32, #tpu.memory_space<vmem>>, %arg30: memref<64x9xf32, #tpu.memory_space<vmem>>, %arg31: memref<2x9xf32, #tpu.memory_space<vmem>>, %arg32: memref<1x2xf32, #tpu.memory_space<vmem>>) attributes {dimension_semantics = [#tpu.dimension_semantics<arbitrary>], iteration_bounds = array<i64: 1>, scalar_prefetch = 0 : i64, scratch_operands = 0 : i64, tpu.core_type = #tpu.core_type<tc>, window_params = [{pipeline_mode = #tpu.pipeline_mode<synchronous>, transform_indices = @transform_0, window_bounds = array<i64: 64, 3>}, {pipeline_mode = #tpu.pipeline_mode<synchronous>, transform_indices = @transform_1, window_bounds = array<i64: 2, 32, 32>}, {pipeline_mode = #tpu.pipeline_mode<synchronous>, transform_indices = @transform_2, window_bounds = array<i64: 64, 1>}, {pipeline_mode = #tpu.pipeline_mode<synchronous>, transform_indices = @transform_3, window_bounds = array<i64: 68, 128>}, {pipeline_mode = #tpu.pipeline_mode<synchronous>, transform_indices = @transform_4, window_bounds = array<i64: 6, 64>}, {pipeline_mode = #tpu.pipeline_mode<synchronous>, transform_indices = @transform_5, window_bounds = array<i64: 128, 64>}, {pipeline_mode = #tpu.pipeline_mode<synchronous>, transform_indices = @transform_6, window_bounds = array<i64: 128, 8>}, {pipeline_mode = #tpu.pipeline_mode<synchronous>, transform_indices = @transform_7, window_bounds = array<i64: 136, 8>}, {pipeline_mode = #tpu.pipeline_mode<synchronous>, transform_indices = @transform_8, window_bounds = array<i64: 6, 64>}, {pipeline_mode = #tpu.pipeline_mode<synchronous>, transform_indices = @transform_9, window_bounds = array<i64: 128, 64>}, {pipeline_mode = #tpu.pipeline_mode<synchronous>, transform_indices = @transform_10, window_bounds = array<i64: 128, 64>}, {pipeline_mode = #tpu.pipeline_mode<synchronous>, transform_indices = @transform_11, window_bounds = array<i64: 384, 64>}, {pipeline_mode = #tpu.pipeline_mode<synchronous>, transform_indices = @transform_12, window_bounds = array<i64: 128, 64>}, {pipeline_mode = #tpu.pipeline_mode<synchronous>, transform_indices = @transform_13, window_bounds = array<i64: 128, 2>}, {pipeline_mode = #tpu.pipeline_mode<synchronous>, transform_indices = @transform_14, window_bounds = array<i64: 130, 2>}, {pipeline_mode = #tpu.pipeline_mode<synchronous>, transform_indices = @transform_15, window_bounds = array<i64: 384, 64>}, {pipeline_mode = #tpu.pipeline_mode<synchronous>, transform_indices = @transform_16, window_bounds = array<i64: 128, 64>}, {pipeline_mode = #tpu.pipeline_mode<synchronous>, transform_indices = @transform_17, window_bounds = array<i64: 128, 64>}, {pipeline_mode = #tpu.pipeline_mode<synchronous>, transform_indices = @transform_18, window_bounds = array<i64: 384, 64>}, {pipeline_mode = #tpu.pipeline_mode<synchronous>, transform_indices = @transform_19, window_bounds = array<i64: 128, 64>}, {pipeline_mode = #tpu.pipeline_mode<synchronous>, transform_indices = @transform_20, window_bounds = array<i64: 128, 9>}, {pipeline_mode = #tpu.pipeline_mode<synchronous>, transform_indices = @transform_21, window_bounds = array<i64: 137, 9>}, {pipeline_mode = #tpu.pipeline_mode<synchronous>, transform_indices = @transform_22, window_bounds = array<i64: 384, 64>}, {pipeline_mode = #tpu.pipeline_mode<synchronous>, transform_indices = @transform_23, window_bounds = array<i64: 128, 64>}, {pipeline_mode = #tpu.pipeline_mode<synchronous>, transform_indices = @transform_24, window_bounds = array<i64: 128, 64>}, {pipeline_mode = #tpu.pipeline_mode<synchronous>, transform_indices = @transform_25, window_bounds = array<i64: 384, 64>}, {pipeline_mode = #tpu.pipeline_mode<synchronous>, transform_indices = @transform_26, window_bounds = array<i64: 128, 64>}, {pipeline_mode = #tpu.pipeline_mode<synchronous>, transform_indices = @transform_27, window_bounds = array<i64: 128, 64>}, {pipeline_mode = #tpu.pipeline_mode<synchronous>, transform_indices = @transform_28, window_bounds = array<i64: 192, 64>}, {pipeline_mode = #tpu.pipeline_mode<synchronous>, transform_indices = @transform_29, window_bounds = array<i64: 64, 9>}, {pipeline_mode = #tpu.pipeline_mode<synchronous>, transform_indices = @transform_30, window_bounds = array<i64: 2, 9>}, {pipeline_mode = #tpu.pipeline_mode<synchronous>, transform_indices = @transform_31, window_bounds = array<i64: 1, 2>}]} {
    %c0 = arith.constant 0 : index
    %c0_0 = arith.constant 0 : index
    %0 = vector.load %arg1[%c0, %c0_0] : memref<64x3xf32, #tpu.memory_space<vmem>>, vector<64x3xf32>
    %c0_1 = arith.constant 0 : index
    %c0_2 = arith.constant 0 : index
    %1 = vector.load %arg3[%c0_1, %c0_2] : memref<64x1xf32, #tpu.memory_space<vmem>>, vector<64x1xf32>
    %cst = arith.constant 0.000000e+00 : f32
    %2 = vector.broadcast %cst : f32 to vector<32x32xf32>
    %c0_3 = arith.constant 0 : index
    %c0_4 = arith.constant 0 : index
    %c0_5 = arith.constant 0 : index
    %3 = vector.load %arg2[%c0_3, %c0_4, %c0_5] : memref<2x32x32xf32, #tpu.memory_space<vmem>>, vector<1x32x32xf32>
    %4 = vector.shape_cast %3 : vector<1x32x32xf32> to vector<32x32xf32>
    %5 = tpu.concatenate %4, %2 in 1 : vector<32x32xf32>, vector<32x32xf32> -> vector<32x64xf32>
    %c1 = arith.constant 1 : index
    %c0_6 = arith.constant 0 : index
    %c0_7 = arith.constant 0 : index
    %6 = vector.load %arg2[%c1, %c0_6, %c0_7] : memref<2x32x32xf32, #tpu.memory_space<vmem>>, vector<1x32x32xf32>
    %7 = vector.shape_cast %6 : vector<1x32x32xf32> to vector<32x32xf32>
    %8 = tpu.concatenate %2, %7 in 1 : vector<32x32xf32>, vector<32x32xf32> -> vector<32x64xf32>
    %9 = tpu.concatenate %5, %8 in 0 : vector<32x64xf32>, vector<32x64xf32> -> vector<64x64xf32>
    %cst_8 = arith.constant dense<0.000000e+00> : vector<64xf32>
    %10 = vector.multi_reduction <add>, %9, %cst_8 [1] : vector<64x64xf32> to vector<64xf32>
    %11 = vector.shape_cast %10 : vector<64xf32> to vector<64x1xf32>
    %cst_9 = arith.constant 1.000000e+00 : f32
    %12 = vector.broadcast %cst_9 : f32 to vector<64x1xf32>
    %13 = arith.maximumf %11, %12 : vector<64x1xf32>
    %14 = tpu.reciprocal %13 {approx = true} : vector<64x1xf32> -> vector<64x1xf32>
    %cst_10 = arith.constant dense<0.000000e+00> : vector<64x3xf32>
    %15 = tpu.matmul %9, %0, %cst_10 {dimension_numbers = #tpu.dot_dimension_numbers<[1], [0], [0], [1], [0, 0, 1, 1], [], []>} : vector<64x64xf32>, vector<64x3xf32>, vector<64x3xf32> -> vector<64x3xf32>
    %16 = vector.broadcast %14 : vector<64x1xf32> to vector<64x3xf32>
    %17 = arith.mulf %15, %16 : vector<64x3xf32>
    %c0_11 = arith.constant 0 : index
    %c0_12 = arith.constant 0 : index
    %18 = vector.load %arg5[%c0_11, %c0_12] : memref<6x64xf32, #tpu.memory_space<vmem>>, vector<3x64xf32>
    %cst_13 = arith.constant dense<0.000000e+00> : vector<64x64xf32>
    %19 = tpu.matmul %17, %18, %cst_13 {dimension_numbers = #tpu.dot_dimension_numbers<[1], [0], [0], [1], [0, 0, 1, 1], [], []>} : vector<64x3xf32>, vector<3x64xf32>, vector<64x64xf32> -> vector<64x64xf32>
    %c3 = arith.constant 3 : index
    %c0_14 = arith.constant 0 : index
    %20 = vector.load %arg5[%c3, %c0_14] : memref<6x64xf32, #tpu.memory_space<vmem>>, vector<3x64xf32>
    %cst_15 = arith.constant dense<0.000000e+00> : vector<64x64xf32>
    %21 = tpu.matmul %0, %20, %cst_15 {dimension_numbers = #tpu.dot_dimension_numbers<[1], [0], [0], [1], [0, 0, 1, 1], [], []>} : vector<64x3xf32>, vector<3x64xf32>, vector<64x64xf32> -> vector<64x64xf32>
    %22 = arith.addf %19, %21 : vector<64x64xf32>
    %c0_16 = arith.constant 0 : index
    %c0_17 = arith.constant 0 : index
    %23 = vector.load %arg4[%c0_16, %c0_17] : memref<68x128xf32, #tpu.memory_space<vmem>>, vector<1x64xf32>
    %24 = vector.broadcast %23 : vector<1x64xf32> to vector<64x64xf32>
    %25 = arith.addf %22, %24 : vector<64x64xf32>
    %cst_18 = arith.constant 0.000000e+00 : f32
    %26 = vector.broadcast %cst_18 : f32 to vector<64x64xf32>
    %27 = arith.maximumf %25, %26 : vector<64x64xf32>
    %28 = vector.broadcast %1 : vector<64x1xf32> to vector<64x64xf32>
    %29 = arith.mulf %27, %28 : vector<64x64xf32>
    %cst_19 = arith.constant dense<0.000000e+00> : vector<64xf32>
    %30 = vector.multi_reduction <add>, %29, %cst_19 [0] : vector<64x64xf32> to vector<64xf32>
    %31 = vector.shape_cast %30 : vector<64xf32> to vector<1x64xf32>
    %cst_20 = arith.constant 1.562500e-02 : f32
    %32 = vector.broadcast %cst_20 : f32 to vector<1x64xf32>
    %33 = arith.mulf %31, %32 : vector<1x64xf32>
    %34 = arith.mulf %29, %29 : vector<64x64xf32>
    %cst_21 = arith.constant dense<0.000000e+00> : vector<64xf32>
    %35 = vector.multi_reduction <add>, %34, %cst_21 [0] : vector<64x64xf32> to vector<64xf32>
    %36 = vector.shape_cast %35 : vector<64xf32> to vector<1x64xf32>
    %cst_22 = arith.constant 1.562500e-02 : f32
    %37 = vector.broadcast %cst_22 : f32 to vector<1x64xf32>
    %38 = arith.mulf %36, %37 : vector<1x64xf32>
    %39 = arith.mulf %33, %33 : vector<1x64xf32>
    %40 = arith.subf %38, %39 : vector<1x64xf32>
    %cst_23 = arith.constant 9.99999974E-6 : f32
    %41 = vector.broadcast %cst_23 : f32 to vector<1x64xf32>
    %42 = arith.addf %40, %41 : vector<1x64xf32>
    %43 = math.rsqrt %42 : vector<1x64xf32>
    %c1_24 = arith.constant 1 : index
    %c0_25 = arith.constant 0 : index
    %44 = vector.load %arg4[%c1_24, %c0_25] : memref<68x128xf32, #tpu.memory_space<vmem>>, vector<1x64xf32>
    %45 = arith.mulf %43, %44 : vector<1x64xf32>
    %c2 = arith.constant 2 : index
    %c0_26 = arith.constant 0 : index
    %46 = vector.load %arg4[%c2, %c0_26] : memref<68x128xf32, #tpu.memory_space<vmem>>, vector<1x64xf32>
    %47 = arith.mulf %33, %45 : vector<1x64xf32>
    %48 = arith.subf %46, %47 : vector<1x64xf32>
    %49 = vector.broadcast %45 : vector<1x64xf32> to vector<64x64xf32>
    %50 = arith.mulf %29, %49 : vector<64x64xf32>
    %51 = vector.broadcast %48 : vector<1x64xf32> to vector<64x64xf32>
    %52 = arith.addf %50, %51 : vector<64x64xf32>
    %cst_27 = arith.constant dense<0.000000e+00> : vector<64x64xf32>
    %53 = tpu.matmul %9, %52, %cst_27 {dimension_numbers = #tpu.dot_dimension_numbers<[1], [0], [0], [1], [0, 0, 1, 1], [], []>} : vector<64x64xf32>, vector<64x64xf32>, vector<64x64xf32> -> vector<64x64xf32>
    %54 = vector.broadcast %14 : vector<64x1xf32> to vector<64x64xf32>
    %55 = arith.mulf %53, %54 : vector<64x64xf32>
    %c0_28 = arith.constant 0 : index
    %c0_29 = arith.constant 0 : index
    %56 = vector.load %arg6[%c0_28, %c0_29] : memref<128x64xf32, #tpu.memory_space<vmem>>, vector<64x64xf32>
    %cst_30 = arith.constant dense<0.000000e+00> : vector<64x64xf32>
    %57 = tpu.matmul %55, %56, %cst_30 {dimension_numbers = #tpu.dot_dimension_numbers<[1], [0], [0], [1], [0, 0, 1, 1], [], []>} : vector<64x64xf32>, vector<64x64xf32>, vector<64x64xf32> -> vector<64x64xf32>
    %c64 = arith.constant 64 : index
    %c0_31 = arith.constant 0 : index
    %58 = vector.load %arg6[%c64, %c0_31] : memref<128x64xf32, #tpu.memory_space<vmem>>, vector<64x64xf32>
    %cst_32 = arith.constant dense<0.000000e+00> : vector<64x64xf32>
    %59 = tpu.matmul %52, %58, %cst_32 {dimension_numbers = #tpu.dot_dimension_numbers<[1], [0], [0], [1], [0, 0, 1, 1], [], []>} : vector<64x64xf32>, vector<64x64xf32>, vector<64x64xf32> -> vector<64x64xf32>
    %60 = arith.addf %57, %59 : vector<64x64xf32>
    %c3_33 = arith.constant 3 : index
    %c0_34 = arith.constant 0 : index
    %61 = vector.load %arg4[%c3_33, %c0_34] : memref<68x128xf32, #tpu.memory_space<vmem>>, vector<1x64xf32>
    %62 = vector.broadcast %61 : vector<1x64xf32> to vector<64x64xf32>
    %63 = arith.addf %60, %62 : vector<64x64xf32>
    %cst_35 = arith.constant 0.000000e+00 : f32
    %64 = vector.broadcast %cst_35 : f32 to vector<64x64xf32>
    %65 = arith.maximumf %63, %64 : vector<64x64xf32>
    %66 = vector.broadcast %1 : vector<64x1xf32> to vector<64x64xf32>
    %67 = arith.mulf %65, %66 : vector<64x64xf32>
    %cst_36 = arith.constant dense<0.000000e+00> : vector<64xf32>
    %68 = vector.multi_reduction <add>, %67, %cst_36 [0] : vector<64x64xf32> to vector<64xf32>
    %69 = vector.shape_cast %68 : vector<64xf32> to vector<1x64xf32>
    %cst_37 = arith.constant 1.562500e-02 : f32
    %70 = vector.broadcast %cst_37 : f32 to vector<1x64xf32>
    %71 = arith.mulf %69, %70 : vector<1x64xf32>
    %72 = arith.mulf %67, %67 : vector<64x64xf32>
    %cst_38 = arith.constant dense<0.000000e+00> : vector<64xf32>
    %73 = vector.multi_reduction <add>, %72, %cst_38 [0] : vector<64x64xf32> to vector<64xf32>
    %74 = vector.shape_cast %73 : vector<64xf32> to vector<1x64xf32>
    %cst_39 = arith.constant 1.562500e-02 : f32
    %75 = vector.broadcast %cst_39 : f32 to vector<1x64xf32>
    %76 = arith.mulf %74, %75 : vector<1x64xf32>
    %77 = arith.mulf %71, %71 : vector<1x64xf32>
    %78 = arith.subf %76, %77 : vector<1x64xf32>
    %cst_40 = arith.constant 9.99999974E-6 : f32
    %79 = vector.broadcast %cst_40 : f32 to vector<1x64xf32>
    %80 = arith.addf %78, %79 : vector<1x64xf32>
    %81 = math.rsqrt %80 : vector<1x64xf32>
    %c4 = arith.constant 4 : index
    %c0_41 = arith.constant 0 : index
    %82 = vector.load %arg4[%c4, %c0_41] : memref<68x128xf32, #tpu.memory_space<vmem>>, vector<1x64xf32>
    %83 = arith.mulf %81, %82 : vector<1x64xf32>
    %c5 = arith.constant 5 : index
    %c0_42 = arith.constant 0 : index
    %84 = vector.load %arg4[%c5, %c0_42] : memref<68x128xf32, #tpu.memory_space<vmem>>, vector<1x64xf32>
    %85 = arith.mulf %71, %83 : vector<1x64xf32>
    %86 = arith.subf %84, %85 : vector<1x64xf32>
    %87 = vector.broadcast %83 : vector<1x64xf32> to vector<64x64xf32>
    %88 = arith.mulf %67, %87 : vector<64x64xf32>
    %89 = vector.broadcast %86 : vector<1x64xf32> to vector<64x64xf32>
    %90 = arith.addf %88, %89 : vector<64x64xf32>
    %cst_43 = arith.constant dense<0.000000e+00> : vector<64x64xf32>
    %91 = tpu.matmul %9, %90, %cst_43 {dimension_numbers = #tpu.dot_dimension_numbers<[1], [0], [0], [1], [0, 0, 1, 1], [], []>} : vector<64x64xf32>, vector<64x64xf32>, vector<64x64xf32> -> vector<64x64xf32>
    %92 = vector.broadcast %14 : vector<64x1xf32> to vector<64x64xf32>
    %93 = arith.mulf %91, %92 : vector<64x64xf32>
    %c0_44 = arith.constant 0 : index
    %c0_45 = arith.constant 0 : index
    %94 = vector.load %arg7[%c0_44, %c0_45] : memref<128x8xf32, #tpu.memory_space<vmem>>, vector<64x8xf32>
    %cst_46 = arith.constant dense<0.000000e+00> : vector<64x8xf32>
    %95 = tpu.matmul %93, %94, %cst_46 {dimension_numbers = #tpu.dot_dimension_numbers<[1], [0], [0], [1], [0, 0, 1, 1], [], []>} : vector<64x64xf32>, vector<64x8xf32>, vector<64x8xf32> -> vector<64x8xf32>
    %c64_47 = arith.constant 64 : index
    %c0_48 = arith.constant 0 : index
    %96 = vector.load %arg7[%c64_47, %c0_48] : memref<128x8xf32, #tpu.memory_space<vmem>>, vector<64x8xf32>
    %cst_49 = arith.constant dense<0.000000e+00> : vector<64x8xf32>
    %97 = tpu.matmul %90, %96, %cst_49 {dimension_numbers = #tpu.dot_dimension_numbers<[1], [0], [0], [1], [0, 0, 1, 1], [], []>} : vector<64x64xf32>, vector<64x8xf32>, vector<64x8xf32> -> vector<64x8xf32>
    %98 = arith.addf %95, %97 : vector<64x8xf32>
    %c6 = arith.constant 6 : index
    %c0_50 = arith.constant 0 : index
    %99 = vector.load %arg4[%c6, %c0_50] : memref<68x128xf32, #tpu.memory_space<vmem>>, vector<1x8xf32>
    %100 = vector.broadcast %99 : vector<1x8xf32> to vector<64x8xf32>
    %101 = arith.addf %98, %100 : vector<64x8xf32>
    %cst_51 = arith.constant 0.000000e+00 : f32
    %102 = vector.broadcast %cst_51 : f32 to vector<64x8xf32>
    %103 = arith.maximumf %101, %102 : vector<64x8xf32>
    %104 = vector.broadcast %1 : vector<64x1xf32> to vector<64x8xf32>
    %105 = arith.mulf %103, %104 : vector<64x8xf32>
    %cst_52 = arith.constant dense<0.000000e+00> : vector<8xf32>
    %106 = vector.multi_reduction <add>, %105, %cst_52 [0] : vector<64x8xf32> to vector<8xf32>
    %107 = vector.shape_cast %106 : vector<8xf32> to vector<1x8xf32>
    %cst_53 = arith.constant 1.562500e-02 : f32
    %108 = vector.broadcast %cst_53 : f32 to vector<1x8xf32>
    %109 = arith.mulf %107, %108 : vector<1x8xf32>
    %110 = arith.mulf %105, %105 : vector<64x8xf32>
    %cst_54 = arith.constant dense<0.000000e+00> : vector<8xf32>
    %111 = vector.multi_reduction <add>, %110, %cst_54 [0] : vector<64x8xf32> to vector<8xf32>
    %112 = vector.shape_cast %111 : vector<8xf32> to vector<1x8xf32>
    %cst_55 = arith.constant 1.562500e-02 : f32
    %113 = vector.broadcast %cst_55 : f32 to vector<1x8xf32>
    %114 = arith.mulf %112, %113 : vector<1x8xf32>
    %115 = arith.mulf %109, %109 : vector<1x8xf32>
    %116 = arith.subf %114, %115 : vector<1x8xf32>
    %cst_56 = arith.constant 9.99999974E-6 : f32
    %117 = vector.broadcast %cst_56 : f32 to vector<1x8xf32>
    %118 = arith.addf %116, %117 : vector<1x8xf32>
    %119 = math.rsqrt %118 : vector<1x8xf32>
    %c7 = arith.constant 7 : index
    %c0_57 = arith.constant 0 : index
    %120 = vector.load %arg4[%c7, %c0_57] : memref<68x128xf32, #tpu.memory_space<vmem>>, vector<1x8xf32>
    %121 = arith.mulf %119, %120 : vector<1x8xf32>
    %c8 = arith.constant 8 : index
    %c0_58 = arith.constant 0 : index
    %122 = vector.load %arg4[%c8, %c0_58] : memref<68x128xf32, #tpu.memory_space<vmem>>, vector<1x8xf32>
    %123 = arith.mulf %109, %121 : vector<1x8xf32>
    %124 = arith.subf %122, %123 : vector<1x8xf32>
    %125 = vector.broadcast %121 : vector<1x8xf32> to vector<64x8xf32>
    %126 = arith.mulf %105, %125 : vector<64x8xf32>
    %127 = vector.broadcast %124 : vector<1x8xf32> to vector<64x8xf32>
    %128 = arith.addf %126, %127 : vector<64x8xf32>
    %129 = tpu.concatenate %52, %90, %128 in 1 : vector<64x64xf32>, vector<64x64xf32>, vector<64x8xf32> -> vector<64x136xf32>
    %c0_59 = arith.constant 0 : index
    %c0_60 = arith.constant 0 : index
    %130 = vector.load %arg8[%c0_59, %c0_60] : memref<136x8xf32, #tpu.memory_space<vmem>>, vector<136x8xf32>
    %cst_61 = arith.constant dense<0.000000e+00> : vector<64x8xf32>
    %131 = tpu.matmul %129, %130, %cst_61 {dimension_numbers = #tpu.dot_dimension_numbers<[1], [0], [0], [1], [0, 0, 1, 1], [], []>} : vector<64x136xf32>, vector<136x8xf32>, vector<64x8xf32> -> vector<64x8xf32>
    %c9 = arith.constant 9 : index
    %c0_62 = arith.constant 0 : index
    %132 = vector.load %arg4[%c9, %c0_62] : memref<68x128xf32, #tpu.memory_space<vmem>>, vector<1x8xf32>
    %133 = vector.broadcast %132 : vector<1x8xf32> to vector<64x8xf32>
    %134 = arith.addf %131, %133 : vector<64x8xf32>
    %cst_63 = arith.constant 0.000000e+00 : f32
    %135 = vector.broadcast %cst_63 : f32 to vector<64x8xf32>
    %136 = arith.maximumf %134, %135 : vector<64x8xf32>
    %cst_64 = arith.constant dense<0.000000e+00> : vector<64x3xf32>
    %137 = tpu.matmul %9, %0, %cst_64 {dimension_numbers = #tpu.dot_dimension_numbers<[1], [0], [0], [1], [0, 0, 1, 1], [], []>} : vector<64x64xf32>, vector<64x3xf32>, vector<64x3xf32> -> vector<64x3xf32>
    %138 = vector.broadcast %14 : vector<64x1xf32> to vector<64x3xf32>
    %139 = arith.mulf %137, %138 : vector<64x3xf32>
    %c0_65 = arith.constant 0 : index
    %c0_66 = arith.constant 0 : index
    %140 = vector.load %arg9[%c0_65, %c0_66] : memref<6x64xf32, #tpu.memory_space<vmem>>, vector<3x64xf32>
    %cst_67 = arith.constant dense<0.000000e+00> : vector<64x64xf32>
    %141 = tpu.matmul %139, %140, %cst_67 {dimension_numbers = #tpu.dot_dimension_numbers<[1], [0], [0], [1], [0, 0, 1, 1], [], []>} : vector<64x3xf32>, vector<3x64xf32>, vector<64x64xf32> -> vector<64x64xf32>
    %c3_68 = arith.constant 3 : index
    %c0_69 = arith.constant 0 : index
    %142 = vector.load %arg9[%c3_68, %c0_69] : memref<6x64xf32, #tpu.memory_space<vmem>>, vector<3x64xf32>
    %cst_70 = arith.constant dense<0.000000e+00> : vector<64x64xf32>
    %143 = tpu.matmul %0, %142, %cst_70 {dimension_numbers = #tpu.dot_dimension_numbers<[1], [0], [0], [1], [0, 0, 1, 1], [], []>} : vector<64x3xf32>, vector<3x64xf32>, vector<64x64xf32> -> vector<64x64xf32>
    %144 = arith.addf %141, %143 : vector<64x64xf32>
    %c10 = arith.constant 10 : index
    %c0_71 = arith.constant 0 : index
    %145 = vector.load %arg4[%c10, %c0_71] : memref<68x128xf32, #tpu.memory_space<vmem>>, vector<1x64xf32>
    %146 = vector.broadcast %145 : vector<1x64xf32> to vector<64x64xf32>
    %147 = arith.addf %144, %146 : vector<64x64xf32>
    %cst_72 = arith.constant 0.000000e+00 : f32
    %148 = vector.broadcast %cst_72 : f32 to vector<64x64xf32>
    %149 = arith.maximumf %147, %148 : vector<64x64xf32>
    %150 = vector.broadcast %1 : vector<64x1xf32> to vector<64x64xf32>
    %151 = arith.mulf %149, %150 : vector<64x64xf32>
    %cst_73 = arith.constant dense<0.000000e+00> : vector<64xf32>
    %152 = vector.multi_reduction <add>, %151, %cst_73 [0] : vector<64x64xf32> to vector<64xf32>
    %153 = vector.shape_cast %152 : vector<64xf32> to vector<1x64xf32>
    %cst_74 = arith.constant 1.562500e-02 : f32
    %154 = vector.broadcast %cst_74 : f32 to vector<1x64xf32>
    %155 = arith.mulf %153, %154 : vector<1x64xf32>
    %156 = arith.mulf %151, %151 : vector<64x64xf32>
    %cst_75 = arith.constant dense<0.000000e+00> : vector<64xf32>
    %157 = vector.multi_reduction <add>, %156, %cst_75 [0] : vector<64x64xf32> to vector<64xf32>
    %158 = vector.shape_cast %157 : vector<64xf32> to vector<1x64xf32>
    %cst_76 = arith.constant 1.562500e-02 : f32
    %159 = vector.broadcast %cst_76 : f32 to vector<1x64xf32>
    %160 = arith.mulf %158, %159 : vector<1x64xf32>
    %161 = arith.mulf %155, %155 : vector<1x64xf32>
    %162 = arith.subf %160, %161 : vector<1x64xf32>
    %cst_77 = arith.constant 9.99999974E-6 : f32
    %163 = vector.broadcast %cst_77 : f32 to vector<1x64xf32>
    %164 = arith.addf %162, %163 : vector<1x64xf32>
    %165 = math.rsqrt %164 : vector<1x64xf32>
    %c11 = arith.constant 11 : index
    %c0_78 = arith.constant 0 : index
    %166 = vector.load %arg4[%c11, %c0_78] : memref<68x128xf32, #tpu.memory_space<vmem>>, vector<1x64xf32>
    %167 = arith.mulf %165, %166 : vector<1x64xf32>
    %c12 = arith.constant 12 : index
    %c0_79 = arith.constant 0 : index
    %168 = vector.load %arg4[%c12, %c0_79] : memref<68x128xf32, #tpu.memory_space<vmem>>, vector<1x64xf32>
    %169 = arith.mulf %155, %167 : vector<1x64xf32>
    %170 = arith.subf %168, %169 : vector<1x64xf32>
    %171 = vector.broadcast %167 : vector<1x64xf32> to vector<64x64xf32>
    %172 = arith.mulf %151, %171 : vector<64x64xf32>
    %173 = vector.broadcast %170 : vector<1x64xf32> to vector<64x64xf32>
    %174 = arith.addf %172, %173 : vector<64x64xf32>
    %cst_80 = arith.constant dense<0.000000e+00> : vector<64x64xf32>
    %175 = tpu.matmul %9, %174, %cst_80 {dimension_numbers = #tpu.dot_dimension_numbers<[1], [0], [0], [1], [0, 0, 1, 1], [], []>} : vector<64x64xf32>, vector<64x64xf32>, vector<64x64xf32> -> vector<64x64xf32>
    %176 = vector.broadcast %14 : vector<64x1xf32> to vector<64x64xf32>
    %177 = arith.mulf %175, %176 : vector<64x64xf32>
    %c0_81 = arith.constant 0 : index
    %c0_82 = arith.constant 0 : index
    %178 = vector.load %arg10[%c0_81, %c0_82] : memref<128x64xf32, #tpu.memory_space<vmem>>, vector<64x64xf32>
    %cst_83 = arith.constant dense<0.000000e+00> : vector<64x64xf32>
    %179 = tpu.matmul %177, %178, %cst_83 {dimension_numbers = #tpu.dot_dimension_numbers<[1], [0], [0], [1], [0, 0, 1, 1], [], []>} : vector<64x64xf32>, vector<64x64xf32>, vector<64x64xf32> -> vector<64x64xf32>
    %c64_84 = arith.constant 64 : index
    %c0_85 = arith.constant 0 : index
    %180 = vector.load %arg10[%c64_84, %c0_85] : memref<128x64xf32, #tpu.memory_space<vmem>>, vector<64x64xf32>
    %cst_86 = arith.constant dense<0.000000e+00> : vector<64x64xf32>
    %181 = tpu.matmul %174, %180, %cst_86 {dimension_numbers = #tpu.dot_dimension_numbers<[1], [0], [0], [1], [0, 0, 1, 1], [], []>} : vector<64x64xf32>, vector<64x64xf32>, vector<64x64xf32> -> vector<64x64xf32>
    %182 = arith.addf %179, %181 : vector<64x64xf32>
    %c13 = arith.constant 13 : index
    %c0_87 = arith.constant 0 : index
    %183 = vector.load %arg4[%c13, %c0_87] : memref<68x128xf32, #tpu.memory_space<vmem>>, vector<1x64xf32>
    %184 = vector.broadcast %183 : vector<1x64xf32> to vector<64x64xf32>
    %185 = arith.addf %182, %184 : vector<64x64xf32>
    %cst_88 = arith.constant 0.000000e+00 : f32
    %186 = vector.broadcast %cst_88 : f32 to vector<64x64xf32>
    %187 = arith.maximumf %185, %186 : vector<64x64xf32>
    %188 = vector.broadcast %1 : vector<64x1xf32> to vector<64x64xf32>
    %189 = arith.mulf %187, %188 : vector<64x64xf32>
    %cst_89 = arith.constant dense<0.000000e+00> : vector<64xf32>
    %190 = vector.multi_reduction <add>, %189, %cst_89 [0] : vector<64x64xf32> to vector<64xf32>
    %191 = vector.shape_cast %190 : vector<64xf32> to vector<1x64xf32>
    %cst_90 = arith.constant 1.562500e-02 : f32
    %192 = vector.broadcast %cst_90 : f32 to vector<1x64xf32>
    %193 = arith.mulf %191, %192 : vector<1x64xf32>
    %194 = arith.mulf %189, %189 : vector<64x64xf32>
    %cst_91 = arith.constant dense<0.000000e+00> : vector<64xf32>
    %195 = vector.multi_reduction <add>, %194, %cst_91 [0] : vector<64x64xf32> to vector<64xf32>
    %196 = vector.shape_cast %195 : vector<64xf32> to vector<1x64xf32>
    %cst_92 = arith.constant 1.562500e-02 : f32
    %197 = vector.broadcast %cst_92 : f32 to vector<1x64xf32>
    %198 = arith.mulf %196, %197 : vector<1x64xf32>
    %199 = arith.mulf %193, %193 : vector<1x64xf32>
    %200 = arith.subf %198, %199 : vector<1x64xf32>
    %cst_93 = arith.constant 9.99999974E-6 : f32
    %201 = vector.broadcast %cst_93 : f32 to vector<1x64xf32>
    %202 = arith.addf %200, %201 : vector<1x64xf32>
    %203 = math.rsqrt %202 : vector<1x64xf32>
    %c14 = arith.constant 14 : index
    %c0_94 = arith.constant 0 : index
    %204 = vector.load %arg4[%c14, %c0_94] : memref<68x128xf32, #tpu.memory_space<vmem>>, vector<1x64xf32>
    %205 = arith.mulf %203, %204 : vector<1x64xf32>
    %c15 = arith.constant 15 : index
    %c0_95 = arith.constant 0 : index
    %206 = vector.load %arg4[%c15, %c0_95] : memref<68x128xf32, #tpu.memory_space<vmem>>, vector<1x64xf32>
    %207 = arith.mulf %193, %205 : vector<1x64xf32>
    %208 = arith.subf %206, %207 : vector<1x64xf32>
    %209 = vector.broadcast %205 : vector<1x64xf32> to vector<64x64xf32>
    %210 = arith.mulf %189, %209 : vector<64x64xf32>
    %211 = vector.broadcast %208 : vector<1x64xf32> to vector<64x64xf32>
    %212 = arith.addf %210, %211 : vector<64x64xf32>
    %cst_96 = arith.constant dense<0.000000e+00> : vector<64x64xf32>
    %213 = tpu.matmul %9, %212, %cst_96 {dimension_numbers = #tpu.dot_dimension_numbers<[1], [0], [0], [1], [0, 0, 1, 1], [], []>} : vector<64x64xf32>, vector<64x64xf32>, vector<64x64xf32> -> vector<64x64xf32>
    %214 = vector.broadcast %14 : vector<64x1xf32> to vector<64x64xf32>
    %215 = arith.mulf %213, %214 : vector<64x64xf32>
    %c0_97 = arith.constant 0 : index
    %c0_98 = arith.constant 0 : index
    %216 = vector.load %arg11[%c0_97, %c0_98] : memref<128x64xf32, #tpu.memory_space<vmem>>, vector<64x64xf32>
    %cst_99 = arith.constant dense<0.000000e+00> : vector<64x64xf32>
    %217 = tpu.matmul %215, %216, %cst_99 {dimension_numbers = #tpu.dot_dimension_numbers<[1], [0], [0], [1], [0, 0, 1, 1], [], []>} : vector<64x64xf32>, vector<64x64xf32>, vector<64x64xf32> -> vector<64x64xf32>
    %c64_100 = arith.constant 64 : index
    %c0_101 = arith.constant 0 : index
    %218 = vector.load %arg11[%c64_100, %c0_101] : memref<128x64xf32, #tpu.memory_space<vmem>>, vector<64x64xf32>
    %cst_102 = arith.constant dense<0.000000e+00> : vector<64x64xf32>
    %219 = tpu.matmul %212, %218, %cst_102 {dimension_numbers = #tpu.dot_dimension_numbers<[1], [0], [0], [1], [0, 0, 1, 1], [], []>} : vector<64x64xf32>, vector<64x64xf32>, vector<64x64xf32> -> vector<64x64xf32>
    %220 = arith.addf %217, %219 : vector<64x64xf32>
    %c16 = arith.constant 16 : index
    %c0_103 = arith.constant 0 : index
    %221 = vector.load %arg4[%c16, %c0_103] : memref<68x128xf32, #tpu.memory_space<vmem>>, vector<1x64xf32>
    %222 = vector.broadcast %221 : vector<1x64xf32> to vector<64x64xf32>
    %223 = arith.addf %220, %222 : vector<64x64xf32>
    %cst_104 = arith.constant 0.000000e+00 : f32
    %224 = vector.broadcast %cst_104 : f32 to vector<64x64xf32>
    %225 = arith.maximumf %223, %224 : vector<64x64xf32>
    %226 = vector.broadcast %1 : vector<64x1xf32> to vector<64x64xf32>
    %227 = arith.mulf %225, %226 : vector<64x64xf32>
    %cst_105 = arith.constant dense<0.000000e+00> : vector<64xf32>
    %228 = vector.multi_reduction <add>, %227, %cst_105 [0] : vector<64x64xf32> to vector<64xf32>
    %229 = vector.shape_cast %228 : vector<64xf32> to vector<1x64xf32>
    %cst_106 = arith.constant 1.562500e-02 : f32
    %230 = vector.broadcast %cst_106 : f32 to vector<1x64xf32>
    %231 = arith.mulf %229, %230 : vector<1x64xf32>
    %232 = arith.mulf %227, %227 : vector<64x64xf32>
    %cst_107 = arith.constant dense<0.000000e+00> : vector<64xf32>
    %233 = vector.multi_reduction <add>, %232, %cst_107 [0] : vector<64x64xf32> to vector<64xf32>
    %234 = vector.shape_cast %233 : vector<64xf32> to vector<1x64xf32>
    %cst_108 = arith.constant 1.562500e-02 : f32
    %235 = vector.broadcast %cst_108 : f32 to vector<1x64xf32>
    %236 = arith.mulf %234, %235 : vector<1x64xf32>
    %237 = arith.mulf %231, %231 : vector<1x64xf32>
    %238 = arith.subf %236, %237 : vector<1x64xf32>
    %cst_109 = arith.constant 9.99999974E-6 : f32
    %239 = vector.broadcast %cst_109 : f32 to vector<1x64xf32>
    %240 = arith.addf %238, %239 : vector<1x64xf32>
    %241 = math.rsqrt %240 : vector<1x64xf32>
    %c17 = arith.constant 17 : index
    %c0_110 = arith.constant 0 : index
    %242 = vector.load %arg4[%c17, %c0_110] : memref<68x128xf32, #tpu.memory_space<vmem>>, vector<1x64xf32>
    %243 = arith.mulf %241, %242 : vector<1x64xf32>
    %c18 = arith.constant 18 : index
    %c0_111 = arith.constant 0 : index
    %244 = vector.load %arg4[%c18, %c0_111] : memref<68x128xf32, #tpu.memory_space<vmem>>, vector<1x64xf32>
    %245 = arith.mulf %231, %243 : vector<1x64xf32>
    %246 = arith.subf %244, %245 : vector<1x64xf32>
    %247 = vector.broadcast %243 : vector<1x64xf32> to vector<64x64xf32>
    %248 = arith.mulf %227, %247 : vector<64x64xf32>
    %249 = vector.broadcast %246 : vector<1x64xf32> to vector<64x64xf32>
    %250 = arith.addf %248, %249 : vector<64x64xf32>
    %251 = tpu.concatenate %174, %212, %250 in 1 : vector<64x64xf32>, vector<64x64xf32>, vector<64x64xf32> -> vector<64x192xf32>
    %cst_112 = arith.constant dense<0xFF800000> : vector<64xf32>
    %252 = vector.multi_reduction <maximumf>, %136, %cst_112 [1] : vector<64x8xf32> to vector<64xf32>
    %253 = vector.shape_cast %252 : vector<64xf32> to vector<64x1xf32>
    %254 = vector.broadcast %253 : vector<64x1xf32> to vector<64x8xf32>
    %255 = arith.subf %136, %254 : vector<64x8xf32>
    %256 = math.exp %255 : vector<64x8xf32>
    %cst_113 = arith.constant dense<0.000000e+00> : vector<64xf32>
    %257 = vector.multi_reduction <add>, %256, %cst_113 [1] : vector<64x8xf32> to vector<64xf32>
    %258 = vector.shape_cast %257 : vector<64xf32> to vector<64x1xf32>
    %259 = tpu.reciprocal %258 {approx = true} : vector<64x1xf32> -> vector<64x1xf32>
    %260 = vector.broadcast %259 : vector<64x1xf32> to vector<64x8xf32>
    %261 = arith.mulf %256, %260 : vector<64x8xf32>
    %262 = vector.broadcast %1 : vector<64x1xf32> to vector<64x192xf32>
    %263 = arith.mulf %251, %262 : vector<64x192xf32>
    %264 = vector.broadcast %1 : vector<64x1xf32> to vector<64x8xf32>
    %265 = arith.mulf %261, %264 : vector<64x8xf32>
    %266 = tpu.concatenate %265, %265 in 1 : vector<64x8xf32>, vector<64x8xf32> -> vector<64x16xf32>
    %c0_i32 = arith.constant 0 : i32
    %267 = vector.broadcast %c0_i32 : i32 to vector<32x1xi32>
    %c1_i32 = arith.constant 1 : i32
    %268 = vector.broadcast %c1_i32 : i32 to vector<32x1xi32>
    %269 = tpu.concatenate %267, %268 in 0 : vector<32x1xi32>, vector<32x1xi32> -> vector<64x1xi32>
    %c0_i32_114 = arith.constant 0 : i32
    %270 = vector.broadcast %c0_i32_114 : i32 to vector<1x8xi32>
    %c1_i32_115 = arith.constant 1 : i32
    %271 = vector.broadcast %c1_i32_115 : i32 to vector<1x8xi32>
    %272 = tpu.concatenate %270, %271 in 1 : vector<1x8xi32>, vector<1x8xi32> -> vector<1x16xi32>
    %273 = vector.broadcast %269 : vector<64x1xi32> to vector<64x16xi32>
    %274 = vector.broadcast %272 : vector<1x16xi32> to vector<64x16xi32>
    %275 = arith.cmpi eq, %273, %274 : vector<64x16xi32>
    %cst_116 = arith.constant 0.000000e+00 : f32
    %276 = vector.broadcast %cst_116 : f32 to vector<64x16xf32>
    %277 = arith.select %275, %266, %276 : vector<64x16xi1>, vector<64x16xf32>
    %278 = tpu.transpose %277, [1, 0] : vector<64x16xf32> -> vector<16x64xf32>
    %cst_117 = arith.constant dense<0.000000e+00> : vector<16x192xf32>
    %279 = tpu.matmul %278, %263, %cst_117 {dimension_numbers = #tpu.dot_dimension_numbers<[1], [0], [0], [1], [0, 0, 1, 1], [], []>} : vector<16x64xf32>, vector<64x192xf32>, vector<16x192xf32> -> vector<16x192xf32>
    %cst_118 = arith.constant dense<0.000000e+00> : vector<16x64xf32>
    %280 = tpu.matmul %278, %9, %cst_118 {dimension_numbers = #tpu.dot_dimension_numbers<[1], [0], [0], [1], [0, 0, 1, 1], [], []>} : vector<16x64xf32>, vector<64x64xf32>, vector<16x64xf32> -> vector<16x64xf32>
    %cst_119 = arith.constant dense<0.000000e+00> : vector<16x16xf32>
    %281 = tpu.matmul %280, %277, %cst_119 {dimension_numbers = #tpu.dot_dimension_numbers<[1], [0], [0], [1], [0, 0, 1, 1], [], []>} : vector<16x64xf32>, vector<64x16xf32>, vector<16x16xf32> -> vector<16x16xf32>
    %282 = arith.mulf %9, %9 : vector<64x64xf32>
    %cst_120 = arith.constant dense<0.000000e+00> : vector<64xf32>
    %283 = vector.multi_reduction <add>, %282, %cst_120 [1] : vector<64x64xf32> to vector<64xf32>
    %284 = vector.shape_cast %283 : vector<64xf32> to vector<64x1xf32>
    %cst_121 = arith.constant dense<0.000000e+00> : vector<1xf32>
    %285 = vector.multi_reduction <add>, %284, %cst_121 [0] : vector<64x1xf32> to vector<1xf32>
    %286 = vector.shape_cast %285 : vector<1xf32> to vector<1x1xf32>
    %287 = tpu.iota {dimensions = array<i32: 0>} : vector<16x16xi32>
    %288 = tpu.iota {dimensions = array<i32: 1>} : vector<16x16xi32>
    %289 = arith.cmpi eq, %287, %288 : vector<16x16xi32>
    %cst_122 = arith.constant 0.000000e+00 : f32
    %290 = vector.broadcast %cst_122 : f32 to vector<16x16xf32>
    %291 = arith.select %289, %281, %290 : vector<16x16xi1>, vector<16x16xf32>
    %cst_123 = arith.constant dense<0.000000e+00> : vector<16xf32>
    %292 = vector.multi_reduction <add>, %291, %cst_123 [1] : vector<16x16xf32> to vector<16xf32>
    %293 = vector.shape_cast %292 : vector<16xf32> to vector<16x1xf32>
    %cst_124 = arith.constant dense<0.000000e+00> : vector<1xf32>
    %294 = vector.multi_reduction <add>, %293, %cst_124 [0] : vector<16x1xf32> to vector<1xf32>
    %295 = vector.shape_cast %294 : vector<1xf32> to vector<1x1xf32>
    %cst_125 = arith.constant dense<0.000000e+00> : vector<16x16xf32>
    %296 = tpu.matmul %278, %277, %cst_125 {dimension_numbers = #tpu.dot_dimension_numbers<[1], [0], [0], [1], [0, 0, 1, 1], [], []>} : vector<16x64xf32>, vector<64x16xf32>, vector<16x16xf32> -> vector<16x16xf32>
    %cst_126 = arith.constant 2.000000e+00 : f32
    %297 = vector.broadcast %cst_126 : f32 to vector<1x1xf32>
    %298 = arith.mulf %297, %295 : vector<1x1xf32>
    %299 = arith.subf %286, %298 : vector<1x1xf32>
    %300 = arith.mulf %296, %296 : vector<16x16xf32>
    %cst_127 = arith.constant dense<0.000000e+00> : vector<16xf32>
    %301 = vector.multi_reduction <add>, %300, %cst_127 [1] : vector<16x16xf32> to vector<16xf32>
    %302 = vector.shape_cast %301 : vector<16xf32> to vector<16x1xf32>
    %cst_128 = arith.constant dense<0.000000e+00> : vector<1xf32>
    %303 = vector.multi_reduction <add>, %302, %cst_128 [0] : vector<16x1xf32> to vector<1xf32>
    %304 = vector.shape_cast %303 : vector<1xf32> to vector<1x1xf32>
    %305 = arith.addf %299, %304 : vector<1x1xf32>
    %cst_129 = arith.constant 0.000000e+00 : f32
    %306 = vector.broadcast %cst_129 : f32 to vector<1x1xf32>
    %307 = arith.maximumf %305, %306 : vector<1x1xf32>
    %308 = math.sqrt %307 : vector<1x1xf32>
    %cst_130 = arith.constant 4.8828125E-4 : f32
    %309 = vector.broadcast %cst_130 : f32 to vector<1x1xf32>
    %310 = arith.mulf %308, %309 : vector<1x1xf32>
    %cst_131 = arith.constant 0.000000e+00 : f32
    %311 = vector.broadcast %cst_131 : f32 to vector<64x8xf32>
    %312 = arith.subf %311, %265 : vector<64x8xf32>
    %cst_132 = arith.constant 1.000000e-15 : f32
    %313 = vector.broadcast %cst_132 : f32 to vector<64x8xf32>
    %314 = arith.addf %265, %313 : vector<64x8xf32>
    %315 = math.log %314 : vector<64x8xf32>
    %316 = arith.mulf %312, %315 : vector<64x8xf32>
    %cst_133 = arith.constant dense<0.000000e+00> : vector<64xf32>
    %317 = vector.multi_reduction <add>, %316, %cst_133 [1] : vector<64x8xf32> to vector<64xf32>
    %318 = vector.shape_cast %317 : vector<64xf32> to vector<64x1xf32>
    %cst_134 = arith.constant dense<0.000000e+00> : vector<1xf32>
    %319 = vector.multi_reduction <add>, %318, %cst_134 [0] : vector<64x1xf32> to vector<1xf32>
    %320 = vector.shape_cast %319 : vector<1xf32> to vector<1x1xf32>
    %cst_135 = arith.constant 1.562500e-02 : f32
    %321 = vector.broadcast %cst_135 : f32 to vector<1x1xf32>
    %322 = arith.mulf %320, %321 : vector<1x1xf32>
    %cst_136 = arith.constant dense<0.000000e+00> : vector<16xf32>
    %323 = vector.multi_reduction <add>, %281, %cst_136 [1] : vector<16x16xf32> to vector<16xf32>
    %324 = vector.shape_cast %323 : vector<16xf32> to vector<16x1xf32>
    %cst_137 = arith.constant 1.000000e+00 : f32
    %325 = vector.broadcast %cst_137 : f32 to vector<16x1xf32>
    %326 = arith.maximumf %324, %325 : vector<16x1xf32>
    %327 = tpu.reciprocal %326 {approx = true} : vector<16x1xf32> -> vector<16x1xf32>
    %cst_138 = arith.constant dense<0.000000e+00> : vector<16x192xf32>
    %328 = tpu.matmul %281, %279, %cst_138 {dimension_numbers = #tpu.dot_dimension_numbers<[1], [0], [0], [1], [0, 0, 1, 1], [], []>} : vector<16x16xf32>, vector<16x192xf32>, vector<16x192xf32> -> vector<16x192xf32>
    %329 = vector.broadcast %327 : vector<16x1xf32> to vector<16x192xf32>
    %330 = arith.mulf %328, %329 : vector<16x192xf32>
    %c0_139 = arith.constant 0 : index
    %c0_140 = arith.constant 0 : index
    %331 = vector.load %arg12[%c0_139, %c0_140] : memref<384x64xf32, #tpu.memory_space<vmem>>, vector<192x64xf32>
    %cst_141 = arith.constant dense<0.000000e+00> : vector<16x64xf32>
    %332 = tpu.matmul %330, %331, %cst_141 {dimension_numbers = #tpu.dot_dimension_numbers<[1], [0], [0], [1], [0, 0, 1, 1], [], []>} : vector<16x192xf32>, vector<192x64xf32>, vector<16x64xf32> -> vector<16x64xf32>
    %c192 = arith.constant 192 : index
    %c0_142 = arith.constant 0 : index
    %333 = vector.load %arg12[%c192, %c0_142] : memref<384x64xf32, #tpu.memory_space<vmem>>, vector<192x64xf32>
    %cst_143 = arith.constant dense<0.000000e+00> : vector<16x64xf32>
    %334 = tpu.matmul %279, %333, %cst_143 {dimension_numbers = #tpu.dot_dimension_numbers<[1], [0], [0], [1], [0, 0, 1, 1], [], []>} : vector<16x192xf32>, vector<192x64xf32>, vector<16x64xf32> -> vector<16x64xf32>
    %335 = arith.addf %332, %334 : vector<16x64xf32>
    %c19 = arith.constant 19 : index
    %c0_144 = arith.constant 0 : index
    %336 = vector.load %arg4[%c19, %c0_144] : memref<68x128xf32, #tpu.memory_space<vmem>>, vector<1x64xf32>
    %337 = vector.broadcast %336 : vector<1x64xf32> to vector<16x64xf32>
    %338 = arith.addf %335, %337 : vector<16x64xf32>
    %cst_145 = arith.constant 0.000000e+00 : f32
    %339 = vector.broadcast %cst_145 : f32 to vector<16x64xf32>
    %340 = arith.maximumf %338, %339 : vector<16x64xf32>
    %cst_146 = arith.constant dense<0.000000e+00> : vector<64xf32>
    %341 = vector.multi_reduction <add>, %340, %cst_146 [0] : vector<16x64xf32> to vector<64xf32>
    %342 = vector.shape_cast %341 : vector<64xf32> to vector<1x64xf32>
    %cst_147 = arith.constant 6.250000e-02 : f32
    %343 = vector.broadcast %cst_147 : f32 to vector<1x64xf32>
    %344 = arith.mulf %342, %343 : vector<1x64xf32>
    %345 = arith.mulf %340, %340 : vector<16x64xf32>
    %cst_148 = arith.constant dense<0.000000e+00> : vector<64xf32>
    %346 = vector.multi_reduction <add>, %345, %cst_148 [0] : vector<16x64xf32> to vector<64xf32>
    %347 = vector.shape_cast %346 : vector<64xf32> to vector<1x64xf32>
    %cst_149 = arith.constant 6.250000e-02 : f32
    %348 = vector.broadcast %cst_149 : f32 to vector<1x64xf32>
    %349 = arith.mulf %347, %348 : vector<1x64xf32>
    %350 = arith.mulf %344, %344 : vector<1x64xf32>
    %351 = arith.subf %349, %350 : vector<1x64xf32>
    %cst_150 = arith.constant 9.99999974E-6 : f32
    %352 = vector.broadcast %cst_150 : f32 to vector<1x64xf32>
    %353 = arith.addf %351, %352 : vector<1x64xf32>
    %354 = math.rsqrt %353 : vector<1x64xf32>
    %c20 = arith.constant 20 : index
    %c0_151 = arith.constant 0 : index
    %355 = vector.load %arg4[%c20, %c0_151] : memref<68x128xf32, #tpu.memory_space<vmem>>, vector<1x64xf32>
    %356 = arith.mulf %354, %355 : vector<1x64xf32>
    %c21 = arith.constant 21 : index
    %c0_152 = arith.constant 0 : index
    %357 = vector.load %arg4[%c21, %c0_152] : memref<68x128xf32, #tpu.memory_space<vmem>>, vector<1x64xf32>
    %358 = arith.mulf %344, %356 : vector<1x64xf32>
    %359 = arith.subf %357, %358 : vector<1x64xf32>
    %360 = vector.broadcast %356 : vector<1x64xf32> to vector<16x64xf32>
    %361 = arith.mulf %340, %360 : vector<16x64xf32>
    %362 = vector.broadcast %359 : vector<1x64xf32> to vector<16x64xf32>
    %363 = arith.addf %361, %362 : vector<16x64xf32>
    %cst_153 = arith.constant dense<0.000000e+00> : vector<16x64xf32>
    %364 = tpu.matmul %281, %363, %cst_153 {dimension_numbers = #tpu.dot_dimension_numbers<[1], [0], [0], [1], [0, 0, 1, 1], [], []>} : vector<16x16xf32>, vector<16x64xf32>, vector<16x64xf32> -> vector<16x64xf32>
    %365 = vector.broadcast %327 : vector<16x1xf32> to vector<16x64xf32>
    %366 = arith.mulf %364, %365 : vector<16x64xf32>
    %c0_154 = arith.constant 0 : index
    %c0_155 = arith.constant 0 : index
    %367 = vector.load %arg13[%c0_154, %c0_155] : memref<128x64xf32, #tpu.memory_space<vmem>>, vector<64x64xf32>
    %cst_156 = arith.constant dense<0.000000e+00> : vector<16x64xf32>
    %368 = tpu.matmul %366, %367, %cst_156 {dimension_numbers = #tpu.dot_dimension_numbers<[1], [0], [0], [1], [0, 0, 1, 1], [], []>} : vector<16x64xf32>, vector<64x64xf32>, vector<16x64xf32> -> vector<16x64xf32>
    %c64_157 = arith.constant 64 : index
    %c0_158 = arith.constant 0 : index
    %369 = vector.load %arg13[%c64_157, %c0_158] : memref<128x64xf32, #tpu.memory_space<vmem>>, vector<64x64xf32>
    %cst_159 = arith.constant dense<0.000000e+00> : vector<16x64xf32>
    %370 = tpu.matmul %363, %369, %cst_159 {dimension_numbers = #tpu.dot_dimension_numbers<[1], [0], [0], [1], [0, 0, 1, 1], [], []>} : vector<16x64xf32>, vector<64x64xf32>, vector<16x64xf32> -> vector<16x64xf32>
    %371 = arith.addf %368, %370 : vector<16x64xf32>
    %c22 = arith.constant 22 : index
    %c0_160 = arith.constant 0 : index
    %372 = vector.load %arg4[%c22, %c0_160] : memref<68x128xf32, #tpu.memory_space<vmem>>, vector<1x64xf32>
    %373 = vector.broadcast %372 : vector<1x64xf32> to vector<16x64xf32>
    %374 = arith.addf %371, %373 : vector<16x64xf32>
    %cst_161 = arith.constant 0.000000e+00 : f32
    %375 = vector.broadcast %cst_161 : f32 to vector<16x64xf32>
    %376 = arith.maximumf %374, %375 : vector<16x64xf32>
    %cst_162 = arith.constant dense<0.000000e+00> : vector<64xf32>
    %377 = vector.multi_reduction <add>, %376, %cst_162 [0] : vector<16x64xf32> to vector<64xf32>
    %378 = vector.shape_cast %377 : vector<64xf32> to vector<1x64xf32>
    %cst_163 = arith.constant 6.250000e-02 : f32
    %379 = vector.broadcast %cst_163 : f32 to vector<1x64xf32>
    %380 = arith.mulf %378, %379 : vector<1x64xf32>
    %381 = arith.mulf %376, %376 : vector<16x64xf32>
    %cst_164 = arith.constant dense<0.000000e+00> : vector<64xf32>
    %382 = vector.multi_reduction <add>, %381, %cst_164 [0] : vector<16x64xf32> to vector<64xf32>
    %383 = vector.shape_cast %382 : vector<64xf32> to vector<1x64xf32>
    %cst_165 = arith.constant 6.250000e-02 : f32
    %384 = vector.broadcast %cst_165 : f32 to vector<1x64xf32>
    %385 = arith.mulf %383, %384 : vector<1x64xf32>
    %386 = arith.mulf %380, %380 : vector<1x64xf32>
    %387 = arith.subf %385, %386 : vector<1x64xf32>
    %cst_166 = arith.constant 9.99999974E-6 : f32
    %388 = vector.broadcast %cst_166 : f32 to vector<1x64xf32>
    %389 = arith.addf %387, %388 : vector<1x64xf32>
    %390 = math.rsqrt %389 : vector<1x64xf32>
    %c23 = arith.constant 23 : index
    %c0_167 = arith.constant 0 : index
    %391 = vector.load %arg4[%c23, %c0_167] : memref<68x128xf32, #tpu.memory_space<vmem>>, vector<1x64xf32>
    %392 = arith.mulf %390, %391 : vector<1x64xf32>
    %c24 = arith.constant 24 : index
    %c0_168 = arith.constant 0 : index
    %393 = vector.load %arg4[%c24, %c0_168] : memref<68x128xf32, #tpu.memory_space<vmem>>, vector<1x64xf32>
    %394 = arith.mulf %380, %392 : vector<1x64xf32>
    %395 = arith.subf %393, %394 : vector<1x64xf32>
    %396 = vector.broadcast %392 : vector<1x64xf32> to vector<16x64xf32>
    %397 = arith.mulf %376, %396 : vector<16x64xf32>
    %398 = vector.broadcast %395 : vector<1x64xf32> to vector<16x64xf32>
    %399 = arith.addf %397, %398 : vector<16x64xf32>
    %cst_169 = arith.constant dense<0.000000e+00> : vector<16x64xf32>
    %400 = tpu.matmul %281, %399, %cst_169 {dimension_numbers = #tpu.dot_dimension_numbers<[1], [0], [0], [1], [0, 0, 1, 1], [], []>} : vector<16x16xf32>, vector<16x64xf32>, vector<16x64xf32> -> vector<16x64xf32>
    %401 = vector.broadcast %327 : vector<16x1xf32> to vector<16x64xf32>
    %402 = arith.mulf %400, %401 : vector<16x64xf32>
    %c0_170 = arith.constant 0 : index
    %c0_171 = arith.constant 0 : index
    %403 = vector.load %arg14[%c0_170, %c0_171] : memref<128x2xf32, #tpu.memory_space<vmem>>, vector<64x2xf32>
    %cst_172 = arith.constant dense<0.000000e+00> : vector<16x2xf32>
    %404 = tpu.matmul %402, %403, %cst_172 {dimension_numbers = #tpu.dot_dimension_numbers<[1], [0], [0], [1], [0, 0, 1, 1], [], []>} : vector<16x64xf32>, vector<64x2xf32>, vector<16x2xf32> -> vector<16x2xf32>
    %c64_173 = arith.constant 64 : index
    %c0_174 = arith.constant 0 : index
    %405 = vector.load %arg14[%c64_173, %c0_174] : memref<128x2xf32, #tpu.memory_space<vmem>>, vector<64x2xf32>
    %cst_175 = arith.constant dense<0.000000e+00> : vector<16x2xf32>
    %406 = tpu.matmul %399, %405, %cst_175 {dimension_numbers = #tpu.dot_dimension_numbers<[1], [0], [0], [1], [0, 0, 1, 1], [], []>} : vector<16x64xf32>, vector<64x2xf32>, vector<16x2xf32> -> vector<16x2xf32>
    %407 = arith.addf %404, %406 : vector<16x2xf32>
    %c25 = arith.constant 25 : index
    %c0_176 = arith.constant 0 : index
    %408 = vector.load %arg4[%c25, %c0_176] : memref<68x128xf32, #tpu.memory_space<vmem>>, vector<1x2xf32>
    %409 = vector.broadcast %408 : vector<1x2xf32> to vector<16x2xf32>
    %410 = arith.addf %407, %409 : vector<16x2xf32>
    %cst_177 = arith.constant 0.000000e+00 : f32
    %411 = vector.broadcast %cst_177 : f32 to vector<16x2xf32>
    %412 = arith.maximumf %410, %411 : vector<16x2xf32>
    %cst_178 = arith.constant dense<0.000000e+00> : vector<2xf32>
    %413 = vector.multi_reduction <add>, %412, %cst_178 [0] : vector<16x2xf32> to vector<2xf32>
    %414 = vector.shape_cast %413 : vector<2xf32> to vector<1x2xf32>
    %cst_179 = arith.constant 6.250000e-02 : f32
    %415 = vector.broadcast %cst_179 : f32 to vector<1x2xf32>
    %416 = arith.mulf %414, %415 : vector<1x2xf32>
    %417 = arith.mulf %412, %412 : vector<16x2xf32>
    %cst_180 = arith.constant dense<0.000000e+00> : vector<2xf32>
    %418 = vector.multi_reduction <add>, %417, %cst_180 [0] : vector<16x2xf32> to vector<2xf32>
    %419 = vector.shape_cast %418 : vector<2xf32> to vector<1x2xf32>
    %cst_181 = arith.constant 6.250000e-02 : f32
    %420 = vector.broadcast %cst_181 : f32 to vector<1x2xf32>
    %421 = arith.mulf %419, %420 : vector<1x2xf32>
    %422 = arith.mulf %416, %416 : vector<1x2xf32>
    %423 = arith.subf %421, %422 : vector<1x2xf32>
    %cst_182 = arith.constant 9.99999974E-6 : f32
    %424 = vector.broadcast %cst_182 : f32 to vector<1x2xf32>
    %425 = arith.addf %423, %424 : vector<1x2xf32>
    %426 = math.rsqrt %425 : vector<1x2xf32>
    %c26 = arith.constant 26 : index
    %c0_183 = arith.constant 0 : index
    %427 = vector.load %arg4[%c26, %c0_183] : memref<68x128xf32, #tpu.memory_space<vmem>>, vector<1x2xf32>
    %428 = arith.mulf %426, %427 : vector<1x2xf32>
    %c27 = arith.constant 27 : index
    %c0_184 = arith.constant 0 : index
    %429 = vector.load %arg4[%c27, %c0_184] : memref<68x128xf32, #tpu.memory_space<vmem>>, vector<1x2xf32>
    %430 = arith.mulf %416, %428 : vector<1x2xf32>
    %431 = arith.subf %429, %430 : vector<1x2xf32>
    %432 = vector.broadcast %428 : vector<1x2xf32> to vector<16x2xf32>
    %433 = arith.mulf %412, %432 : vector<16x2xf32>
    %434 = vector.broadcast %431 : vector<1x2xf32> to vector<16x2xf32>
    %435 = arith.addf %433, %434 : vector<16x2xf32>
    %436 = tpu.concatenate %363, %399, %435 in 1 : vector<16x64xf32>, vector<16x64xf32>, vector<16x2xf32> -> vector<16x130xf32>
    %c0_185 = arith.constant 0 : index
    %c0_186 = arith.constant 0 : index
    %437 = vector.load %arg15[%c0_185, %c0_186] : memref<130x2xf32, #tpu.memory_space<vmem>>, vector<130x2xf32>
    %cst_187 = arith.constant dense<0.000000e+00> : vector<16x2xf32>
    %438 = tpu.matmul %436, %437, %cst_187 {dimension_numbers = #tpu.dot_dimension_numbers<[1], [0], [0], [1], [0, 0, 1, 1], [], []>} : vector<16x130xf32>, vector<130x2xf32>, vector<16x2xf32> -> vector<16x2xf32>
    %c28 = arith.constant 28 : index
    %c0_188 = arith.constant 0 : index
    %439 = vector.load %arg4[%c28, %c0_188] : memref<68x128xf32, #tpu.memory_space<vmem>>, vector<1x2xf32>
    %440 = vector.broadcast %439 : vector<1x2xf32> to vector<16x2xf32>
    %441 = arith.addf %438, %440 : vector<16x2xf32>
    %cst_189 = arith.constant 0.000000e+00 : f32
    %442 = vector.broadcast %cst_189 : f32 to vector<16x2xf32>
    %443 = arith.maximumf %441, %442 : vector<16x2xf32>
    %cst_190 = arith.constant dense<0.000000e+00> : vector<16x192xf32>
    %444 = tpu.matmul %281, %279, %cst_190 {dimension_numbers = #tpu.dot_dimension_numbers<[1], [0], [0], [1], [0, 0, 1, 1], [], []>} : vector<16x16xf32>, vector<16x192xf32>, vector<16x192xf32> -> vector<16x192xf32>
    %445 = vector.broadcast %327 : vector<16x1xf32> to vector<16x192xf32>
    %446 = arith.mulf %444, %445 : vector<16x192xf32>
    %c0_191 = arith.constant 0 : index
    %c0_192 = arith.constant 0 : index
    %447 = vector.load %arg16[%c0_191, %c0_192] : memref<384x64xf32, #tpu.memory_space<vmem>>, vector<192x64xf32>
    %cst_193 = arith.constant dense<0.000000e+00> : vector<16x64xf32>
    %448 = tpu.matmul %446, %447, %cst_193 {dimension_numbers = #tpu.dot_dimension_numbers<[1], [0], [0], [1], [0, 0, 1, 1], [], []>} : vector<16x192xf32>, vector<192x64xf32>, vector<16x64xf32> -> vector<16x64xf32>
    %c192_194 = arith.constant 192 : index
    %c0_195 = arith.constant 0 : index
    %449 = vector.load %arg16[%c192_194, %c0_195] : memref<384x64xf32, #tpu.memory_space<vmem>>, vector<192x64xf32>
    %cst_196 = arith.constant dense<0.000000e+00> : vector<16x64xf32>
    %450 = tpu.matmul %279, %449, %cst_196 {dimension_numbers = #tpu.dot_dimension_numbers<[1], [0], [0], [1], [0, 0, 1, 1], [], []>} : vector<16x192xf32>, vector<192x64xf32>, vector<16x64xf32> -> vector<16x64xf32>
    %451 = arith.addf %448, %450 : vector<16x64xf32>
    %c29 = arith.constant 29 : index
    %c0_197 = arith.constant 0 : index
    %452 = vector.load %arg4[%c29, %c0_197] : memref<68x128xf32, #tpu.memory_space<vmem>>, vector<1x64xf32>
    %453 = vector.broadcast %452 : vector<1x64xf32> to vector<16x64xf32>
    %454 = arith.addf %451, %453 : vector<16x64xf32>
    %cst_198 = arith.constant 0.000000e+00 : f32
    %455 = vector.broadcast %cst_198 : f32 to vector<16x64xf32>
    %456 = arith.maximumf %454, %455 : vector<16x64xf32>
    %cst_199 = arith.constant dense<0.000000e+00> : vector<64xf32>
    %457 = vector.multi_reduction <add>, %456, %cst_199 [0] : vector<16x64xf32> to vector<64xf32>
    %458 = vector.shape_cast %457 : vector<64xf32> to vector<1x64xf32>
    %cst_200 = arith.constant 6.250000e-02 : f32
    %459 = vector.broadcast %cst_200 : f32 to vector<1x64xf32>
    %460 = arith.mulf %458, %459 : vector<1x64xf32>
    %461 = arith.mulf %456, %456 : vector<16x64xf32>
    %cst_201 = arith.constant dense<0.000000e+00> : vector<64xf32>
    %462 = vector.multi_reduction <add>, %461, %cst_201 [0] : vector<16x64xf32> to vector<64xf32>
    %463 = vector.shape_cast %462 : vector<64xf32> to vector<1x64xf32>
    %cst_202 = arith.constant 6.250000e-02 : f32
    %464 = vector.broadcast %cst_202 : f32 to vector<1x64xf32>
    %465 = arith.mulf %463, %464 : vector<1x64xf32>
    %466 = arith.mulf %460, %460 : vector<1x64xf32>
    %467 = arith.subf %465, %466 : vector<1x64xf32>
    %cst_203 = arith.constant 9.99999974E-6 : f32
    %468 = vector.broadcast %cst_203 : f32 to vector<1x64xf32>
    %469 = arith.addf %467, %468 : vector<1x64xf32>
    %470 = math.rsqrt %469 : vector<1x64xf32>
    %c30 = arith.constant 30 : index
    %c0_204 = arith.constant 0 : index
    %471 = vector.load %arg4[%c30, %c0_204] : memref<68x128xf32, #tpu.memory_space<vmem>>, vector<1x64xf32>
    %472 = arith.mulf %470, %471 : vector<1x64xf32>
    %c31 = arith.constant 31 : index
    %c0_205 = arith.constant 0 : index
    %473 = vector.load %arg4[%c31, %c0_205] : memref<68x128xf32, #tpu.memory_space<vmem>>, vector<1x64xf32>
    %474 = arith.mulf %460, %472 : vector<1x64xf32>
    %475 = arith.subf %473, %474 : vector<1x64xf32>
    %476 = vector.broadcast %472 : vector<1x64xf32> to vector<16x64xf32>
    %477 = arith.mulf %456, %476 : vector<16x64xf32>
    %478 = vector.broadcast %475 : vector<1x64xf32> to vector<16x64xf32>
    %479 = arith.addf %477, %478 : vector<16x64xf32>
    %cst_206 = arith.constant dense<0.000000e+00> : vector<16x64xf32>
    %480 = tpu.matmul %281, %479, %cst_206 {dimension_numbers = #tpu.dot_dimension_numbers<[1], [0], [0], [1], [0, 0, 1, 1], [], []>} : vector<16x16xf32>, vector<16x64xf32>, vector<16x64xf32> -> vector<16x64xf32>
    %481 = vector.broadcast %327 : vector<16x1xf32> to vector<16x64xf32>
    %482 = arith.mulf %480, %481 : vector<16x64xf32>
    %c0_207 = arith.constant 0 : index
    %c0_208 = arith.constant 0 : index
    %483 = vector.load %arg17[%c0_207, %c0_208] : memref<128x64xf32, #tpu.memory_space<vmem>>, vector<64x64xf32>
    %cst_209 = arith.constant dense<0.000000e+00> : vector<16x64xf32>
    %484 = tpu.matmul %482, %483, %cst_209 {dimension_numbers = #tpu.dot_dimension_numbers<[1], [0], [0], [1], [0, 0, 1, 1], [], []>} : vector<16x64xf32>, vector<64x64xf32>, vector<16x64xf32> -> vector<16x64xf32>
    %c64_210 = arith.constant 64 : index
    %c0_211 = arith.constant 0 : index
    %485 = vector.load %arg17[%c64_210, %c0_211] : memref<128x64xf32, #tpu.memory_space<vmem>>, vector<64x64xf32>
    %cst_212 = arith.constant dense<0.000000e+00> : vector<16x64xf32>
    %486 = tpu.matmul %479, %485, %cst_212 {dimension_numbers = #tpu.dot_dimension_numbers<[1], [0], [0], [1], [0, 0, 1, 1], [], []>} : vector<16x64xf32>, vector<64x64xf32>, vector<16x64xf32> -> vector<16x64xf32>
    %487 = arith.addf %484, %486 : vector<16x64xf32>
    %c32 = arith.constant 32 : index
    %c0_213 = arith.constant 0 : index
    %488 = vector.load %arg4[%c32, %c0_213] : memref<68x128xf32, #tpu.memory_space<vmem>>, vector<1x64xf32>
    %489 = vector.broadcast %488 : vector<1x64xf32> to vector<16x64xf32>
    %490 = arith.addf %487, %489 : vector<16x64xf32>
    %cst_214 = arith.constant 0.000000e+00 : f32
    %491 = vector.broadcast %cst_214 : f32 to vector<16x64xf32>
    %492 = arith.maximumf %490, %491 : vector<16x64xf32>
    %cst_215 = arith.constant dense<0.000000e+00> : vector<64xf32>
    %493 = vector.multi_reduction <add>, %492, %cst_215 [0] : vector<16x64xf32> to vector<64xf32>
    %494 = vector.shape_cast %493 : vector<64xf32> to vector<1x64xf32>
    %cst_216 = arith.constant 6.250000e-02 : f32
    %495 = vector.broadcast %cst_216 : f32 to vector<1x64xf32>
    %496 = arith.mulf %494, %495 : vector<1x64xf32>
    %497 = arith.mulf %492, %492 : vector<16x64xf32>
    %cst_217 = arith.constant dense<0.000000e+00> : vector<64xf32>
    %498 = vector.multi_reduction <add>, %497, %cst_217 [0] : vector<16x64xf32> to vector<64xf32>
    %499 = vector.shape_cast %498 : vector<64xf32> to vector<1x64xf32>
    %cst_218 = arith.constant 6.250000e-02 : f32
    %500 = vector.broadcast %cst_218 : f32 to vector<1x64xf32>
    %501 = arith.mulf %499, %500 : vector<1x64xf32>
    %502 = arith.mulf %496, %496 : vector<1x64xf32>
    %503 = arith.subf %501, %502 : vector<1x64xf32>
    %cst_219 = arith.constant 9.99999974E-6 : f32
    %504 = vector.broadcast %cst_219 : f32 to vector<1x64xf32>
    %505 = arith.addf %503, %504 : vector<1x64xf32>
    %506 = math.rsqrt %505 : vector<1x64xf32>
    %c33 = arith.constant 33 : index
    %c0_220 = arith.constant 0 : index
    %507 = vector.load %arg4[%c33, %c0_220] : memref<68x128xf32, #tpu.memory_space<vmem>>, vector<1x64xf32>
    %508 = arith.mulf %506, %507 : vector<1x64xf32>
    %c34 = arith.constant 34 : index
    %c0_221 = arith.constant 0 : index
    %509 = vector.load %arg4[%c34, %c0_221] : memref<68x128xf32, #tpu.memory_space<vmem>>, vector<1x64xf32>
    %510 = arith.mulf %496, %508 : vector<1x64xf32>
    %511 = arith.subf %509, %510 : vector<1x64xf32>
    %512 = vector.broadcast %508 : vector<1x64xf32> to vector<16x64xf32>
    %513 = arith.mulf %492, %512 : vector<16x64xf32>
    %514 = vector.broadcast %511 : vector<1x64xf32> to vector<16x64xf32>
    %515 = arith.addf %513, %514 : vector<16x64xf32>
    %cst_222 = arith.constant dense<0.000000e+00> : vector<16x64xf32>
    %516 = tpu.matmul %281, %515, %cst_222 {dimension_numbers = #tpu.dot_dimension_numbers<[1], [0], [0], [1], [0, 0, 1, 1], [], []>} : vector<16x16xf32>, vector<16x64xf32>, vector<16x64xf32> -> vector<16x64xf32>
    %517 = vector.broadcast %327 : vector<16x1xf32> to vector<16x64xf32>
    %518 = arith.mulf %516, %517 : vector<16x64xf32>
    %c0_223 = arith.constant 0 : index
    %c0_224 = arith.constant 0 : index
    %519 = vector.load %arg18[%c0_223, %c0_224] : memref<128x64xf32, #tpu.memory_space<vmem>>, vector<64x64xf32>
    %cst_225 = arith.constant dense<0.000000e+00> : vector<16x64xf32>
    %520 = tpu.matmul %518, %519, %cst_225 {dimension_numbers = #tpu.dot_dimension_numbers<[1], [0], [0], [1], [0, 0, 1, 1], [], []>} : vector<16x64xf32>, vector<64x64xf32>, vector<16x64xf32> -> vector<16x64xf32>
    %c64_226 = arith.constant 64 : index
    %c0_227 = arith.constant 0 : index
    %521 = vector.load %arg18[%c64_226, %c0_227] : memref<128x64xf32, #tpu.memory_space<vmem>>, vector<64x64xf32>
    %cst_228 = arith.constant dense<0.000000e+00> : vector<16x64xf32>
    %522 = tpu.matmul %515, %521, %cst_228 {dimension_numbers = #tpu.dot_dimension_numbers<[1], [0], [0], [1], [0, 0, 1, 1], [], []>} : vector<16x64xf32>, vector<64x64xf32>, vector<16x64xf32> -> vector<16x64xf32>
    %523 = arith.addf %520, %522 : vector<16x64xf32>
    %c35 = arith.constant 35 : index
    %c0_229 = arith.constant 0 : index
    %524 = vector.load %arg4[%c35, %c0_229] : memref<68x128xf32, #tpu.memory_space<vmem>>, vector<1x64xf32>
    %525 = vector.broadcast %524 : vector<1x64xf32> to vector<16x64xf32>
    %526 = arith.addf %523, %525 : vector<16x64xf32>
    %cst_230 = arith.constant 0.000000e+00 : f32
    %527 = vector.broadcast %cst_230 : f32 to vector<16x64xf32>
    %528 = arith.maximumf %526, %527 : vector<16x64xf32>
    %cst_231 = arith.constant dense<0.000000e+00> : vector<64xf32>
    %529 = vector.multi_reduction <add>, %528, %cst_231 [0] : vector<16x64xf32> to vector<64xf32>
    %530 = vector.shape_cast %529 : vector<64xf32> to vector<1x64xf32>
    %cst_232 = arith.constant 6.250000e-02 : f32
    %531 = vector.broadcast %cst_232 : f32 to vector<1x64xf32>
    %532 = arith.mulf %530, %531 : vector<1x64xf32>
    %533 = arith.mulf %528, %528 : vector<16x64xf32>
    %cst_233 = arith.constant dense<0.000000e+00> : vector<64xf32>
    %534 = vector.multi_reduction <add>, %533, %cst_233 [0] : vector<16x64xf32> to vector<64xf32>
    %535 = vector.shape_cast %534 : vector<64xf32> to vector<1x64xf32>
    %cst_234 = arith.constant 6.250000e-02 : f32
    %536 = vector.broadcast %cst_234 : f32 to vector<1x64xf32>
    %537 = arith.mulf %535, %536 : vector<1x64xf32>
    %538 = arith.mulf %532, %532 : vector<1x64xf32>
    %539 = arith.subf %537, %538 : vector<1x64xf32>
    %cst_235 = arith.constant 9.99999974E-6 : f32
    %540 = vector.broadcast %cst_235 : f32 to vector<1x64xf32>
    %541 = arith.addf %539, %540 : vector<1x64xf32>
    %542 = math.rsqrt %541 : vector<1x64xf32>
    %c36 = arith.constant 36 : index
    %c0_236 = arith.constant 0 : index
    %543 = vector.load %arg4[%c36, %c0_236] : memref<68x128xf32, #tpu.memory_space<vmem>>, vector<1x64xf32>
    %544 = arith.mulf %542, %543 : vector<1x64xf32>
    %c37 = arith.constant 37 : index
    %c0_237 = arith.constant 0 : index
    %545 = vector.load %arg4[%c37, %c0_237] : memref<68x128xf32, #tpu.memory_space<vmem>>, vector<1x64xf32>
    %546 = arith.mulf %532, %544 : vector<1x64xf32>
    %547 = arith.subf %545, %546 : vector<1x64xf32>
    %548 = vector.broadcast %544 : vector<1x64xf32> to vector<16x64xf32>
    %549 = arith.mulf %528, %548 : vector<16x64xf32>
    %550 = vector.broadcast %547 : vector<1x64xf32> to vector<16x64xf32>
    %551 = arith.addf %549, %550 : vector<16x64xf32>
    %552 = tpu.concatenate %479, %515, %551 in 1 : vector<16x64xf32>, vector<16x64xf32>, vector<16x64xf32> -> vector<16x192xf32>
    %cst_238 = arith.constant dense<0xFF800000> : vector<16xf32>
    %553 = vector.multi_reduction <maximumf>, %443, %cst_238 [1] : vector<16x2xf32> to vector<16xf32>
    %554 = vector.shape_cast %553 : vector<16xf32> to vector<16x1xf32>
    %555 = vector.broadcast %554 : vector<16x1xf32> to vector<16x2xf32>
    %556 = arith.subf %443, %555 : vector<16x2xf32>
    %557 = math.exp %556 : vector<16x2xf32>
    %cst_239 = arith.constant dense<0.000000e+00> : vector<16xf32>
    %558 = vector.multi_reduction <add>, %557, %cst_239 [1] : vector<16x2xf32> to vector<16xf32>
    %559 = vector.shape_cast %558 : vector<16xf32> to vector<16x1xf32>
    %560 = tpu.reciprocal %559 {approx = true} : vector<16x1xf32> -> vector<16x1xf32>
    %561 = vector.broadcast %560 : vector<16x1xf32> to vector<16x2xf32>
    %562 = arith.mulf %557, %561 : vector<16x2xf32>
    %563 = tpu.concatenate %562, %562 in 1 : vector<16x2xf32>, vector<16x2xf32> -> vector<16x4xf32>
    %c0_i32_240 = arith.constant 0 : i32
    %564 = vector.broadcast %c0_i32_240 : i32 to vector<8x1xi32>
    %c1_i32_241 = arith.constant 1 : i32
    %565 = vector.broadcast %c1_i32_241 : i32 to vector<8x1xi32>
    %566 = tpu.concatenate %564, %565 in 0 : vector<8x1xi32>, vector<8x1xi32> -> vector<16x1xi32>
    %c0_i32_242 = arith.constant 0 : i32
    %567 = vector.broadcast %c0_i32_242 : i32 to vector<1x2xi32>
    %c1_i32_243 = arith.constant 1 : i32
    %568 = vector.broadcast %c1_i32_243 : i32 to vector<1x2xi32>
    %569 = tpu.concatenate %567, %568 in 1 : vector<1x2xi32>, vector<1x2xi32> -> vector<1x4xi32>
    %570 = vector.broadcast %566 : vector<16x1xi32> to vector<16x4xi32>
    %571 = vector.broadcast %569 : vector<1x4xi32> to vector<16x4xi32>
    %572 = arith.cmpi eq, %570, %571 : vector<16x4xi32>
    %cst_244 = arith.constant 0.000000e+00 : f32
    %573 = vector.broadcast %cst_244 : f32 to vector<16x4xf32>
    %574 = arith.select %572, %563, %573 : vector<16x4xi1>, vector<16x4xf32>
    %575 = tpu.transpose %574, [1, 0] : vector<16x4xf32> -> vector<4x16xf32>
    %cst_245 = arith.constant dense<0.000000e+00> : vector<4x192xf32>
    %576 = tpu.matmul %575, %552, %cst_245 {dimension_numbers = #tpu.dot_dimension_numbers<[1], [0], [0], [1], [0, 0, 1, 1], [], []>} : vector<4x16xf32>, vector<16x192xf32>, vector<4x192xf32> -> vector<4x192xf32>
    %cst_246 = arith.constant dense<0.000000e+00> : vector<4x16xf32>
    %577 = tpu.matmul %575, %281, %cst_246 {dimension_numbers = #tpu.dot_dimension_numbers<[1], [0], [0], [1], [0, 0, 1, 1], [], []>} : vector<4x16xf32>, vector<16x16xf32>, vector<4x16xf32> -> vector<4x16xf32>
    %cst_247 = arith.constant dense<0.000000e+00> : vector<4x4xf32>
    %578 = tpu.matmul %577, %574, %cst_247 {dimension_numbers = #tpu.dot_dimension_numbers<[1], [0], [0], [1], [0, 0, 1, 1], [], []>} : vector<4x16xf32>, vector<16x4xf32>, vector<4x4xf32> -> vector<4x4xf32>
    %cst_248 = arith.constant dense<0.000000e+00> : vector<4xf32>
    %579 = vector.multi_reduction <add>, %578, %cst_248 [1] : vector<4x4xf32> to vector<4xf32>
    %580 = vector.shape_cast %579 : vector<4xf32> to vector<4x1xf32>
    %cst_249 = arith.constant 1.000000e+00 : f32
    %581 = vector.broadcast %cst_249 : f32 to vector<4x1xf32>
    %582 = arith.maximumf %580, %581 : vector<4x1xf32>
    %583 = tpu.reciprocal %582 {approx = true} : vector<4x1xf32> -> vector<4x1xf32>
    %cst_250 = arith.constant dense<0.000000e+00> : vector<4x192xf32>
    %584 = tpu.matmul %578, %576, %cst_250 {dimension_numbers = #tpu.dot_dimension_numbers<[1], [0], [0], [1], [0, 0, 1, 1], [], []>} : vector<4x4xf32>, vector<4x192xf32>, vector<4x192xf32> -> vector<4x192xf32>
    %585 = vector.broadcast %583 : vector<4x1xf32> to vector<4x192xf32>
    %586 = arith.mulf %584, %585 : vector<4x192xf32>
    %c0_251 = arith.constant 0 : index
    %c0_252 = arith.constant 0 : index
    %587 = vector.load %arg19[%c0_251, %c0_252] : memref<384x64xf32, #tpu.memory_space<vmem>>, vector<192x64xf32>
    %cst_253 = arith.constant dense<0.000000e+00> : vector<4x64xf32>
    %588 = tpu.matmul %586, %587, %cst_253 {dimension_numbers = #tpu.dot_dimension_numbers<[1], [0], [0], [1], [0, 0, 1, 1], [], []>} : vector<4x192xf32>, vector<192x64xf32>, vector<4x64xf32> -> vector<4x64xf32>
    %c192_254 = arith.constant 192 : index
    %c0_255 = arith.constant 0 : index
    %589 = vector.load %arg19[%c192_254, %c0_255] : memref<384x64xf32, #tpu.memory_space<vmem>>, vector<192x64xf32>
    %cst_256 = arith.constant dense<0.000000e+00> : vector<4x64xf32>
    %590 = tpu.matmul %576, %589, %cst_256 {dimension_numbers = #tpu.dot_dimension_numbers<[1], [0], [0], [1], [0, 0, 1, 1], [], []>} : vector<4x192xf32>, vector<192x64xf32>, vector<4x64xf32> -> vector<4x64xf32>
    %591 = arith.addf %588, %590 : vector<4x64xf32>
    %c38 = arith.constant 38 : index
    %c0_257 = arith.constant 0 : index
    %592 = vector.load %arg4[%c38, %c0_257] : memref<68x128xf32, #tpu.memory_space<vmem>>, vector<1x64xf32>
    %593 = vector.broadcast %592 : vector<1x64xf32> to vector<4x64xf32>
    %594 = arith.addf %591, %593 : vector<4x64xf32>
    %cst_258 = arith.constant 0.000000e+00 : f32
    %595 = vector.broadcast %cst_258 : f32 to vector<4x64xf32>
    %596 = arith.maximumf %594, %595 : vector<4x64xf32>
    %cst_259 = arith.constant dense<0.000000e+00> : vector<64xf32>
    %597 = vector.multi_reduction <add>, %596, %cst_259 [0] : vector<4x64xf32> to vector<64xf32>
    %598 = vector.shape_cast %597 : vector<64xf32> to vector<1x64xf32>
    %cst_260 = arith.constant 2.500000e-01 : f32
    %599 = vector.broadcast %cst_260 : f32 to vector<1x64xf32>
    %600 = arith.mulf %598, %599 : vector<1x64xf32>
    %601 = arith.mulf %596, %596 : vector<4x64xf32>
    %cst_261 = arith.constant dense<0.000000e+00> : vector<64xf32>
    %602 = vector.multi_reduction <add>, %601, %cst_261 [0] : vector<4x64xf32> to vector<64xf32>
    %603 = vector.shape_cast %602 : vector<64xf32> to vector<1x64xf32>
    %cst_262 = arith.constant 2.500000e-01 : f32
    %604 = vector.broadcast %cst_262 : f32 to vector<1x64xf32>
    %605 = arith.mulf %603, %604 : vector<1x64xf32>
    %606 = arith.mulf %600, %600 : vector<1x64xf32>
    %607 = arith.subf %605, %606 : vector<1x64xf32>
    %cst_263 = arith.constant 9.99999974E-6 : f32
    %608 = vector.broadcast %cst_263 : f32 to vector<1x64xf32>
    %609 = arith.addf %607, %608 : vector<1x64xf32>
    %610 = math.rsqrt %609 : vector<1x64xf32>
    %c39 = arith.constant 39 : index
    %c0_264 = arith.constant 0 : index
    %611 = vector.load %arg4[%c39, %c0_264] : memref<68x128xf32, #tpu.memory_space<vmem>>, vector<1x64xf32>
    %612 = arith.mulf %610, %611 : vector<1x64xf32>
    %c40 = arith.constant 40 : index
    %c0_265 = arith.constant 0 : index
    %613 = vector.load %arg4[%c40, %c0_265] : memref<68x128xf32, #tpu.memory_space<vmem>>, vector<1x64xf32>
    %614 = arith.mulf %600, %612 : vector<1x64xf32>
    %615 = arith.subf %613, %614 : vector<1x64xf32>
    %616 = vector.broadcast %612 : vector<1x64xf32> to vector<4x64xf32>
    %617 = arith.mulf %596, %616 : vector<4x64xf32>
    %618 = vector.broadcast %615 : vector<1x64xf32> to vector<4x64xf32>
    %619 = arith.addf %617, %618 : vector<4x64xf32>
    %cst_266 = arith.constant dense<0.000000e+00> : vector<4x64xf32>
    %620 = tpu.matmul %578, %619, %cst_266 {dimension_numbers = #tpu.dot_dimension_numbers<[1], [0], [0], [1], [0, 0, 1, 1], [], []>} : vector<4x4xf32>, vector<4x64xf32>, vector<4x64xf32> -> vector<4x64xf32>
    %621 = vector.broadcast %583 : vector<4x1xf32> to vector<4x64xf32>
    %622 = arith.mulf %620, %621 : vector<4x64xf32>
    %c0_267 = arith.constant 0 : index
    %c0_268 = arith.constant 0 : index
    %623 = vector.load %arg20[%c0_267, %c0_268] : memref<128x64xf32, #tpu.memory_space<vmem>>, vector<64x64xf32>
    %cst_269 = arith.constant dense<0.000000e+00> : vector<4x64xf32>
    %624 = tpu.matmul %622, %623, %cst_269 {dimension_numbers = #tpu.dot_dimension_numbers<[1], [0], [0], [1], [0, 0, 1, 1], [], []>} : vector<4x64xf32>, vector<64x64xf32>, vector<4x64xf32> -> vector<4x64xf32>
    %c64_270 = arith.constant 64 : index
    %c0_271 = arith.constant 0 : index
    %625 = vector.load %arg20[%c64_270, %c0_271] : memref<128x64xf32, #tpu.memory_space<vmem>>, vector<64x64xf32>
    %cst_272 = arith.constant dense<0.000000e+00> : vector<4x64xf32>
    %626 = tpu.matmul %619, %625, %cst_272 {dimension_numbers = #tpu.dot_dimension_numbers<[1], [0], [0], [1], [0, 0, 1, 1], [], []>} : vector<4x64xf32>, vector<64x64xf32>, vector<4x64xf32> -> vector<4x64xf32>
    %627 = arith.addf %624, %626 : vector<4x64xf32>
    %c41 = arith.constant 41 : index
    %c0_273 = arith.constant 0 : index
    %628 = vector.load %arg4[%c41, %c0_273] : memref<68x128xf32, #tpu.memory_space<vmem>>, vector<1x64xf32>
    %629 = vector.broadcast %628 : vector<1x64xf32> to vector<4x64xf32>
    %630 = arith.addf %627, %629 : vector<4x64xf32>
    %cst_274 = arith.constant 0.000000e+00 : f32
    %631 = vector.broadcast %cst_274 : f32 to vector<4x64xf32>
    %632 = arith.maximumf %630, %631 : vector<4x64xf32>
    %cst_275 = arith.constant dense<0.000000e+00> : vector<64xf32>
    %633 = vector.multi_reduction <add>, %632, %cst_275 [0] : vector<4x64xf32> to vector<64xf32>
    %634 = vector.shape_cast %633 : vector<64xf32> to vector<1x64xf32>
    %cst_276 = arith.constant 2.500000e-01 : f32
    %635 = vector.broadcast %cst_276 : f32 to vector<1x64xf32>
    %636 = arith.mulf %634, %635 : vector<1x64xf32>
    %637 = arith.mulf %632, %632 : vector<4x64xf32>
    %cst_277 = arith.constant dense<0.000000e+00> : vector<64xf32>
    %638 = vector.multi_reduction <add>, %637, %cst_277 [0] : vector<4x64xf32> to vector<64xf32>
    %639 = vector.shape_cast %638 : vector<64xf32> to vector<1x64xf32>
    %cst_278 = arith.constant 2.500000e-01 : f32
    %640 = vector.broadcast %cst_278 : f32 to vector<1x64xf32>
    %641 = arith.mulf %639, %640 : vector<1x64xf32>
    %642 = arith.mulf %636, %636 : vector<1x64xf32>
    %643 = arith.subf %641, %642 : vector<1x64xf32>
    %cst_279 = arith.constant 9.99999974E-6 : f32
    %644 = vector.broadcast %cst_279 : f32 to vector<1x64xf32>
    %645 = arith.addf %643, %644 : vector<1x64xf32>
    %646 = math.rsqrt %645 : vector<1x64xf32>
    %c42 = arith.constant 42 : index
    %c0_280 = arith.constant 0 : index
    %647 = vector.load %arg4[%c42, %c0_280] : memref<68x128xf32, #tpu.memory_space<vmem>>, vector<1x64xf32>
    %648 = arith.mulf %646, %647 : vector<1x64xf32>
    %c43 = arith.constant 43 : index
    %c0_281 = arith.constant 0 : index
    %649 = vector.load %arg4[%c43, %c0_281] : memref<68x128xf32, #tpu.memory_space<vmem>>, vector<1x64xf32>
    %650 = arith.mulf %636, %648 : vector<1x64xf32>
    %651 = arith.subf %649, %650 : vector<1x64xf32>
    %652 = vector.broadcast %648 : vector<1x64xf32> to vector<4x64xf32>
    %653 = arith.mulf %632, %652 : vector<4x64xf32>
    %654 = vector.broadcast %651 : vector<1x64xf32> to vector<4x64xf32>
    %655 = arith.addf %653, %654 : vector<4x64xf32>
    %cst_282 = arith.constant dense<0.000000e+00> : vector<4x64xf32>
    %656 = tpu.matmul %578, %655, %cst_282 {dimension_numbers = #tpu.dot_dimension_numbers<[1], [0], [0], [1], [0, 0, 1, 1], [], []>} : vector<4x4xf32>, vector<4x64xf32>, vector<4x64xf32> -> vector<4x64xf32>
    %657 = vector.broadcast %583 : vector<4x1xf32> to vector<4x64xf32>
    %658 = arith.mulf %656, %657 : vector<4x64xf32>
    %c0_283 = arith.constant 0 : index
    %c0_284 = arith.constant 0 : index
    %659 = vector.load %arg21[%c0_283, %c0_284] : memref<128x9xf32, #tpu.memory_space<vmem>>, vector<64x9xf32>
    %cst_285 = arith.constant dense<0.000000e+00> : vector<4x9xf32>
    %660 = tpu.matmul %658, %659, %cst_285 {dimension_numbers = #tpu.dot_dimension_numbers<[1], [0], [0], [1], [0, 0, 1, 1], [], []>} : vector<4x64xf32>, vector<64x9xf32>, vector<4x9xf32> -> vector<4x9xf32>
    %c64_286 = arith.constant 64 : index
    %c0_287 = arith.constant 0 : index
    %661 = vector.load %arg21[%c64_286, %c0_287] : memref<128x9xf32, #tpu.memory_space<vmem>>, vector<64x9xf32>
    %cst_288 = arith.constant dense<0.000000e+00> : vector<4x9xf32>
    %662 = tpu.matmul %655, %661, %cst_288 {dimension_numbers = #tpu.dot_dimension_numbers<[1], [0], [0], [1], [0, 0, 1, 1], [], []>} : vector<4x64xf32>, vector<64x9xf32>, vector<4x9xf32> -> vector<4x9xf32>
    %663 = arith.addf %660, %662 : vector<4x9xf32>
    %c44 = arith.constant 44 : index
    %c0_289 = arith.constant 0 : index
    %664 = vector.load %arg4[%c44, %c0_289] : memref<68x128xf32, #tpu.memory_space<vmem>>, vector<1x9xf32>
    %665 = vector.broadcast %664 : vector<1x9xf32> to vector<4x9xf32>
    %666 = arith.addf %663, %665 : vector<4x9xf32>
    %cst_290 = arith.constant 0.000000e+00 : f32
    %667 = vector.broadcast %cst_290 : f32 to vector<4x9xf32>
    %668 = arith.maximumf %666, %667 : vector<4x9xf32>
    %cst_291 = arith.constant dense<0.000000e+00> : vector<9xf32>
    %669 = vector.multi_reduction <add>, %668, %cst_291 [0] : vector<4x9xf32> to vector<9xf32>
    %670 = vector.shape_cast %669 : vector<9xf32> to vector<1x9xf32>
    %cst_292 = arith.constant 2.500000e-01 : f32
    %671 = vector.broadcast %cst_292 : f32 to vector<1x9xf32>
    %672 = arith.mulf %670, %671 : vector<1x9xf32>
    %673 = arith.mulf %668, %668 : vector<4x9xf32>
    %cst_293 = arith.constant dense<0.000000e+00> : vector<9xf32>
    %674 = vector.multi_reduction <add>, %673, %cst_293 [0] : vector<4x9xf32> to vector<9xf32>
    %675 = vector.shape_cast %674 : vector<9xf32> to vector<1x9xf32>
    %cst_294 = arith.constant 2.500000e-01 : f32
    %676 = vector.broadcast %cst_294 : f32 to vector<1x9xf32>
    %677 = arith.mulf %675, %676 : vector<1x9xf32>
    %678 = arith.mulf %672, %672 : vector<1x9xf32>
    %679 = arith.subf %677, %678 : vector<1x9xf32>
    %cst_295 = arith.constant 9.99999974E-6 : f32
    %680 = vector.broadcast %cst_295 : f32 to vector<1x9xf32>
    %681 = arith.addf %679, %680 : vector<1x9xf32>
    %682 = math.rsqrt %681 : vector<1x9xf32>
    %c45 = arith.constant 45 : index
    %c0_296 = arith.constant 0 : index
    %683 = vector.load %arg4[%c45, %c0_296] : memref<68x128xf32, #tpu.memory_space<vmem>>, vector<1x9xf32>
    %684 = arith.mulf %682, %683 : vector<1x9xf32>
    %c46 = arith.constant 46 : index
    %c0_297 = arith.constant 0 : index
    %685 = vector.load %arg4[%c46, %c0_297] : memref<68x128xf32, #tpu.memory_space<vmem>>, vector<1x9xf32>
    %686 = arith.mulf %672, %684 : vector<1x9xf32>
    %687 = arith.subf %685, %686 : vector<1x9xf32>
    %688 = vector.broadcast %684 : vector<1x9xf32> to vector<4x9xf32>
    %689 = arith.mulf %668, %688 : vector<4x9xf32>
    %690 = vector.broadcast %687 : vector<1x9xf32> to vector<4x9xf32>
    %691 = arith.addf %689, %690 : vector<4x9xf32>
    %692 = tpu.concatenate %619, %655, %691 in 1 : vector<4x64xf32>, vector<4x64xf32>, vector<4x9xf32> -> vector<4x137xf32>
    %c0_298 = arith.constant 0 : index
    %c0_299 = arith.constant 0 : index
    %693 = vector.load %arg22[%c0_298, %c0_299] : memref<137x9xf32, #tpu.memory_space<vmem>>, vector<137x9xf32>
    %cst_300 = arith.constant dense<0.000000e+00> : vector<4x9xf32>
    %694 = tpu.matmul %692, %693, %cst_300 {dimension_numbers = #tpu.dot_dimension_numbers<[1], [0], [0], [1], [0, 0, 1, 1], [], []>} : vector<4x137xf32>, vector<137x9xf32>, vector<4x9xf32> -> vector<4x9xf32>
    %c47 = arith.constant 47 : index
    %c0_301 = arith.constant 0 : index
    %695 = vector.load %arg4[%c47, %c0_301] : memref<68x128xf32, #tpu.memory_space<vmem>>, vector<1x9xf32>
    %696 = vector.broadcast %695 : vector<1x9xf32> to vector<4x9xf32>
    %697 = arith.addf %694, %696 : vector<4x9xf32>
    %cst_302 = arith.constant 0.000000e+00 : f32
    %698 = vector.broadcast %cst_302 : f32 to vector<4x9xf32>
    %699 = arith.maximumf %697, %698 : vector<4x9xf32>
    %cst_303 = arith.constant dense<0.000000e+00> : vector<4x192xf32>
    %700 = tpu.matmul %578, %576, %cst_303 {dimension_numbers = #tpu.dot_dimension_numbers<[1], [0], [0], [1], [0, 0, 1, 1], [], []>} : vector<4x4xf32>, vector<4x192xf32>, vector<4x192xf32> -> vector<4x192xf32>
    %701 = vector.broadcast %583 : vector<4x1xf32> to vector<4x192xf32>
    %702 = arith.mulf %700, %701 : vector<4x192xf32>
    %c0_304 = arith.constant 0 : index
    %c0_305 = arith.constant 0 : index
    %703 = vector.load %arg23[%c0_304, %c0_305] : memref<384x64xf32, #tpu.memory_space<vmem>>, vector<192x64xf32>
    %cst_306 = arith.constant dense<0.000000e+00> : vector<4x64xf32>
    %704 = tpu.matmul %702, %703, %cst_306 {dimension_numbers = #tpu.dot_dimension_numbers<[1], [0], [0], [1], [0, 0, 1, 1], [], []>} : vector<4x192xf32>, vector<192x64xf32>, vector<4x64xf32> -> vector<4x64xf32>
    %c192_307 = arith.constant 192 : index
    %c0_308 = arith.constant 0 : index
    %705 = vector.load %arg23[%c192_307, %c0_308] : memref<384x64xf32, #tpu.memory_space<vmem>>, vector<192x64xf32>
    %cst_309 = arith.constant dense<0.000000e+00> : vector<4x64xf32>
    %706 = tpu.matmul %576, %705, %cst_309 {dimension_numbers = #tpu.dot_dimension_numbers<[1], [0], [0], [1], [0, 0, 1, 1], [], []>} : vector<4x192xf32>, vector<192x64xf32>, vector<4x64xf32> -> vector<4x64xf32>
    %707 = arith.addf %704, %706 : vector<4x64xf32>
    %c48 = arith.constant 48 : index
    %c0_310 = arith.constant 0 : index
    %708 = vector.load %arg4[%c48, %c0_310] : memref<68x128xf32, #tpu.memory_space<vmem>>, vector<1x64xf32>
    %709 = vector.broadcast %708 : vector<1x64xf32> to vector<4x64xf32>
    %710 = arith.addf %707, %709 : vector<4x64xf32>
    %cst_311 = arith.constant 0.000000e+00 : f32
    %711 = vector.broadcast %cst_311 : f32 to vector<4x64xf32>
    %712 = arith.maximumf %710, %711 : vector<4x64xf32>
    %cst_312 = arith.constant dense<0.000000e+00> : vector<64xf32>
    %713 = vector.multi_reduction <add>, %712, %cst_312 [0] : vector<4x64xf32> to vector<64xf32>
    %714 = vector.shape_cast %713 : vector<64xf32> to vector<1x64xf32>
    %cst_313 = arith.constant 2.500000e-01 : f32
    %715 = vector.broadcast %cst_313 : f32 to vector<1x64xf32>
    %716 = arith.mulf %714, %715 : vector<1x64xf32>
    %717 = arith.mulf %712, %712 : vector<4x64xf32>
    %cst_314 = arith.constant dense<0.000000e+00> : vector<64xf32>
    %718 = vector.multi_reduction <add>, %717, %cst_314 [0] : vector<4x64xf32> to vector<64xf32>
    %719 = vector.shape_cast %718 : vector<64xf32> to vector<1x64xf32>
    %cst_315 = arith.constant 2.500000e-01 : f32
    %720 = vector.broadcast %cst_315 : f32 to vector<1x64xf32>
    %721 = arith.mulf %719, %720 : vector<1x64xf32>
    %722 = arith.mulf %716, %716 : vector<1x64xf32>
    %723 = arith.subf %721, %722 : vector<1x64xf32>
    %cst_316 = arith.constant 9.99999974E-6 : f32
    %724 = vector.broadcast %cst_316 : f32 to vector<1x64xf32>
    %725 = arith.addf %723, %724 : vector<1x64xf32>
    %726 = math.rsqrt %725 : vector<1x64xf32>
    %c49 = arith.constant 49 : index
    %c0_317 = arith.constant 0 : index
    %727 = vector.load %arg4[%c49, %c0_317] : memref<68x128xf32, #tpu.memory_space<vmem>>, vector<1x64xf32>
    %728 = arith.mulf %726, %727 : vector<1x64xf32>
    %c50 = arith.constant 50 : index
    %c0_318 = arith.constant 0 : index
    %729 = vector.load %arg4[%c50, %c0_318] : memref<68x128xf32, #tpu.memory_space<vmem>>, vector<1x64xf32>
    %730 = arith.mulf %716, %728 : vector<1x64xf32>
    %731 = arith.subf %729, %730 : vector<1x64xf32>
    %732 = vector.broadcast %728 : vector<1x64xf32> to vector<4x64xf32>
    %733 = arith.mulf %712, %732 : vector<4x64xf32>
    %734 = vector.broadcast %731 : vector<1x64xf32> to vector<4x64xf32>
    %735 = arith.addf %733, %734 : vector<4x64xf32>
    %cst_319 = arith.constant dense<0.000000e+00> : vector<4x64xf32>
    %736 = tpu.matmul %578, %735, %cst_319 {dimension_numbers = #tpu.dot_dimension_numbers<[1], [0], [0], [1], [0, 0, 1, 1], [], []>} : vector<4x4xf32>, vector<4x64xf32>, vector<4x64xf32> -> vector<4x64xf32>
    %737 = vector.broadcast %583 : vector<4x1xf32> to vector<4x64xf32>
    %738 = arith.mulf %736, %737 : vector<4x64xf32>
    %c0_320 = arith.constant 0 : index
    %c0_321 = arith.constant 0 : index
    %739 = vector.load %arg24[%c0_320, %c0_321] : memref<128x64xf32, #tpu.memory_space<vmem>>, vector<64x64xf32>
    %cst_322 = arith.constant dense<0.000000e+00> : vector<4x64xf32>
    %740 = tpu.matmul %738, %739, %cst_322 {dimension_numbers = #tpu.dot_dimension_numbers<[1], [0], [0], [1], [0, 0, 1, 1], [], []>} : vector<4x64xf32>, vector<64x64xf32>, vector<4x64xf32> -> vector<4x64xf32>
    %c64_323 = arith.constant 64 : index
    %c0_324 = arith.constant 0 : index
    %741 = vector.load %arg24[%c64_323, %c0_324] : memref<128x64xf32, #tpu.memory_space<vmem>>, vector<64x64xf32>
    %cst_325 = arith.constant dense<0.000000e+00> : vector<4x64xf32>
    %742 = tpu.matmul %735, %741, %cst_325 {dimension_numbers = #tpu.dot_dimension_numbers<[1], [0], [0], [1], [0, 0, 1, 1], [], []>} : vector<4x64xf32>, vector<64x64xf32>, vector<4x64xf32> -> vector<4x64xf32>
    %743 = arith.addf %740, %742 : vector<4x64xf32>
    %c51 = arith.constant 51 : index
    %c0_326 = arith.constant 0 : index
    %744 = vector.load %arg4[%c51, %c0_326] : memref<68x128xf32, #tpu.memory_space<vmem>>, vector<1x64xf32>
    %745 = vector.broadcast %744 : vector<1x64xf32> to vector<4x64xf32>
    %746 = arith.addf %743, %745 : vector<4x64xf32>
    %cst_327 = arith.constant 0.000000e+00 : f32
    %747 = vector.broadcast %cst_327 : f32 to vector<4x64xf32>
    %748 = arith.maximumf %746, %747 : vector<4x64xf32>
    %cst_328 = arith.constant dense<0.000000e+00> : vector<64xf32>
    %749 = vector.multi_reduction <add>, %748, %cst_328 [0] : vector<4x64xf32> to vector<64xf32>
    %750 = vector.shape_cast %749 : vector<64xf32> to vector<1x64xf32>
    %cst_329 = arith.constant 2.500000e-01 : f32
    %751 = vector.broadcast %cst_329 : f32 to vector<1x64xf32>
    %752 = arith.mulf %750, %751 : vector<1x64xf32>
    %753 = arith.mulf %748, %748 : vector<4x64xf32>
    %cst_330 = arith.constant dense<0.000000e+00> : vector<64xf32>
    %754 = vector.multi_reduction <add>, %753, %cst_330 [0] : vector<4x64xf32> to vector<64xf32>
    %755 = vector.shape_cast %754 : vector<64xf32> to vector<1x64xf32>
    %cst_331 = arith.constant 2.500000e-01 : f32
    %756 = vector.broadcast %cst_331 : f32 to vector<1x64xf32>
    %757 = arith.mulf %755, %756 : vector<1x64xf32>
    %758 = arith.mulf %752, %752 : vector<1x64xf32>
    %759 = arith.subf %757, %758 : vector<1x64xf32>
    %cst_332 = arith.constant 9.99999974E-6 : f32
    %760 = vector.broadcast %cst_332 : f32 to vector<1x64xf32>
    %761 = arith.addf %759, %760 : vector<1x64xf32>
    %762 = math.rsqrt %761 : vector<1x64xf32>
    %c52 = arith.constant 52 : index
    %c0_333 = arith.constant 0 : index
    %763 = vector.load %arg4[%c52, %c0_333] : memref<68x128xf32, #tpu.memory_space<vmem>>, vector<1x64xf32>
    %764 = arith.mulf %762, %763 : vector<1x64xf32>
    %c53 = arith.constant 53 : index
    %c0_334 = arith.constant 0 : index
    %765 = vector.load %arg4[%c53, %c0_334] : memref<68x128xf32, #tpu.memory_space<vmem>>, vector<1x64xf32>
    %766 = arith.mulf %752, %764 : vector<1x64xf32>
    %767 = arith.subf %765, %766 : vector<1x64xf32>
    %768 = vector.broadcast %764 : vector<1x64xf32> to vector<4x64xf32>
    %769 = arith.mulf %748, %768 : vector<4x64xf32>
    %770 = vector.broadcast %767 : vector<1x64xf32> to vector<4x64xf32>
    %771 = arith.addf %769, %770 : vector<4x64xf32>
    %cst_335 = arith.constant dense<0.000000e+00> : vector<4x64xf32>
    %772 = tpu.matmul %578, %771, %cst_335 {dimension_numbers = #tpu.dot_dimension_numbers<[1], [0], [0], [1], [0, 0, 1, 1], [], []>} : vector<4x4xf32>, vector<4x64xf32>, vector<4x64xf32> -> vector<4x64xf32>
    %773 = vector.broadcast %583 : vector<4x1xf32> to vector<4x64xf32>
    %774 = arith.mulf %772, %773 : vector<4x64xf32>
    %c0_336 = arith.constant 0 : index
    %c0_337 = arith.constant 0 : index
    %775 = vector.load %arg25[%c0_336, %c0_337] : memref<128x64xf32, #tpu.memory_space<vmem>>, vector<64x64xf32>
    %cst_338 = arith.constant dense<0.000000e+00> : vector<4x64xf32>
    %776 = tpu.matmul %774, %775, %cst_338 {dimension_numbers = #tpu.dot_dimension_numbers<[1], [0], [0], [1], [0, 0, 1, 1], [], []>} : vector<4x64xf32>, vector<64x64xf32>, vector<4x64xf32> -> vector<4x64xf32>
    %c64_339 = arith.constant 64 : index
    %c0_340 = arith.constant 0 : index
    %777 = vector.load %arg25[%c64_339, %c0_340] : memref<128x64xf32, #tpu.memory_space<vmem>>, vector<64x64xf32>
    %cst_341 = arith.constant dense<0.000000e+00> : vector<4x64xf32>
    %778 = tpu.matmul %771, %777, %cst_341 {dimension_numbers = #tpu.dot_dimension_numbers<[1], [0], [0], [1], [0, 0, 1, 1], [], []>} : vector<4x64xf32>, vector<64x64xf32>, vector<4x64xf32> -> vector<4x64xf32>
    %779 = arith.addf %776, %778 : vector<4x64xf32>
    %c54 = arith.constant 54 : index
    %c0_342 = arith.constant 0 : index
    %780 = vector.load %arg4[%c54, %c0_342] : memref<68x128xf32, #tpu.memory_space<vmem>>, vector<1x64xf32>
    %781 = vector.broadcast %780 : vector<1x64xf32> to vector<4x64xf32>
    %782 = arith.addf %779, %781 : vector<4x64xf32>
    %cst_343 = arith.constant 0.000000e+00 : f32
    %783 = vector.broadcast %cst_343 : f32 to vector<4x64xf32>
    %784 = arith.maximumf %782, %783 : vector<4x64xf32>
    %cst_344 = arith.constant dense<0.000000e+00> : vector<64xf32>
    %785 = vector.multi_reduction <add>, %784, %cst_344 [0] : vector<4x64xf32> to vector<64xf32>
    %786 = vector.shape_cast %785 : vector<64xf32> to vector<1x64xf32>
    %cst_345 = arith.constant 2.500000e-01 : f32
    %787 = vector.broadcast %cst_345 : f32 to vector<1x64xf32>
    %788 = arith.mulf %786, %787 : vector<1x64xf32>
    %789 = arith.mulf %784, %784 : vector<4x64xf32>
    %cst_346 = arith.constant dense<0.000000e+00> : vector<64xf32>
    %790 = vector.multi_reduction <add>, %789, %cst_346 [0] : vector<4x64xf32> to vector<64xf32>
    %791 = vector.shape_cast %790 : vector<64xf32> to vector<1x64xf32>
    %cst_347 = arith.constant 2.500000e-01 : f32
    %792 = vector.broadcast %cst_347 : f32 to vector<1x64xf32>
    %793 = arith.mulf %791, %792 : vector<1x64xf32>
    %794 = arith.mulf %788, %788 : vector<1x64xf32>
    %795 = arith.subf %793, %794 : vector<1x64xf32>
    %cst_348 = arith.constant 9.99999974E-6 : f32
    %796 = vector.broadcast %cst_348 : f32 to vector<1x64xf32>
    %797 = arith.addf %795, %796 : vector<1x64xf32>
    %798 = math.rsqrt %797 : vector<1x64xf32>
    %c55 = arith.constant 55 : index
    %c0_349 = arith.constant 0 : index
    %799 = vector.load %arg4[%c55, %c0_349] : memref<68x128xf32, #tpu.memory_space<vmem>>, vector<1x64xf32>
    %800 = arith.mulf %798, %799 : vector<1x64xf32>
    %c56 = arith.constant 56 : index
    %c0_350 = arith.constant 0 : index
    %801 = vector.load %arg4[%c56, %c0_350] : memref<68x128xf32, #tpu.memory_space<vmem>>, vector<1x64xf32>
    %802 = arith.mulf %788, %800 : vector<1x64xf32>
    %803 = arith.subf %801, %802 : vector<1x64xf32>
    %804 = vector.broadcast %800 : vector<1x64xf32> to vector<4x64xf32>
    %805 = arith.mulf %784, %804 : vector<4x64xf32>
    %806 = vector.broadcast %803 : vector<1x64xf32> to vector<4x64xf32>
    %807 = arith.addf %805, %806 : vector<4x64xf32>
    %808 = tpu.concatenate %735, %771, %807 in 1 : vector<4x64xf32>, vector<4x64xf32>, vector<4x64xf32> -> vector<4x192xf32>
    %cst_351 = arith.constant dense<0xFF800000> : vector<4xf32>
    %809 = vector.multi_reduction <maximumf>, %699, %cst_351 [1] : vector<4x9xf32> to vector<4xf32>
    %810 = vector.shape_cast %809 : vector<4xf32> to vector<4x1xf32>
    %811 = vector.broadcast %810 : vector<4x1xf32> to vector<4x9xf32>
    %812 = arith.subf %699, %811 : vector<4x9xf32>
    %813 = math.exp %812 : vector<4x9xf32>
    %cst_352 = arith.constant dense<0.000000e+00> : vector<4xf32>
    %814 = vector.multi_reduction <add>, %813, %cst_352 [1] : vector<4x9xf32> to vector<4xf32>
    %815 = vector.shape_cast %814 : vector<4xf32> to vector<4x1xf32>
    %816 = tpu.reciprocal %815 {approx = true} : vector<4x1xf32> -> vector<4x1xf32>
    %817 = vector.broadcast %816 : vector<4x1xf32> to vector<4x9xf32>
    %818 = arith.mulf %813, %817 : vector<4x9xf32>
    %819 = tpu.concatenate %818, %818 in 1 : vector<4x9xf32>, vector<4x9xf32> -> vector<4x18xf32>
    %c0_i32_353 = arith.constant 0 : i32
    %820 = vector.broadcast %c0_i32_353 : i32 to vector<2x1xi32>
    %c1_i32_354 = arith.constant 1 : i32
    %821 = vector.broadcast %c1_i32_354 : i32 to vector<2x1xi32>
    %822 = tpu.concatenate %820, %821 in 0 : vector<2x1xi32>, vector<2x1xi32> -> vector<4x1xi32>
    %c0_i32_355 = arith.constant 0 : i32
    %823 = vector.broadcast %c0_i32_355 : i32 to vector<1x9xi32>
    %c1_i32_356 = arith.constant 1 : i32
    %824 = vector.broadcast %c1_i32_356 : i32 to vector<1x9xi32>
    %825 = tpu.concatenate %823, %824 in 1 : vector<1x9xi32>, vector<1x9xi32> -> vector<1x18xi32>
    %826 = vector.broadcast %822 : vector<4x1xi32> to vector<4x18xi32>
    %827 = vector.broadcast %825 : vector<1x18xi32> to vector<4x18xi32>
    %828 = arith.cmpi eq, %826, %827 : vector<4x18xi32>
    %cst_357 = arith.constant 0.000000e+00 : f32
    %829 = vector.broadcast %cst_357 : f32 to vector<4x18xf32>
    %830 = arith.select %828, %819, %829 : vector<4x18xi1>, vector<4x18xf32>
    %831 = tpu.transpose %830, [1, 0] : vector<4x18xf32> -> vector<18x4xf32>
    %cst_358 = arith.constant dense<0.000000e+00> : vector<18x192xf32>
    %832 = tpu.matmul %831, %808, %cst_358 {dimension_numbers = #tpu.dot_dimension_numbers<[1], [0], [0], [1], [0, 0, 1, 1], [], []>} : vector<18x4xf32>, vector<4x192xf32>, vector<18x192xf32> -> vector<18x192xf32>
    %cst_359 = arith.constant dense<0.000000e+00> : vector<18x4xf32>
    %833 = tpu.matmul %831, %578, %cst_359 {dimension_numbers = #tpu.dot_dimension_numbers<[1], [0], [0], [1], [0, 0, 1, 1], [], []>} : vector<18x4xf32>, vector<4x4xf32>, vector<18x4xf32> -> vector<18x4xf32>
    %cst_360 = arith.constant dense<0.000000e+00> : vector<18x18xf32>
    %834 = tpu.matmul %833, %830, %cst_360 {dimension_numbers = #tpu.dot_dimension_numbers<[1], [0], [0], [1], [0, 0, 1, 1], [], []>} : vector<18x4xf32>, vector<4x18xf32>, vector<18x18xf32> -> vector<18x18xf32>
    %835 = arith.mulf %578, %578 : vector<4x4xf32>
    %cst_361 = arith.constant dense<0.000000e+00> : vector<4xf32>
    %836 = vector.multi_reduction <add>, %835, %cst_361 [1] : vector<4x4xf32> to vector<4xf32>
    %837 = vector.shape_cast %836 : vector<4xf32> to vector<4x1xf32>
    %cst_362 = arith.constant dense<0.000000e+00> : vector<1xf32>
    %838 = vector.multi_reduction <add>, %837, %cst_362 [0] : vector<4x1xf32> to vector<1xf32>
    %839 = vector.shape_cast %838 : vector<1xf32> to vector<1x1xf32>
    %840 = tpu.iota {dimensions = array<i32: 0>} : vector<18x18xi32>
    %841 = tpu.iota {dimensions = array<i32: 1>} : vector<18x18xi32>
    %842 = arith.cmpi eq, %840, %841 : vector<18x18xi32>
    %cst_363 = arith.constant 0.000000e+00 : f32
    %843 = vector.broadcast %cst_363 : f32 to vector<18x18xf32>
    %844 = arith.select %842, %834, %843 : vector<18x18xi1>, vector<18x18xf32>
    %cst_364 = arith.constant dense<0.000000e+00> : vector<18xf32>
    %845 = vector.multi_reduction <add>, %844, %cst_364 [1] : vector<18x18xf32> to vector<18xf32>
    %846 = vector.shape_cast %845 : vector<18xf32> to vector<18x1xf32>
    %cst_365 = arith.constant dense<0.000000e+00> : vector<1xf32>
    %847 = vector.multi_reduction <add>, %846, %cst_365 [0] : vector<18x1xf32> to vector<1xf32>
    %848 = vector.shape_cast %847 : vector<1xf32> to vector<1x1xf32>
    %cst_366 = arith.constant dense<0.000000e+00> : vector<18x18xf32>
    %849 = tpu.matmul %831, %830, %cst_366 {dimension_numbers = #tpu.dot_dimension_numbers<[1], [0], [0], [1], [0, 0, 1, 1], [], []>} : vector<18x4xf32>, vector<4x18xf32>, vector<18x18xf32> -> vector<18x18xf32>
    %cst_367 = arith.constant 2.000000e+00 : f32
    %850 = vector.broadcast %cst_367 : f32 to vector<1x1xf32>
    %851 = arith.mulf %850, %848 : vector<1x1xf32>
    %852 = arith.subf %839, %851 : vector<1x1xf32>
    %853 = arith.mulf %849, %849 : vector<18x18xf32>
    %cst_368 = arith.constant dense<0.000000e+00> : vector<18xf32>
    %854 = vector.multi_reduction <add>, %853, %cst_368 [1] : vector<18x18xf32> to vector<18xf32>
    %855 = vector.shape_cast %854 : vector<18xf32> to vector<18x1xf32>
    %cst_369 = arith.constant dense<0.000000e+00> : vector<1xf32>
    %856 = vector.multi_reduction <add>, %855, %cst_369 [0] : vector<18x1xf32> to vector<1xf32>
    %857 = vector.shape_cast %856 : vector<1xf32> to vector<1x1xf32>
    %858 = arith.addf %852, %857 : vector<1x1xf32>
    %cst_370 = arith.constant 0.000000e+00 : f32
    %859 = vector.broadcast %cst_370 : f32 to vector<1x1xf32>
    %860 = arith.maximumf %858, %859 : vector<1x1xf32>
    %861 = math.sqrt %860 : vector<1x1xf32>
    %cst_371 = arith.constant 1.250000e-01 : f32
    %862 = vector.broadcast %cst_371 : f32 to vector<1x1xf32>
    %863 = arith.mulf %861, %862 : vector<1x1xf32>
    %cst_372 = arith.constant 0.000000e+00 : f32
    %864 = vector.broadcast %cst_372 : f32 to vector<4x9xf32>
    %865 = arith.subf %864, %818 : vector<4x9xf32>
    %cst_373 = arith.constant 1.000000e-15 : f32
    %866 = vector.broadcast %cst_373 : f32 to vector<4x9xf32>
    %867 = arith.addf %818, %866 : vector<4x9xf32>
    %868 = math.log %867 : vector<4x9xf32>
    %869 = arith.mulf %865, %868 : vector<4x9xf32>
    %cst_374 = arith.constant dense<0.000000e+00> : vector<4xf32>
    %870 = vector.multi_reduction <add>, %869, %cst_374 [1] : vector<4x9xf32> to vector<4xf32>
    %871 = vector.shape_cast %870 : vector<4xf32> to vector<4x1xf32>
    %cst_375 = arith.constant dense<0.000000e+00> : vector<1xf32>
    %872 = vector.multi_reduction <add>, %871, %cst_375 [0] : vector<4x1xf32> to vector<1xf32>
    %873 = vector.shape_cast %872 : vector<1xf32> to vector<1x1xf32>
    %cst_376 = arith.constant 2.500000e-01 : f32
    %874 = vector.broadcast %cst_376 : f32 to vector<1x1xf32>
    %875 = arith.mulf %873, %874 : vector<1x1xf32>
    %cst_377 = arith.constant dense<0.000000e+00> : vector<18xf32>
    %876 = vector.multi_reduction <add>, %834, %cst_377 [1] : vector<18x18xf32> to vector<18xf32>
    %877 = vector.shape_cast %876 : vector<18xf32> to vector<18x1xf32>
    %cst_378 = arith.constant 1.000000e+00 : f32
    %878 = vector.broadcast %cst_378 : f32 to vector<18x1xf32>
    %879 = arith.maximumf %877, %878 : vector<18x1xf32>
    %880 = tpu.reciprocal %879 {approx = true} : vector<18x1xf32> -> vector<18x1xf32>
    %cst_379 = arith.constant dense<0.000000e+00> : vector<18x192xf32>
    %881 = tpu.matmul %834, %832, %cst_379 {dimension_numbers = #tpu.dot_dimension_numbers<[1], [0], [0], [1], [0, 0, 1, 1], [], []>} : vector<18x18xf32>, vector<18x192xf32>, vector<18x192xf32> -> vector<18x192xf32>
    %882 = vector.broadcast %880 : vector<18x1xf32> to vector<18x192xf32>
    %883 = arith.mulf %881, %882 : vector<18x192xf32>
    %c0_380 = arith.constant 0 : index
    %c0_381 = arith.constant 0 : index
    %884 = vector.load %arg26[%c0_380, %c0_381] : memref<384x64xf32, #tpu.memory_space<vmem>>, vector<192x64xf32>
    %cst_382 = arith.constant dense<0.000000e+00> : vector<18x64xf32>
    %885 = tpu.matmul %883, %884, %cst_382 {dimension_numbers = #tpu.dot_dimension_numbers<[1], [0], [0], [1], [0, 0, 1, 1], [], []>} : vector<18x192xf32>, vector<192x64xf32>, vector<18x64xf32> -> vector<18x64xf32>
    %c192_383 = arith.constant 192 : index
    %c0_384 = arith.constant 0 : index
    %886 = vector.load %arg26[%c192_383, %c0_384] : memref<384x64xf32, #tpu.memory_space<vmem>>, vector<192x64xf32>
    %cst_385 = arith.constant dense<0.000000e+00> : vector<18x64xf32>
    %887 = tpu.matmul %832, %886, %cst_385 {dimension_numbers = #tpu.dot_dimension_numbers<[1], [0], [0], [1], [0, 0, 1, 1], [], []>} : vector<18x192xf32>, vector<192x64xf32>, vector<18x64xf32> -> vector<18x64xf32>
    %888 = arith.addf %885, %887 : vector<18x64xf32>
    %c57 = arith.constant 57 : index
    %c0_386 = arith.constant 0 : index
    %889 = vector.load %arg4[%c57, %c0_386] : memref<68x128xf32, #tpu.memory_space<vmem>>, vector<1x64xf32>
    %890 = vector.broadcast %889 : vector<1x64xf32> to vector<18x64xf32>
    %891 = arith.addf %888, %890 : vector<18x64xf32>
    %cst_387 = arith.constant 0.000000e+00 : f32
    %892 = vector.broadcast %cst_387 : f32 to vector<18x64xf32>
    %893 = arith.maximumf %891, %892 : vector<18x64xf32>
    %cst_388 = arith.constant dense<0.000000e+00> : vector<64xf32>
    %894 = vector.multi_reduction <add>, %893, %cst_388 [0] : vector<18x64xf32> to vector<64xf32>
    %895 = vector.shape_cast %894 : vector<64xf32> to vector<1x64xf32>
    %cst_389 = arith.constant 0.055555556 : f32
    %896 = vector.broadcast %cst_389 : f32 to vector<1x64xf32>
    %897 = arith.mulf %895, %896 : vector<1x64xf32>
    %898 = arith.mulf %893, %893 : vector<18x64xf32>
    %cst_390 = arith.constant dense<0.000000e+00> : vector<64xf32>
    %899 = vector.multi_reduction <add>, %898, %cst_390 [0] : vector<18x64xf32> to vector<64xf32>
    %900 = vector.shape_cast %899 : vector<64xf32> to vector<1x64xf32>
    %cst_391 = arith.constant 0.055555556 : f32
    %901 = vector.broadcast %cst_391 : f32 to vector<1x64xf32>
    %902 = arith.mulf %900, %901 : vector<1x64xf32>
    %903 = arith.mulf %897, %897 : vector<1x64xf32>
    %904 = arith.subf %902, %903 : vector<1x64xf32>
    %cst_392 = arith.constant 9.99999974E-6 : f32
    %905 = vector.broadcast %cst_392 : f32 to vector<1x64xf32>
    %906 = arith.addf %904, %905 : vector<1x64xf32>
    %907 = math.rsqrt %906 : vector<1x64xf32>
    %c58 = arith.constant 58 : index
    %c0_393 = arith.constant 0 : index
    %908 = vector.load %arg4[%c58, %c0_393] : memref<68x128xf32, #tpu.memory_space<vmem>>, vector<1x64xf32>
    %909 = arith.mulf %907, %908 : vector<1x64xf32>
    %c59 = arith.constant 59 : index
    %c0_394 = arith.constant 0 : index
    %910 = vector.load %arg4[%c59, %c0_394] : memref<68x128xf32, #tpu.memory_space<vmem>>, vector<1x64xf32>
    %911 = arith.mulf %897, %909 : vector<1x64xf32>
    %912 = arith.subf %910, %911 : vector<1x64xf32>
    %913 = vector.broadcast %909 : vector<1x64xf32> to vector<18x64xf32>
    %914 = arith.mulf %893, %913 : vector<18x64xf32>
    %915 = vector.broadcast %912 : vector<1x64xf32> to vector<18x64xf32>
    %916 = arith.addf %914, %915 : vector<18x64xf32>
    %cst_395 = arith.constant dense<0.000000e+00> : vector<18x64xf32>
    %917 = tpu.matmul %834, %916, %cst_395 {dimension_numbers = #tpu.dot_dimension_numbers<[1], [0], [0], [1], [0, 0, 1, 1], [], []>} : vector<18x18xf32>, vector<18x64xf32>, vector<18x64xf32> -> vector<18x64xf32>
    %918 = vector.broadcast %880 : vector<18x1xf32> to vector<18x64xf32>
    %919 = arith.mulf %917, %918 : vector<18x64xf32>
    %c0_396 = arith.constant 0 : index
    %c0_397 = arith.constant 0 : index
    %920 = vector.load %arg27[%c0_396, %c0_397] : memref<128x64xf32, #tpu.memory_space<vmem>>, vector<64x64xf32>
    %cst_398 = arith.constant dense<0.000000e+00> : vector<18x64xf32>
    %921 = tpu.matmul %919, %920, %cst_398 {dimension_numbers = #tpu.dot_dimension_numbers<[1], [0], [0], [1], [0, 0, 1, 1], [], []>} : vector<18x64xf32>, vector<64x64xf32>, vector<18x64xf32> -> vector<18x64xf32>
    %c64_399 = arith.constant 64 : index
    %c0_400 = arith.constant 0 : index
    %922 = vector.load %arg27[%c64_399, %c0_400] : memref<128x64xf32, #tpu.memory_space<vmem>>, vector<64x64xf32>
    %cst_401 = arith.constant dense<0.000000e+00> : vector<18x64xf32>
    %923 = tpu.matmul %916, %922, %cst_401 {dimension_numbers = #tpu.dot_dimension_numbers<[1], [0], [0], [1], [0, 0, 1, 1], [], []>} : vector<18x64xf32>, vector<64x64xf32>, vector<18x64xf32> -> vector<18x64xf32>
    %924 = arith.addf %921, %923 : vector<18x64xf32>
    %c60 = arith.constant 60 : index
    %c0_402 = arith.constant 0 : index
    %925 = vector.load %arg4[%c60, %c0_402] : memref<68x128xf32, #tpu.memory_space<vmem>>, vector<1x64xf32>
    %926 = vector.broadcast %925 : vector<1x64xf32> to vector<18x64xf32>
    %927 = arith.addf %924, %926 : vector<18x64xf32>
    %cst_403 = arith.constant 0.000000e+00 : f32
    %928 = vector.broadcast %cst_403 : f32 to vector<18x64xf32>
    %929 = arith.maximumf %927, %928 : vector<18x64xf32>
    %cst_404 = arith.constant dense<0.000000e+00> : vector<64xf32>
    %930 = vector.multi_reduction <add>, %929, %cst_404 [0] : vector<18x64xf32> to vector<64xf32>
    %931 = vector.shape_cast %930 : vector<64xf32> to vector<1x64xf32>
    %cst_405 = arith.constant 0.055555556 : f32
    %932 = vector.broadcast %cst_405 : f32 to vector<1x64xf32>
    %933 = arith.mulf %931, %932 : vector<1x64xf32>
    %934 = arith.mulf %929, %929 : vector<18x64xf32>
    %cst_406 = arith.constant dense<0.000000e+00> : vector<64xf32>
    %935 = vector.multi_reduction <add>, %934, %cst_406 [0] : vector<18x64xf32> to vector<64xf32>
    %936 = vector.shape_cast %935 : vector<64xf32> to vector<1x64xf32>
    %cst_407 = arith.constant 0.055555556 : f32
    %937 = vector.broadcast %cst_407 : f32 to vector<1x64xf32>
    %938 = arith.mulf %936, %937 : vector<1x64xf32>
    %939 = arith.mulf %933, %933 : vector<1x64xf32>
    %940 = arith.subf %938, %939 : vector<1x64xf32>
    %cst_408 = arith.constant 9.99999974E-6 : f32
    %941 = vector.broadcast %cst_408 : f32 to vector<1x64xf32>
    %942 = arith.addf %940, %941 : vector<1x64xf32>
    %943 = math.rsqrt %942 : vector<1x64xf32>
    %c61 = arith.constant 61 : index
    %c0_409 = arith.constant 0 : index
    %944 = vector.load %arg4[%c61, %c0_409] : memref<68x128xf32, #tpu.memory_space<vmem>>, vector<1x64xf32>
    %945 = arith.mulf %943, %944 : vector<1x64xf32>
    %c62 = arith.constant 62 : index
    %c0_410 = arith.constant 0 : index
    %946 = vector.load %arg4[%c62, %c0_410] : memref<68x128xf32, #tpu.memory_space<vmem>>, vector<1x64xf32>
    %947 = arith.mulf %933, %945 : vector<1x64xf32>
    %948 = arith.subf %946, %947 : vector<1x64xf32>
    %949 = vector.broadcast %945 : vector<1x64xf32> to vector<18x64xf32>
    %950 = arith.mulf %929, %949 : vector<18x64xf32>
    %951 = vector.broadcast %948 : vector<1x64xf32> to vector<18x64xf32>
    %952 = arith.addf %950, %951 : vector<18x64xf32>
    %cst_411 = arith.constant dense<0.000000e+00> : vector<18x64xf32>
    %953 = tpu.matmul %834, %952, %cst_411 {dimension_numbers = #tpu.dot_dimension_numbers<[1], [0], [0], [1], [0, 0, 1, 1], [], []>} : vector<18x18xf32>, vector<18x64xf32>, vector<18x64xf32> -> vector<18x64xf32>
    %954 = vector.broadcast %880 : vector<18x1xf32> to vector<18x64xf32>
    %955 = arith.mulf %953, %954 : vector<18x64xf32>
    %c0_412 = arith.constant 0 : index
    %c0_413 = arith.constant 0 : index
    %956 = vector.load %arg28[%c0_412, %c0_413] : memref<128x64xf32, #tpu.memory_space<vmem>>, vector<64x64xf32>
    %cst_414 = arith.constant dense<0.000000e+00> : vector<18x64xf32>
    %957 = tpu.matmul %955, %956, %cst_414 {dimension_numbers = #tpu.dot_dimension_numbers<[1], [0], [0], [1], [0, 0, 1, 1], [], []>} : vector<18x64xf32>, vector<64x64xf32>, vector<18x64xf32> -> vector<18x64xf32>
    %c64_415 = arith.constant 64 : index
    %c0_416 = arith.constant 0 : index
    %958 = vector.load %arg28[%c64_415, %c0_416] : memref<128x64xf32, #tpu.memory_space<vmem>>, vector<64x64xf32>
    %cst_417 = arith.constant dense<0.000000e+00> : vector<18x64xf32>
    %959 = tpu.matmul %952, %958, %cst_417 {dimension_numbers = #tpu.dot_dimension_numbers<[1], [0], [0], [1], [0, 0, 1, 1], [], []>} : vector<18x64xf32>, vector<64x64xf32>, vector<18x64xf32> -> vector<18x64xf32>
    %960 = arith.addf %957, %959 : vector<18x64xf32>
    %c63 = arith.constant 63 : index
    %c0_418 = arith.constant 0 : index
    %961 = vector.load %arg4[%c63, %c0_418] : memref<68x128xf32, #tpu.memory_space<vmem>>, vector<1x64xf32>
    %962 = vector.broadcast %961 : vector<1x64xf32> to vector<18x64xf32>
    %963 = arith.addf %960, %962 : vector<18x64xf32>
    %cst_419 = arith.constant 0.000000e+00 : f32
    %964 = vector.broadcast %cst_419 : f32 to vector<18x64xf32>
    %965 = arith.maximumf %963, %964 : vector<18x64xf32>
    %cst_420 = arith.constant dense<0.000000e+00> : vector<64xf32>
    %966 = vector.multi_reduction <add>, %965, %cst_420 [0] : vector<18x64xf32> to vector<64xf32>
    %967 = vector.shape_cast %966 : vector<64xf32> to vector<1x64xf32>
    %cst_421 = arith.constant 0.055555556 : f32
    %968 = vector.broadcast %cst_421 : f32 to vector<1x64xf32>
    %969 = arith.mulf %967, %968 : vector<1x64xf32>
    %970 = arith.mulf %965, %965 : vector<18x64xf32>
    %cst_422 = arith.constant dense<0.000000e+00> : vector<64xf32>
    %971 = vector.multi_reduction <add>, %970, %cst_422 [0] : vector<18x64xf32> to vector<64xf32>
    %972 = vector.shape_cast %971 : vector<64xf32> to vector<1x64xf32>
    %cst_423 = arith.constant 0.055555556 : f32
    %973 = vector.broadcast %cst_423 : f32 to vector<1x64xf32>
    %974 = arith.mulf %972, %973 : vector<1x64xf32>
    %975 = arith.mulf %969, %969 : vector<1x64xf32>
    %976 = arith.subf %974, %975 : vector<1x64xf32>
    %cst_424 = arith.constant 9.99999974E-6 : f32
    %977 = vector.broadcast %cst_424 : f32 to vector<1x64xf32>
    %978 = arith.addf %976, %977 : vector<1x64xf32>
    %979 = math.rsqrt %978 : vector<1x64xf32>
    %c64_425 = arith.constant 64 : index
    %c0_426 = arith.constant 0 : index
    %980 = vector.load %arg4[%c64_425, %c0_426] : memref<68x128xf32, #tpu.memory_space<vmem>>, vector<1x64xf32>
    %981 = arith.mulf %979, %980 : vector<1x64xf32>
    %c65 = arith.constant 65 : index
    %c0_427 = arith.constant 0 : index
    %982 = vector.load %arg4[%c65, %c0_427] : memref<68x128xf32, #tpu.memory_space<vmem>>, vector<1x64xf32>
    %983 = arith.mulf %969, %981 : vector<1x64xf32>
    %984 = arith.subf %982, %983 : vector<1x64xf32>
    %985 = vector.broadcast %981 : vector<1x64xf32> to vector<18x64xf32>
    %986 = arith.mulf %965, %985 : vector<18x64xf32>
    %987 = vector.broadcast %984 : vector<1x64xf32> to vector<18x64xf32>
    %988 = arith.addf %986, %987 : vector<18x64xf32>
    %989 = tpu.concatenate %916, %952, %988 in 1 : vector<18x64xf32>, vector<18x64xf32>, vector<18x64xf32> -> vector<18x192xf32>
    %990 = tpu.iota {dimensions = array<i32: 1>} : vector<2x18xi32>
    %991 = tpu.iota {dimensions = array<i32: 0>} : vector<2x18xi32>
    %c9_i32 = arith.constant 9 : i32
    %992 = vector.broadcast %c9_i32 : i32 to vector<2x18xi32>
    %993 = arith.muli %991, %992 : vector<2x18xi32>
    %994 = arith.subi %990, %993 : vector<2x18xi32>
    %c0_i32_428 = arith.constant 0 : i32
    %995 = vector.broadcast %c0_i32_428 : i32 to vector<2x18xi32>
    %996 = arith.cmpi sge, %994, %995 : vector<2x18xi32>
    %c9_i32_429 = arith.constant 9 : i32
    %997 = vector.broadcast %c9_i32_429 : i32 to vector<2x18xi32>
    %998 = arith.cmpi slt, %994, %997 : vector<2x18xi32>
    %999 = arith.andi %996, %998 : vector<2x18xi1>
    %cst_430 = arith.constant 0.111111112 : f32
    %cst_431 = arith.constant 0.000000e+00 : f32
    %1000 = vector.broadcast %cst_430 : f32 to vector<2x18xf32>
    %1001 = vector.broadcast %cst_431 : f32 to vector<2x18xf32>
    %1002 = arith.select %999, %1000, %1001 : vector<2x18xi1>, vector<2x18xf32>
    %cst_432 = arith.constant dense<0.000000e+00> : vector<2x192xf32>
    %1003 = tpu.matmul %1002, %989, %cst_432 {dimension_numbers = #tpu.dot_dimension_numbers<[1], [0], [0], [1], [0, 0, 1, 1], [], []>} : vector<2x18xf32>, vector<18x192xf32>, vector<2x192xf32> -> vector<2x192xf32>
    %c0_433 = arith.constant 0 : index
    %c0_434 = arith.constant 0 : index
    %1004 = vector.load %arg29[%c0_433, %c0_434] : memref<192x64xf32, #tpu.memory_space<vmem>>, vector<192x64xf32>
    %cst_435 = arith.constant dense<0.000000e+00> : vector<2x64xf32>
    %1005 = tpu.matmul %1003, %1004, %cst_435 {dimension_numbers = #tpu.dot_dimension_numbers<[1], [0], [0], [1], [0, 0, 1, 1], [], []>} : vector<2x192xf32>, vector<192x64xf32>, vector<2x64xf32> -> vector<2x64xf32>
    %c66 = arith.constant 66 : index
    %c0_436 = arith.constant 0 : index
    %1006 = vector.load %arg4[%c66, %c0_436] : memref<68x128xf32, #tpu.memory_space<vmem>>, vector<1x64xf32>
    %1007 = vector.broadcast %1006 : vector<1x64xf32> to vector<2x64xf32>
    %1008 = arith.addf %1005, %1007 : vector<2x64xf32>
    %cst_437 = arith.constant 0.000000e+00 : f32
    %1009 = vector.broadcast %cst_437 : f32 to vector<2x64xf32>
    %1010 = arith.maximumf %1008, %1009 : vector<2x64xf32>
    %c0_438 = arith.constant 0 : index
    %c0_439 = arith.constant 0 : index
    %1011 = vector.load %arg30[%c0_438, %c0_439] : memref<64x9xf32, #tpu.memory_space<vmem>>, vector<64x9xf32>
    %cst_440 = arith.constant dense<0.000000e+00> : vector<2x9xf32>
    %1012 = tpu.matmul %1010, %1011, %cst_440 {dimension_numbers = #tpu.dot_dimension_numbers<[1], [0], [0], [1], [0, 0, 1, 1], [], []>} : vector<2x64xf32>, vector<64x9xf32>, vector<2x9xf32> -> vector<2x9xf32>
    %c67 = arith.constant 67 : index
    %c0_441 = arith.constant 0 : index
    %1013 = vector.load %arg4[%c67, %c0_441] : memref<68x128xf32, #tpu.memory_space<vmem>>, vector<1x9xf32>
    %1014 = vector.broadcast %1013 : vector<1x9xf32> to vector<2x9xf32>
    %1015 = arith.addf %1012, %1014 : vector<2x9xf32>
    %cst_442 = arith.constant dense<0xFF800000> : vector<2xf32>
    %1016 = vector.multi_reduction <maximumf>, %1015, %cst_442 [1] : vector<2x9xf32> to vector<2xf32>
    %1017 = vector.shape_cast %1016 : vector<2xf32> to vector<2x1xf32>
    %1018 = vector.broadcast %1017 : vector<2x1xf32> to vector<2x9xf32>
    %1019 = arith.subf %1015, %1018 : vector<2x9xf32>
    %1020 = math.exp %1019 : vector<2x9xf32>
    %cst_443 = arith.constant dense<0.000000e+00> : vector<2xf32>
    %1021 = vector.multi_reduction <add>, %1020, %cst_443 [1] : vector<2x9xf32> to vector<2xf32>
    %1022 = vector.shape_cast %1021 : vector<2xf32> to vector<2x1xf32>
    %1023 = math.log %1022 : vector<2x1xf32>
    %1024 = vector.broadcast %1023 : vector<2x1xf32> to vector<2x9xf32>
    %1025 = arith.subf %1019, %1024 : vector<2x9xf32>
    %c0_444 = arith.constant 0 : index
    %c0_445 = arith.constant 0 : index
    %1026 = vector.load %arg31[%c0_444, %c0_445] : memref<2x9xf32, #tpu.memory_space<vmem>>, vector<2x9xf32>
    tpu.vector_store %arg31[%c0_444, %c0_445], %1025 {strides = array<i32>} : memref<2x9xf32, #tpu.memory_space<vmem>>, vector<2x9xf32>,
    %1027 = arith.addf %310, %863 : vector<1x1xf32>
    %1028 = arith.addf %322, %875 : vector<1x1xf32>
    %1029 = tpu.concatenate %1027, %1028 in 1 : vector<1x1xf32>, vector<1x1xf32> -> vector<1x2xf32>
    %c0_446 = arith.constant 0 : index
    %c0_447 = arith.constant 0 : index
    %1030 = vector.load %arg32[%c0_446, %c0_447] : memref<1x2xf32, #tpu.memory_space<vmem>>, vector<1x2xf32>
    tpu.vector_store %arg32[%c0_446, %c0_447], %1029 {strides = array<i32>} : memref<1x2xf32, #tpu.memory_space<vmem>>, vector<1x2xf32>,
    return
  }
  func.func @transform_0(%arg0: i32) -> (i32, i32) {
    %c0_i32 = arith.constant 0 : i32
    %c0_i32_0 = arith.constant 0 : i32
    %c0_i32_1 = arith.constant 0 : i32
    return %c0_i32, %c0_i32_0 : i32, i32
  }
  func.func @transform_1(%arg0: i32) -> (i32, i32, i32) {
    %c0_i32 = arith.constant 0 : i32
    %c0_i32_0 = arith.constant 0 : i32
    %c0_i32_1 = arith.constant 0 : i32
    %c0_i32_2 = arith.constant 0 : i32
    return %c0_i32, %c0_i32_0, %c0_i32_1 : i32, i32, i32
  }
  func.func @transform_2(%arg0: i32) -> (i32, i32) {
    %c0_i32 = arith.constant 0 : i32
    %c0_i32_0 = arith.constant 0 : i32
    %c0_i32_1 = arith.constant 0 : i32
    return %c0_i32, %c0_i32_0 : i32, i32
  }
  func.func @transform_3(%arg0: i32) -> (i32, i32) {
    %c0_i32 = arith.constant 0 : i32
    %c0_i32_0 = arith.constant 0 : i32
    %c0_i32_1 = arith.constant 0 : i32
    return %c0_i32, %c0_i32_0 : i32, i32
  }
  func.func @transform_4(%arg0: i32) -> (i32, i32) {
    %c0_i32 = arith.constant 0 : i32
    %c0_i32_0 = arith.constant 0 : i32
    %c0_i32_1 = arith.constant 0 : i32
    return %c0_i32, %c0_i32_0 : i32, i32
  }
  func.func @transform_5(%arg0: i32) -> (i32, i32) {
    %c0_i32 = arith.constant 0 : i32
    %c0_i32_0 = arith.constant 0 : i32
    %c0_i32_1 = arith.constant 0 : i32
    return %c0_i32, %c0_i32_0 : i32, i32
  }
  func.func @transform_6(%arg0: i32) -> (i32, i32) {
    %c0_i32 = arith.constant 0 : i32
    %c0_i32_0 = arith.constant 0 : i32
    %c0_i32_1 = arith.constant 0 : i32
    return %c0_i32, %c0_i32_0 : i32, i32
  }
  func.func @transform_7(%arg0: i32) -> (i32, i32) {
    %c0_i32 = arith.constant 0 : i32
    %c0_i32_0 = arith.constant 0 : i32
    %c0_i32_1 = arith.constant 0 : i32
    return %c0_i32, %c0_i32_0 : i32, i32
  }
  func.func @transform_8(%arg0: i32) -> (i32, i32) {
    %c0_i32 = arith.constant 0 : i32
    %c0_i32_0 = arith.constant 0 : i32
    %c0_i32_1 = arith.constant 0 : i32
    return %c0_i32, %c0_i32_0 : i32, i32
  }
  func.func @transform_9(%arg0: i32) -> (i32, i32) {
    %c0_i32 = arith.constant 0 : i32
    %c0_i32_0 = arith.constant 0 : i32
    %c0_i32_1 = arith.constant 0 : i32
    return %c0_i32, %c0_i32_0 : i32, i32
  }
  func.func @transform_10(%arg0: i32) -> (i32, i32) {
    %c0_i32 = arith.constant 0 : i32
    %c0_i32_0 = arith.constant 0 : i32
    %c0_i32_1 = arith.constant 0 : i32
    return %c0_i32, %c0_i32_0 : i32, i32
  }
  func.func @transform_11(%arg0: i32) -> (i32, i32) {
    %c0_i32 = arith.constant 0 : i32
    %c0_i32_0 = arith.constant 0 : i32
    %c0_i32_1 = arith.constant 0 : i32
    return %c0_i32, %c0_i32_0 : i32, i32
  }
  func.func @transform_12(%arg0: i32) -> (i32, i32) {
    %c0_i32 = arith.constant 0 : i32
    %c0_i32_0 = arith.constant 0 : i32
    %c0_i32_1 = arith.constant 0 : i32
    return %c0_i32, %c0_i32_0 : i32, i32
  }
  func.func @transform_13(%arg0: i32) -> (i32, i32) {
    %c0_i32 = arith.constant 0 : i32
    %c0_i32_0 = arith.constant 0 : i32
    %c0_i32_1 = arith.constant 0 : i32
    return %c0_i32, %c0_i32_0 : i32, i32
  }
  func.func @transform_14(%arg0: i32) -> (i32, i32) {
    %c0_i32 = arith.constant 0 : i32
    %c0_i32_0 = arith.constant 0 : i32
    %c0_i32_1 = arith.constant 0 : i32
    return %c0_i32, %c0_i32_0 : i32, i32
  }
  func.func @transform_15(%arg0: i32) -> (i32, i32) {
    %c0_i32 = arith.constant 0 : i32
    %c0_i32_0 = arith.constant 0 : i32
    %c0_i32_1 = arith.constant 0 : i32
    return %c0_i32, %c0_i32_0 : i32, i32
  }
  func.func @transform_16(%arg0: i32) -> (i32, i32) {
    %c0_i32 = arith.constant 0 : i32
    %c0_i32_0 = arith.constant 0 : i32
    %c0_i32_1 = arith.constant 0 : i32
    return %c0_i32, %c0_i32_0 : i32, i32
  }
  func.func @transform_17(%arg0: i32) -> (i32, i32) {
    %c0_i32 = arith.constant 0 : i32
    %c0_i32_0 = arith.constant 0 : i32
    %c0_i32_1 = arith.constant 0 : i32
    return %c0_i32, %c0_i32_0 : i32, i32
  }
  func.func @transform_18(%arg0: i32) -> (i32, i32) {
    %c0_i32 = arith.constant 0 : i32
    %c0_i32_0 = arith.constant 0 : i32
    %c0_i32_1 = arith.constant 0 : i32
    return %c0_i32, %c0_i32_0 : i32, i32
  }
  func.func @transform_19(%arg0: i32) -> (i32, i32) {
    %c0_i32 = arith.constant 0 : i32
    %c0_i32_0 = arith.constant 0 : i32
    %c0_i32_1 = arith.constant 0 : i32
    return %c0_i32, %c0_i32_0 : i32, i32
  }
  func.func @transform_20(%arg0: i32) -> (i32, i32) {
    %c0_i32 = arith.constant 0 : i32
    %c0_i32_0 = arith.constant 0 : i32
    %c0_i32_1 = arith.constant 0 : i32
    return %c0_i32, %c0_i32_0 : i32, i32
  }
  func.func @transform_21(%arg0: i32) -> (i32, i32) {
    %c0_i32 = arith.constant 0 : i32
    %c0_i32_0 = arith.constant 0 : i32
    %c0_i32_1 = arith.constant 0 : i32
    return %c0_i32, %c0_i32_0 : i32, i32
  }
  func.func @transform_22(%arg0: i32) -> (i32, i32) {
    %c0_i32 = arith.constant 0 : i32
    %c0_i32_0 = arith.constant 0 : i32
    %c0_i32_1 = arith.constant 0 : i32
    return %c0_i32, %c0_i32_0 : i32, i32
  }
  func.func @transform_23(%arg0: i32) -> (i32, i32) {
    %c0_i32 = arith.constant 0 : i32
    %c0_i32_0 = arith.constant 0 : i32
    %c0_i32_1 = arith.constant 0 : i32
    return %c0_i32, %c0_i32_0 : i32, i32
  }
  func.func @transform_24(%arg0: i32) -> (i32, i32) {
    %c0_i32 = arith.constant 0 : i32
    %c0_i32_0 = arith.constant 0 : i32
    %c0_i32_1 = arith.constant 0 : i32
    return %c0_i32, %c0_i32_0 : i32, i32
  }
  func.func @transform_25(%arg0: i32) -> (i32, i32) {
    %c0_i32 = arith.constant 0 : i32
    %c0_i32_0 = arith.constant 0 : i32
    %c0_i32_1 = arith.constant 0 : i32
    return %c0_i32, %c0_i32_0 : i32, i32
  }
  func.func @transform_26(%arg0: i32) -> (i32, i32) {
    %c0_i32 = arith.constant 0 : i32
    %c0_i32_0 = arith.constant 0 : i32
    %c0_i32_1 = arith.constant 0 : i32
    return %c0_i32, %c0_i32_0 : i32, i32
  }
  func.func @transform_27(%arg0: i32) -> (i32, i32) {
    %c0_i32 = arith.constant 0 : i32
    %c0_i32_0 = arith.constant 0 : i32
    %c0_i32_1 = arith.constant 0 : i32
    return %c0_i32, %c0_i32_0 : i32, i32
  }
  func.func @transform_28(%arg0: i32) -> (i32, i32) {
    %c0_i32 = arith.constant 0 : i32
    %c0_i32_0 = arith.constant 0 : i32
    %c0_i32_1 = arith.constant 0 : i32
    return %c0_i32, %c0_i32_0 : i32, i32
  }
  func.func @transform_29(%arg0: i32) -> (i32, i32) {
    %c0_i32 = arith.constant 0 : i32
    %c0_i32_0 = arith.constant 0 : i32
    %c0_i32_1 = arith.constant 0 : i32
    return %c0_i32, %c0_i32_0 : i32, i32
  }
  func.func @transform_30(%arg0: i32) -> (i32, i32) {
    %c0_i32 = arith.constant 0 : i32
    %c0_i32_0 = arith.constant 0 : i32
    %c0_i32_1 = arith.constant 0 : i32
    return %c0_i32, %c0_i32_0 : i32, i32
  }
  func.func @transform_31(%arg0: i32) -> (i32, i32) {
    %c0_i32 = arith.constant 0 : i32
    %c0_i32_0 = arith.constant 0 : i32
    %c0_i32_1 = arith.constant 0 : i32
    return %c0_i32, %c0_i32_0 : i32, i32
  }
}

</mosaic_0001>

<bundles_post_ra>
// kernel: net_forward.1
= control target key start
LH: loop header
LB: loop body
LE: loop exit
PB: predicated region body
PF: predicated region fallthrough
CT: control target
= control target key end

     0   :  { %s13284_s6 = smov 1   ;;  %s13285_s10 = smov 2   ;;  %s16383_s0 = inlined_call_operand.smem [shape: u32[32], index: -1, kind: input, shape index: {}] }
   0x1   :  { %s13335_s5 = sld [smem:[%s16383_s0]]   ;;  %s13286_s14 = smov 3  }
   0x2   :  { %s13340_s9 = sld [smem:[%s16383_s0 + %s13284_s6]]   ;;  %s13287_s18 = smov 4  }
   0x3   :  { %s13345_s13 = sld [smem:[%s16383_s0 + %s13285_s10]]   ;;  %s13288_s22 = smov 5  }
   0x4   :  { %s13350_s17 = sld [smem:[%s16383_s0 + %s13286_s14]]   ;;  %s13289_s26 = smov 6  }
   0x5   :  { %s13355_s21 = sld [smem:[%s16383_s0 + %s13287_s18]]   ;;  %s13290_s30 = smov 7  }
   0x6   :  { %s13360_s25 = sld [smem:[%s16383_s0 + %s13288_s22]]   ;;  %s13291_s4 = smov 8  }
   0x7   :  { %s13365_s29 = sld [smem:[%s16383_s0 + %s13289_s26]]   ;;  %s13292_s10 = smov 9  }
   0x8   :  { %s13370_s3 = sld [smem:[%s16383_s0 + %s13290_s30]]   ;;  %s13293_s15 = smov 10  }
   0x9   :  { %s13375_s8 = sld [smem:[%s16383_s0 + %s13291_s4]]   ;;  %s13294_s20 = smov 11  }
   0xa   :  { %s13380_s14 = sld [smem:[%s16383_s0 + %s13292_s10]]   ;;  %s13295_s26 = smov 12  }
   0xb   :  { %s13385_s19 = sld [smem:[%s16383_s0 + %s13293_s15]]   ;;  %s13296_s1 = smov 13  }
   0xc   :  { %s13390_s24 = sld [smem:[%s16383_s0 + %s13294_s20]]   ;;  %s13297_s7 = smov 14  }
   0xd   :  { %s13395_s30 = sld [smem:[%s16383_s0 + %s13295_s26]]   ;;  %s13298_s15 = smov 15  }
   0xe   :  { %s13400_s6 = sld [smem:[%s16383_s0 + %s13296_s1]]   ;;  %s13299_s22 = smov 16  }
   0xf   :  { %s13405_s12 = sld [smem:[%s16383_s0 + %s13297_s7]]   ;;  %s13300_s28 = smov 17  }
  0x10   :  { %s13410_s20 = sld [smem:[%s16383_s0 + %s13298_s15]]   ;;  %s13301_s7 = smov 18  }
  0x11   :  { %s13415_s27 = sld [smem:[%s16383_s0 + %s13299_s22]]   ;;  %s13302_s15 = smov 19  }
  0x12   :  { %s13420_s4 = sld [smem:[%s16383_s0 + %s13300_s28]]   ;;  %s13303_s22 = smov 20  }
  0x13   :  { %s13304_s28 = smov 21  }
  0x15   :  { %16427 = sst [smem:[#allocation5_spill]] %s13405_s12 }
  0x16   :  { %16428 = sst [smem:[#allocation6_spill]] %s13410_s20 }
  0x17   :  { %16429 = sst [smem:[#allocation7_spill]] %s13415_s27 }
  0x18   :  { %16430 = sst [smem:[#allocation8_spill]] %s13420_s4 }
  0x19   :  { %s13425_s12 = sld [smem:[%s16383_s0 + %s13301_s7]]   ;;  %s13305_s7 = smov 22  }
  0x1a   :  { %s13430_s20 = sld [smem:[%s16383_s0 + %s13302_s15]]   ;;  %s13306_s15 = smov 23  }
  0x1b   :  { %s13435_s27 = sld [smem:[%s16383_s0 + %s13303_s22]]   ;;  %s13307_s22 = smov 24  }
  0x1c   :  { %s13440_s4 = sld [smem:[%s16383_s0 + %s13304_s28]]   ;;  %s13308_s28 = smov 25  }
  0x1f   :  { %16431 = sst [smem:[#allocation9_spill]] %s13425_s12 }
  0x20   :  { %16432 = sst [smem:[#allocation10_spill]] %s13430_s20 }
  0x21   :  { %16433 = sst [smem:[#allocation11_spill]] %s13435_s27 }
  0x22   :  { %16434 = sst [smem:[#allocation12_spill]] %s13440_s4 }
  0x23   :  { %s13445_s12 = sld [smem:[%s16383_s0 + %s13305_s7]]   ;;  %s13309_s7 = smov 26  }
  0x24   :  { %s13450_s20 = sld [smem:[%s16383_s0 + %s13306_s15]]   ;;  %s13310_s15 = smov 27  }
  0x25   :  { %s13455_s27 = sld [smem:[%s16383_s0 + %s13307_s22]]   ;;  %s13311_s22 = smov 28  }
  0x26   :  { %s13460_s4 = sld [smem:[%s16383_s0 + %s13308_s28]]   ;;  %s13312_s28 = smov 29  }
  0x29   :  { %16435 = sst [smem:[#allocation13_spill]] %s13445_s12 }
  0x2a   :  { %16436 = sst [smem:[#allocation14_spill]] %s13450_s20 }
  0x2b   :  { %16437 = sst [smem:[#allocation15_spill]] %s13455_s27 }
  0x2c   :  { %16438 = sst [smem:[#allocation16_spill]] %s13460_s4 }
  0x2d   :  { %s13465_s12 = sld [smem:[%s16383_s0 + %s13309_s7]]   ;;  %s13313_s7 = smov 30  }
  0x2e   :  { %s13470_s20 = sld [smem:[%s16383_s0 + %s13310_s15]]   ;;  %s13314_s15 = smov 31  }
  0x2f   :  { %s13475_s27 = sld [smem:[%s16383_s0 + %s13311_s22]]  }
  0x30   :  { %s13480_s4 = sld [smem:[%s16383_s0 + %s13312_s28]]  }
  0x33   :  { %16439 = sst [smem:[#allocation17_spill]] %s13465_s12 }
  0x34   :  { %16440 = sst [smem:[#allocation18_spill]] %s13470_s20 }
  0x35   :  { %s13485_s12 = sld [smem:[%s16383_s0 + %s13313_s7]]  }
  0x36   :  { %s13490_s20 = sld [smem:[%s16383_s0 + %s13314_s15]]  }
  0x37   :  { %v10006_v0 = vld [vmem:[%s13340_s9 + $0x30] sm:$0xff]  ;;  %v10004_v1 = vld [vmem:[%s13340_s9 + $0x20] sm:$0xff]  ;;  %v10007_v2 = vld [vmem:[%s13340_s9 + $0x38] sm:$0xff]  ;;  %s13315_s22 = smov 32   ;;  %vm150_vm0 = vcmask 261120   ;;  %vm180_vm1 = vcmask 523264  }
  0x38   :  { %168 = vrot.lane.b32.xlu1 %v10006_v0, %s13315_s22  ;;  %164 = vrot.lane.b32.xlu0 %v10004_v1, %s13315_s22  ;;  %v10005_v3 = vld [vmem:[%s13340_s9 + $0x28] sm:$0xff]  ;;  %v13497_v4 = vld [vmem:[%s13335_s5] sm:$0xff] }
  0x39   :  { %v13500_v5 = vld [vmem:[%s13335_s5 + $0x8] sm:$0xff]  ;;  %v13503_v6 = vld [vmem:[%s13335_s5 + $0x10] sm:$0xff]  ;;  %v13506_v7 = vld [vmem:[%s13335_s5 + $0x18] sm:$0xff] }
  0x3a   :  { %v11900_v8 = vpack.c.bf16 %v13500_v5, %v13497_v4  ;;  %v11904_v9 = vpack.c.bf16 %v13506_v7, %v13503_v6  ;;  %v146_v10 = vld [vmem:[%s13340_s9] sm:$0xff]  ;;  %v13517_v12 = vld [vmem:[%s13335_s5 + $0x28] sm:$0xff] }
  0x3b   :  { %v13514_v11 = vld [vmem:[%s13335_s5 + $0x20] sm:$0xff]  ;;  %v13520_v13 = vsel %vm150_vm0, %v146_v10, 0.0 }
  0x3c   :  { %170 = vrot.lane.b32.xlu1 %v10007_v2, %s13315_s22  ;;  %166 = vrot.lane.b32.xlu0 %v10005_v3, %s13315_s22  ;;  %16441 = vst [vmem:[#allocation19_spill] sm:$0xff] %v13520_v13 }
  0x3d   :  { %11901 = vmatprep.subr.bf16.mxu0 %v11900_v8  ;;  %10891 = vmatprep.mubr.msk.f32.mxu0 %vm180_vm1, %v13520_v13 }
  0x3e   :  { %69 = vsyncpa [#allocation3], 0  ;;  %11903 = vmatpush3.bf16.msra.mxu0 %v11900_v8  ;;  %v11908_v14 = vpack.c.bf16 %v13517_v12, %v13514_v11  ;;  %v136_v15 = vld [vmem:[%s13335_s5 + $0x30] sm:$0xff]  ;;  %v137_v16 = vld [vmem:[%s13335_s5 + $0x38] sm:$0xff]  ;;  %v181_v24 = vsel %vm180_vm1, %v13520_v13, 0.0  ;;  %vm385_vm2 = vcmask 1042432  }
  0x3f   :  { %11905 = vmatprep.subr.bf16.mxu0 %v11904_v9  ;;  %v11912_v17 = vpack.c.bf16 %v137_v16, %v136_v15  ;;  %v147_v18 = vld [vmem:[%s13340_s9 + $0x8] sm:$0xff]  ;;  %v148_v19 = vld [vmem:[%s13340_s9 + $0x10] sm:$0xff]  ;;  %v149_v22 = vld [vmem:[%s13340_s9 + $0x18] sm:$0xff]  ;;  %vm360_vm3 = vcmask 23552   ;;  %v13316_v45 = vmov 0   ;;  %s13317_s0 = smov 64  }
  0x40   :  { %v13531_v20 = vsel %vm150_vm0, %v147_v18, 0.0  ;;  %v13534_v21 = vsel %vm150_vm0, %v148_v19, 0.0  ;;  %v13542_v23 = vsel %vm150_vm0, %v149_v22, 0.0  ;;  %v359_v40 = vld [vmem:[%s13355_s21 + $0x3] sm:$0x7]  ;;  %10905 = vmatprep.mubr.msk.f32.mxu1 %vm360_vm3, %v13497_v4  ;;  %13096 = vset.pattern.permute.xlu1 %v13316_v45  ;;  %v139_v46 = vld [vmem:[%s13345_s13 + $0x8] sm:$0xff]  ;;  %vm14847_vm9 = vmpackc.low %vm150_vm0, %vm150_vm0 }
  0x41   :  { %v187_v25 = vsel %vm180_vm1, %v13534_v21, 0.0  ;;  %v184_v26 = vsel %vm180_vm1, %v13531_v20, 0.0  ;;  %v190_v27 = vsel %vm180_vm1, %v13542_v23, 0.0  ;;  %v358_v41 = vld [vmem:[%s13355_s21] sm:$0x7]  ;;  %10903 = vmatprep.subr.msk.mxu1 %vm385_vm2, %v359_v40  ;;  %13097 = vset.pattern.permute.xlu0 %v13316_v45  ;;  %v140_v48 = vld [vmem:[%s13345_s13 + $0x10] sm:$0xff]  ;;  %vm10171_vm10 = vmneg %vm150_vm0 }
  0x42   :  { %11907 = vmatpush3.bf16.msra.mxu0 %v11904_v9  ;;  %10904 = vmatpush3.msk.msra.mxu1 %vm385_vm2, %v359_v40  ;;  %v138_v43 = vld [vmem:[%s13345_s13] sm:$0xff]  ;;  %v141_v52 = vld [vmem:[%s13345_s13 + $0x18] sm:$0xff]  ;;  %v143_v56 = vld [vmem:[%s13345_s13 + $0x28] sm:$0xff]  ;;  %vm1697_vm4 = vcmask 64512   ;;  %vm3838_vm12 = vcmask 130048   ;;  %vm5042_vm13 = vcmask 1041408  }
  0x43   :  { %11909 = vmatprep.subr.bf16.mxu0 %v11908_v14  ;;  %10906 = vmatmul.mubr.msk.f32.vlgmr.msra.gmra.mrb[0].mxu1 %vm360_vm3, %v13500_v5  ;;  %v142_v55 = vld [vmem:[%s13345_s13 + $0x20] sm:$0xff]  ;;  %v144_v59 = vld [vmem:[%s13345_s13 + $0x30] sm:$0xff]  ;;  %v145_v2 = vld [vmem:[%s13345_s13 + $0x38] sm:$0xff]  ;;  %s16490_s13 = sld [smem:[#allocation5_spill]]  ;;  %vm4962_vm14 = vcmask 15360   ;;  %s16491_s21 = sld [smem:[#allocation7_spill]] }
  0x44   :  { %10917 = vmatprep.subr.msk.mxu1 %vm385_vm2, %v358_v41  ;;  %10908 = vmatprep.mubr.msk.f32.mxu1 %vm360_vm3, %v13503_v6  ;;  %v13683_v40 = vld [vmem:[%s13350_s17] ss:$0 sm:$0xff]  ;;  %vm12161_vm11 = vmpackc.low %vm10171_vm10, %vm10171_vm10  ;;  %vm13324_vm10 = vmmov 1   ;;  %s16501_s23 = sld [smem:[#allocation15_spill]]  ;;  %s16502_s26 = sld [smem:[#allocation16_spill]] }
  0x45   :  { %10918 = vmatpush3.msk.msra.mxu1 %vm385_vm2, %v358_v41  ;;  %s16503_s28 = sld [smem:[#allocation17_spill]]  ;;  %s16504_s1 = sld [smem:[#allocation18_spill]] }
  0x46   :  { %11911 = vmatpush3.bf16.msra.mxu0 %v11908_v14 }
  0x47   :  { %11913 = vmatprep.subr.bf16.mxu0 %v11912_v17  ;;  %10909 = vmatmul.mubr.msk.f32.gmra.mrb[2].mxu1 %vm360_vm3, %v13506_v7 }
  0x48   :  { %10911 = vmatprep.mubr.msk.f32.mxu1 %vm360_vm3, %v13514_v11 }
  0x4a   :  { %11915 = vmatpush3.bf16.msra.mxu0 %v11912_v17 }
  0x4b   :  { %10912 = vmatmul.mubr.msk.f32.gmra.mrb[4].mxu1 %vm360_vm3, %v13517_v12 }
  0x4c   :  { %10914 = vmatprep.mubr.msk.f32.mxu1 %vm360_vm3, %v136_v15 }
  0x4d   :  { %10892 = vmatmul.mubr.msk.f32.vlgmr.msra.gmra.mrb[0].mxu0 %vm180_vm1, %v13531_v20 }
  0x4e   :  { %10894 = vmatprep.mubr.msk.f32.mxu0 %vm180_vm1, %v13534_v21 }
  0x4f   :  { %10915 = vmatmul.mubr.msk.f32.gmra.mrb[6].mxu1 %vm360_vm3, %v137_v16 }
  0x51   :  { %10895 = vmatmul.mubr.msk.f32.gmra.mrb[2].mxu0 %vm180_vm1, %v13542_v23 }
  0x5b   :  { %182 = vadd.xlane.f32.xlu0 %v181_v24 }
  0x5f   :  { %188 = vadd.xlane.f32.xlu0 %v187_v25 }
  0x60   :  { %185 = vadd.xlane.f32.xlu1 %v184_v26 }
  0x63   :  { %191 = vadd.xlane.f32.xlu0 %v190_v27 }
  0xaa   :  { %v13554_v28 = vpop.permute.xlu1 %168  ;;  %v13556_v29 = vpop.permute.xlu0 %164 }
  0xab   :  { %16442 = vst [vmem:[#allocation20_spill] sm:$0xff] %v13554_v28  ;;  %16443 = vst [vmem:[#allocation21_spill] sm:$0xff] %v13556_v29  ;;  %v13560_v30 = vsel %vm150_vm0, 0.0, %v13554_v28  ;;  %v13564_v31 = vsel %vm150_vm0, 0.0, %v13556_v29 }
  0xac   :  { %10897 = vmatprep.mubr.msk.f32.mxu0 %vm180_vm1, %v13564_v31  ;;  %v193_v32 = vsel %vm180_vm1, %v13564_v31, 0.0  ;;  %v199_v35 = vsel %vm180_vm1, %v13560_v30, 0.0 }
  0xad   :  { %194 = vadd.xlane.f32.xlu1 %v193_v32 }
  0xae   :  { %v13570_v33 = vpop.permute.xlu1 %170  ;;  %v13572_v34 = vpop.permute.xlu0 %166 }
  0xaf   :  { %16444 = vst [vmem:[#allocation22_spill] sm:$0xff] %v13570_v33  ;;  %16445 = vst [vmem:[#allocation23_spill] sm:$0xff] %v13572_v34  ;;  %v13578_v36 = vsel %vm150_vm0, 0.0, %v13570_v33  ;;  %v13582_v37 = vsel %vm150_vm0, 0.0, %v13572_v34 }
  0xb0   :  { %10898 = vmatmul.mubr.msk.f32.gmra.mrb[4].mxu0 %vm180_vm1, %v13582_v37  ;;  %v196_v38 = vsel %vm180_vm1, %v13582_v37, 0.0  ;;  %v202_v39 = vsel %vm180_vm1, %v13578_v36, 0.0 }
  0xb1   :  { %200 = vadd.xlane.f32.xlu1 %v199_v35  ;;  %197 = vadd.xlane.f32.xlu0 %v196_v38 }
  0xb2   :  { %10900 = vmatprep.mubr.msk.f32.mxu0 %vm180_vm1, %v13560_v30 }
  0xb4   :  { %10901 = vmatmul.mubr.msk.f32.gmra.mrb[6].mxu0 %vm180_vm1, %v13578_v36 }
  0xb5   :  { %203 = vadd.xlane.f32.xlu0 %v202_v39  ;;  %10947 = vmatprep.mubr.msk.f32.mxu0 %vm180_vm1, %v13520_v13 }
  0xc2   :  { %649 = vperm.xlu1 %13096, %v138_v43  }
  0xc6   :  { %659 = vperm.xlu1 %13096, %v140_v48  }
  0xca   :  { %664 = vperm.xlu1 %13096, %v141_v52  }
  0xcb   :  { %654 = vperm.xlu0 %13097, %v139_v46  }
  0xce   :  { %669 = vperm.xlu1 %13096, %v142_v55  }
  0xd2   :  { %674 = vperm.xlu1 %13096, %v143_v56  }
  0xd6   :  { %679 = vperm.xlu1 %13096, %v144_v59  }
  0xda   :  { %684 = vperm.xlu1 %13096, %v145_v2  }
  0xe8   :  { %v183_v42 = vpop.xlane.xlu0 %182 }
  0xe9   :  { %v205_v50 = vmax.f32 %v183_v42, 1.0 }
  0xec   :  { %v189_v44 = vpop.xlane.xlu0 %188 }
  0xed   :  { %v186_v47 = vpop.xlane.xlu1 %185  ;;  %v207_v54 = vmax.f32 %v189_v44, 1.0 }
  0xee   :  { %v206_v49 = vmax.f32 %v186_v47, 1.0 }
  0xf0   :  { %v192_v51 = vpop.xlane.xlu0 %191  ;;  %13108 = vrcp.f32 %v206_v49 }
  0xf1   :  { %v208_v53 = vmax.f32 %v192_v51, 1.0  ;;  %13110 = vrcp.f32 %v205_v50 }
  0xf3   :  { %13112 = vrcp.f32 %v208_v53 }
  0xf4   :  { %13114 = vrcp.f32 %v207_v54 }
  0xfa   :  { %v13622_v57 = vpop.eup %13108 }
  0xfb   :  { %v13624_v58 = vpop.eup %13110 }
  0xfd   :  { %v13630_v63 = vpop.eup %13112 }
  0xfe   :  { %v13635_v1 = vpop.eup %13114 }
 0x120   :  { %v10893_v60 = vpop.f32.mrb[0].mxu0 }
 0x121   :  { %v13628_v61 = vmul.f32 %v13622_v57, %v10893_v60  ;;  %v311_v62 = vpop.f32.mrb[1].mxu0 }
 0x122   :  { %v13633_v0 = vmul.f32 %v13624_v58, %v311_v62 }
 0x124   :  { %v10896_v3 = vpop.f32.mrb[2].mxu0  ;;  %10919 = vmatprep.mubr.msk.f32.mxu1 %vm360_vm3, %v13633_v0 }
 0x125   :  { %v13641_v4 = vmul.f32 %v13630_v63, %v10896_v3  ;;  %v321_v5 = vpop.f32.mrb[3].mxu0  ;;  %10920 = vmatmul.mubr.msk.f32.vlgmr.msra.gmra.mrb[0].mxu1 %vm360_vm3, %v13628_v61 }
 0x126   :  { %v13646_v6 = vmul.f32 %v13635_v1, %v321_v5 }
 0x128   :  { %10922 = vmatprep.mubr.msk.f32.mxu1 %vm360_vm3, %v13646_v6 }
 0x129   :  { %10923 = vmatmul.mubr.msk.f32.gmra.mrb[2].mxu1 %vm360_vm3, %v13641_v4 }
 0x13a   :  { %v195_v7 = vpop.xlane.xlu1 %194 }
 0x13b   :  { %v209_v9 = vmax.f32 %v195_v7, 1.0 }
 0x13d   :  { %13116 = vrcp.f32 %v209_v9 }
 0x13e   :  { %v198_v8 = vpop.xlane.xlu0 %197  ;;  %v201_v10 = vpop.xlane.xlu1 %200 }
 0x13f   :  { %v210_v11 = vmax.f32 %v198_v8, 1.0  ;;  %v211_v14 = vmax.f32 %v201_v10, 1.0 }
 0x141   :  { %13118 = vrcp.f32 %v210_v11 }
 0x142   :  { %v204_v12 = vpop.xlane.xlu0 %203  ;;  %13120 = vrcp.f32 %v211_v14  ;;  %v13680_v39 = vpop.permute.xlu1 %649 }
 0x143   :  { %v212_v15 = vmax.f32 %v204_v12, 1.0 }
 0x145   :  { %13122 = vrcp.f32 %v212_v15 }
 0x146   :  { %v13686_v44 = vpop.permute.xlu1 %659 }
 0x147   :  { %v13652_v17 = vpop.eup %13116 }
 0x14a   :  { %v13689_v46 = vpop.permute.xlu0 %654  ;;  %v13703_v60 = vpop.permute.xlu1 %664 }
 0x14b   :  { %v13654_v19 = vpop.eup %13118 }
 0x14c   :  { %v13664_v26 = vpop.eup %13120 }
 0x14f   :  { %v13668_v32 = vpop.eup %13122 }
 0x183   :  { %v10899_v16 = vpop.f32.mrb[4].mxu0 }
 0x184   :  { %v331_v18 = vpop.f32.mrb[5].mxu0  ;;  %v13660_v24 = vmul.f32 %v13654_v19, %v10899_v16 }
 0x185   :  { %v13657_v22 = vmul.f32 %v13652_v17, %v331_v18  ;;  %v901_v18 = vld [vmem:[%s13360_s25 + $0x40] sm:$0xff] }
 0x187   :  { %v10902_v25 = vpop.f32.mrb[6].mxu0  ;;  %10925 = vmatprep.mubr.msk.f32.mxu1 %vm360_vm3, %v13657_v22 }
 0x188   :  { %v341_v27 = vpop.f32.mrb[7].mxu0  ;;  %10926 = vmatmul.mubr.msk.f32.gmra.mrb[4].mxu1 %vm360_vm3, %v13660_v24  ;;  %v13674_v38 = vmul.f32 %v13668_v32, %v10902_v25  ;;  %v902_v25 = vld [vmem:[%s13360_s25 + $0x48] sm:$0xff] }
 0x189   :  { %v13671_v35 = vmul.f32 %v13664_v26, %v341_v27 }
 0x18b   :  { %10928 = vmatprep.mubr.msk.f32.mxu1 %vm360_vm3, %v13671_v35 }
 0x18c   :  { %10929 = vmatmul.mubr.msk.f32.gmra.mrb[6].mxu1 %vm360_vm3, %v13674_v38 }
 0x1f8   :  { %v10921_v41 = vpop.f32.mrb[0].mxu1 }
 0x1f9   :  { %v632_v42 = vadd.f32 %v10921_v41, %v13683_v40  ;;  %v587_v43 = vpop.f32.mrb[1].mxu1  ;;  %v11932_v41 = vpack.c.bf16 %v902_v25, %v901_v18 }
 0x1fa   :  { %v631_v45 = vadd.f32 %v13683_v40, %v587_v43 }
 0x1fb   :  { %v640_v47 = vmax.f32 %v632_v42, 0.0  ;;  %11933 = vmatprep.subr.bf16.mxu1 %v11932_v41 }
 0x1fc   :  { %v639_v48 = vmax.f32 %v631_v45, 0.0  ;;  %v10924_v49 = vpop.f32.mrb[2].mxu1  ;;  %11935 = vmatpush3.bf16.msra.mxu1 %v11932_v41 }
 0x1fd   :  { %v634_v50 = vadd.f32 %v10924_v49, %v13683_v40  ;;  %v597_v51 = vpop.f32.mrb[3].mxu1  ;;  %v13693_v52 = vmul.f32 %v13689_v46, %v640_v47  ;;  %v904_v49 = vld [vmem:[%s13360_s25 + $0x58] sm:$0xff] }
 0x1fe   :  { %v13696_v53 = vmul.f32 %v13680_v39, %v639_v48  ;;  %v633_v54 = vadd.f32 %v13683_v40, %v597_v51  ;;  %v903_v48 = vld [vmem:[%s13360_s25 + $0x50] sm:$0xff] }
 0x1ff   :  { %v642_v55 = vmax.f32 %v634_v50, 0.0  ;;  %v696_v56 = vsel %vm180_vm1, %v13693_v52, 0.0  ;;  %v718_v59 = vmul.f32 %v13693_v52, %v13693_v52  ;;  %v11936_v51 = vpack.c.bf16 %v904_v49, %v903_v48 }
 0x200   :  { %v695_v62 = vsel %vm180_vm1, %v13696_v53, 0.0  ;;  %v717_v2 = vmul.f32 %v13696_v53, %v13696_v53  ;;  %v641_v3 = vmax.f32 %v633_v54, 0.0  ;;  %v905_v54 = vld [vmem:[%s13360_s25 + $0x60] sm:$0xff] }
 0x201   :  { %v13710_v5 = vmul.f32 %v13703_v60, %v642_v55  ;;  %v697_v7 = vadd.f32 %v696_v56, %v695_v62  ;;  %v726_v8 = vsel %vm180_vm1, %v718_v59, 0.0  ;;  %11937 = vmatprep.subr.bf16.mxu1 %v11936_v51  ;;  %v906_v55 = vld [vmem:[%s13360_s25 + $0x68] sm:$0xff]  ;;  %v907_v59 = vld [vmem:[%s13360_s25 + $0x70] sm:$0xff]  ;;  %v908_v62 = vld [vmem:[%s13360_s25 + $0x78] sm:$0xff] }
 0x202   :  { %v725_v9 = vsel %vm180_vm1, %v717_v2, 0.0  ;;  %v13715_v10 = vmul.f32 %v13686_v44, %v641_v3  ;;  %11939 = vmatpush3.bf16.msra.mxu1 %v11936_v51  ;;  %v11940_v56 = vpack.c.bf16 %v906_v55, %v905_v54  ;;  %v11944_v2 = vpack.c.bf16 %v908_v62, %v907_v59  ;;  %v893_v3 = vld [vmem:[%s13360_s25] sm:$0xff] }
 0x203   :  { %v720_v11 = vmul.f32 %v13710_v5, %v13710_v5  ;;  %v727_v12 = vadd.f32 %v726_v8, %v725_v9  ;;  %v700_v14 = vsel %vm180_vm1, %v13710_v5, 0.0  ;;  %v13740_v9 = vpop.permute.xlu1 %669 }
 0x204   :  { %v698_v15 = vsel %vm180_vm1, %v13715_v10, 0.0  ;;  %v719_v16 = vmul.f32 %v13715_v10, %v13715_v10  ;;  %11941 = vmatprep.subr.bf16.mxu1 %v11940_v56 }
 0x205   :  { %v699_v27 = vadd.f32 %v698_v15, %v697_v7  ;;  %v730_v42 = vsel %vm180_vm1, %v720_v11, 0.0  ;;  %v894_v7 = vld [vmem:[%s13360_s25 + $0x8] sm:$0xff] }
 0x206   :  { %v728_v43 = vsel %vm180_vm1, %v719_v16, 0.0  ;;  %11943 = vmatpush3.bf16.msra.mxu1 %v11940_v56  ;;  %v13737_v8 = vpack.c.bf16 %v894_v7, %v893_v3 }
 0x207   :  { %v701_v45 = vadd.f32 %v700_v14, %v699_v27  ;;  %v729_v47 = vadd.f32 %v728_v43, %v727_v12  ;;  %11945 = vmatprep.subr.bf16.mxu1 %v11944_v2  ;;  %v13742_v11 = vpop.permute.xlu1 %674 }
 0x209   :  { %v731_v50 = vadd.f32 %v730_v42, %v729_v47 }
 0x20a   :  { %11947 = vmatpush3.bf16.msra.mxu1 %v11944_v2 }
 0x20b   :  { %11949 = vmatprep.subr.bf16.mxu1 %v13737_v8  ;;  %v13745_v16 = vpop.permute.xlu1 %679 }
 0x20c   :  { %16446 = vst [vmem:[#allocation24_spill] sm:$0xff] %v13745_v16 }
 0x20f   :  { %v13754_v54 = vpop.permute.xlu1 %684 }
 0x25b   :  { %v10927_v12 = vpop.f32.mrb[4].mxu1 }
 0x25c   :  { %v636_v14 = vadd.f32 %v10927_v12, %v13683_v40  ;;  %v607_v15 = vpop.f32.mrb[5].mxu1 }
 0x25d   :  { %v635_v18 = vadd.f32 %v13683_v40, %v607_v15 }
 0x25e   :  { %v644_v25 = vmax.f32 %v636_v14, 0.0 }
 0x25f   :  { %v643_v27 = vmax.f32 %v635_v18, 0.0  ;;  %v10930_v41 = vpop.f32.mrb[6].mxu1 }
 0x260   :  { %v13749_v42 = vmul.f32 %v13742_v11, %v644_v25  ;;  %v638_v43 = vadd.f32 %v10930_v41, %v13683_v40  ;;  %v617_v47 = vpop.f32.mrb[7].mxu1 }
 0x261   :  { %v691_v48 = vmul.f32 %v13740_v9, %v643_v27  ;;  %v637_v49 = vadd.f32 %v13683_v40, %v617_v47 }
 0x262   :  { %v646_v51 = vmax.f32 %v638_v43, 0.0  ;;  %v722_v55 = vmul.f32 %v13749_v42, %v13749_v42  ;;  %v704_v7 = vsel %vm180_vm1, %v13749_v42, 0.0 }
 0x263   :  { %v702_v56 = vsel %vm180_vm1, %v691_v48, 0.0  ;;  %v721_v59 = vmul.f32 %v691_v48, %v691_v48  ;;  %v645_v62 = vmax.f32 %v637_v49, 0.0 }
 0x264   :  { %v703_v2 = vadd.f32 %v702_v56, %v701_v45  ;;  %v694_v3 = vmul.f32 %v13754_v54, %v646_v51  ;;  %v734_v18 = vsel %vm180_vm1, %v722_v55, 0.0 }
 0x265   :  { %v732_v12 = vsel %vm180_vm1, %v721_v59, 0.0  ;;  %v693_v40 = vmul.f32 %v13745_v16, %v645_v62 }
 0x266   :  { %v733_v14 = vadd.f32 %v732_v12, %v731_v50  ;;  %v705_v15 = vadd.f32 %v704_v7, %v703_v2  ;;  %v724_v25 = vmul.f32 %v694_v3, %v694_v3  ;;  %v708_v45 = vsel %vm180_vm1, %v694_v3, 0.0 }
 0x267   :  { %v706_v27 = vsel %vm180_vm1, %v693_v40, 0.0  ;;  %v723_v41 = vmul.f32 %v693_v40, %v693_v40 }
 0x268   :  { %v707_v43 = vadd.f32 %v706_v27, %v705_v15  ;;  %v735_v47 = vadd.f32 %v734_v18, %v733_v14  ;;  %v738_v59 = vsel %vm180_vm1, %v724_v25, 0.0 }
 0x269   :  { %v736_v49 = vsel %vm180_vm1, %v723_v41, 0.0 }
 0x26a   :  { %v709_v51 = vadd.f32 %v708_v45, %v707_v43  ;;  %v737_v56 = vadd.f32 %v736_v49, %v735_v47  ;;  %v16401_v49 = vlaneseq }
 0x26c   :  { %v710_v33 = vrot.slane %v709_v51, 4  ;;  %v739_v62 = vadd.f32 %v738_v59, %v737_v56  ;;  %v753_v59 = vld [vmem:[%s13350_s17 + $0x2] sm:$0x1] }
 0x26e   :  { %v711_v50 = vadd.f32 %v710_v33, %v709_v51  ;;  %v740_v2 = vrot.slane %v739_v62, 4  ;;  %v13770_v33 = vshrl.u32 %v16401_v49, 7  ;;  %v751_v51 = vld [vmem:[%s13350_s17 + $0x1] sm:$0x1] }
 0x270   :  { %v712_v7 = vrot.slane %v711_v50, 2  ;;  %v741_v55 = vadd.f32 %v740_v2, %v739_v62  ;;  %16447 = vst [vmem:[#allocation25_spill] sm:$0xff] %v13770_v33  ;;  %v13774_v56 = vsub.s32 0, %v13770_v33 }
 0x272   :  { %v713_v12 = vadd.f32 %v712_v7, %v711_v50  ;;  %v742_v28 = vrot.slane %v741_v55, 2 }
 0x274   :  { %v714_v34 = vrot.slane %v713_v12, 1  ;;  %v743_v15 = vadd.f32 %v742_v28, %v741_v55 }
 0x276   :  { %v715_v14 = vadd.f32 %v714_v34, %v713_v12  ;;  %v744_v18 = vrot.slane %v743_v15, 1 }
 0x278   :  { %v716_v27 = vmul.f32 0.015625, %v715_v14  ;;  %v745_v41 = vadd.f32 %v744_v18, %v743_v15 }
 0x27a   :  { %v746_v43 = vmul.f32 0.015625, %v745_v41  ;;  %v747_v47 = vmul.f32 %v716_v27, %v716_v27 }
 0x27c   :  { %v748_v45 = vsub.f32 %v746_v43, %v747_v47 }
 0x27e   :  { %v749_v25 = vadd.f32 1e-05, %v748_v45  ;;  %v896_v45 = vld [vmem:[%s13360_s25 + $0x18] sm:$0xff] }
 0x280   :  { %13124 = vrsqrt.f32 %v749_v25 }
 0x28a   :  { %v13125_v28 = vpop.eup %13124 }
 0x28b   :  { %v752_v34 = vmul.f32 %v13125_v28, %v751_v51  ;;  %v897_v28 = vld [vmem:[%s13360_s25 + $0x20] sm:$0xff] }
 0x28d   :  { %v754_v62 = vmul.f32 %v752_v34, %v716_v27  ;;  %v759_v50 = vrot.slane %v752_v34, %v13774_v56  ;;  %v895_v27 = vld [vmem:[%s13360_s25 + $0x10] sm:$0xff]  ;;  %v898_v34 = vld [vmem:[%s13360_s25 + $0x28] sm:$0xff] }
 0x28e   :  { %v11952_v51 = vpack.c.bf16 %v896_v45, %v895_v27 }
 0x28f   :  { %v755_v2 = vsub.f32 %v753_v59, %v754_v62  ;;  %v766_v7 = vmul.f32 %v759_v50, %v693_v40  ;;  %v760_v55 = vmul.f32 %v759_v50, %v13696_v53  ;;  %v761_v12 = vmul.f32 %v759_v50, %v13693_v52 }
 0x290   :  { %v762_v15 = vmul.f32 %v759_v50, %v13715_v10  ;;  %v763_v14 = vmul.f32 %v759_v50, %v13710_v5  ;;  %v764_v18 = vmul.f32 %v759_v50, %v691_v48  ;;  %v765_v41 = vmul.f32 %v759_v50, %v13749_v42 }
 0x291   :  { %v771_v43 = vrot.slane %v755_v2, %v13774_v56  ;;  %v767_v47 = vmul.f32 %v759_v50, %v694_v3  ;;  %v11956_v62 = vpack.c.bf16 %v898_v34, %v897_v28  ;;  %v899_v2 = vld [vmem:[%s13360_s25 + $0x30] sm:$0xff] }
 0x293   :  { %v13786_v25 = vadd.f32 %v771_v43, %v760_v55  ;;  %v13788_v40 = vadd.f32 %v771_v43, %v761_v12  ;;  %v13790_v53 = vadd.f32 %v771_v43, %v762_v15  ;;  %v13792_v52 = vadd.f32 %v771_v43, %v763_v14 }
 0x294   :  { %v13794_v10 = vadd.f32 %v771_v43, %v764_v18  ;;  %v13796_v5 = vadd.f32 %v771_v43, %v765_v41  ;;  %v13798_v42 = vadd.f32 %v771_v43, %v766_v7  ;;  %v13800_v48 = vadd.f32 %v771_v43, %v767_v47  ;;  %v900_v7 = vld [vmem:[%s13360_s25 + $0x38] sm:$0xff]  ;;  %s13322_s25 = smov 2  }
 0x295   :  { %16448 = vst [vmem:[#allocation26_spill] sm:$0xff] %v13790_v53  ;;  %16449 = vst [vmem:[#allocation27_spill] sm:$0xff] %v13792_v52  ;;  %10975 = vmatprep.mubr.msk.f32.mxu1 %vm180_vm1, %v13786_v25  ;;  %v11916_v3 = vpack.c.bf16 %v13788_v40, %v13786_v25  ;;  %v11920_v59 = vpack.c.bf16 %v13792_v52, %v13790_v53  ;;  %v11960_v55 = vpack.c.bf16 %v900_v7, %v899_v2 }
 0x296   :  { %16450 = vst [vmem:[#allocation28_spill] sm:$0xff] %v13794_v10  ;;  %16451 = vst [vmem:[#allocation29_spill] sm:$0xff] %v13796_v5  ;;  %10976 = vmatmul.mubr.msk.f32.vlgmr.msra.gmra.mrb[8].mxu1 %vm180_vm1, %v13788_v40  ;;  %v11924_v50 = vpack.c.bf16 %v13796_v5, %v13794_v10 }
 0x297   :  { %16452 = vst [vmem:[#allocation30_spill] sm:$0xff] %v13798_v42  ;;  %16453 = vst [vmem:[#allocation31_spill] sm:$0xff] %v13800_v48  ;;  %11917 = vmatprep.subr.bf16.mxu0 %v11916_v3  ;;  %10978 = vmatprep.mubr.msk.f32.mxu1 %vm180_vm1, %v13790_v53 }
 0x298   :  { %11919 = vmatpush3.bf16.msra.mxu0 %v11916_v3  ;;  %11951 = vmatpush3.bf16.msra.mxu1 %v13737_v8  ;;  %v11928_v8 = vpack.c.bf16 %v13800_v48, %v13798_v42 }
 0x299   :  { %11921 = vmatprep.subr.bf16.mxu0 %v11920_v59  ;;  %11953 = vmatprep.subr.bf16.mxu1 %v11952_v51 }
 0x29a   :  { %10979 = vmatmul.mubr.msk.f32.gmra.mrb[10].mxu1 %vm180_vm1, %v13792_v52 }
 0x29b   :  { %10981 = vmatprep.mubr.msk.f32.mxu1 %vm180_vm1, %v13794_v10 }
 0x29c   :  { %11923 = vmatpush3.bf16.msra.mxu0 %v11920_v59  ;;  %11955 = vmatpush3.bf16.msra.mxu1 %v11952_v51 }
 0x29d   :  { %11925 = vmatprep.subr.bf16.mxu0 %v11924_v50  ;;  %11957 = vmatprep.subr.bf16.mxu1 %v11956_v62 }
 0x29e   :  { %10982 = vmatmul.mubr.msk.f32.gmra.mrb[12].mxu1 %vm180_vm1, %v13796_v5 }
 0x29f   :  { %10984 = vmatprep.mubr.msk.f32.mxu1 %vm180_vm1, %v13798_v42 }
 0x2a0   :  { %11927 = vmatpush3.bf16.msra.mxu0 %v11924_v50  ;;  %11959 = vmatpush3.bf16.msra.mxu1 %v11956_v62 }
 0x2a1   :  { %11929 = vmatprep.subr.bf16.mxu0 %v11928_v8  ;;  %11961 = vmatprep.subr.bf16.mxu1 %v11960_v55 }
 0x2a2   :  { %10985 = vmatmul.mubr.msk.f32.gmra.mrb[14].mxu1 %vm180_vm1, %v13800_v48 }
 0x2a4   :  { %11931 = vmatpush3.bf16.msra.mxu0 %v11928_v8  ;;  %11963 = vmatpush3.bf16.msra.mxu1 %v11960_v55  ;;  %v10059_v8 = vld [vmem:[%s13350_s17 + $0x3] ss:$0 sm:$0xff] }
 0x2a7   :  { %10948 = vmatmul.mubr.msk.f32.vlgmr.msra.gmra.mrb[8].mxu0 %vm180_vm1, %v13531_v20 }
 0x2a8   :  { %10950 = vmatprep.mubr.msk.f32.mxu0 %vm180_vm1, %v13534_v21 }
 0x2ab   :  { %10951 = vmatmul.mubr.msk.f32.gmra.mrb[10].mxu0 %vm180_vm1, %v13542_v23 }
 0x2ac   :  { %10953 = vmatprep.mubr.msk.f32.mxu0 %vm180_vm1, %v13564_v31 }
 0x2af   :  { %10954 = vmatmul.mubr.msk.f32.gmra.mrb[12].mxu0 %vm180_vm1, %v13582_v37 }
 0x2b0   :  { %10956 = vmatprep.mubr.msk.f32.mxu0 %vm180_vm1, %v13560_v30 }
 0x2b3   :  { %10957 = vmatmul.mubr.msk.f32.gmra.mrb[14].mxu0 %vm180_vm1, %v13578_v36 }
 0x2b4   :  { %11031 = vmatprep.mubr.msk.f32.mxu0 %vm180_vm1, %v13520_v13 }
 0x37a   :  { %v10949_v12 = vpop.f32.mrb[8].mxu0 }
 0x37b   :  { %v846_v15 = vpop.f32.mrb[9].mxu0  ;;  %v886_v18 = vmul.f32 %v13622_v57, %v10949_v12 }
 0x37c   :  { %v885_v14 = vmul.f32 %v13624_v58, %v846_v15 }
 0x37e   :  { %v10952_v41 = vpop.f32.mrb[10].mxu0  ;;  %11003 = vmatprep.mubr.msk.f32.mxu1 %vm180_vm1, %v885_v14 }
 0x37f   :  { %v856_v43 = vpop.f32.mrb[11].mxu0  ;;  %11004 = vmatmul.mubr.msk.f32.vlgmr.msra.gmra.mrb[8].mxu1 %vm180_vm1, %v886_v18  ;;  %v888_v27 = vmul.f32 %v13630_v63, %v10952_v41 }
 0x380   :  { %v887_v47 = vmul.f32 %v13635_v1, %v856_v43 }
 0x382   :  { %v10955_v45 = vpop.f32.mrb[12].mxu0  ;;  %11006 = vmatprep.mubr.msk.f32.mxu1 %vm180_vm1, %v887_v47 }
 0x383   :  { %v866_v3 = vpop.f32.mrb[13].mxu0  ;;  %11007 = vmatmul.mubr.msk.f32.gmra.mrb[10].mxu1 %vm180_vm1, %v888_v27  ;;  %v890_v28 = vmul.f32 %v13654_v19, %v10955_v45 }
 0x384   :  { %v889_v51 = vmul.f32 %v13652_v17, %v866_v3 }
 0x386   :  { %v10958_v34 = vpop.f32.mrb[14].mxu0  ;;  %11009 = vmatprep.mubr.msk.f32.mxu1 %vm180_vm1, %v889_v51 }
 0x387   :  { %v876_v59 = vpop.f32.mrb[15].mxu0  ;;  %11010 = vmatmul.mubr.msk.f32.gmra.mrb[12].mxu1 %vm180_vm1, %v890_v28  ;;  %v892_v50 = vmul.f32 %v13668_v32, %v10958_v34 }
 0x388   :  { %v891_v62 = vmul.f32 %v13664_v26, %v876_v59 }
 0x38a   :  { %11012 = vmatprep.mubr.msk.f32.mxu1 %vm180_vm1, %v891_v62 }
 0x38b   :  { %11013 = vmatmul.mubr.msk.f32.gmra.mrb[14].mxu1 %vm180_vm1, %v892_v50 }
 0x452   :  { %v11005_v2 = vpop.f32.mrb[8].mxu1 }
 0x453   :  { %v1173_v7 = vadd.f32 %v11005_v2, %v10059_v8  ;;  %v1128_v55 = vpop.f32.mrb[9].mxu1 }
 0x454   :  { %v1172_v12 = vadd.f32 %v10059_v8, %v1128_v55 }
 0x455   :  { %v1181_v15 = vmax.f32 %v1173_v7, 0.0 }
 0x456   :  { %v1180_v14 = vmax.f32 %v1172_v12, 0.0  ;;  %v11008_v18 = vpop.f32.mrb[10].mxu1 }
 0x457   :  { %v13865_v41 = vmul.f32 %v1181_v15, %v13689_v46  ;;  %v1175_v43 = vadd.f32 %v11008_v18, %v10059_v8  ;;  %v1138_v47 = vpop.f32.mrb[11].mxu1 }
 0x458   :  { %v13868_v27 = vmul.f32 %v1180_v14, %v13680_v39  ;;  %v1174_v45 = vadd.f32 %v10059_v8, %v1138_v47 }
 0x459   :  { %v1197_v3 = vsel %vm180_vm1, %v13865_v41, 0.0  ;;  %v1219_v51 = vmul.f32 %v13865_v41, %v13865_v41  ;;  %v1183_v28 = vmax.f32 %v1175_v43, 0.0 }
 0x45a   :  { %v1196_v34 = vsel %vm180_vm1, %v13868_v27, 0.0  ;;  %v1218_v59 = vmul.f32 %v13868_v27, %v13868_v27  ;;  %v1182_v62 = vmax.f32 %v1174_v45, 0.0  ;;  %v11011_v50 = vpop.f32.mrb[12].mxu1 }
 0x45b   :  { %v1227_v2 = vsel %vm180_vm1, %v1219_v51, 0.0  ;;  %v1198_v7 = vadd.f32 %v1197_v3, %v1196_v34  ;;  %v13880_v55 = vmul.f32 %v1183_v28, %v13703_v60  ;;  %v1177_v12 = vadd.f32 %v11011_v50, %v10059_v8  ;;  %v1148_v15 = vpop.f32.mrb[13].mxu1 }
 0x45c   :  { %v1226_v14 = vsel %vm180_vm1, %v1218_v59, 0.0  ;;  %v13884_v18 = vmul.f32 %v1182_v62, %v13686_v44  ;;  %v1176_v43 = vadd.f32 %v10059_v8, %v1148_v15 }
 0x45d   :  { %v1228_v47 = vadd.f32 %v1227_v2, %v1226_v14  ;;  %v1221_v49 = vmul.f32 %v13880_v55, %v13880_v55  ;;  %v1185_v45 = vmax.f32 %v1177_v12, 0.0  ;;  %v1201_v2 = vsel %vm180_vm1, %v13880_v55, 0.0 }
 0x45e   :  { %v1199_v51 = vsel %vm180_vm1, %v13884_v18, 0.0  ;;  %v1220_v3 = vmul.f32 %v13884_v18, %v13884_v18  ;;  %v1184_v28 = vmax.f32 %v1176_v43, 0.0  ;;  %v11014_v34 = vpop.f32.mrb[14].mxu1 }
 0x45f   :  { %v1200_v50 = vadd.f32 %v1199_v51, %v1198_v7  ;;  %v13893_v59 = vmul.f32 %v1185_v45, %v13742_v11  ;;  %v1179_v62 = vadd.f32 %v11014_v34, %v10059_v8  ;;  %v1158_v33 = vpop.f32.mrb[15].mxu1  ;;  %v1231_v29 = vsel %vm180_vm1, %v1221_v49, 0.0 }
 0x460   :  { %v1229_v15 = vsel %vm180_vm1, %v1220_v3, 0.0  ;;  %v1192_v12 = vmul.f32 %v1184_v28, %v13740_v9  ;;  %v1178_v14 = vadd.f32 %v10059_v8, %v1158_v33 }
 0x461   :  { %v1230_v13 = vadd.f32 %v1229_v15, %v1228_v47  ;;  %v1223_v43 = vmul.f32 %v13893_v59, %v13893_v59  ;;  %v1202_v7 = vadd.f32 %v1201_v2, %v1200_v50  ;;  %v1187_v34 = vmax.f32 %v1179_v62, 0.0 }
 0x462   :  { %v1203_v45 = vsel %vm180_vm1, %v1192_v12, 0.0  ;;  %v1222_v51 = vmul.f32 %v1192_v12, %v1192_v12  ;;  %v1186_v48 = vmax.f32 %v1178_v14, 0.0  ;;  %v1205_v3 = vsel %vm180_vm1, %v13893_v59, 0.0 }
 0x463   :  { %v1204_v42 = vadd.f32 %v1203_v45, %v1202_v7  ;;  %v1232_v5 = vadd.f32 %v1231_v29, %v1230_v13  ;;  %v1195_v33 = vmul.f32 %v1187_v34, %v13754_v54  ;;  %v1235_v50 = vsel %vm180_vm1, %v1223_v43, 0.0 }
 0x464   :  { %v1233_v28 = vsel %vm180_vm1, %v1222_v51, 0.0  ;;  %v1194_v49 = vmul.f32 %v1186_v48, %v13745_v16 }
 0x465   :  { %v1234_v8 = vadd.f32 %v1233_v28, %v1232_v5  ;;  %v1206_v47 = vadd.f32 %v1205_v3, %v1204_v42  ;;  %v1225_v2 = vmul.f32 %v1195_v33, %v1195_v33  ;;  %v1209_v13 = vsel %vm180_vm1, %v1195_v33, 0.0 }
 0x466   :  { %v1207_v15 = vsel %vm180_vm1, %v1194_v49, 0.0  ;;  %v1224_v62 = vmul.f32 %v1194_v49, %v1194_v49 }
 0x467   :  { %v1208_v14 = vadd.f32 %v1207_v15, %v1206_v47  ;;  %v1236_v7 = vadd.f32 %v1235_v50, %v1234_v8  ;;  %v1239_v34 = vsel %vm180_vm1, %v1225_v2, 0.0 }
 0x468   :  { %v1237_v29 = vsel %vm180_vm1, %v1224_v62, 0.0 }
 0x469   :  { %v1210_v45 = vadd.f32 %v1209_v13, %v1208_v14  ;;  %v1238_v51 = vadd.f32 %v1237_v29, %v1236_v7  ;;  %v1252_v29 = vld [vmem:[%s13350_s17 + $0x4] sm:$0x1] }
 0x46b   :  { %v1211_v10 = vrot.slane %v1210_v45, 4  ;;  %v1240_v48 = vadd.f32 %v1239_v34, %v1238_v51  ;;  %v1254_v51 = vld [vmem:[%s13350_s17 + $0x5] sm:$0x1] }
 0x46d   :  { %v1212_v5 = vadd.f32 %v1211_v10, %v1210_v45  ;;  %v1241_v42 = vrot.slane %v1240_v48, 4 }
 0x46f   :  { %v1213_v43 = vrot.slane %v1212_v5, 2  ;;  %v1242_v3 = vadd.f32 %v1241_v42, %v1240_v48 }
 0x471   :  { %v1214_v28 = vadd.f32 %v1213_v43, %v1212_v5  ;;  %v1243_v52 = vrot.slane %v1242_v3, 2 }
 0x473   :  { %v1215_v47 = vrot.slane %v1214_v28, 1  ;;  %v1244_v8 = vadd.f32 %v1243_v52, %v1242_v3 }
 0x475   :  { %v1216_v50 = vadd.f32 %v1215_v47, %v1214_v28  ;;  %v1245_v15 = vrot.slane %v1244_v8, 1 }
 0x477   :  { %v1217_v53 = vmul.f32 0.015625, %v1216_v50  ;;  %v1246_v62 = vadd.f32 %v1245_v15, %v1244_v8 }
 0x479   :  { %v1247_v14 = vmul.f32 0.015625, %v1246_v62  ;;  %v1248_v7 = vmul.f32 %v1217_v53, %v1217_v53 }
 0x47b   :  { %v1249_v13 = vsub.f32 %v1247_v14, %v1248_v7 }
 0x47d   :  { %v1250_v2 = vadd.f32 1e-05, %v1249_v13  ;;  %v1402_v13 = vld [vmem:[%s13365_s29 + $0x40] sm:$0xff] }
 0x47f   :  { %13126 = vrsqrt.f32 %v1250_v2  ;;  %v1403_v2 = vld [vmem:[%s13365_s29 + $0x48] sm:$0xff] }
 0x489   :  { %v13127_v10 = vpop.eup %13126 }
 0x48a   :  { %v1253_v45 = vmul.f32 %v13127_v10, %v1252_v29  ;;  %v11980_v29 = vpack.c.bf16 %v1403_v2, %v1402_v13  ;;  %v1404_v10 = vld [vmem:[%s13365_s29 + $0x50] sm:$0xff]  ;;  %v1974_v2 = vld [vmem:[%s13375_s8] sm:$0x7] }
 0x48c   :  { %v1255_v34 = vmul.f32 %v1253_v45, %v1217_v53  ;;  %v1260_v48 = vrot.slane %v1253_v45, %v13774_v56  ;;  %v1405_v45 = vld [vmem:[%s13365_s29 + $0x58] sm:$0xff] }
 0x48e   :  { %v1256_v5 = vsub.f32 %v1254_v51, %v1255_v34  ;;  %v1263_v42 = vmul.f32 %v1260_v48, %v13884_v18  ;;  %v1261_v52 = vmul.f32 %v1260_v48, %v13868_v27  ;;  %v1262_v43 = vmul.f32 %v1260_v48, %v13865_v41  ;;  %v1406_v34 = vld [vmem:[%s13365_s29 + $0x60] sm:$0xff] }
 0x48f   :  { %v1265_v3 = vmul.f32 %v1260_v48, %v1192_v12  ;;  %v1264_v28 = vmul.f32 %v1260_v48, %v13880_v55  ;;  %v1267_v47 = vmul.f32 %v1260_v48, %v1194_v49  ;;  %v1266_v8 = vmul.f32 %v1260_v48, %v13893_v59 }
 0x490   :  { %v1272_v50 = vrot.slane %v1256_v5, %v13774_v56  ;;  %v1268_v15 = vmul.f32 %v1260_v48, %v1195_v33  ;;  %v11984_v51 = vpack.c.bf16 %v1405_v45, %v1404_v10  ;;  %v1407_v48 = vld [vmem:[%s13365_s29 + $0x68] sm:$0xff] }
 0x491   :  { %v11988_v5 = vpack.c.bf16 %v1407_v48, %v1406_v34 }
 0x492   :  { %v13922_v62 = vadd.f32 %v1272_v50, %v1263_v42  ;;  %v1273_v53 = vadd.f32 %v1272_v50, %v1261_v52  ;;  %v13924_v14 = vadd.f32 %v1272_v50, %v1262_v43  ;;  %v13926_v7 = vadd.f32 %v1272_v50, %v1265_v3  ;;  %v1408_v42 = vld [vmem:[%s13365_s29 + $0x70] sm:$0xff]  ;;  %v1409_v52 = vld [vmem:[%s13365_s29 + $0x78] sm:$0xff]  ;;  %v1394_v3 = vld [vmem:[%s13365_s29] sm:$0xff] }
 0x493   :  { %v13928_v18 = vadd.f32 %v1272_v50, %v1264_v28  ;;  %v13930_v27 = vadd.f32 %v1272_v50, %v1267_v47  ;;  %v13932_v41 = vadd.f32 %v1272_v50, %v1266_v8  ;;  %v13934_v55 = vadd.f32 %v1272_v50, %v1268_v15  ;;  %v1395_v28 = vld [vmem:[%s13365_s29 + $0x8] sm:$0xff]  ;;  %v1396_v8 = vld [vmem:[%s13365_s29 + $0x10] sm:$0xff]  ;;  %v1397_v50 = vld [vmem:[%s13365_s29 + $0x18] sm:$0xff] }
 0x494   :  { %1787 = vrot.lane.b32.xlu0 %v13922_v62, %s13317_s0  ;;  %1783 = vrot.lane.b32.xlu1 %v1273_v53, %s13317_s0  ;;  %v11964_v59 = vpack.c.bf16 %v13924_v14, %v1273_v53  ;;  %v11992_v43 = vpack.c.bf16 %v1409_v52, %v1408_v42  ;;  %v11996_v47 = vpack.c.bf16 %v1395_v28, %v1394_v3  ;;  %v13248_v3 = vld [vmem:[%s13335_s5] sm:$0xff]  ;;  %v13249_v28 = vld [vmem:[%s13335_s5 + $0x8] sm:$0xff] }
 0x495   :  { %v11968_v12 = vpack.c.bf16 %v13928_v18, %v13922_v62  ;;  %v11972_v33 = vpack.c.bf16 %v13932_v41, %v13926_v7  ;;  %v11976_v49 = vpack.c.bf16 %v13934_v55, %v13930_v27  ;;  %v12000_v15 = vpack.c.bf16 %v1397_v50, %v1396_v8  ;;  %v13251_v8 = vld [vmem:[%s13335_s5 + $0x18] sm:$0xff]  ;;  %v13252_v50 = vld [vmem:[%s13335_s5 + $0x20] sm:$0xff] }
 0x496   :  { %11965 = vmatprep.subr.bf16.mxu0 %v11964_v59 }
 0x497   :  { %11967 = vmatpush3.bf16.msra.mxu0 %v11964_v59  ;;  %v1398_v59 = vld [vmem:[%s13365_s29 + $0x20] sm:$0xff] }
 0x498   :  { %1791 = vrot.lane.b32.xlu0 %v13926_v7, %s13317_s0  ;;  %1785 = vrot.lane.b32.xlu1 %v13924_v14, %s13317_s0 }
 0x499   :  { %11969 = vmatprep.subr.bf16.mxu0 %v11968_v12 }
 0x49b   :  { %11971 = vmatpush3.bf16.msra.mxu0 %v11968_v12  ;;  %v1399_v12 = vld [vmem:[%s13365_s29 + $0x28] sm:$0xff] }
 0x49c   :  { %1795 = vrot.lane.b32.xlu0 %v13930_v27, %s13317_s0  ;;  %1789 = vrot.lane.b32.xlu1 %v13928_v18, %s13317_s0 }
 0x49d   :  { %11973 = vmatprep.subr.bf16.mxu0 %v11972_v33 }
 0x49f   :  { %11975 = vmatpush3.bf16.msra.mxu0 %v11972_v33  ;;  %v12004_v33 = vpack.c.bf16 %v1399_v12, %v1398_v59  ;;  %v13254_v59 = vld [vmem:[%s13335_s5 + $0x30] sm:$0xff]  ;;  %v13255_v12 = vld [vmem:[%s13335_s5 + $0x38] sm:$0xff] }
 0x4a0   :  { %1793 = vrot.lane.b32.xlu1 %v13932_v41, %s13317_s0  ;;  %11977 = vmatprep.subr.bf16.mxu0 %v11976_v49 }
 0x4a3   :  { %11979 = vmatpush3.bf16.msra.mxu0 %v11976_v49 }
 0x4a4   :  { %1797 = vrot.lane.b32.xlu1 %v13934_v55, %s13317_s0  ;;  %11981 = vmatprep.subr.bf16.mxu0 %v11980_v29 }
 0x4a6   :  { %11032 = vmatmul.mubr.msk.f32.vlgmr.msra.gmra.mrb[16].mxu0 %vm180_vm1, %v13531_v20 }
 0x4a7   :  { %11983 = vmatpush3.bf16.msra.mxu0 %v11980_v29  ;;  %11034 = vmatprep.mubr.msk.f32.mxu0 %vm180_vm1, %v13534_v21 }
 0x4a8   :  { %11985 = vmatprep.subr.bf16.mxu0 %v11984_v51 }
 0x4aa   :  { %11035 = vmatmul.mubr.msk.f32.gmra.mrb[18].mxu0 %vm180_vm1, %v13542_v23 }
 0x4ab   :  { %11037 = vmatprep.mubr.msk.f32.mxu0 %vm180_vm1, %v13564_v31  ;;  %11987 = vmatpush3.bf16.msra.mxu0 %v11984_v51 }
 0x4ac   :  { %11989 = vmatprep.subr.bf16.mxu0 %v11988_v5 }
 0x4ae   :  { %11038 = vmatmul.mubr.msk.f32.gmra.mrb[20].mxu0 %vm180_vm1, %v13582_v37 }
 0x4af   :  { %11040 = vmatprep.mubr.msk.f32.mxu0 %vm180_vm1, %v13560_v30  ;;  %11991 = vmatpush3.bf16.msra.mxu0 %v11988_v5 }
 0x4b0   :  { %11993 = vmatprep.subr.bf16.mxu0 %v11992_v43 }
 0x4b2   :  { %11041 = vmatmul.mubr.msk.f32.gmra.mrb[22].mxu0 %vm180_vm1, %v13578_v36 }
 0x4b3   :  { %11995 = vmatpush3.bf16.msra.mxu0 %v11992_v43  ;;  %11059 = vmatprep.mubr.msk.f32.mxu0 %vm180_vm1, %v1273_v53  ;;  %v1401_v53 = vld [vmem:[%s13365_s29 + $0x38] sm:$0xff] }
 0x4b4   :  { %11997 = vmatprep.subr.bf16.mxu0 %v11996_v47 }
 0x4b6   :  { %11060 = vmatmul.mubr.msk.f32.vlgmr.msra.gmra.mrb[24].mxu0 %vm180_vm1, %v13924_v14 }
 0x4b7   :  { %11062 = vmatprep.mubr.msk.f32.mxu0 %vm180_vm1, %v13922_v62  ;;  %11999 = vmatpush3.bf16.msra.mxu0 %v11996_v47  ;;  %v1400_v62 = vld [vmem:[%s13365_s29 + $0x30] sm:$0xff]  ;;  %s16494_s29 = sld [smem:[#allocation8_spill]] }
 0x4b8   :  { %12001 = vmatprep.subr.bf16.mxu0 %v12000_v15  ;;  %v12008_v14 = vpack.c.bf16 %v1401_v53, %v1400_v62  ;;  %v13250_v47 = vld [vmem:[%s13335_s5 + $0x10] sm:$0xff] }
 0x4b9   :  { %v1821_v53 = vld [vmem:[%s13370_s3 + $0x30] sm:$0xff] }
 0x4ba   :  { %11063 = vmatmul.mubr.msk.f32.gmra.mrb[26].mxu0 %vm180_vm1, %v13928_v18  ;;  %v1975_v18 = vld [vmem:[%s13375_s8 + $0x3] sm:$0x7]  ;;  %s16496_s8 = sld [smem:[#allocation10_spill]] }
 0x4bb   :  { %11065 = vmatprep.mubr.msk.f32.mxu0 %vm180_vm1, %v13926_v7  ;;  %12003 = vmatpush3.bf16.msra.mxu0 %v12000_v15  ;;  %v13253_v15 = vld [vmem:[%s13335_s5 + $0x28] sm:$0xff]  ;;  %s13320_s5 = smov 8  }
 0x4bc   :  { %12005 = vmatprep.subr.bf16.mxu0 %v12004_v33 }
 0x4be   :  { %11066 = vmatmul.mubr.msk.f32.gmra.mrb[28].mxu0 %vm180_vm1, %v13932_v41 }
 0x4bf   :  { %11068 = vmatprep.mubr.msk.f32.mxu0 %vm180_vm1, %v13930_v27  ;;  %12007 = vmatpush3.bf16.msra.mxu0 %v12004_v33 }
 0x4c0   :  { %12009 = vmatprep.subr.bf16.mxu0 %v12008_v14 }
 0x4c2   :  { %11069 = vmatmul.mubr.msk.f32.gmra.mrb[30].mxu0 %vm180_vm1, %v13934_v55 }
 0x4c3   :  { %12011 = vmatpush3.bf16.msra.mxu0 %v12008_v14  ;;  %v1822_v14 = vld [vmem:[%s13370_s3 + $0x38] sm:$0xff] }
 0x4c4   :  { %11099 = vmatprep.subr.msk.mxu0 %vm385_vm2, %v1975_v18 }
 0x579   :  { %v11033_v7 = vpop.f32.mrb[16].mxu0 }
 0x57a   :  { %v1347_v49 = vpop.f32.mrb[17].mxu0  ;;  %v1387_v13 = vmul.f32 %v13622_v57, %v11033_v7  ;;  %v1823_v7 = vld [vmem:[%s13370_s3 + $0x40] sm:$0xff] }
 0x57b   :  { %v1386_v41 = vmul.f32 %v13624_v58, %v1347_v49  ;;  %v1824_v49 = vld [vmem:[%s13370_s3 + $0x48] sm:$0xff] }
 0x57d   :  { %v11036_v27 = vpop.f32.mrb[18].mxu0  ;;  %11087 = vmatprep.mubr.msk.f32.mxu0 %vm180_vm1, %v1386_v41  ;;  %v12025_v41 = vpack.c.bf16 %v1824_v49, %v1823_v7 }
 0x57e   :  { %v1357_v29 = vpop.f32.mrb[19].mxu0  ;;  %11088 = vmatmul.mubr.msk.f32.vlgmr.msra.gmra.mrb[24].mxu0 %vm180_vm1, %v1387_v13  ;;  %v1389_v10 = vmul.f32 %v13630_v63, %v11036_v27  ;;  %v1825_v13 = vld [vmem:[%s13370_s3 + $0x50] sm:$0xff]  ;;  %v1826_v27 = vld [vmem:[%s13370_s3 + $0x58] sm:$0xff] }
 0x57f   :  { %v1388_v55 = vmul.f32 %v13635_v1, %v1357_v29  ;;  %11100 = vmatpush3.msk.msra.mxu0 %vm385_vm2, %v1975_v18  ;;  %v12022_v18 = vpack.c.bf16 %v1822_v14, %v1821_v53  ;;  %v1827_v29 = vld [vmem:[%s13370_s3 + $0x60] sm:$0xff] }
 0x580   :  { %11113 = vmatprep.subr.msk.mxu0 %vm385_vm2, %v1974_v2 }
 0x581   :  { %v11039_v45 = vpop.f32.mrb[20].mxu0  ;;  %11090 = vmatprep.mubr.msk.f32.mxu0 %vm180_vm1, %v1388_v55  ;;  %v1828_v55 = vld [vmem:[%s13370_s3 + $0x68] sm:$0xff] }
 0x582   :  { %v1367_v51 = vpop.f32.mrb[21].mxu0  ;;  %11091 = vmatmul.mubr.msk.f32.gmra.mrb[26].mxu0 %vm180_vm1, %v1389_v10  ;;  %v1391_v48 = vmul.f32 %v13654_v19, %v11039_v45  ;;  %v12031_v10 = vpack.c.bf16 %v1828_v55, %v1827_v29  ;;  %v1829_v45 = vld [vmem:[%s13370_s3 + $0x70] sm:$0xff] }
 0x583   :  { %v1390_v34 = vmul.f32 %v13652_v17, %v1367_v51  ;;  %v1830_v51 = vld [vmem:[%s13370_s3 + $0x78] sm:$0xff] }
 0x585   :  { %v11042_v5 = vpop.f32.mrb[22].mxu0  ;;  %11093 = vmatprep.mubr.msk.f32.mxu0 %vm180_vm1, %v1390_v34  ;;  %v12034_v34 = vpack.c.bf16 %v1830_v51, %v1829_v45 }
 0x586   :  { %v1377_v42 = vpop.f32.mrb[23].mxu0  ;;  %11094 = vmatmul.mubr.msk.f32.gmra.mrb[28].mxu0 %vm180_vm1, %v1391_v48  ;;  %v1393_v43 = vmul.f32 %v13668_v32, %v11042_v5  ;;  %v16415_v48 = vmov 0.0   ;;  %v1831_v5 = vld [vmem:[%s13370_s3 + $0x80] sm:$0xff] }
 0x587   :  { %v1392_v52 = vmul.f32 %v13664_v26, %v1377_v42  ;;  %v2427_v42 = vld [vmem:[%s13380_s14 + $0x40] sm:$0xff] }
 0x589   :  { %11096 = vmatprep.mubr.msk.f32.mxu0 %vm180_vm1, %v1392_v52  ;;  %v2428_v52 = vld [vmem:[%s13380_s14 + $0x48] sm:$0xff] }
 0x58a   :  { %11097 = vmatmul.mubr.msk.f32.gmra.mrb[30].mxu0 %vm180_vm1, %v1393_v43  ;;  %v12052_v43 = vpack.c.bf16 %v2428_v52, %v2427_v42 }
 0x58b   :  { %11101 = vmatprep.mubr.msk.f32.mxu0 %vm360_vm3, %v13248_v3  ;;  %v2429_v3 = vld [vmem:[%s13380_s14 + $0x50] sm:$0xff] }
 0x58e   :  { %11102 = vmatmul.mubr.msk.f32.vlgmr.msra.gmra.mrb[32].mxu0 %vm360_vm3, %v13249_v28  ;;  %v2430_v28 = vld [vmem:[%s13380_s14 + $0x58] sm:$0xff] }
 0x58f   :  { %11104 = vmatprep.mubr.msk.f32.mxu0 %vm360_vm3, %v13250_v47  ;;  %11114 = vmatpush3.msk.msra.mxu0 %vm385_vm2, %v1974_v2  ;;  %v12028_v2 = vpack.c.bf16 %v1826_v27, %v1825_v13  ;;  %v12056_v47 = vpack.c.bf16 %v2430_v28, %v2429_v3 }
 0x590   :  { %12053 = vmatprep.subr.bf16.mxu0 %v12052_v43 }
 0x592   :  { %11105 = vmatmul.mubr.msk.f32.gmra.mrb[34].mxu0 %vm360_vm3, %v13251_v8  ;;  %v2431_v8 = vld [vmem:[%s13380_s14 + $0x60] sm:$0xff] }
 0x593   :  { %11107 = vmatprep.mubr.msk.f32.mxu0 %vm360_vm3, %v13252_v50  ;;  %v2432_v50 = vld [vmem:[%s13380_s14 + $0x68] sm:$0xff] }
 0x596   :  { %11108 = vmatmul.mubr.msk.f32.gmra.mrb[36].mxu0 %vm360_vm3, %v13253_v15  ;;  %v12060_v15 = vpack.c.bf16 %v2432_v50, %v2431_v8 }
 0x597   :  { %11110 = vmatprep.mubr.msk.f32.mxu0 %vm360_vm3, %v13254_v59  ;;  %v2433_v59 = vld [vmem:[%s13380_s14 + $0x70] sm:$0xff] }
 0x59a   :  { %11111 = vmatmul.mubr.msk.f32.gmra.mrb[38].mxu0 %vm360_vm3, %v13255_v12  ;;  %v2434_v12 = vld [vmem:[%s13380_s14 + $0x78] sm:$0xff] }
 0x59b   :  { %11115 = vmatprep.mubr.msk.f32.mxu0 %vm360_vm3, %v13633_v0  ;;  %v1816_v0 = vld [vmem:[%s13370_s3 + $0x8] sm:$0xff] }
 0x59e   :  { %11116 = vmatmul.mubr.msk.f32.vlgmr.msra.gmra.mrb[32].mxu0 %vm360_vm3, %v13628_v61  ;;  %v1815_v61 = vld [vmem:[%s13370_s3] sm:$0xff] }
 0x59f   :  { %11118 = vmatprep.mubr.msk.f32.mxu0 %vm360_vm3, %v13646_v6  ;;  %v12013_v6 = vpack.c.bf16 %v1816_v0, %v1815_v61  ;;  %12055 = vmatpush3.bf16.msra.mxu0 %v12052_v43  ;;  %v12064_v61 = vpack.c.bf16 %v2434_v12, %v2433_v59  ;;  %v10084_v0 = vld [vmem:[%s13350_s17 + $0x6] ss:$0 sm:$0xff] }
 0x5a0   :  { %12057 = vmatprep.subr.bf16.mxu0 %v12056_v47 }
 0x5a2   :  { %11119 = vmatmul.mubr.msk.f32.gmra.mrb[34].mxu0 %vm360_vm3, %v13641_v4  ;;  %v16413_v4 = vmov 0.0|0.0  }
 0x5a3   :  { %11121 = vmatprep.mubr.msk.f32.mxu0 %vm360_vm3, %v13657_v22  ;;  %12012 = vmatprep.subr.bf16.mxu1 %v16413_v4  ;;  %v1817_v22 = vld [vmem:[%s13370_s3 + $0x10] sm:$0xff] }
 0x5a4   :  { %12014 = vmatpush1.bf16.msra.mxu1 %v12013_v6  ;;  %12059 = vmatpush3.bf16.msra.mxu0 %v12056_v47 }
 0x5a5   :  { %12015 = vmatprep.subr.bf16.mxu1 %v16413_v4  ;;  %12061 = vmatprep.subr.bf16.mxu0 %v12060_v15 }
 0x5a6   :  { %11122 = vmatmul.mubr.msk.f32.gmra.mrb[36].mxu0 %vm360_vm3, %v13660_v24  ;;  %v1818_v24 = vld [vmem:[%s13370_s3 + $0x18] sm:$0xff] }
 0x5a7   :  { %11124 = vmatprep.mubr.msk.f32.mxu0 %vm360_vm3, %v13671_v35  ;;  %v12016_v33 = vpack.c.bf16 %v1818_v24, %v1817_v22  ;;  %v1819_v35 = vld [vmem:[%s13370_s3 + $0x20] sm:$0xff] }
 0x5a8   :  { %12063 = vmatpush3.bf16.msra.mxu0 %v12060_v15 }
 0x5a9   :  { %12017 = vmatpush1.bf16.msra.mxu1 %v12016_v33  ;;  %12065 = vmatprep.subr.bf16.mxu0 %v12064_v61 }
 0x5aa   :  { %11125 = vmatmul.mubr.msk.f32.gmra.mrb[38].mxu0 %vm360_vm3, %v13674_v38  ;;  %12018 = vmatprep.subr.bf16.mxu1 %v16413_v4  ;;  %v1820_v38 = vld [vmem:[%s13370_s3 + $0x28] sm:$0xff]  ;;  %vm13323_vm3 = vmmov 0   ;;  %s16495_s3 = sld [smem:[#allocation9_spill]] }
 0x5ab   :  { %v12019_v62 = vpack.c.bf16 %v1820_v38, %v1819_v35 }
 0x5ac   :  { %12067 = vmatpush3.bf16.msra.mxu0 %v12064_v61 }
 0x5ad   :  { %12020 = vmatpush1.bf16.msra.mxu1 %v12019_v62 }
 0x5ae   :  { %12021 = vmatprep.subr.bf16.mxu1 %v16413_v4 }
 0x5b1   :  { %12023 = vmatpush1.bf16.msra.mxu1 %v12022_v18 }
 0x5b2   :  { %12024 = vmatprep.subr.bf16.mxu1 %v16413_v4 }
 0x5b5   :  { %12026 = vmatpush1.bf16.msra.mxu1 %v12025_v41 }
 0x5b6   :  { %12027 = vmatprep.subr.bf16.mxu1 %v16413_v4 }
 0x5b9   :  { %12029 = vmatpush1.bf16.msra.mxu1 %v12028_v2 }
 0x5ba   :  { %12030 = vmatprep.subr.bf16.mxu1 %v16413_v4 }
 0x5bd   :  { %12032 = vmatpush1.bf16.msra.mxu1 %v12031_v10 }
 0x5be   :  { %12033 = vmatprep.subr.bf16.mxu1 %v16413_v4 }
 0x5c1   :  { %12035 = vmatpush1.bf16.msra.mxu1 %v12034_v34 }
 0x5c2   :  { %1893 = vmatprep.subr.mxu1 %v16415_v48 }
 0x5c5   :  { %1894 = vmatpush1.msra.mxu1 %v1831_v5 }
 0x651   :  { %v11089_v6 = vpop.f32.mrb[24].mxu0 }
 0x652   :  { %v1674_v22 = vadd.f32 %v11089_v6, %v10084_v0  ;;  %v1629_v24 = vpop.f32.mrb[25].mxu0 }
 0x653   :  { %v1673_v33 = vadd.f32 %v10084_v0, %v1629_v24 }
 0x654   :  { %v1682_v35 = vmax.f32 %v1674_v22, 0.0 }
 0x655   :  { %v1681_v38 = vmax.f32 %v1673_v33, 0.0  ;;  %v11092_v62 = vpop.f32.mrb[26].mxu0 }
 0x656   :  { %v14093_v53 = vmul.f32 %v1682_v35, %v13689_v46  ;;  %v1676_v14 = vadd.f32 %v11092_v62, %v10084_v0  ;;  %v1639_v18 = vpop.f32.mrb[27].mxu0 }
 0x657   :  { %v14096_v7 = vmul.f32 %v1681_v38, %v13680_v39  ;;  %v1675_v49 = vadd.f32 %v10084_v0, %v1639_v18 }
 0x658   :  { %v1699_v41 = vsel %vm1697_vm4, %v14093_v53, 0.0  ;;  %v1721_v13 = vmul.f32 %v14093_v53, %v14093_v53  ;;  %v1684_v27 = vmax.f32 %v1676_v14, 0.0 }
 0x659   :  { %v1698_v2 = vsel %vm1697_vm4, %v14096_v7, 0.0  ;;  %v1720_v29 = vmul.f32 %v14096_v7, %v14096_v7  ;;  %v1683_v55 = vmax.f32 %v1675_v49, 0.0  ;;  %v11095_v10 = vpop.f32.mrb[28].mxu0 }
 0x65a   :  { %v1729_v45 = vsel %vm1697_vm4, %v1721_v13, 0.0  ;;  %v1700_v51 = vadd.f32 %v1699_v41, %v1698_v2  ;;  %v14108_v34 = vmul.f32 %v1684_v27, %v13703_v60  ;;  %v1678_v5 = vadd.f32 %v11095_v10, %v10084_v0  ;;  %v1649_v42 = vpop.f32.mrb[29].mxu0 }
 0x65b   :  { %v1728_v52 = vsel %vm1697_vm4, %v1720_v29, 0.0  ;;  %v14112_v43 = vmul.f32 %v1683_v55, %v13686_v44  ;;  %v1677_v3 = vadd.f32 %v10084_v0, %v1649_v42 }
 0x65c   :  { %v1730_v28 = vadd.f32 %v1729_v45, %v1728_v52  ;;  %v1723_v47 = vmul.f32 %v14108_v34, %v14108_v34  ;;  %v1686_v8 = vmax.f32 %v1678_v5, 0.0  ;;  %v1703_v33 = vsel %vm1697_vm4, %v14108_v34, 0.0 }
 0x65d   :  { %v1701_v50 = vsel %vm1697_vm4, %v14112_v43, 0.0  ;;  %v1722_v15 = vmul.f32 %v14112_v43, %v14112_v43  ;;  %v1685_v59 = vmax.f32 %v1677_v3, 0.0  ;;  %v11098_v12 = vpop.f32.mrb[30].mxu0 }
 0x65e   :  { %v1702_v61 = vadd.f32 %v1701_v50, %v1700_v51  ;;  %v14121_v6 = vmul.f32 %v1686_v8, %v13742_v11  ;;  %v1680_v22 = vadd.f32 %v11098_v12, %v10084_v0  ;;  %v1659_v24 = vpop.f32.mrb[31].mxu0  ;;  %v1733_v14 = vsel %vm1697_vm4, %v1723_v47, 0.0 }
 0x65f   :  { %v1731_v35 = vsel %vm1697_vm4, %v1722_v15, 0.0  ;;  %v14127_v38 = vmul.f32 %v1685_v59, %v13740_v9  ;;  %v1679_v62 = vadd.f32 %v10084_v0, %v1659_v24 }
 0x660   :  { %v1732_v18 = vadd.f32 %v1731_v35, %v1730_v28  ;;  %v1725_v49 = vmul.f32 %v14121_v6, %v14121_v6  ;;  %v1704_v41 = vadd.f32 %v1703_v33, %v1702_v61  ;;  %v1688_v2 = vmax.f32 %v1680_v22, 0.0 }
 0x661   :  { %v1705_v13 = vsel %vm1697_vm4, %v14127_v38, 0.0  ;;  %v1724_v27 = vmul.f32 %v14127_v38, %v14127_v38  ;;  %v1687_v29 = vmax.f32 %v1679_v62, 0.0  ;;  %v1707_v0 = vsel %vm1697_vm4, %v14121_v6, 0.0 }
 0x662   :  { %v1706_v55 = vadd.f32 %v1705_v13, %v1704_v41  ;;  %v1734_v10 = vadd.f32 %v1733_v14, %v1732_v18  ;;  %v14140_v51 = vmul.f32 %v1688_v2, %v13754_v54  ;;  %v1737_v3 = vsel %vm1697_vm4, %v1725_v49, 0.0  ;;  %v10112_v41 = vld [vmem:[%s13350_s17 + $0xa] ss:$0 sm:$0xff] }
 0x663   :  { %v1735_v45 = vsel %vm1697_vm4, %v1724_v27, 0.0  ;;  %v14143_v5 = vmul.f32 %v1687_v29, %v13745_v16 }
 0x664   :  { %v1736_v42 = vadd.f32 %v1735_v45, %v1734_v10  ;;  %v1708_v52 = vadd.f32 %v1707_v0, %v1706_v55  ;;  %v1727_v28 = vmul.f32 %v14140_v51, %v14140_v51  ;;  %v1711_v59 = vsel %vm1697_vm4, %v14140_v51, 0.0 }
 0x665   :  { %v1709_v47 = vsel %vm1697_vm4, %v14143_v5, 0.0  ;;  %v1726_v8 = vmul.f32 %v14143_v5, %v14143_v5 }
 0x666   :  { %v1710_v50 = vadd.f32 %v1709_v47, %v1708_v52  ;;  %v1738_v15 = vadd.f32 %v1737_v3, %v1736_v42  ;;  %v1741_v24 = vsel %vm1697_vm4, %v1727_v28, 0.0 }
 0x667   :  { %v1739_v12 = vsel %vm1697_vm4, %v1726_v8, 0.0 }
 0x668   :  { %v1712_v61 = vadd.f32 %v1711_v59, %v1710_v50  ;;  %v1740_v22 = vadd.f32 %v1739_v12, %v1738_v15 }
 0x66a   :  { %v1713_v33 = vrot.slane %v1712_v61, 4  ;;  %v1742_v35 = vadd.f32 %v1741_v24, %v1740_v22 }
 0x66c   :  { %v1714_v62 = vadd.f32 %v1713_v33, %v1712_v61  ;;  %v1743_v14 = vrot.slane %v1742_v35, 4 }
 0x66e   :  { %v1715_v18 = vrot.slane %v1714_v62, 2  ;;  %v1744_v49 = vadd.f32 %v1743_v14, %v1742_v35 }
 0x670   :  { %v1716_v13 = vadd.f32 %v1715_v18, %v1714_v62  ;;  %v1745_v27 = vrot.slane %v1744_v49, 2 }
 0x671   :  { %v11117_v2 = vpop.f32.mrb[32].mxu0 }
 0x672   :  { %v1717_v29 = vrot.slane %v1716_v13, 1  ;;  %v1746_v55 = vadd.f32 %v1745_v27, %v1744_v49  ;;  %v2198_v10 = vadd.f32 %v11117_v2, %v10112_v41  ;;  %v2153_v0 = vpop.f32.mrb[33].mxu0 }
 0x673   :  { %v2197_v45 = vadd.f32 %v10112_v41, %v2153_v0 }
 0x674   :  { %v1718_v42 = vadd.f32 %v1717_v29, %v1716_v13  ;;  %v1747_v52 = vrot.slane %v1746_v55, 1  ;;  %v2206_v3 = vmax.f32 %v2198_v10, 0.0 }
 0x675   :  { %v2205_v47 = vmax.f32 %v2197_v45, 0.0  ;;  %v11120_v28 = vpop.f32.mrb[34].mxu0 }
 0x676   :  { %v14157_v8 = vmul.f32 0.015625, %v1718_v42  ;;  %v1748_v50 = vadd.f32 %v1747_v52, %v1746_v55  ;;  %v14160_v15 = vmul.f32 %v2206_v3, %v13689_v46  ;;  %v2200_v59 = vadd.f32 %v11120_v28, %v10112_v41  ;;  %v2163_v12 = vpop.f32.mrb[35].mxu0 }
 0x677   :  { %v14163_v61 = vmul.f32 %v2205_v47, %v13680_v39  ;;  %v2199_v22 = vadd.f32 %v10112_v41, %v2163_v12 }
 0x678   :  { %v1749_v24 = vmul.f32 0.015625, %v1748_v50  ;;  %v1750_v33 = vmul.f32 %v14157_v8, %v14157_v8  ;;  %v2222_v35 = vsel %vm180_vm1, %v14160_v15, 0.0  ;;  %v2244_v62 = vmul.f32 %v14160_v15, %v14160_v15 }
 0x679   :  { %v2221_v14 = vsel %vm180_vm1, %v14163_v61, 0.0  ;;  %v2243_v18 = vmul.f32 %v14163_v61, %v14163_v61  ;;  %v2208_v49 = vmax.f32 %v2200_v59, 0.0  ;;  %v2207_v13 = vmax.f32 %v2199_v22, 0.0  ;;  %v11123_v27 = vpop.f32.mrb[36].mxu0 }
 0x67a   :  { %v1751_v2 = vsub.f32 %v1749_v24, %v1750_v33  ;;  %v2252_v29 = vsel %vm180_vm1, %v2244_v62, 0.0  ;;  %v2223_v55 = vadd.f32 %v2222_v35, %v2221_v14  ;;  %v2202_v10 = vadd.f32 %v11123_v27, %v10112_v41  ;;  %v2173_v0 = vpop.f32.mrb[37].mxu0 }
 0x67b   :  { %v2251_v45 = vsel %vm180_vm1, %v2243_v18, 0.0  ;;  %v14178_v42 = vmul.f32 %v2208_v49, %v13703_v60  ;;  %v14181_v52 = vmul.f32 %v2207_v13, %v13686_v44  ;;  %v2201_v3 = vadd.f32 %v10112_v41, %v2173_v0 }
 0x67c   :  { %v1752_v47 = vadd.f32 1e-05, %v1751_v2  ;;  %v2253_v28 = vadd.f32 %v2252_v29, %v2251_v45  ;;  %v2210_v50 = vmax.f32 %v2202_v10, 0.0 }
 0x67d   :  { %v2246_v59 = vmul.f32 %v14178_v42, %v14178_v42  ;;  %v2224_v12 = vsel %vm180_vm1, %v14181_v52, 0.0  ;;  %v2245_v22 = vmul.f32 %v14181_v52, %v14181_v52  ;;  %v11126_v24 = vpop.f32.mrb[38].mxu0  ;;  %v2209_v62 = vmax.f32 %v2201_v3, 0.0 }
 0x67e   :  { %13128 = vrsqrt.f32 %v1752_v47  ;;  %v2225_v33 = vadd.f32 %v2224_v12, %v2223_v55  ;;  %v14190_v35 = vmul.f32 %v2210_v50, %v13742_v11  ;;  %v2183_v14 = vpop.f32.mrb[39].mxu0  ;;  %v2204_v49 = vadd.f32 %v11126_v24, %v10112_v41 }
 0x67f   :  { %v2254_v18 = vsel %vm180_vm1, %v2245_v22, 0.0  ;;  %v2203_v13 = vadd.f32 %v10112_v41, %v2183_v14  ;;  %v2226_v27 = vsel %vm180_vm1, %v14178_v42, 0.0  ;;  %v14196_v29 = vmul.f32 %v2209_v62, %v13740_v9  ;;  %v1754_v14 = vld [vmem:[%s13350_s17 + $0x7] sm:$0x1] }
 0x680   :  { %v2255_v2 = vadd.f32 %v2254_v18, %v2253_v28  ;;  %v2256_v10 = vsel %vm180_vm1, %v2246_v59, 0.0  ;;  %v2227_v55 = vadd.f32 %v2226_v27, %v2225_v33  ;;  %v2212_v0 = vmax.f32 %v2204_v49, 0.0 }
 0x681   :  { %v2211_v45 = vmax.f32 %v2203_v13, 0.0  ;;  %v2248_v3 = vmul.f32 %v14190_v35, %v14190_v35  ;;  %v2228_v47 = vsel %vm180_vm1, %v14196_v29, 0.0  ;;  %v2247_v41 = vmul.f32 %v14196_v29, %v14196_v29 }
 0x682   :  { %v2257_v50 = vadd.f32 %v2256_v10, %v2255_v2  ;;  %v2229_v28 = vadd.f32 %v2228_v47, %v2227_v55  ;;  %v14206_v12 = vmul.f32 %v2212_v0, %v13754_v54  ;;  %v2230_v59 = vsel %vm180_vm1, %v14190_v35, 0.0 }
 0x683   :  { %v14209_v22 = vmul.f32 %v2211_v45, %v13745_v16  ;;  %v2258_v24 = vsel %vm180_vm1, %v2247_v41, 0.0  ;;  %v2260_v18 = vsel %vm180_vm1, %v2248_v3, 0.0 }
 0x684   :  { %v2259_v33 = vadd.f32 %v2258_v24, %v2257_v50  ;;  %v2231_v62 = vadd.f32 %v2230_v59, %v2229_v28  ;;  %v2250_v49 = vmul.f32 %v14206_v12, %v14206_v12  ;;  %v2234_v0 = vsel %vm180_vm1, %v14206_v12, 0.0  ;;  %v1756_v50 = vld [vmem:[%s13350_s17 + $0x8] sm:$0x1] }
 0x685   :  { %v2232_v13 = vsel %vm180_vm1, %v14209_v22, 0.0  ;;  %v2249_v27 = vmul.f32 %v14209_v22, %v14209_v22 }
 0x686   :  { %v2233_v2 = vadd.f32 %v2232_v13, %v2231_v62  ;;  %v2261_v10 = vadd.f32 %v2260_v18, %v2259_v33  ;;  %v2264_v28 = vsel %vm180_vm1, %v2250_v49, 0.0  ;;  %v1784_v62 = vpop.permute.xlu1 %1783 }
 0x687   :  { %v2262_v45 = vsel %vm180_vm1, %v2249_v27, 0.0 }
 0x688   :  { %v13129_v55 = vpop.eup %13128  ;;  %v2235_v41 = vadd.f32 %v2234_v0, %v2233_v2  ;;  %v2263_v3 = vadd.f32 %v2262_v45, %v2261_v10  ;;  %v1807_v45 = vsel %vm180_vm1, %v13786_v25, %v1784_v62 }
 0x689   :  { %v1755_v47 = vmul.f32 %v13129_v55, %v1754_v14 }
 0x68a   :  { %v2236_v4 = vrot.slane %v2235_v41, 4  ;;  %v2265_v48 = vadd.f32 %v2264_v28, %v2263_v3 }
 0x68b   :  { %v1757_v59 = vmul.f32 %v1755_v47, %v14157_v8  ;;  %v1762_v24 = vrot.slane %v1755_v47, %v13774_v56 }
 0x68c   :  { %v2237_v13 = vadd.f32 %v2236_v4, %v2235_v41  ;;  %v2266_v16 = vrot.slane %v2265_v48, 4 }
 0x68d   :  { %v1758_v33 = vsub.f32 %v1756_v50, %v1757_v59  ;;  %v1769_v18 = vmul.f32 %v1762_v24, %v14143_v5  ;;  %v1763_v27 = vmul.f32 %v1762_v24, %v14096_v7  ;;  %v1764_v14 = vmul.f32 %v1762_v24, %v14093_v53 }
 0x68e   :  { %v1765_v2 = vmul.f32 %v1762_v24, %v14112_v43  ;;  %v1766_v49 = vmul.f32 %v1762_v24, %v14108_v34  ;;  %v2238_v10 = vrot.slane %v2237_v13, 2  ;;  %v2267_v55 = vadd.f32 %v2266_v16, %v2265_v48 }
 0x68f   :  { %v1774_v8 = vrot.slane %v1758_v33, %v13774_v56  ;;  %v1767_v0 = vmul.f32 %v1762_v24, %v14127_v38  ;;  %v1768_v4 = vmul.f32 %v1762_v24, %v14121_v6  ;;  %v1770_v5 = vmul.f32 %v1762_v24, %v14140_v51  ;;  %v1786_v38 = vpop.permute.xlu1 %1785  ;;  %v1788_v33 = vpop.permute.xlu0 %1787 }
 0x690   :  { %v2239_v7 = vadd.f32 %v2238_v10, %v2237_v13  ;;  %v2268_v47 = vrot.slane %v2267_v55, 2  ;;  %v1808_v62 = vsel %vm180_vm1, %v13788_v40, %v1786_v38  ;;  %v16455_v10 = vld [vmem:[#allocation27_spill] sm:$0xff] }
 0x691   :  { %v1775_v53 = vadd.f32 %v1774_v8, %v1763_v27  ;;  %v1776_v41 = vadd.f32 %v1774_v8, %v1764_v14  ;;  %v1777_v43 = vadd.f32 %v1774_v8, %v1765_v2  ;;  %v1778_v3 = vadd.f32 %v1774_v8, %v1766_v49  ;;  %v16454_v14 = vld [vmem:[#allocation26_spill] sm:$0xff] }
 0x692   :  { %v1779_v34 = vadd.f32 %v1774_v8, %v1767_v0  ;;  %v1780_v50 = vadd.f32 %v1774_v8, %v1768_v4  ;;  %v2240_v28 = vrot.slane %v2239_v7, 1  ;;  %v2269_v59 = vadd.f32 %v2268_v47, %v2267_v55  ;;  %v16456_v0 = vld [vmem:[#allocation28_spill] sm:$0xff] }
 0x693   :  { %10086 = vmatprep.mubr.msk.f32.mxu1 %vm1697_vm4, %v1775_v53  ;;  %v1781_v16 = vadd.f32 %v1774_v8, %v1769_v18  ;;  %v1782_v48 = vadd.f32 %v1774_v8, %v1770_v5  ;;  %v1809_v2 = vsel %vm180_vm1, %v16454_v14, %v1788_v33  ;;  %v1790_v49 = vpop.permute.xlu1 %1789  ;;  %v1792_v55 = vpop.permute.xlu0 %1791  ;;  %v2277_v5 = vld [vmem:[%s13350_s17 + $0xb] sm:$0x1] }
 0x694   :  { %1926 = vmatmul.mubr.f32.vlgmr.msra.gmra.mrb[16].mxu1 %v1807_v45  ;;  %v2241_v25 = vadd.f32 %v2240_v28, %v2239_v7  ;;  %v2270_v6 = vrot.slane %v2269_v59, 1  ;;  %v1810_v40 = vsel %vm180_vm1, %v16455_v10, %v1790_v49  ;;  %v1811_v45 = vsel %vm180_vm1, %v16456_v0, %v1792_v55  ;;  %v16457_v7 = vld [vmem:[#allocation29_spill] sm:$0xff]  ;;  %v2279_v28 = vld [vmem:[%s13350_s17 + $0xc] sm:$0x1]  ;;  %v2419_v55 = vld [vmem:[%s13380_s14] sm:$0xff] }
 0x695   :  { %10087 = vmatprep.mubr.msk.f32.mxu1 %vm1697_vm4, %v1776_v41  ;;  %v2420_v0 = vld [vmem:[%s13380_s14 + $0x8] sm:$0xff] }
 0x696   :  { %v2242_v51 = vmul.f32 0.015625, %v2241_v25  ;;  %v2271_v24 = vadd.f32 %v2270_v6, %v2269_v59 }
 0x697   :  { %v1794_v4 = vpop.permute.xlu1 %1793  ;;  %v1796_v53 = vpop.permute.xlu0 %1795 }
 0x698   :  { %1931 = vmatmul.mubr.f32.gmra.mrb[18].mxu1 %v1808_v62  ;;  %v2272_v13 = vmul.f32 0.015625, %v2271_v24  ;;  %v2273_v27 = vmul.f32 %v2242_v51, %v2242_v51  ;;  %v1812_v47 = vsel %vm180_vm1, %v16457_v7, %v1794_v4  ;;  %v12068_v4 = vpack.c.bf16 %v2420_v0, %v2419_v55 }
 0x699   :  { %10088 = vmatprep.mubr.msk.f32.mxu1 %vm1697_vm4, %v1777_v43 }
 0x69a   :  { %v2274_v18 = vsub.f32 %v2272_v13, %v2273_v27  ;;  %12069 = vmatprep.subr.bf16.mxu0 %v12068_v4 }
 0x69b   :  { %v1798_v43 = vpop.permute.xlu1 %1797 }
 0x69c   :  { %1936 = vmatmul.mubr.f32.gmra.mrb[20].mxu1 %v1809_v2  ;;  %v2275_v8 = vadd.f32 1e-05, %v2274_v18  ;;  %v16460_v2 = vld [vmem:[#allocation19_spill] sm:$0xff] }
 0x69d   :  { %10089 = vmatprep.mubr.msk.f32.mxu1 %vm1697_vm4, %v1778_v3 }
 0x69e   :  { %13130 = vrsqrt.f32 %v2275_v8 }
 0x6a0   :  { %1941 = vmatmul.mubr.f32.gmra.mrb[22].mxu1 %v1810_v40 }
 0x6a1   :  { %10090 = vmatprep.mubr.msk.f32.mxu1 %vm1697_vm4, %v1779_v34  ;;  %v16458_v34 = vld [vmem:[#allocation30_spill] sm:$0xff] }
 0x6a2   :  { %v1813_v59 = vsel %vm180_vm1, %v16458_v34, %v1796_v53  ;;  %v2424_v53 = vld [vmem:[%s13380_s14 + $0x28] sm:$0xff] }
 0x6a3   :  { %v10085_v34 = vld [vmem:[%s13350_s17 + $0x9] ss:$0 sm:$0xff] }
 0x6a4   :  { %1946 = vmatmul.mubr.f32.gmra.mrb[24].mxu1 %v1811_v45  ;;  %v2421_v45 = vld [vmem:[%s13380_s14 + $0x10] sm:$0xff] }
 0x6a5   :  { %10091 = vmatprep.mubr.msk.f32.mxu1 %vm1697_vm4, %v1780_v50  ;;  %v16459_v50 = vld [vmem:[#allocation31_spill] sm:$0xff] }
 0x6a6   :  { %v1814_v6 = vsel %vm180_vm1, %v16459_v50, %v1798_v43  ;;  %v2425_v43 = vld [vmem:[%s13380_s14 + $0x30] sm:$0xff] }
 0x6a8   :  { %1951 = vmatmul.mubr.f32.gmra.mrb[26].mxu1 %v1812_v47  ;;  %v13131_v41 = vpop.eup %13130  ;;  %v2423_v47 = vld [vmem:[%s13380_s14 + $0x20] sm:$0xff] }
 0x6a9   :  { %10092 = vmatprep.mubr.msk.f32.mxu1 %vm1697_vm4, %v1781_v16  ;;  %v2278_v3 = vmul.f32 %v13131_v41, %v2277_v5  ;;  %v2422_v5 = vld [vmem:[%s13380_s14 + $0x18] sm:$0xff]  ;;  %v12076_v41 = vpack.c.bf16 %v2424_v53, %v2423_v47 }
 0x6aa   :  { %v12072_v7 = vpack.c.bf16 %v2422_v5, %v2421_v45 }
 0x6ab   :  { %v2280_v38 = vmul.f32 %v2278_v3, %v2242_v51  ;;  %v2285_v25 = vrot.slane %v2278_v3, %v13774_v56  ;;  %v2426_v3 = vld [vmem:[%s13380_s14 + $0x38] sm:$0xff]  ;;  %s16497_s14 = sld [smem:[#allocation11_spill]] }
 0x6ac   :  { %1956 = vmatmul.mubr.f32.gmra.mrb[28].mxu1 %v1813_v59 }
 0x6ad   :  { %10093 = vmatprep.mubr.msk.f32.mxu1 %vm1697_vm4, %v1782_v48  ;;  %v2281_v24 = vsub.f32 %v2279_v28, %v2280_v38  ;;  %v2292_v62 = vmul.f32 %v2285_v25, %v14209_v22  ;;  %v2286_v16 = vmul.f32 %v2285_v25, %v14163_v61  ;;  %v2287_v33 = vmul.f32 %v2285_v25, %v14160_v15 }
 0x6ae   :  { %v2288_v13 = vmul.f32 %v2285_v25, %v14181_v52  ;;  %v2289_v27 = vmul.f32 %v2285_v25, %v14178_v42  ;;  %v2290_v51 = vmul.f32 %v2285_v25, %v14196_v29  ;;  %v2291_v18 = vmul.f32 %v2285_v25, %v14190_v35 }
 0x6af   :  { %v2297_v48 = vrot.slane %v2281_v24, %v13774_v56  ;;  %v2293_v14 = vmul.f32 %v2285_v25, %v14206_v12  ;;  %v12080_v28 = vpack.c.bf16 %v2426_v3, %v2425_v43 }
 0x6b0   :  { %1961 = vmatmul.mubr.f32.gmra.mrb[30].mxu1 %v1814_v6 }
 0x6b1   :  { %11143 = vmatprep.mubr.msk.f32.mxu1 %vm180_vm1, %v16460_v2  ;;  %v14276_v22 = vadd.f32 %v2297_v48, %v2286_v16  ;;  %v14278_v61 = vadd.f32 %v2297_v48, %v2287_v33  ;;  %v14280_v15 = vadd.f32 %v2297_v48, %v2288_v13  ;;  %v14282_v52 = vadd.f32 %v2297_v48, %v2289_v27 }
 0x6b2   :  { %v14284_v42 = vadd.f32 %v2297_v48, %v2290_v51  ;;  %v14286_v29 = vadd.f32 %v2297_v48, %v2291_v18  ;;  %v14288_v35 = vadd.f32 %v2297_v48, %v2292_v62  ;;  %v14290_v49 = vadd.f32 %v2297_v48, %v2293_v14 }
 0x6b3   :  { %16461 = vst [vmem:[#allocation26_spill] sm:$0xff] %v14278_v61  ;;  %16462 = vst [vmem:[#allocation27_spill] sm:$0xff] %v14280_v15  ;;  %11171 = vmatprep.mubr.msk.f32.mxu0 %vm180_vm1, %v14276_v22  ;;  %v12036_v12 = vpack.c.bf16 %v14278_v61, %v14276_v22  ;;  %v12040_v8 = vpack.c.bf16 %v14282_v52, %v14280_v15 }
 0x6b4   :  { %16463 = vst [vmem:[#allocation28_spill] sm:$0xff] %v14282_v52  ;;  %16464 = vst [vmem:[#allocation29_spill] sm:$0xff] %v14284_v42  ;;  %11172 = vmatmul.mubr.msk.f32.vlgmr.msra.gmra.mrb[40].mxu0 %vm180_vm1, %v14278_v61  ;;  %v12044_v10 = vpack.c.bf16 %v14286_v29, %v14284_v42  ;;  %v12048_v40 = vpack.c.bf16 %v14290_v49, %v14288_v35 }
 0x6b5   :  { %16465 = vst [vmem:[#allocation30_spill] sm:$0xff] %v14286_v29  ;;  %16466 = vst [vmem:[#allocation31_spill] sm:$0xff] %v14288_v35  ;;  %12037 = vmatprep.subr.bf16.mxu1 %v12036_v12  ;;  %11174 = vmatprep.mubr.msk.f32.mxu0 %vm180_vm1, %v14280_v15 }
 0x6b6   :  { %16467 = vst [vmem:[#allocation32_spill] sm:$0xff] %v14290_v49  ;;  %12039 = vmatpush3.bf16.msra.mxu1 %v12036_v12  ;;  %12071 = vmatpush3.bf16.msra.mxu0 %v12068_v4 }
 0x6b7   :  { %12041 = vmatprep.subr.bf16.mxu1 %v12040_v8  ;;  %12073 = vmatprep.subr.bf16.mxu0 %v12072_v7 }
 0x6b8   :  { %11175 = vmatmul.mubr.msk.f32.gmra.mrb[42].mxu0 %vm180_vm1, %v14282_v52 }
 0x6b9   :  { %11177 = vmatprep.mubr.msk.f32.mxu0 %vm180_vm1, %v14284_v42 }
 0x6ba   :  { %12043 = vmatpush3.bf16.msra.mxu1 %v12040_v8  ;;  %12075 = vmatpush3.bf16.msra.mxu0 %v12072_v7 }
 0x6bb   :  { %12045 = vmatprep.subr.bf16.mxu1 %v12044_v10  ;;  %12077 = vmatprep.subr.bf16.mxu0 %v12076_v41 }
 0x6bc   :  { %11178 = vmatmul.mubr.msk.f32.gmra.mrb[44].mxu0 %vm180_vm1, %v14286_v29 }
 0x6bd   :  { %11180 = vmatprep.mubr.msk.f32.mxu0 %vm180_vm1, %v14288_v35 }
 0x6be   :  { %12047 = vmatpush3.bf16.msra.mxu1 %v12044_v10  ;;  %12079 = vmatpush3.bf16.msra.mxu0 %v12076_v41 }
 0x6bf   :  { %12049 = vmatprep.subr.bf16.mxu1 %v12048_v40  ;;  %12081 = vmatprep.subr.bf16.mxu0 %v12080_v28 }
 0x6c0   :  { %11181 = vmatmul.mubr.msk.f32.gmra.mrb[46].mxu0 %vm180_vm1, %v14290_v49 }
 0x6c2   :  { %12051 = vmatpush3.bf16.msra.mxu1 %v12048_v40  ;;  %12083 = vmatpush3.bf16.msra.mxu0 %v12080_v28 }
 0x6c5   :  { %11144 = vmatmul.mubr.msk.f32.vlgmr.msra.gmra.mrb[32].mxu1 %vm180_vm1, %v13531_v20 }
 0x6c6   :  { %11146 = vmatprep.mubr.msk.f32.mxu1 %vm180_vm1, %v13534_v21 }
 0x6c9   :  { %11147 = vmatmul.mubr.msk.f32.gmra.mrb[34].mxu1 %vm180_vm1, %v13542_v23 }
 0x6ca   :  { %11149 = vmatprep.mubr.msk.f32.mxu1 %vm180_vm1, %v13564_v31 }
 0x6cd   :  { %11150 = vmatmul.mubr.msk.f32.gmra.mrb[36].mxu1 %vm180_vm1, %v13582_v37 }
 0x6ce   :  { %11152 = vmatprep.mubr.msk.f32.mxu1 %vm180_vm1, %v13560_v30 }
 0x6d1   :  { %11153 = vmatmul.mubr.msk.f32.gmra.mrb[38].mxu1 %vm180_vm1, %v13578_v36 }
 0x6d2   :  { %11227 = vmatprep.mubr.msk.f32.mxu1 %vm180_vm1, %v16460_v2 }
 0x767   :  { %v1927_v59 = vpop.f32.mrb[16].mxu1 }
 0x768   :  { %v14341_v38 = vadd.f32 %v10085_v34, %v1927_v59  ;;  %v1929_v25 = vpop.f32.mrb[17].mxu1 }
 0x76a   :  { %v1966_v50 = vmax.f32 %v14341_v38, 0.0 }
 0x76b   :  { %v1932_v6 = vpop.f32.mrb[18].mxu1 }
 0x76c   :  { %v14344_v24 = vadd.f32 %v10085_v34, %v1932_v6  ;;  %v1934_v62 = vpop.f32.mrb[19].mxu1  ;;  %v3340_v16 = vsel %vm1697_vm4, %v1966_v50, -inf }
 0x76d   :  { %3341 = vmax.xlane.f32.xlu0 %v3340_v16 }
 0x76e   :  { %v1967_v33 = vmax.f32 %v14344_v24, 0.0 }
 0x76f   :  { %v1937_v13 = vpop.f32.mrb[20].mxu1 }
 0x770   :  { %v14350_v27 = vadd.f32 %v10085_v34, %v1937_v13  ;;  %v1939_v51 = vpop.f32.mrb[21].mxu1  ;;  %v3343_v18 = vsel %vm1697_vm4, %v1967_v33, -inf }
 0x771   :  { %3344 = vmax.xlane.f32.xlu1 %v3343_v18 }
 0x772   :  { %v1968_v48 = vmax.f32 %v14350_v27, 0.0 }
 0x773   :  { %v1942_v14 = vpop.f32.mrb[22].mxu1 }
 0x774   :  { %v14356_v12 = vadd.f32 %v10085_v34, %v1942_v14  ;;  %v1944_v8 = vpop.f32.mrb[23].mxu1  ;;  %v3346_v10 = vsel %vm1697_vm4, %v1968_v48, -inf }
 0x775   :  { %3347 = vmax.xlane.f32.xlu0 %v3346_v10 }
 0x776   :  { %v1969_v40 = vmax.f32 %v14356_v12, 0.0 }
 0x777   :  { %v1947_v55 = vpop.f32.mrb[24].mxu1 }
 0x778   :  { %v14362_v0 = vadd.f32 %v10085_v34, %v1947_v55  ;;  %v1949_v45 = vpop.f32.mrb[25].mxu1  ;;  %v3349_v4 = vsel %vm1697_vm4, %v1969_v40, -inf }
 0x779   :  { %3350 = vmax.xlane.f32.xlu0 %v3349_v4 }
 0x77a   :  { %v1970_v5 = vmax.f32 %v14362_v0, 0.0 }
 0x77b   :  { %v1952_v7 = vpop.f32.mrb[26].mxu1 }
 0x77c   :  { %v14368_v47 = vadd.f32 %v10085_v34, %v1952_v7  ;;  %v1954_v53 = vpop.f32.mrb[27].mxu1  ;;  %v3352_v41 = vsel %vm1697_vm4, %v1970_v5, -inf }
 0x77d   :  { %3353 = vmax.xlane.f32.xlu1 %v3352_v41 }
 0x77e   :  { %v1971_v43 = vmax.f32 %v14368_v47, 0.0 }
 0x77f   :  { %v1957_v3 = vpop.f32.mrb[28].mxu1 }
 0x780   :  { %v14374_v28 = vadd.f32 %v10085_v34, %v1957_v3  ;;  %v1959_v59 = vpop.f32.mrb[29].mxu1  ;;  %v3355_v25 = vsel %vm1697_vm4, %v1971_v43, -inf }
 0x781   :  { %3356 = vmax.xlane.f32.xlu0 %v3355_v25 }
 0x782   :  { %v1972_v6 = vmax.f32 %v14374_v28, 0.0 }
 0x783   :  { %v1962_v62 = vpop.f32.mrb[30].mxu1 }
 0x784   :  { %v14380_v16 = vadd.f32 %v10085_v34, %v1962_v62  ;;  %v1964_v13 = vpop.f32.mrb[31].mxu1  ;;  %v3358_v51 = vsel %vm1697_vm4, %v1972_v6, -inf }
 0x785   :  { %3359 = vmax.xlane.f32.xlu1 %v3358_v51 }
 0x786   :  { %v1973_v18 = vmax.f32 %v14380_v16, 0.0 }
 0x788   :  { %v3361_v14 = vsel %vm1697_vm4, %v1973_v18, -inf }
 0x789   :  { %3362 = vmax.xlane.f32.xlu0 %v3361_v14 }
 0x798   :  { %v11145_v8 = vpop.f32.mrb[32].mxu1 }
 0x799   :  { %v2372_v10 = vpop.f32.mrb[33].mxu1  ;;  %v2412_v34 = vmul.f32 %v13622_v57, %v11145_v8  ;;  %v16468_v8 = vmov 0.0  }
 0x79a   :  { %v2411_v55 = vmul.f32 %v13624_v58, %v2372_v10 }
 0x79c   :  { %v11148_v45 = vpop.f32.mrb[34].mxu1  ;;  %11199 = vmatprep.mubr.msk.f32.mxu0 %vm180_vm1, %v2411_v55 }
 0x79d   :  { %v2382_v4 = vpop.f32.mrb[35].mxu1  ;;  %11200 = vmatmul.mubr.msk.f32.vlgmr.msra.gmra.mrb[40].mxu0 %vm180_vm1, %v2412_v34  ;;  %v2414_v53 = vmul.f32 %v13630_v63, %v11148_v45 }
 0x79e   :  { %v2413_v7 = vmul.f32 %v13635_v1, %v2382_v4 }
 0x7a0   :  { %v11151_v41 = vpop.f32.mrb[36].mxu1  ;;  %11202 = vmatprep.mubr.msk.f32.mxu0 %vm180_vm1, %v2413_v7 }
 0x7a1   :  { %v2392_v3 = vpop.f32.mrb[37].mxu1  ;;  %11203 = vmatmul.mubr.msk.f32.gmra.mrb[42].mxu0 %vm180_vm1, %v2414_v53  ;;  %v2416_v25 = vmul.f32 %v13654_v19, %v11151_v41 }
 0x7a2   :  { %v2415_v59 = vmul.f32 %v13652_v17, %v2392_v3 }
 0x7a4   :  { %v11154_v62 = vpop.f32.mrb[38].mxu1  ;;  %11205 = vmatprep.mubr.msk.f32.mxu0 %vm180_vm1, %v2415_v59 }
 0x7a5   :  { %v2402_v13 = vpop.f32.mrb[39].mxu1  ;;  %11206 = vmatmul.mubr.msk.f32.gmra.mrb[44].mxu0 %vm180_vm1, %v2416_v25  ;;  %v2418_v14 = vmul.f32 %v13668_v32, %v11154_v62 }
 0x7a6   :  { %v2417_v51 = vmul.f32 %v13664_v26, %v2402_v13 }
 0x7a8   :  { %11208 = vmatprep.mubr.msk.f32.mxu0 %vm180_vm1, %v2417_v51 }
 0x7a9   :  { %11209 = vmatmul.mubr.msk.f32.gmra.mrb[46].mxu0 %vm180_vm1, %v2418_v14 }
 0x7aa   :  { %3615 = vmatprep.mubr.f32.mxu0 %v16468_v8 }
 0x7fa   :  { %v3342_v10 = vpop.xlane.xlu0 %3341 }
 0x7fb   :  { %v3364_v55 = vsub.f32 %v1966_v50, %v3342_v10 }
 0x7fd   :  { %v3372_v34 = vmul.f32 1.442695, %v3364_v55 }
 0x7fe   :  { %v3345_v45 = vpop.xlane.xlu1 %3344 }
 0x7ff   :  { %13132 = vpow2.f32 %v3372_v34  ;;  %v3365_v4 = vsub.f32 %v1967_v33, %v3345_v45 }
 0x801   :  { %v3374_v7 = vmul.f32 1.442695, %v3365_v4 }
 0x802   :  { %v3348_v53 = vpop.xlane.xlu0 %3347 }
 0x803   :  { %13134 = vpow2.f32 %v3374_v7  ;;  %v3366_v41 = vsub.f32 %v1968_v48, %v3348_v53 }
 0x805   :  { %v3376_v3 = vmul.f32 1.442695, %v3366_v41 }
 0x806   :  { %v3351_v59 = vpop.xlane.xlu0 %3350 }
 0x807   :  { %13136 = vpow2.f32 %v3376_v3  ;;  %v3367_v25 = vsub.f32 %v1969_v40, %v3351_v59  ;;  %v10137_v59 = vld [vmem:[%s13350_s17 + $0xd] ss:$0 sm:$0xff] }
 0x809   :  { %v14414_v38 = vpop.eup %13132  ;;  %v3378_v50 = vmul.f32 1.442695, %v3367_v25 }
 0x80a   :  { %v3354_v62 = vpop.xlane.xlu1 %3353  ;;  %v3388_v24 = vsel %vm1697_vm4, %v14414_v38, 0.0 }
 0x80b   :  { %13138 = vpow2.f32 %v3378_v50  ;;  %v3368_v33 = vsub.f32 %v1970_v5, %v3354_v62  ;;  %3389 = vadd.xlane.f32.xlu1 %v3388_v24 }
 0x80d   :  { %v14420_v27 = vpop.eup %13134  ;;  %v3380_v48 = vmul.f32 1.442695, %v3368_v33 }
 0x80e   :  { %v3357_v13 = vpop.xlane.xlu0 %3356  ;;  %v3391_v12 = vsel %vm1697_vm4, %v14420_v27, 0.0 }
 0x80f   :  { %13140 = vpow2.f32 %v3380_v48  ;;  %v3369_v40 = vsub.f32 %v1971_v43, %v3357_v13  ;;  %3392 = vadd.xlane.f32.xlu0 %v3391_v12 }
 0x811   :  { %v14426_v51 = vpop.eup %13136  ;;  %v3382_v14 = vmul.f32 1.442695, %v3369_v40 }
 0x812   :  { %v3360_v10 = vpop.xlane.xlu1 %3359  ;;  %v3394_v0 = vsel %vm1697_vm4, %v14426_v51, 0.0 }
 0x813   :  { %13142 = vpow2.f32 %v3382_v14  ;;  %v3370_v5 = vsub.f32 %v1972_v6, %v3360_v10  ;;  %3395 = vadd.xlane.f32.xlu1 %v3394_v0 }
 0x815   :  { %v14432_v55 = vpop.eup %13138  ;;  %v3384_v34 = vmul.f32 1.442695, %v3370_v5 }
 0x816   :  { %v3363_v45 = vpop.xlane.xlu0 %3362  ;;  %v3397_v47 = vsel %vm1697_vm4, %v14432_v55, 0.0 }
 0x817   :  { %13144 = vpow2.f32 %v3384_v34  ;;  %v3371_v43 = vsub.f32 %v1973_v18, %v3363_v45  ;;  %3398 = vadd.xlane.f32.xlu0 %v3397_v47 }
 0x819   :  { %v14438_v4 = vpop.eup %13140  ;;  %v3386_v7 = vmul.f32 1.442695, %v3371_v43 }
 0x81a   :  { %v3400_v28 = vsel %vm1697_vm4, %v14438_v4, 0.0 }
 0x81b   :  { %13146 = vpow2.f32 %v3386_v7  ;;  %3401 = vadd.xlane.f32.xlu1 %v3400_v28 }
 0x81d   :  { %v14442_v6 = vpop.eup %13142 }
 0x81e   :  { %v3403_v53 = vsel %vm1697_vm4, %v14442_v6, 0.0 }
 0x81f   :  { %3404 = vadd.xlane.f32.xlu0 %v3403_v53 }
 0x821   :  { %v14446_v41 = vpop.eup %13144 }
 0x822   :  { %v3406_v16 = vsel %vm1697_vm4, %v14446_v41, 0.0 }
 0x823   :  { %3407 = vadd.xlane.f32.xlu1 %v3406_v16 }
 0x825   :  { %v14450_v18 = vpop.eup %13146 }
 0x826   :  { %v3409_v3 = vsel %vm1697_vm4, %v14450_v18, 0.0 }
 0x827   :  { %3410 = vadd.xlane.f32.xlu0 %v3409_v3 }
 0x870   :  { %v11201_v25 = vpop.f32.mrb[40].mxu0 }
 0x871   :  { %v2699_v50 = vadd.f32 %v11201_v25, %v10137_v59  ;;  %v2654_v62 = vpop.f32.mrb[41].mxu0 }
 0x872   :  { %v2698_v24 = vadd.f32 %v10137_v59, %v2654_v62 }
 0x873   :  { %v2707_v33 = vmax.f32 %v2699_v50, 0.0 }
 0x874   :  { %v2706_v48 = vmax.f32 %v2698_v24, 0.0  ;;  %v11204_v13 = vpop.f32.mrb[42].mxu0 }
 0x875   :  { %v14456_v12 = vmul.f32 %v2707_v33, %v13689_v46  ;;  %v2701_v40 = vadd.f32 %v11204_v13, %v10137_v59  ;;  %v2664_v14 = vpop.f32.mrb[43].mxu0 }
 0x876   :  { %v14459_v10 = vmul.f32 %v2706_v48, %v13680_v39  ;;  %v2700_v0 = vadd.f32 %v10137_v59, %v2664_v14 }
 0x877   :  { %v2723_v5 = vsel %vm180_vm1, %v14456_v12, 0.0  ;;  %v2745_v34 = vmul.f32 %v14456_v12, %v14456_v12  ;;  %v2709_v45 = vmax.f32 %v2701_v40, 0.0 }
 0x878   :  { %v2722_v47 = vsel %vm180_vm1, %v14459_v10, 0.0  ;;  %v2744_v43 = vmul.f32 %v14459_v10, %v14459_v10  ;;  %v2708_v7 = vmax.f32 %v2700_v0, 0.0  ;;  %v11207_v28 = vpop.f32.mrb[44].mxu0 }
 0x879   :  { %v2753_v53 = vsel %vm180_vm1, %v2745_v34, 0.0  ;;  %v2724_v16 = vadd.f32 %v2723_v5, %v2722_v47  ;;  %v14471_v3 = vmul.f32 %v2709_v45, %v13703_v60  ;;  %v2703_v25 = vadd.f32 %v11207_v28, %v10137_v59  ;;  %v2674_v50 = vpop.f32.mrb[45].mxu0 }
 0x87a   :  { %v2752_v62 = vsel %vm180_vm1, %v2744_v43, 0.0  ;;  %v14475_v24 = vmul.f32 %v2708_v7, %v13686_v44  ;;  %v2702_v33 = vadd.f32 %v10137_v59, %v2674_v50 }
 0x87b   :  { %v2754_v48 = vadd.f32 %v2753_v53, %v2752_v62  ;;  %v2747_v13 = vmul.f32 %v14471_v3, %v14471_v3  ;;  %v2711_v40 = vmax.f32 %v2703_v25, 0.0  ;;  %v2727_v28 = vsel %vm180_vm1, %v14471_v3, 0.0 }
 0x87c   :  { %v2725_v14 = vsel %vm180_vm1, %v14475_v24, 0.0  ;;  %v2746_v0 = vmul.f32 %v14475_v24, %v14475_v24  ;;  %v2710_v5 = vmax.f32 %v2702_v33, 0.0  ;;  %v11210_v34 = vpop.f32.mrb[46].mxu0 }
 0x87d   :  { %v2726_v45 = vadd.f32 %v2725_v14, %v2724_v16  ;;  %v14484_v47 = vmul.f32 %v2711_v40, %v13742_v11  ;;  %v2705_v43 = vadd.f32 %v11210_v34, %v10137_v59  ;;  %v2684_v7 = vpop.f32.mrb[47].mxu0  ;;  %v2757_v62 = vsel %vm180_vm1, %v2747_v13, 0.0 }
 0x87e   :  { %v2755_v53 = vsel %vm180_vm1, %v2746_v0, 0.0  ;;  %v14490_v25 = vmul.f32 %v2710_v5, %v13740_v9  ;;  %v2704_v50 = vadd.f32 %v10137_v59, %v2684_v7  ;;  %v16469_v5 = vld [vmem:[#allocation24_spill] sm:$0xff] }
 0x87f   :  { %v2756_v2 = vadd.f32 %v2755_v53, %v2754_v48  ;;  %v2749_v16 = vmul.f32 %v14484_v47, %v14484_v47  ;;  %v2728_v33 = vadd.f32 %v2727_v28, %v2726_v45  ;;  %v2713_v34 = vmax.f32 %v2705_v43, 0.0 }
 0x880   :  { %v2729_v40 = vsel %vm180_vm1, %v14490_v25, 0.0  ;;  %v2748_v14 = vmul.f32 %v14490_v25, %v14490_v25  ;;  %v2712_v8 = vmax.f32 %v2704_v50, 0.0  ;;  %v2731_v59 = vsel %vm180_vm1, %v14484_v47, 0.0 }
 0x881   :  { %v2730_v0 = vadd.f32 %v2729_v40, %v2728_v33  ;;  %v2758_v35 = vadd.f32 %v2757_v62, %v2756_v2  ;;  %v14503_v48 = vmul.f32 %v2713_v34, %v13754_v54  ;;  %v2761_v53 = vsel %vm180_vm1, %v2749_v16, 0.0 }
 0x882   :  { %v2759_v13 = vsel %vm180_vm1, %v2748_v14, 0.0  ;;  %v2720_v45 = vmul.f32 %v2712_v8, %v16469_v5 }
 0x883   :  { %v2760_v7 = vadd.f32 %v2759_v13, %v2758_v35  ;;  %v2732_v28 = vadd.f32 %v2731_v59, %v2730_v0  ;;  %v2751_v43 = vmul.f32 %v14503_v48, %v14503_v48  ;;  %v2735_v40 = vsel %vm180_vm1, %v14503_v48, 0.0 }
 0x884   :  { %v2733_v50 = vsel %vm180_vm1, %v2720_v45, 0.0  ;;  %v2750_v2 = vmul.f32 %v2720_v45, %v2720_v45 }
 0x885   :  { %v2734_v62 = vadd.f32 %v2733_v50, %v2732_v28  ;;  %v2762_v33 = vadd.f32 %v2761_v53, %v2760_v7  ;;  %v2765_v35 = vsel %vm180_vm1, %v2751_v43, 0.0 }
 0x886   :  { %v2763_v14 = vsel %vm180_vm1, %v2750_v2, 0.0 }
 0x887   :  { %v2736_v34 = vadd.f32 %v2735_v40, %v2734_v62  ;;  %v2764_v49 = vadd.f32 %v2763_v14, %v2762_v33 }
 0x889   :  { %v2737_v8 = vrot.slane %v2736_v34, 4  ;;  %v2766_v0 = vadd.f32 %v2765_v35, %v2764_v49 }
 0x88b   :  { %v2738_v16 = vadd.f32 %v2737_v8, %v2736_v34  ;;  %v2767_v59 = vrot.slane %v2766_v0, 4 }
 0x88d   :  { %v2739_v13 = vrot.slane %v2738_v16, 2  ;;  %v2768_v42 = vadd.f32 %v2767_v59, %v2766_v0  ;;  %v2780_v59 = vld [vmem:[%s13350_s17 + $0xf] sm:$0x1] }
 0x88f   :  { %v2740_v29 = vadd.f32 %v2739_v13, %v2738_v16  ;;  %v2769_v15 = vrot.slane %v2768_v42, 2 }
 0x891   :  { %v2741_v52 = vrot.slane %v2740_v29, 1  ;;  %v2770_v28 = vadd.f32 %v2769_v15, %v2768_v42 }
 0x893   :  { %v2742_v7 = vadd.f32 %v2741_v52, %v2740_v29  ;;  %v2771_v53 = vrot.slane %v2770_v28, 1  ;;  %v2778_v52 = vld [vmem:[%s13350_s17 + $0xe] sm:$0x1] }
 0x895   :  { %v2743_v50 = vmul.f32 0.015625, %v2742_v7  ;;  %v2772_v61 = vadd.f32 %v2771_v53, %v2770_v28 }
 0x897   :  { %v2773_v2 = vmul.f32 0.015625, %v2772_v61  ;;  %v2774_v62 = vmul.f32 %v2743_v50, %v2743_v50 }
 0x898   :  { %v3390_v33 = vpop.xlane.xlu1 %3389 }
 0x899   :  { %13148 = vrcp.f32 %v3390_v33  ;;  %v2775_v43 = vsub.f32 %v2773_v2, %v2774_v62 }
 0x89b   :  { %v2776_v40 = vadd.f32 1e-05, %v2775_v43 }
 0x89c   :  { %v3393_v49 = vpop.xlane.xlu0 %3392 }
 0x89d   :  { %13150 = vrcp.f32 %v3393_v49 }
 0x89e   :  { %13152 = vrsqrt.f32 %v2776_v40 }
 0x8a0   :  { %v3396_v14 = vpop.xlane.xlu1 %3395 }
 0x8a1   :  { %13154 = vrcp.f32 %v3396_v14 }
 0x8a3   :  { %v13149_v34 = vpop.eup %13148 }
 0x8a4   :  { %v3399_v35 = vpop.xlane.xlu0 %3398  ;;  %v3420_v15 = vmul.f32 %v13149_v34, %v14414_v38 }
 0x8a5   :  { %13156 = vrcp.f32 %v3399_v35 }
 0x8a6   :  { %v14517_v42 = vmul.f32 %v3420_v15, %v13680_v39 }
 0x8a7   :  { %v13151_v61 = vpop.eup %13150 }
 0x8a8   :  { %v13153_v29 = vpop.eup %13152  ;;  %3460 = vrot.lane.b32.xlu1 %v14517_v42, %s13320_s5  ;;  %v3402_v8 = vpop.xlane.xlu1 %3401  ;;  %v3421_v0 = vmul.f32 %v13151_v61, %v14420_v27 }
 0x8a9   :  { %v2779_v16 = vmul.f32 %v13153_v29, %v2778_v52  ;;  %13158 = vrcp.f32 %v3402_v8 }
 0x8aa   :  { %v14524_v13 = vmul.f32 %v3421_v0, %v13689_v46 }
 0x8ab   :  { %v13155_v38 = vpop.eup %13154  ;;  %v2781_v28 = vmul.f32 %v2779_v16, %v2743_v50  ;;  %v2786_v7 = vrot.slane %v2779_v16, %v13774_v56 }
 0x8ac   :  { %3462 = vrot.lane.b32.xlu0 %v14524_v13, %s13320_s5  ;;  %v3405_v53 = vpop.xlane.xlu0 %3404  ;;  %v3422_v2 = vmul.f32 %v13155_v38, %v14426_v51 }
 0x8ad   :  { %v2782_v62 = vsub.f32 %v2780_v59, %v2781_v28  ;;  %v2793_v33 = vmul.f32 %v2786_v7, %v2720_v45  ;;  %13160 = vrcp.f32 %v3405_v53  ;;  %v2787_v27 = vmul.f32 %v2786_v7, %v14459_v10 }
 0x8ae   :  { %v14532_v43 = vmul.f32 %v3422_v2, %v13686_v44  ;;  %v2788_v40 = vmul.f32 %v2786_v7, %v14456_v12  ;;  %v2789_v50 = vmul.f32 %v2786_v7, %v14475_v24  ;;  %v2790_v49 = vmul.f32 %v2786_v7, %v14471_v3 }
 0x8af   :  { %v13157_v14 = vpop.eup %13156  ;;  %v2798_v34 = vrot.slane %v2782_v62, %v13774_v56  ;;  %v2791_v35 = vmul.f32 %v2786_v7, %v14490_v25  ;;  %v2792_v51 = vmul.f32 %v2786_v7, %v14484_v47  ;;  %v2794_v45 = vmul.f32 %v2786_v7, %v14503_v48 }
 0x8b0   :  { %3464 = vrot.lane.b32.xlu1 %v14532_v43, %s13320_s5  ;;  %v3408_v10 = vpop.xlane.xlu1 %3407  ;;  %v3423_v15 = vmul.f32 %v13157_v14, %v14432_v55 }
 0x8b1   :  { %13162 = vrcp.f32 %v3408_v10  ;;  %v14544_v12 = vadd.f32 %v2798_v34, %v2787_v27  ;;  %v14546_v24 = vadd.f32 %v2798_v34, %v2788_v40  ;;  %v14548_v3 = vadd.f32 %v2798_v34, %v2789_v50  ;;  %v2928_v27 = vld [vmem:[%s13385_s19 + $0x40] sm:$0xff]  ;;  %v2929_v40 = vld [vmem:[%s13385_s19 + $0x48] sm:$0xff] }
 0x8b2   :  { %v14551_v52 = vmul.f32 %v3423_v15, %v13703_v60  ;;  %v14553_v25 = vadd.f32 %v2798_v34, %v2790_v49  ;;  %v14555_v47 = vadd.f32 %v2798_v34, %v2791_v35  ;;  %v14557_v48 = vadd.f32 %v2798_v34, %v2792_v51  ;;  %v2931_v35 = vld [vmem:[%s13385_s19 + $0x58] sm:$0xff]  ;;  %v2933_v10 = vld [vmem:[%s13385_s19 + $0x68] sm:$0xff]  ;;  %v2934_v15 = vld [vmem:[%s13385_s19 + $0x70] sm:$0xff] }
 0x8b3   :  { %v13159_v61 = vpop.eup %13158  ;;  %v12084_v55 = vpack.c.bf16 %v14546_v24, %v14544_v12  ;;  %v14561_v29 = vadd.f32 %v2798_v34, %v2793_v33  ;;  %v14563_v8 = vadd.f32 %v2798_v34, %v2794_v45  ;;  %v12100_v49 = vpack.c.bf16 %v2929_v40, %v2928_v27  ;;  %v2930_v34 = vld [vmem:[%s13385_s19 + $0x50] sm:$0xff]  ;;  %v2932_v45 = vld [vmem:[%s13385_s19 + $0x60] sm:$0xff]  ;;  %v2927_v40 = vld [vmem:[%s13385_s19 + $0x38] sm:$0xff] }
 0x8b4   :  { %3466 = vrot.lane.b32.xlu1 %v14551_v52, %s13320_s5  ;;  %v3411_v0 = vpop.xlane.xlu0 %3410  ;;  %v12088_v16 = vpack.c.bf16 %v14553_v25, %v14548_v3  ;;  %v3424_v59 = vmul.f32 %v13159_v61, %v14438_v4  ;;  %v12092_v38 = vpack.c.bf16 %v14557_v48, %v14555_v47  ;;  %v12104_v51 = vpack.c.bf16 %v2931_v35, %v2930_v34  ;;  %v2935_v61 = vld [vmem:[%s13385_s19 + $0x78] sm:$0xff]  ;;  %v2926_v27 = vld [vmem:[%s13385_s19 + $0x30] sm:$0xff] }
 0x8b5   :  { %12085 = vmatprep.subr.bf16.mxu1 %v12084_v55  ;;  %13164 = vrcp.f32 %v3411_v0  ;;  %v12096_v28 = vpack.c.bf16 %v14563_v8, %v14561_v29  ;;  %v2920_v0 = vld [vmem:[%s13385_s19] sm:$0xff] }
 0x8b6   :  { %12087 = vmatpush3.bf16.msra.mxu1 %v12084_v55  ;;  %v14575_v7 = vmul.f32 %v3424_v59, %v13740_v9  ;;  %v12112_v55 = vpack.c.bf16 %v2935_v61, %v2934_v15 }
 0x8b7   :  { %v13161_v53 = vpop.eup %13160  ;;  %12089 = vmatprep.subr.bf16.mxu1 %v12088_v16 }
 0x8b8   :  { %3468 = vrot.lane.b32.xlu0 %v14575_v7, %s13320_s5  ;;  %v3425_v4 = vmul.f32 %v13161_v53, %v14442_v6 }
 0x8ba   :  { %12091 = vmatpush3.bf16.msra.mxu1 %v12088_v16  ;;  %v14581_v2 = vmul.f32 %v3425_v4, %v13742_v11  ;;  %v2921_v16 = vld [vmem:[%s13385_s19 + $0x8] sm:$0xff]  ;;  %v2924_v4 = vld [vmem:[%s13385_s19 + $0x20] sm:$0xff] }
 0x8bb   :  { %v13163_v62 = vpop.eup %13162  ;;  %12093 = vmatprep.subr.bf16.mxu1 %v12092_v38  ;;  %v12116_v59 = vpack.c.bf16 %v2921_v16, %v2920_v0 }
 0x8bc   :  { %3470 = vrot.lane.b32.xlu1 %v14581_v2, %s13320_s5  ;;  %v3426_v33 = vmul.f32 %v13163_v62, %v14446_v41  ;;  %v2925_v62 = vld [vmem:[%s13385_s19 + $0x28] sm:$0xff] }
 0x8be   :  { %12095 = vmatpush3.bf16.msra.mxu1 %v12092_v38  ;;  %v14589_v6 = vmul.f32 %v3426_v33, %v16469_v5  ;;  %v2922_v38 = vld [vmem:[%s13385_s19 + $0x10] sm:$0xff]  ;;  %v12124_v33 = vpack.c.bf16 %v2925_v62, %v2924_v4 }
 0x8bf   :  { %v13165_v50 = vpop.eup %13164  ;;  %12097 = vmatprep.subr.bf16.mxu1 %v12096_v28 }
 0x8c0   :  { %3472 = vrot.lane.b32.xlu0 %v14589_v6, %s13320_s5  ;;  %v3427_v14 = vmul.f32 %v13165_v50, %v14450_v18  ;;  %v12108_v18 = vpack.c.bf16 %v2933_v10, %v2932_v45 }
 0x8c2   :  { %12099 = vmatpush3.bf16.msra.mxu1 %v12096_v28  ;;  %v14597_v41 = vmul.f32 %v3427_v14, %v13754_v54  ;;  %v2923_v28 = vld [vmem:[%s13385_s19 + $0x18] sm:$0xff]  ;;  %s16498_s19 = sld [smem:[#allocation13_spill]] }
 0x8c3   :  { %12101 = vmatprep.subr.bf16.mxu1 %v12100_v49  ;;  %v12120_v53 = vpack.c.bf16 %v2923_v28, %v2922_v38 }
 0x8c4   :  { %3308 = vrot.lane.b32.xlu0 %v14544_v12, %s13317_s0  ;;  %3474 = vrot.lane.b32.xlu1 %v14597_v41, %s13320_s5 }
 0x8c5   :  { %11228 = vmatmul.mubr.msk.f32.vlgmr.msra.gmra.mrb[40].mxu1 %vm180_vm1, %v13531_v20 }
 0x8c6   :  { %12103 = vmatpush3.bf16.msra.mxu1 %v12100_v49  ;;  %11230 = vmatprep.mubr.msk.f32.mxu1 %vm180_vm1, %v13534_v21 }
 0x8c7   :  { %12105 = vmatprep.subr.bf16.mxu1 %v12104_v51 }
 0x8c8   :  { %3312 = vrot.lane.b32.xlu0 %v14548_v3, %s13317_s0  ;;  %3310 = vrot.lane.b32.xlu1 %v14546_v24, %s13317_s0 }
 0x8c9   :  { %11231 = vmatmul.mubr.msk.f32.gmra.mrb[42].mxu1 %vm180_vm1, %v13542_v23 }
 0x8ca   :  { %11233 = vmatprep.mubr.msk.f32.mxu1 %vm180_vm1, %v13564_v31  ;;  %12107 = vmatpush3.bf16.msra.mxu1 %v12104_v51 }
 0x8cb   :  { %12109 = vmatprep.subr.bf16.mxu1 %v12108_v18 }
 0x8cc   :  { %3316 = vrot.lane.b32.xlu0 %v14555_v47, %s13317_s0  ;;  %3314 = vrot.lane.b32.xlu1 %v14553_v25, %s13317_s0 }
 0x8cd   :  { %11234 = vmatmul.mubr.msk.f32.gmra.mrb[44].mxu1 %vm180_vm1, %v13582_v37 }
 0x8ce   :  { %11236 = vmatprep.mubr.msk.f32.mxu1 %vm180_vm1, %v13560_v30  ;;  %12111 = vmatpush3.bf16.msra.mxu1 %v12108_v18 }
 0x8cf   :  { %12113 = vmatprep.subr.bf16.mxu1 %v12112_v55 }
 0x8d0   :  { %3320 = vrot.lane.b32.xlu0 %v14561_v29, %s13317_s0  ;;  %3318 = vrot.lane.b32.xlu1 %v14557_v48, %s13317_s0 }
 0x8d1   :  { %11237 = vmatmul.mubr.msk.f32.gmra.mrb[46].mxu1 %vm180_vm1, %v13578_v36 }
 0x8d2   :  { %12115 = vmatpush3.bf16.msra.mxu1 %v12112_v55  ;;  %11255 = vmatprep.mubr.msk.f32.mxu1 %vm180_vm1, %v14544_v12  ;;  %v12128_v12 = vpack.c.bf16 %v2927_v40, %v2926_v27 }
 0x8d3   :  { %12117 = vmatprep.subr.bf16.mxu1 %v12116_v59 }
 0x8d4   :  { %3322 = vrot.lane.b32.xlu1 %v14563_v8, %s13317_s0 }
 0x8d5   :  { %11256 = vmatmul.mubr.msk.f32.vlgmr.msra.gmra.mrb[48].mxu1 %vm180_vm1, %v14546_v24  ;;  %v13321_v24 = vmov 1  }
 0x8d6   :  { %11258 = vmatprep.mubr.msk.f32.mxu1 %vm180_vm1, %v14548_v3  ;;  %12119 = vmatpush3.bf16.msra.mxu1 %v12116_v59  ;;  %v3492_v3 = vsel %vm1697_vm4, 0, %v13321_v24 }
 0x8d7   :  { %12121 = vmatprep.subr.bf16.mxu1 %v12120_v53 }
 0x8d9   :  { %11259 = vmatmul.mubr.msk.f32.gmra.mrb[50].mxu1 %vm180_vm1, %v14553_v25  ;;  %v3502_v25 = vrot.slane %v3492_v3, %v13774_v56 }
 0x8da   :  { %11261 = vmatprep.mubr.msk.f32.mxu1 %vm180_vm1, %v14555_v47  ;;  %12123 = vmatpush3.bf16.msra.mxu1 %v12120_v53 }
 0x8db   :  { %12125 = vmatprep.subr.bf16.mxu1 %v12124_v33  ;;  %vm10163_vm5 = vcmp.eq.s32.totalorder %v3502_v25, 0  ;;  %vm10164_vm7 = vcmp.eq.s32.totalorder %v3502_v25, 1 }
 0x8dc   :  { %vm14667_vm6 = vmpackc.low %vm10163_vm5, %vm10163_vm5 }
 0x8dd   :  { %11262 = vmatmul.mubr.msk.f32.gmra.mrb[52].mxu1 %vm180_vm1, %v14557_v48  ;;  %vm14717_vm8 = vmpackc.low %vm10164_vm7, %vm10164_vm7 }
 0x8de   :  { %11264 = vmatprep.mubr.msk.f32.mxu1 %vm180_vm1, %v14561_v29  ;;  %12127 = vmatpush3.bf16.msra.mxu1 %v12124_v33 }
 0x8df   :  { %12129 = vmatprep.subr.bf16.mxu1 %v12128_v12 }
 0x8e1   :  { %11265 = vmatmul.mubr.msk.f32.gmra.mrb[54].mxu1 %vm180_vm1, %v14563_v8 }
 0x8e2   :  { %12131 = vmatpush3.bf16.msra.mxu1 %v12128_v12 }
 0x91a   :  { %v3461_v47 = vpop.permute.xlu1 %3460 }
 0x91b   :  { %v3484_v48 = vsel %vm1697_vm4, %v14517_v42, %v3461_v47 }
 0x91c   :  { %v3505_v50 = vsel %vm10163_vm5, %v3484_v48, 0.0 }
 0x91d   :  { %3513 = vxpose.xlu0.b32.start [1/8] (short) (narrow) %v3505_v50, 16 }
 0x91e   :  { %v3463_v29 = vpop.permute.xlu0 %3462 }
 0x91f   :  { %v3485_v49 = vsel %vm1697_vm4, %v14524_v13, %v3463_v29 }
 0x920   :  { %v3506_v14 = vsel %vm10163_vm5, %v3485_v49, 0.0  ;;  %v14674_v34 = vpack.c.bf16 %v3485_v49, %v3484_v48 }
 0x921   :  { %3514 = vxpose.xlu0.b32.cont [2/8] (short) (narrow) %v3506_v14, 16 }
 0x922   :  { %v3465_v35 = vpop.permute.xlu1 %3464  ;;  %12174 = vmatprep.subr.msk.bf16.mxu1 %vm14667_vm6, %v14674_v34 }
 0x923   :  { %v3486_v51 = vsel %vm1697_vm4, %v14532_v43, %v3465_v35 }
 0x924   :  { %v3507_v45 = vsel %vm10163_vm5, %v3486_v51, 0.0 }
 0x925   :  { %3515 = vxpose.xlu0.b32.cont [3/8] (short) (narrow) %v3507_v45, 16 }
 0x926   :  { %v3467_v10 = vpop.permute.xlu1 %3466 }
 0x927   :  { %v3487_v18 = vsel %vm1697_vm4, %v14551_v52, %v3467_v10 }
 0x928   :  { %v3508_v15 = vsel %vm10163_vm5, %v3487_v18, 0.0  ;;  %v14685_v61 = vpack.c.bf16 %v3487_v18, %v3486_v51  ;;  %vm6295_vm5 = vcmask 1043456  }
 0x929   :  { %3516 = vxpose.xlu0.b32.cont [4/8] (short) (narrow) %v3508_v15, 16 }
 0x92a   :  { %v3469_v55 = vpop.permute.xlu0 %3468 }
 0x92b   :  { %v3488_v0 = vsel %vm1697_vm4, %v14575_v7, %v3469_v55 }
 0x92c   :  { %v3509_v16 = vsel %vm10164_vm7, %v3488_v0, 0.0 }
 0x92d   :  { %3517 = vxpose.xlu0.b32.cont [5/8] (short) (narrow) %v3509_v16, 16 }
 0x92e   :  { %v3471_v59 = vpop.permute.xlu1 %3470 }
 0x92f   :  { %v3489_v38 = vsel %vm1697_vm4, %v14581_v2, %v3471_v59 }
 0x930   :  { %v3510_v28 = vsel %vm10164_vm7, %v3489_v38, 0.0  ;;  %v14693_v53 = vpack.c.bf16 %v3489_v38, %v3488_v0 }
 0x931   :  { %3518 = vxpose.xlu0.b32.cont [6/8] (short) (narrow) %v3510_v28, 16 }
 0x932   :  { %v3473_v4 = vpop.permute.xlu0 %3472 }
 0x933   :  { %v3490_v62 = vsel %vm1697_vm4, %v14589_v6, %v3473_v4 }
 0x934   :  { %v3511_v33 = vsel %vm10164_vm7, %v3490_v62, 0.0 }
 0x935   :  { %3519 = vxpose.xlu0.b32.cont [7/8] (short) (narrow) %v3511_v33, 16 }
 0x936   :  { %v3475_v27 = vpop.permute.xlu1 %3474 }
 0x937   :  { %v3491_v40 = vsel %vm1697_vm4, %v14597_v41, %v3475_v27 }
 0x938   :  { %v3512_v12 = vsel %vm10164_vm7, %v3491_v40, 0.0  ;;  %v14701_v3 = vpack.c.bf16 %v3491_v40, %v3490_v62  ;;  %vm6285_vm7 = vcmask 27648  }
 0x939   :  { %3520 = vxpose.xlu0.b32.end [8/8] (short) (narrow) %v3512_v12, 16 }
 0x998   :  { %v11229_v47 = vpop.f32.mrb[40].mxu1 }
 0x999   :  { %v2873_v48 = vpop.f32.mrb[41].mxu1  ;;  %v2913_v29 = vmul.f32 %v13622_v57, %v11229_v47 }
 0x99a   :  { %v2912_v50 = vmul.f32 %v13624_v58, %v2873_v48 }
 0x99c   :  { %v11232_v49 = vpop.f32.mrb[42].mxu1  ;;  %11283 = vmatprep.mubr.msk.f32.mxu1 %vm180_vm1, %v2912_v50 }
 0x99d   :  { %v2883_v14 = vpop.f32.mrb[43].mxu1  ;;  %11284 = vmatmul.mubr.msk.f32.vlgmr.msra.gmra.mrb[48].mxu1 %vm180_vm1, %v2913_v29  ;;  %v2915_v51 = vmul.f32 %v13630_v63, %v11232_v49 }
 0x99e   :  { %v2914_v35 = vmul.f32 %v13635_v1, %v2883_v14  ;;  %12177 = vmatpush3.bf16.msk.msra.mxu1 %vm14667_vm6, %v14674_v34 }
 0x99f   :  { %12180 = vmatprep.subr.msk.bf16.mxu1 %vm14667_vm6, %v14685_v61 }
 0x9a0   :  { %v11235_v58 = vpop.f32.mrb[44].mxu1  ;;  %11286 = vmatprep.mubr.msk.f32.mxu1 %vm180_vm1, %v2914_v35 }
 0x9a1   :  { %v2893_v1 = vpop.f32.mrb[45].mxu1  ;;  %11287 = vmatmul.mubr.msk.f32.gmra.mrb[50].mxu1 %vm180_vm1, %v2915_v51  ;;  %v2917_v63 = vmul.f32 %v13654_v19, %v11235_v58  ;;  %v10162_v19 = vld [vmem:[%s13350_s17 + $0x10] ss:$0 sm:$0xff] }
 0x9a2   :  { %v2916_v45 = vmul.f32 %v13652_v17, %v2893_v1  ;;  %12183 = vmatpush3.bf16.msk.msra.mxu1 %vm14667_vm6, %v14685_v61 }
 0x9a3   :  { %12186 = vmatprep.subr.msk.bf16.mxu1 %vm14717_vm8, %v14693_v53 }
 0x9a4   :  { %v11238_v25 = vpop.f32.mrb[46].mxu1  ;;  %11289 = vmatprep.mubr.msk.f32.mxu1 %vm180_vm1, %v2916_v45 }
 0x9a5   :  { %v2903_v10 = vpop.f32.mrb[47].mxu1  ;;  %11290 = vmatmul.mubr.msk.f32.gmra.mrb[52].mxu1 %vm180_vm1, %v2917_v63  ;;  %v2919_v17 = vmul.f32 %v13668_v32, %v11238_v25 }
 0x9a6   :  { %v2918_v18 = vmul.f32 %v13664_v26, %v2903_v10  ;;  %12189 = vmatpush3.bf16.msk.msra.mxu1 %vm14717_vm8, %v14693_v53 }
 0x9a7   :  { %12192 = vmatprep.subr.msk.bf16.mxu1 %vm14717_vm8, %v14701_v3 }
 0x9a8   :  { %11292 = vmatprep.mubr.msk.f32.mxu1 %vm180_vm1, %v2918_v18 }
 0x9a9   :  { %11293 = vmatmul.mubr.msk.f32.gmra.mrb[54].mxu1 %vm180_vm1, %v2919_v17 }
 0x9aa   :  { %12195 = vmatpush3.bf16.msk.msra.mxu1 %vm14717_vm8, %v14701_v3 }
 0xa70   :  { %v11285_v26 = vpop.f32.mrb[48].mxu1 }
 0xa71   :  { %v3200_v15 = vadd.f32 %v11285_v26, %v10162_v19  ;;  %v3155_v55 = vpop.f32.mrb[49].mxu1 }
 0xa72   :  { %v3199_v0 = vadd.f32 %v10162_v19, %v3155_v55 }
 0xa73   :  { %v3208_v16 = vmax.f32 %v3200_v15, 0.0 }
 0xa74   :  { %v3207_v59 = vmax.f32 %v3199_v0, 0.0  ;;  %v11288_v32 = vpop.f32.mrb[50].mxu1 }
 0xa75   :  { %v14748_v38 = vmul.f32 %v3208_v16, %v13689_v46  ;;  %v3202_v28 = vadd.f32 %v11288_v32, %v10162_v19  ;;  %v3165_v4 = vpop.f32.mrb[51].mxu1 }
 0xa76   :  { %v14751_v62 = vmul.f32 %v3207_v59, %v13680_v39  ;;  %v3201_v33 = vadd.f32 %v10162_v19, %v3165_v4 }
 0xa77   :  { %v3224_v27 = vsel %vm180_vm1, %v14748_v38, 0.0  ;;  %v3246_v40 = vmul.f32 %v14748_v38, %v14748_v38  ;;  %v3210_v12 = vmax.f32 %v3202_v28, 0.0 }
 0xa78   :  { %v3223_v47 = vsel %vm180_vm1, %v14751_v62, 0.0  ;;  %v3245_v48 = vmul.f32 %v14751_v62, %v14751_v62  ;;  %v3209_v50 = vmax.f32 %v3201_v33, 0.0  ;;  %v11291_v29 = vpop.f32.mrb[52].mxu1 }
 0xa79   :  { %v3254_v49 = vsel %vm180_vm1, %v3246_v40, 0.0  ;;  %v3225_v14 = vadd.f32 %v3224_v27, %v3223_v47  ;;  %v14763_v35 = vmul.f32 %v3210_v12, %v13703_v60  ;;  %v3204_v51 = vadd.f32 %v11291_v29, %v10162_v19  ;;  %v3175_v58 = vpop.f32.mrb[53].mxu1 }
 0xa7a   :  { %v3253_v1 = vsel %vm180_vm1, %v3245_v48, 0.0  ;;  %v14767_v45 = vmul.f32 %v3209_v50, %v13686_v44  ;;  %v3203_v63 = vadd.f32 %v10162_v19, %v3175_v58 }
 0xa7b   :  { %v3255_v25 = vadd.f32 %v3254_v49, %v3253_v1  ;;  %v3248_v10 = vmul.f32 %v14763_v35, %v14763_v35  ;;  %v3212_v18 = vmax.f32 %v3204_v51, 0.0  ;;  %v3228_v28 = vsel %vm180_vm1, %v14763_v35, 0.0 }
 0xa7c   :  { %v3226_v17 = vsel %vm180_vm1, %v14767_v45, 0.0  ;;  %v3247_v26 = vmul.f32 %v14767_v45, %v14767_v45  ;;  %v3211_v15 = vmax.f32 %v3203_v63, 0.0  ;;  %v11294_v55 = vpop.f32.mrb[54].mxu1 }
 0xa7d   :  { %v3227_v0 = vadd.f32 %v3226_v17, %v3225_v14  ;;  %v14776_v16 = vmul.f32 %v3212_v18, %v13742_v11  ;;  %v3206_v59 = vadd.f32 %v11294_v55, %v10162_v19  ;;  %v3185_v32 = vpop.f32.mrb[55].mxu1  ;;  %v3258_v40 = vsel %vm180_vm1, %v3248_v10, 0.0 }
 0xa7e   :  { %v3256_v4 = vsel %vm180_vm1, %v3247_v26, 0.0  ;;  %v14782_v33 = vmul.f32 %v3211_v15, %v13740_v9  ;;  %v3205_v27 = vadd.f32 %v10162_v19, %v3185_v32 }
 0xa7f   :  { %v3257_v12 = vadd.f32 %v3256_v4, %v3255_v25  ;;  %v3250_v47 = vmul.f32 %v14776_v16, %v14776_v16  ;;  %v3229_v48 = vadd.f32 %v3228_v28, %v3227_v0  ;;  %v3214_v49 = vmax.f32 %v3206_v59, 0.0 }
 0xa80   :  { %v3230_v50 = vsel %vm180_vm1, %v14782_v33, 0.0  ;;  %v3249_v29 = vmul.f32 %v14782_v33, %v14782_v33  ;;  %v3213_v14 = vmax.f32 %v3205_v27, 0.0  ;;  %v3232_v19 = vsel %vm180_vm1, %v14776_v16, 0.0 }
 0xa81   :  { %v3231_v51 = vadd.f32 %v3230_v50, %v3229_v48  ;;  %v3259_v58 = vadd.f32 %v3258_v40, %v3257_v12  ;;  %v3222_v63 = vmul.f32 %v3214_v49, %v13754_v54  ;;  %v3262_v17 = vsel %vm180_vm1, %v3250_v47, 0.0 }
 0xa82   :  { %v3260_v1 = vsel %vm180_vm1, %v3249_v29, 0.0  ;;  %v3221_v25 = vmul.f32 %v3213_v14, %v16469_v5 }
 0xa83   :  { %v3261_v10 = vadd.f32 %v3260_v1, %v3259_v58  ;;  %v3233_v18 = vadd.f32 %v3232_v19, %v3231_v51  ;;  %v3252_v26 = vmul.f32 %v3222_v63, %v3222_v63  ;;  %v3236_v32 = vsel %vm180_vm1, %v3222_v63, 0.0 }
 0xa84   :  { %v3234_v15 = vsel %vm180_vm1, %v3221_v25, 0.0  ;;  %v3251_v55 = vmul.f32 %v3221_v25, %v3221_v25 }
 0xa85   :  { %v3235_v0 = vadd.f32 %v3234_v15, %v3233_v18  ;;  %v3263_v59 = vadd.f32 %v3262_v17, %v3261_v10  ;;  %v3266_v40 = vsel %vm180_vm1, %v3252_v26, 0.0 }
 0xa86   :  { %v3264_v28 = vsel %vm180_vm1, %v3251_v55, 0.0 }
 0xa87   :  { %v3237_v4 = vadd.f32 %v3236_v32, %v3235_v0  ;;  %v3265_v27 = vadd.f32 %v3264_v28, %v3263_v59  ;;  %v3311_v59 = vpop.permute.xlu1 %3310  ;;  %v3279_v32 = vld [vmem:[%s13350_s17 + $0x11] sm:$0x1] }
 0xa89   :  { %v3238_v12 = vrot.slane %v3237_v4, 4  ;;  %v3267_v48 = vadd.f32 %v3266_v40, %v3265_v27  ;;  %v3281_v40 = vld [vmem:[%s13350_s17 + $0x12] sm:$0x1] }
 0xa8b   :  { %v3239_v50 = vadd.f32 %v3238_v12, %v3237_v4  ;;  %v3268_v29 = vrot.slane %v3267_v48, 4  ;;  %v3309_v4 = vpop.permute.xlu0 %3308 }
 0xa8d   :  { %v3240_v49 = vrot.slane %v3239_v50, 2  ;;  %v3269_v47 = vadd.f32 %v3268_v29, %v3267_v48  ;;  %v16474_v29 = vld [vmem:[#allocation26_spill] sm:$0xff] }
 0xa8f   :  { %v3241_v14 = vadd.f32 %v3240_v49, %v3239_v50  ;;  %v3270_v51 = vrot.slane %v3269_v47, 2  ;;  %v3332_v50 = vsel %vm180_vm1, %v14276_v22, %v3309_v4  ;;  %v3333_v49 = vsel %vm180_vm1, %v16474_v29, %v3311_v59 }
 0xa91   :  { %v3242_v58 = vrot.slane %v3241_v14, 1  ;;  %v3271_v19 = vadd.f32 %v3270_v51, %v3269_v47  ;;  %v3315_v47 = vpop.permute.xlu1 %3314 }
 0xa93   :  { %v3243_v1 = vadd.f32 %v3242_v58, %v3241_v14  ;;  %v3272_v10 = vrot.slane %v3271_v19, 1 }
 0xa95   :  { %v3244_v18 = vmul.f32 0.015625, %v3243_v1  ;;  %v3273_v17 = vadd.f32 %v3272_v10, %v3271_v19  ;;  %v3313_v1 = vpop.permute.xlu0 %3312 }
 0xa97   :  { %v3274_v15 = vmul.f32 0.015625, %v3273_v17  ;;  %v3275_v55 = vmul.f32 %v3244_v18, %v3244_v18 }
 0xa99   :  { %v3276_v0 = vsub.f32 %v3274_v15, %v3275_v55 }
 0xa9b   :  { %v3277_v26 = vadd.f32 1e-05, %v3276_v0  ;;  %v3428_v0 = vmul.f32 %v3332_v50, %v13680_v39 }
 0xa9d   :  { %13166 = vrsqrt.f32 %v3277_v26  ;;  %v16475_v26 = vld [vmem:[#allocation28_spill] sm:$0xff] }
 0xaa7   :  { %v13167_v28 = vpop.eup %13166 }
 0xaa8   :  { %v3280_v27 = vmul.f32 %v13167_v28, %v3279_v32  ;;  %v3319_v28 = vpop.permute.xlu1 %3318 }
 0xaaa   :  { %v3282_v12 = vmul.f32 %v3280_v27, %v3244_v18  ;;  %v3287_v48 = vrot.slane %v3280_v27, %v13774_v56 }
 0xaac   :  { %v3283_v14 = vsub.f32 %v3281_v40, %v3282_v12  ;;  %v3294_v51 = vmul.f32 %v3287_v48, %v3221_v25  ;;  %v3288_v58 = vmul.f32 %v3287_v48, %v14751_v62  ;;  %v3289_v19 = vmul.f32 %v3287_v48, %v14748_v38 }
 0xaad   :  { %v3290_v10 = vmul.f32 %v3287_v48, %v14767_v45  ;;  %v3291_v18 = vmul.f32 %v3287_v48, %v14763_v35  ;;  %v3292_v17 = vmul.f32 %v3287_v48, %v14782_v33  ;;  %v3293_v15 = vmul.f32 %v3287_v48, %v14776_v16 }
 0xaae   :  { %v3299_v22 = vrot.slane %v3283_v14, %v13774_v56  ;;  %v3295_v55 = vmul.f32 %v3287_v48, %v3222_v63  ;;  %v3430_v25 = vmul.f32 %v3333_v49, %v13689_v46  ;;  %v3335_v62 = vsel %vm180_vm1, %v16475_v26, %v3315_v47  ;;  %v3317_v48 = vpop.permute.xlu0 %3316  ;;  %v16476_v14 = vld [vmem:[#allocation27_spill] sm:$0xff]  ;;  %v16478_v26 = vld [vmem:[#allocation29_spill] sm:$0xff] }
 0xab0   :  { %v3300_v38 = vadd.f32 %v3299_v22, %v3288_v58  ;;  %v3301_v59 = vadd.f32 %v3299_v22, %v3289_v19  ;;  %v3302_v32 = vadd.f32 %v3299_v22, %v3290_v10  ;;  %v3303_v45 = vadd.f32 %v3299_v22, %v3291_v18 }
 0xab1   :  { %v3304_v35 = vadd.f32 %v3299_v22, %v3292_v17  ;;  %v3305_v4 = vadd.f32 %v3299_v22, %v3293_v15  ;;  %v3306_v33 = vadd.f32 %v3299_v22, %v3294_v51  ;;  %v3307_v27 = vadd.f32 %v3299_v22, %v3295_v55  ;;  %v16477_v17 = vld [vmem:[#allocation30_spill] sm:$0xff]  ;;  %v3323_v55 = vpop.permute.xlu1 %3322 }
 0xab2   :  { %v3429_v16 = vmul.f32 %v3300_v38, %v13680_v39  ;;  %v3431_v63 = vmul.f32 %v3301_v59, %v13689_v46  ;;  %v3433_v40 = vmul.f32 %v3302_v32, %v13686_v44  ;;  %v3435_v12 = vmul.f32 %v3303_v45, %v13703_v60  ;;  %v16480_v32 = vld [vmem:[#allocation31_spill] sm:$0xff] }
 0xab3   :  { %v3437_v50 = vmul.f32 %v3304_v35, %v13740_v9  ;;  %v3439_v29 = vmul.f32 %v3305_v4, %v13742_v11  ;;  %v3441_v49 = vmul.f32 %v3306_v33, %v16469_v5  ;;  %v3443_v47 = vmul.f32 %v3307_v27, %v13754_v54  ;;  %v13257_v4 = vld [vmem:[%s13340_s9 + $0x8] sm:$0xff] }
 0xab4   :  { %v3334_v51 = vsel %vm180_vm1, %v16476_v14, %v3313_v1  ;;  %v12132_v58 = vpack.c.bf16 %v3431_v63, %v3429_v16  ;;  %v12136_v39 = vpack.c.bf16 %v3435_v12, %v3433_v40  ;;  %v12134_v19 = vpack.c.bf16 %v3430_v25, %v3428_v0  ;;  %v16479_v25 = vld [vmem:[#allocation32_spill] sm:$0xff]  ;;  %v13259_v63 = vld [vmem:[%s13340_s9 + $0x18] sm:$0xff] }
 0xab5   :  { %v3434_v46 = vmul.f32 %v3335_v62, %v13703_v60  ;;  %v12140_v10 = vpack.c.bf16 %v3439_v29, %v3437_v50  ;;  %v12144_v18 = vpack.c.bf16 %v3443_v47, %v3441_v49  ;;  %v3337_v15 = vsel %vm180_vm1, %v16477_v17, %v3319_v28  ;;  %v3321_v60 = vpop.permute.xlu0 %3320  ;;  %v16485_v50 = vld [vmem:[#allocation23_spill] sm:$0xff]  ;;  %v16486_v49 = vld [vmem:[#allocation20_spill] sm:$0xff]  ;;  %v16487_v47 = vld [vmem:[#allocation22_spill] sm:$0xff] }
 0xab6   :  { %12133 = vmatprep.subr.bf16.mxu0 %v12132_v58  ;;  %v3432_v22 = vmul.f32 %v3334_v51, %v13686_v44  ;;  %v3336_v38 = vsel %vm180_vm1, %v16478_v26, %v3317_v48  ;;  %v3438_v0 = vmul.f32 %v3337_v15, %v13742_v11  ;;  %v3339_v62 = vsel %vm180_vm1, %v16479_v25, %v3323_v55  ;;  %v13256_v11 = vld [vmem:[%s13340_s9] sm:$0xff]  ;;  %v16484_v48 = vld [vmem:[#allocation21_spill] sm:$0xff]  ;;  %v4158_v25 = vld [vmem:[%s13390_s24 + $0xe8] sm:$0xff] }
 0xab7   :  { %12135 = vmatpush1.bf16.msra.mxu0 %v12134_v19  ;;  %v3436_v59 = vmul.f32 %v3336_v38, %v13740_v9  ;;  %v3338_v44 = vsel %vm180_vm1, %v16480_v32, %v3321_v60  ;;  %v3442_v28 = vmul.f32 %v3339_v62, %v13754_v54  ;;  %v12148_v33 = vpack.c.bf16 %v13257_v4, %v13256_v11  ;;  %v13258_v54 = vld [vmem:[%s13340_s9 + $0x10] sm:$0xff]  ;;  %v4156_v55 = vld [vmem:[%s13390_s24 + $0xd8] sm:$0xff]  ;;  %v4157_v60 = vld [vmem:[%s13390_s24 + $0xe0] sm:$0xff]  ;;  %s16489_s9 = sld [smem:[#allocation6_spill]] }
 0xab8   :  { %12137 = vmatprep.subr.bf16.mxu0 %v12136_v39  ;;  %v12138_v1 = vpack.c.bf16 %v3434_v46, %v3432_v22  ;;  %v3440_v35 = vmul.f32 %v3338_v44, %v16469_v5  ;;  %v12154_v5 = vpack.c.bf16 %v13259_v63, %v13258_v54  ;;  %v16483_v40 = vmov 0.0   ;;  %v4155_v22 = vld [vmem:[%s13390_s24 + $0xd0] sm:$0xff]  ;;  %v4160_v44 = vld [vmem:[%s13390_s24 + $0xf8] sm:$0xff]  ;;  %v4165_v9 = vld [vmem:[%s13390_s24 + $0x120] sm:$0xff] }
 0xab9   :  { %v12142_v45 = vpack.c.bf16 %v3438_v0, %v3436_v59  ;;  %v3529_v16 = vpop.trf.xlu0  ;;  %v12160_v29 = vpack.c.bf16 %v16485_v50, %v16484_v48  ;;  %v12166_v14 = vpack.c.bf16 %v16487_v47, %v16486_v49  ;;  %v12228_v0 = vpack.c.bf16 %v4156_v55, %v4155_v22  ;;  %v4159_v32 = vld [vmem:[%s13390_s24 + $0xf0] sm:$0xff]  ;;  %v4130_v48 = vld [vmem:[%s13390_s24 + $0x8] sm:$0xff]  ;;  %v4132_v49 = vld [vmem:[%s13390_s24 + $0x18] sm:$0xff] }
 0xaba   :  { %v12146_v27 = vpack.c.bf16 %v3442_v28, %v3440_v35  ;;  %v12231_v59 = vpack.c.bf16 %v4158_v25, %v4157_v60  ;;  %v4161_v28 = vld [vmem:[%s13390_s24 + $0x100] sm:$0xff]  ;;  %v4162_v35 = vld [vmem:[%s13390_s24 + $0x108] sm:$0xff]  ;;  %v4163_v4 = vld [vmem:[%s13390_s24 + $0x110] sm:$0xff] }
 0xabb   :  { %12139 = vmatpush1.bf16.msra.mxu0 %v12138_v1  ;;  %v12237_v11 = vpack.c.bf16 %v4162_v35, %v4161_v28  ;;  %v4167_v63 = vld [vmem:[%s13390_s24 + $0x130] sm:$0xff]  ;;  %v4172_v22 = vld [vmem:[%s13390_s24 + $0x158] sm:$0xff]  ;;  %v4173_v60 = vld [vmem:[%s13390_s24 + $0x160] sm:$0xff] }
 0xabc   :  { %12141 = vmatprep.subr.bf16.mxu0 %v12140_v10  ;;  %v4153_v10 = vld [vmem:[%s13390_s24 + $0xc0] sm:$0xff]  ;;  %v4131_v50 = vld [vmem:[%s13390_s24 + $0x10] sm:$0xff]  ;;  %v4176_v35 = vld [vmem:[%s13390_s24 + $0x178] sm:$0xff] }
 0xabd   :  { %v3530_v12 = vpop.trf.xlu0  ;;  %v4135_v55 = vld [vmem:[%s13390_s24 + $0x30] sm:$0xff] }
 0xabf   :  { %12143 = vmatpush1.bf16.msra.mxu0 %v12142_v45  ;;  %v12234_v45 = vpack.c.bf16 %v4160_v44, %v4159_v32  ;;  %v4138_v32 = vld [vmem:[%s13390_s24 + $0x48] sm:$0xff] }
 0xac0   :  { %12145 = vmatprep.subr.bf16.mxu0 %v12144_v18  ;;  %v4154_v18 = vld [vmem:[%s13390_s24 + $0xc8] sm:$0xff] }
 0xac1   :  { %v12225_v17 = vpack.c.bf16 %v4154_v18, %v4153_v10  ;;  %v4171_v18 = vld [vmem:[%s13390_s24 + $0x150] sm:$0xff] }
 0xac3   :  { %12147 = vmatpush1.bf16.msra.mxu0 %v12146_v27 }
 0xac4   :  { %12150 = vmatprep.subr.msk.bf16.mxu0 %vm14847_vm9, %v12148_v33 }
 0xac6   :  { %10165 = vmatmul.mubr.msk.f32.vlgmr.msra.gmra.mrb[48].mxu0 %vm180_vm1, %v3529_v16 }
 0xac7   :  { %12153 = vmatpush3.bf16.msk.msra.mxu0 %vm14847_vm9, %v12148_v33  ;;  %3621 = vmatprep.mubr.f32.mxu0 %v16483_v40  ;;  %v4164_v33 = vld [vmem:[%s13390_s24 + $0x118] sm:$0xff] }
 0xac8   :  { %12156 = vmatprep.subr.msk.bf16.mxu0 %vm14847_vm9, %v12154_v5  ;;  %v12240_v27 = vpack.c.bf16 %v4164_v33, %v4163_v4  ;;  %v4140_v4 = vld [vmem:[%s13390_s24 + $0x58] sm:$0xff] }
 0xaca   :  { %10166 = vmatmul.mubr.msk.f32.gmra.mrb[50].mxu0 %vm180_vm1, %v3530_v12 }
 0xacb   :  { %12159 = vmatpush3.bf16.msk.msra.mxu0 %vm14847_vm9, %v12154_v5  ;;  %11311 = vmatprep.mubr.msk.f32.mxu0 %vm180_vm1, %v3529_v16  ;;  %v4168_v5 = vld [vmem:[%s13390_s24 + $0x138] sm:$0xff]  ;;  %vm7200_vm9 = vcmask 1040384  }
 0xacc   :  { %12162 = vmatprep.subr.msk.bf16.mxu0 %vm12161_vm11, %v12160_v29  ;;  %v12246_v47 = vpack.c.bf16 %v4168_v5, %v4167_v63  ;;  %v4143_v63 = vld [vmem:[%s13390_s24 + $0x70] sm:$0xff]  ;;  %v4144_v5 = vld [vmem:[%s13390_s24 + $0x78] sm:$0xff] }
 0xacf   :  { %12165 = vmatpush3.bf16.msk.msra.mxu0 %vm12161_vm11, %v12160_v29 }
 0xad0   :  { %12168 = vmatprep.subr.msk.bf16.mxu0 %vm12161_vm11, %v12166_v14 }
 0xad3   :  { %12171 = vmatpush3.bf16.msk.msra.mxu0 %vm12161_vm11, %v12166_v14  ;;  %v4169_v14 = vld [vmem:[%s13390_s24 + $0x140] sm:$0xff]  ;;  %vm12693_vm11 = vmpackc.low %vm7200_vm9, %vm13324_vm10 }
 0xad4   :  { %12198 = vmatprep.subr.msk.bf16.mxu0 %vm14667_vm6, %v14674_v34 }
 0xad6   :  { %11312 = vmatmul.mubr.msk.f32.vlgmr.msra.gmra.mrb[52].mxu0 %vm180_vm1, %v3530_v12 }
 0xad7   :  { %12201 = vmatpush3.bf16.msk.msra.mxu0 %vm14667_vm6, %v14674_v34  ;;  %11349 = vmatprep.mubr.msk.f32.mxu0 %vm180_vm1, %v3529_v16  ;;  %v16488_v34 = vmov 0.0|0.0   ;;  %v4166_v16 = vld [vmem:[%s13390_s24 + $0x128] sm:$0xff] }
 0xad8   :  { %12204 = vmatprep.subr.msk.bf16.mxu0 %vm14667_vm6, %v14685_v61  ;;  %v12243_v54 = vpack.c.bf16 %v4166_v16, %v4165_v9  ;;  %v4141_v9 = vld [vmem:[%s13390_s24 + $0x60] sm:$0xff]  ;;  %v4142_v16 = vld [vmem:[%s13390_s24 + $0x68] sm:$0xff] }
 0xadb   :  { %12207 = vmatpush3.bf16.msk.msra.mxu0 %vm14667_vm6, %v14685_v61  ;;  %vm6291_vm6 = vcmask 31744  }
 0xadc   :  { %12210 = vmatprep.subr.msk.bf16.mxu0 %vm14717_vm8, %v14693_v53 }
 0xadf   :  { %12213 = vmatpush3.bf16.msk.msra.mxu0 %vm14717_vm8, %v14693_v53 }
 0xae0   :  { %12216 = vmatprep.subr.msk.bf16.mxu0 %vm14717_vm8, %v14701_v3 }
 0xae3   :  { %12219 = vmatpush3.bf16.msk.msra.mxu0 %vm14717_vm8, %v14701_v3  ;;  %vm6575_vm8 = vcmask 519168  }
 0xae4   :  { %12260 = vmatprep.subr.bf16.mxu0 %v16488_v34 }
 0xae6   :  { %11350 = vmatmul.mubr.msk.f32.vlgmr.msra.gmra.mrb[54].mxu0 %vm180_vm1, %v3530_v12  ;;  %v4129_v12 = vld [vmem:[%s13390_s24] sm:$0xff] }
 0xae7   :  { %v12261_v29 = vpack.c.bf16 %v4130_v48, %v4129_v12  ;;  %v12282_v12 = vpack.c.bf16 %v4144_v5, %v4143_v63  ;;  %v4145_v48 = vld [vmem:[%s13390_s24 + $0x80] sm:$0xff]  ;;  %v4478_v63 = vld [vmem:[%s13395_s30 + $0x50] sm:$0xff]  ;;  %v4479_v5 = vld [vmem:[%s13395_s30 + $0x58] sm:$0xff] }
 0xae9   :  { %12262 = vmatpush1.bf16.msra.mxu0 %v12261_v29 }
 0xaea   :  { %12263 = vmatprep.subr.bf16.mxu0 %v16488_v34 }
 0xb99   :  { %v14898_v8 = vpop.f32.mrb[48].mxu0 }
 0xb9a   :  { %v14900_v61 = vpop.f32.mrb[49].mxu0 }
 0xb9d   :  { %v14902_v51 = vpop.f32.mrb[50].mxu0 }
 0xb9e   :  { %v12222_v53 = vpack.c.bf16 %v14902_v51, %v14898_v8  ;;  %v14906_v58 = vpop.f32.mrb[51].mxu0 }
 0xb9f   :  { %v12220_v3 = vpack.c.bf16 %v14906_v58, %v14900_v61 }
 0xba1   :  { %12221 = vmatprep.subr.bf16.mxu1 %v12220_v3  ;;  %v4170_v3 = vld [vmem:[%s13390_s24 + $0x148] sm:$0xff] }
 0xba2   :  { %v12249_v10 = vpack.c.bf16 %v4170_v3, %v4169_v14  ;;  %v4150_v3 = vld [vmem:[%s13390_s24 + $0xa8] sm:$0xff] }
 0xba9   :  { %v11313_v57 = vpop.f32.mrb[52].mxu0 }
 0xbaa   :  { %v3694_v39 = vpop.f32.mrb[53].mxu0 }
 0xbab   :  { %11330 = vmatprep.mubr.msk.f32.mxu1 %vm180_vm1, %v3694_v39  ;;  %v4134_v39 = vld [vmem:[%s13390_s24 + $0x28] sm:$0xff] }
 0xbac   :  { %11331 = vmatmul.mubr.msk.f32.vlgmr.msra.gmra.mrb[56].mxu1 %vm180_vm1, %v11313_v57  ;;  %v4133_v57 = vld [vmem:[%s13390_s24 + $0x20] sm:$0xff] }
 0xbad   :  { %12223 = vmatpush1.bf16.msra.mxu1 %v12222_v53  ;;  %4112 = vmatprep.mubr.f32.mxu1 %v16483_v40  ;;  %v12264_v53 = vpack.c.bf16 %v4132_v49, %v4131_v50  ;;  %v4146_v50 = vld [vmem:[%s13390_s24 + $0x88] sm:$0xff]  ;;  %v4147_v49 = vld [vmem:[%s13390_s24 + $0x90] sm:$0xff] }
 0xbae   :  { %12224 = vmatprep.subr.bf16.mxu1 %v16488_v34  ;;  %v12285_v29 = vpack.c.bf16 %v4146_v50, %v4145_v48  ;;  %v4480_v48 = vld [vmem:[%s13395_s30 + $0x60] sm:$0xff]  ;;  %v4481_v50 = vld [vmem:[%s13395_s30 + $0x68] sm:$0xff] }
 0xbaf   :  { %12265 = vmatpush1.bf16.msra.mxu0 %v12264_v53  ;;  %v4149_v53 = vld [vmem:[%s13390_s24 + $0xa0] sm:$0xff] }
 0xbb0   :  { %12266 = vmatprep.subr.bf16.mxu0 %v16488_v34 }
 0xbb9   :  { %v14914_v19 = vpop.f32.mrb[54].mxu0 }
 0xbba   :  { %v14916_v46 = vpop.f32.mrb[55].mxu0 }
 0xc7f   :  { %v14920_v15 = vpop.f32.mrb[56].mxu1 }
 0xc80   :  { %v14924_v26 = vpop.f32.mrb[57].mxu1  ;;  %v4035_v62 = vsel %vm3838_vm12, %v14920_v15, 0.0 }
 0xc81   :  { %10201 = vmatmul.mubr.msk.f32.vlgmr.msra.gmra.mrb[58].mxu1 %vm3838_vm12, %v14924_v26  ;;  %v4032_v38 = vsel %vm3838_vm12, %v14924_v26, 0.0  ;;  %v12541_v1 = vpack.c.bf16 %v14920_v15, %v14924_v26 }
 0xc82   :  { %12226 = vmatpush1.bf16.msra.mxu1 %v12225_v17  ;;  %4033 = vadd.xlane.f32.xlu1 %v4032_v38  ;;  %v12267_v17 = vpack.c.bf16 %v4134_v39, %v4133_v57  ;;  %v4136_v38 = vld [vmem:[%s13390_s24 + $0x38] sm:$0xff]  ;;  %v12291_v57 = vpack.c.bf16 %v4150_v3, %v4149_v53  ;;  %v4151_v39 = vld [vmem:[%s13390_s24 + $0xb0] sm:$0xff]  ;;  %v4468_v53 = vld [vmem:[%s13395_s30] sm:$0xff] }
 0xc83   :  { %4118 = vmatprep.mubr.f32.mxu1 %v16483_v40  ;;  %12227 = vmatprep.subr.bf16.mxu1 %v16488_v34  ;;  %v12270_v25 = vpack.c.bf16 %v4136_v38, %v4135_v55  ;;  %v4469_v3 = vld [vmem:[%s13395_s30 + $0x8] sm:$0xff] }
 0xc84   :  { %12268 = vmatpush1.bf16.msra.mxu0 %v12267_v17 }
 0xc85   :  { %10202 = vmatmul.mubr.msk.f32.gmra.mrb[60].mxu1 %vm3838_vm12, %v14920_v15  ;;  %12269 = vmatprep.subr.bf16.mxu0 %v16488_v34 }
 0xc86   :  { %12229 = vmatpush1.bf16.msra.mxu1 %v12228_v0  ;;  %10203 = vmatprep.mubr.msk.f32.mxu1 %vm180_vm1, %v14900_v61  ;;  %v12252_v0 = vpack.c.bf16 %v4172_v22, %v4171_v18 }
 0xc87   :  { %4036 = vadd.xlane.f32.xlu1 %v4035_v62  ;;  %12230 = vmatprep.subr.bf16.mxu1 %v16488_v34  ;;  %v4174_v62 = vld [vmem:[%s13390_s24 + $0x168] sm:$0xff] }
 0xc88   :  { %v12255_v44 = vpack.c.bf16 %v4174_v62, %v4173_v60  ;;  %12271 = vmatpush1.bf16.msra.mxu0 %v12270_v25 }
 0xc89   :  { %12272 = vmatprep.subr.bf16.mxu0 %v16488_v34 }
 0xc8a   :  { %12232 = vmatpush1.bf16.msra.mxu1 %v12231_v59  ;;  %v4137_v59 = vld [vmem:[%s13390_s24 + $0x40] sm:$0xff] }
 0xc8b   :  { %12233 = vmatprep.subr.bf16.mxu1 %v16488_v34  ;;  %v12273_v28 = vpack.c.bf16 %v4138_v32, %v4137_v59 }
 0xc8d   :  { %12274 = vmatpush1.bf16.msra.mxu0 %v12273_v28 }
 0xc8e   :  { %12235 = vmatpush1.bf16.msra.mxu1 %v12234_v45  ;;  %v4175_v45 = vld [vmem:[%s13390_s24 + $0x170] sm:$0xff]  ;;  %12275 = vmatprep.subr.bf16.mxu0 %v16488_v34 }
 0xc8f   :  { %12236 = vmatprep.subr.bf16.mxu1 %v16488_v34  ;;  %v12258_v33 = vpack.c.bf16 %v4176_v35, %v4175_v45 }
 0xc92   :  { %12238 = vmatpush1.bf16.msra.mxu1 %v12237_v11  ;;  %v4139_v11 = vld [vmem:[%s13390_s24 + $0x50] sm:$0xff] }
 0xc93   :  { %12239 = vmatprep.subr.bf16.mxu1 %v16488_v34 }
 0xc96   :  { %12241 = vmatpush1.bf16.msra.mxu1 %v12240_v27  ;;  %v12276_v27 = vpack.c.bf16 %v4140_v4, %v4139_v11 }
 0xc97   :  { %12242 = vmatprep.subr.bf16.mxu1 %v16488_v34 }
 0xc98   :  { %12277 = vmatpush1.bf16.msra.mxu0 %v12276_v27 }
 0xc99   :  { %12278 = vmatprep.subr.bf16.mxu0 %v16488_v34 }
 0xc9a   :  { %12244 = vmatpush1.bf16.msra.mxu1 %v12243_v54  ;;  %v12279_v54 = vpack.c.bf16 %v4142_v16, %v4141_v9  ;;  %v4476_v9 = vld [vmem:[%s13395_s30 + $0x40] sm:$0xff]  ;;  %v4477_v16 = vld [vmem:[%s13395_s30 + $0x48] sm:$0xff] }
 0xc9b   :  { %12245 = vmatprep.subr.bf16.mxu1 %v16488_v34 }
 0xc9c   :  { %12280 = vmatpush1.bf16.msra.mxu0 %v12279_v54  ;;  %v12300_v54 = vpack.c.bf16 %v4477_v16, %v4476_v9 }
 0xc9d   :  { %12281 = vmatprep.subr.bf16.mxu0 %v16488_v34 }
 0xc9e   :  { %12247 = vmatpush1.bf16.msra.mxu1 %v12246_v47  ;;  %v4148_v47 = vld [vmem:[%s13390_s24 + $0x98] sm:$0xff] }
 0xc9f   :  { %12248 = vmatprep.subr.bf16.mxu1 %v16488_v34  ;;  %v12288_v14 = vpack.c.bf16 %v4148_v47, %v4147_v49  ;;  %v4482_v49 = vld [vmem:[%s13395_s30 + $0x70] sm:$0xff]  ;;  %v4483_v47 = vld [vmem:[%s13395_s30 + $0x78] sm:$0xff] }
 0xca0   :  { %12283 = vmatpush1.bf16.msra.mxu0 %v12282_v12  ;;  %v12304_v12 = vpack.c.bf16 %v4479_v5, %v4478_v63 }
 0xca1   :  { %12284 = vmatprep.subr.bf16.mxu0 %v16488_v34 }
 0xca2   :  { %12250 = vmatpush1.bf16.msra.mxu1 %v12249_v10  ;;  %v4152_v10 = vld [vmem:[%s13390_s24 + $0xb8] sm:$0xff]  ;;  %s16499_s24 = sld [smem:[#allocation12_spill]] }
 0xca3   :  { %12251 = vmatprep.subr.bf16.mxu1 %v16488_v34  ;;  %v12294_v18 = vpack.c.bf16 %v4152_v10, %v4151_v39  ;;  %v10207_v10 = vld [vmem:[%s13350_s17 + $0x13] ss:$0 sm:$0xff] }
 0xca4   :  { %12286 = vmatpush1.bf16.msra.mxu0 %v12285_v29  ;;  %v12308_v29 = vpack.c.bf16 %v4481_v50, %v4480_v48 }
 0xca5   :  { %12287 = vmatprep.subr.bf16.mxu0 %v16488_v34 }
 0xca6   :  { %12253 = vmatpush1.bf16.msra.mxu1 %v12252_v0 }
 0xca7   :  { %12254 = vmatprep.subr.bf16.mxu1 %v16488_v34 }
 0xca8   :  { %12289 = vmatpush1.bf16.msra.mxu0 %v12288_v14  ;;  %v12312_v14 = vpack.c.bf16 %v4483_v47, %v4482_v49 }
 0xca9   :  { %12290 = vmatprep.subr.bf16.mxu0 %v16488_v34 }
 0xcaa   :  { %12256 = vmatpush1.bf16.msra.mxu1 %v12255_v44 }
 0xcab   :  { %12257 = vmatprep.subr.bf16.mxu1 %v16488_v34 }
 0xcac   :  { %12292 = vmatpush1.bf16.msra.mxu0 %v12291_v57  ;;  %v12316_v57 = vpack.c.bf16 %v4469_v3, %v4468_v53 }
 0xcad   :  { %12293 = vmatprep.subr.bf16.mxu0 %v16488_v34 }
 0xcae   :  { %12259 = vmatpush1.bf16.msra.mxu1 %v12258_v33 }
 0xcb0   :  { %12295 = vmatpush1.bf16.msra.mxu0 %v12294_v18 }
 0xcb1   :  { %4248 = vmatmul.mubr.f32.vlgmr.msra.gmra.mrb[62].mxu1 %v14898_v8  ;;  %12301 = vmatprep.subr.bf16.mxu0 %v12300_v54 }
 0xcb2   :  { %10204 = vmatprep.mubr.msk.f32.mxu1 %vm180_vm1, %v14906_v58 }
 0xcb5   :  { %4253 = vmatmul.mubr.f32.gmra.mrb[64].mxu1 %v14902_v51 }
 0xcb6   :  { %11356 = vmatprep.mubr.msk.f32.mxu1 %vm3838_vm12, %v14924_v26 }
 0xd0f   :  { %v4034_v17 = vpop.xlane.xlu1 %4033 }
 0xd10   :  { %v4038_v22 = vmax.f32 %v4034_v17, 1.0 }
 0xd12   :  { %13168 = vrcp.f32 %v4038_v22 }
 0xd14   :  { %v4037_v55 = vpop.xlane.xlu1 %4036 }
 0xd15   :  { %v4039_v38 = vmax.f32 %v4037_v55, 1.0 }
 0xd17   :  { %13170 = vrcp.f32 %v4039_v38 }
 0xd1c   :  { %v15011_v60 = vpop.eup %13168 }
 0xd21   :  { %v15021_v44 = vpop.eup %13170 }
 0xd54   :  { %v4114_v0 = vpop.f32.mrb[58].mxu1 }
 0xd55   :  { %v4116_v25 = vpop.f32.mrb[59].mxu1  ;;  %v15017_v59 = vmul.f32 %v15011_v60, %v4114_v0 }
 0xd56   :  { %v15014_v62 = vmul.f32 %v15011_v60, %v4116_v25 }
 0xd58   :  { %v4120_v32 = vpop.f32.mrb[60].mxu1  ;;  %10205 = vmatprep.mubr.msk.f32.mxu0 %vm180_vm1, %v15014_v62 }
 0xd59   :  { %v4122_v45 = vpop.f32.mrb[61].mxu1  ;;  %4329 = vmatmul.mubr.f32.vlgmr.msra.gmra.mrb[56].mxu0 %v15017_v59  ;;  %v15028_v35 = vmul.f32 %v15021_v44, %v4120_v32 }
 0xd5a   :  { %v15025_v28 = vmul.f32 %v15021_v44, %v4122_v45  ;;  %12303 = vmatpush3.bf16.msra.mxu0 %v12300_v54 }
 0xd5b   :  { %12305 = vmatprep.subr.bf16.mxu0 %v12304_v12 }
 0xd5c   :  { %10206 = vmatprep.mubr.msk.f32.mxu0 %vm180_vm1, %v15025_v28 }
 0xd5d   :  { %4334 = vmatmul.mubr.f32.gmra.mrb[58].mxu0 %v15028_v35 }
 0xd5e   :  { %12307 = vmatpush3.bf16.msra.mxu0 %v12304_v12 }
 0xd5f   :  { %12309 = vmatprep.subr.bf16.mxu0 %v12308_v29 }
 0xd62   :  { %12311 = vmatpush3.bf16.msra.mxu0 %v12308_v29 }
 0xd63   :  { %12313 = vmatprep.subr.bf16.mxu0 %v12312_v14 }
 0xd66   :  { %12315 = vmatpush3.bf16.msra.mxu0 %v12312_v14 }
 0xd67   :  { %12317 = vmatprep.subr.bf16.mxu0 %v12316_v57 }
 0xd84   :  { %v4249_v11 = vpop.f32.mrb[62].mxu1 }
 0xd85   :  { %v4251_v4 = vpop.f32.mrb[63].mxu1 }
 0xd88   :  { %v4254_v33 = vpop.f32.mrb[64].mxu1 }
 0xd89   :  { %v4256_v27 = vpop.f32.mrb[65].mxu1 }
 0xe2c   :  { %v4330_v39 = vpop.f32.mrb[56].mxu0 }
 0xe2d   :  { %v4331_v18 = vadd.f32 %v4330_v39, %v4249_v11  ;;  %v4332_v17 = vpop.f32.mrb[57].mxu0 }
 0xe2f   :  { %v4344_v22 = vadd.f32 %v10207_v10, %v4331_v18 }
 0xe30   :  { %v4335_v55 = vpop.f32.mrb[58].mxu0 }
 0xe31   :  { %v4346_v38 = vmax.f32 %v4344_v22, 0.0  ;;  %v4336_v0 = vadd.f32 %v4335_v55, %v4254_v33  ;;  %v4337_v25 = vpop.f32.mrb[59].mxu0 }
 0xe32   :  { %v4374_v25 = vld [vmem:[%s13350_s17 + $0x14] sm:$0x1] }
 0xe33   :  { %v4345_v32 = vadd.f32 %v10207_v10, %v4336_v0  ;;  %v4358_v45 = vmul.f32 %v4346_v38, %v4346_v38  ;;  %v4348_v27 = vsel %vm180_vm1, %v4346_v38, 0.0 }
 0xe35   :  { %v4347_v4 = vmax.f32 %v4345_v32, 0.0  ;;  %v4360_v63 = vsel %vm180_vm1, %v4358_v45, 0.0 }
 0xe37   :  { %v4349_v9 = vsel %vm180_vm1, %v4347_v4, 0.0  ;;  %v4359_v16 = vmul.f32 %v4347_v4, %v4347_v4 }
 0xe38   :  { %v4350_v54 = vadd.f32 %v4349_v9, %v4348_v27  ;;  %v4376_v27 = vld [vmem:[%s13350_s17 + $0x15] sm:$0x1] }
 0xe39   :  { %v4361_v5 = vsel %vm180_vm1, %v4359_v16, 0.0 }
 0xe3a   :  { %v4351_v11 = vrot.slane %v4350_v54, 4  ;;  %v4362_v12 = vadd.f32 %v4361_v5, %v4360_v63 }
 0xe3c   :  { %v4352_v48 = vadd.f32 %v4351_v11, %v4350_v54  ;;  %v4363_v50 = vrot.slane %v4362_v12, 4 }
 0xe3e   :  { %v4353_v33 = vrot.slane %v4352_v48, 2  ;;  %v4364_v29 = vadd.f32 %v4363_v50, %v4362_v12  ;;  %v4470_v12 = vld [vmem:[%s13395_s30 + $0x10] sm:$0xff] }
 0xe40   :  { %v4354_v49 = vadd.f32 %v4353_v33, %v4352_v48  ;;  %v4365_v47 = vrot.slane %v4364_v29, 2  ;;  %v4471_v48 = vld [vmem:[%s13395_s30 + $0x18] sm:$0xff] }
 0xe42   :  { %v4355_v14 = vrot.slane %v4354_v49, 1  ;;  %v4366_v53 = vadd.f32 %v4365_v47, %v4364_v29  ;;  %v12320_v29 = vpack.c.bf16 %v4471_v48, %v4470_v12  ;;  %v4472_v47 = vld [vmem:[%s13395_s30 + $0x20] sm:$0xff] }
 0xe44   :  { %v4356_v3 = vadd.f32 %v4355_v14, %v4354_v49  ;;  %v4367_v39 = vrot.slane %v4366_v53, 1  ;;  %v4474_v14 = vld [vmem:[%s13395_s30 + $0x30] sm:$0xff] }
 0xe46   :  { %v4357_v10 = vmul.f32 0.0625, %v4356_v3  ;;  %v4368_v18 = vadd.f32 %v4367_v39, %v4366_v53  ;;  %v4475_v53 = vld [vmem:[%s13395_s30 + $0x38] sm:$0xff] }
 0xe47   :  { %v12328_v3 = vpack.c.bf16 %v4475_v53, %v4474_v14 }
 0xe48   :  { %v4369_v17 = vmul.f32 0.0625, %v4368_v18  ;;  %v4370_v22 = vmul.f32 %v4357_v10, %v4357_v10 }
 0xe4a   :  { %v4371_v55 = vsub.f32 %v4369_v17, %v4370_v22  ;;  %v10214_v17 = vld [vmem:[%s13350_s17 + $0x16] ss:$0 sm:$0xff] }
 0xe4c   :  { %v4372_v0 = vadd.f32 1e-05, %v4371_v55 }
 0xe4e   :  { %13172 = vrsqrt.f32 %v4372_v0 }
 0xe58   :  { %v13173_v32 = vpop.eup %13172 }
 0xe59   :  { %v4375_v45 = vmul.f32 %v13173_v32, %v4374_v25 }
 0xe5b   :  { %v4377_v9 = vmul.f32 %v4375_v45, %v4357_v10  ;;  %v4382_v16 = vrot.slane %v4375_v45, %v13774_v56 }
 0xe5d   :  { %v4378_v54 = vsub.f32 %v4376_v27, %v4377_v9  ;;  %v4384_v63 = vmul.f32 %v4382_v16, %v4347_v4  ;;  %v4383_v5 = vmul.f32 %v4382_v16, %v4346_v38  ;;  %v4473_v4 = vld [vmem:[%s13395_s30 + $0x28] sm:$0xff]  ;;  %s16500_s30 = sld [smem:[#allocation14_spill]] }
 0xe5e   :  { %v12324_v38 = vpack.c.bf16 %v4473_v4, %v4472_v47 }
 0xe5f   :  { %v4388_v11 = vrot.slane %v4378_v54, %v13774_v56 }
 0xe61   :  { %v15054_v50 = vadd.f32 %v4388_v11, %v4384_v63  ;;  %v15056_v33 = vadd.f32 %v4388_v11, %v4383_v5 }
 0xe63   :  { %11375 = vmatprep.mubr.msk.f32.mxu0 %vm180_vm1, %v15056_v33  ;;  %v12296_v49 = vpack.c.bf16 %v15054_v50, %v15056_v33 }
 0xe64   :  { %11376 = vmatmul.mubr.msk.f32.vlgmr.msra.gmra.mrb[60].mxu0 %vm180_vm1, %v15054_v50 }
 0xe65   :  { %12297 = vmatprep.subr.bf16.mxu1 %v12296_v49  ;;  %12319 = vmatpush3.bf16.msra.mxu0 %v12316_v57 }
 0xe66   :  { %12299 = vmatpush3.bf16.msra.mxu1 %v12296_v49  ;;  %12321 = vmatprep.subr.bf16.mxu0 %v12320_v29 }
 0xe69   :  { %11357 = vmatmul.mubr.msk.f32.vlgmr.msra.gmra.mrb[66].mxu1 %vm3838_vm12, %v14920_v15  ;;  %12323 = vmatpush3.bf16.msra.mxu0 %v12320_v29 }
 0xe6a   :  { %11401 = vmatprep.mubr.msk.f32.mxu1 %vm3838_vm12, %v14924_v26  ;;  %12325 = vmatprep.subr.bf16.mxu0 %v12324_v38 }
 0xe6d   :  { %12327 = vmatpush3.bf16.msra.mxu0 %v12324_v38 }
 0xe6e   :  { %12329 = vmatprep.subr.bf16.mxu0 %v12328_v3 }
 0xe71   :  { %12331 = vmatpush3.bf16.msra.mxu0 %v12328_v3 }
 0xe72   :  { %12368 = vmatprep.subr.bf16.mxu0 %v16488_v34 }
 0xf3c   :  { %v11358_v57 = vpop.f32.mrb[66].mxu1 }
 0xf3d   :  { %v4457_v39 = vpop.f32.mrb[67].mxu1  ;;  %v4467_v18 = vmul.f32 %v15021_v44, %v11358_v57 }
 0xf3e   :  { %v4466_v10 = vmul.f32 %v15011_v60, %v4457_v39 }
 0xf40   :  { %11394 = vmatprep.mubr.msk.f32.mxu0 %vm180_vm1, %v4466_v10 }
 0xf41   :  { %11395 = vmatmul.mubr.msk.f32.vlgmr.msra.gmra.mrb[60].mxu0 %vm180_vm1, %v4467_v18 }
0x1014   :  { %v11396_v22 = vpop.f32.mrb[60].mxu0 }
0x1015   :  { %v4652_v55 = vadd.f32 %v11396_v22, %v10214_v17  ;;  %v4637_v0 = vpop.f32.mrb[61].mxu0 }
0x1016   :  { %v4651_v25 = vadd.f32 %v10214_v17, %v4637_v0 }
0x1017   :  { %v4654_v32 = vmax.f32 %v4652_v55, 0.0 }
0x1018   :  { %v4653_v45 = vmax.f32 %v4651_v25, 0.0  ;;  %v4681_v25 = vld [vmem:[%s13350_s17 + $0x17] sm:$0x1] }
0x1019   :  { %v4656_v27 = vsel %vm180_vm1, %v4654_v32, 0.0  ;;  %v4666_v9 = vmul.f32 %v4654_v32, %v4654_v32 }
0x101a   :  { %v4655_v16 = vsel %vm180_vm1, %v4653_v45, 0.0  ;;  %v4665_v54 = vmul.f32 %v4653_v45, %v4653_v45 }
0x101b   :  { %v4668_v63 = vsel %vm180_vm1, %v4666_v9, 0.0  ;;  %v4657_v5 = vadd.f32 %v4656_v27, %v4655_v16  ;;  %v4683_v16 = vld [vmem:[%s13350_s17 + $0x18] sm:$0x1] }
0x101c   :  { %v4667_v11 = vsel %vm180_vm1, %v4665_v54, 0.0 }
0x101d   :  { %v4658_v12 = vrot.slane %v4657_v5, 4  ;;  %v4669_v48 = vadd.f32 %v4668_v63, %v4667_v11 }
0x101f   :  { %v4659_v29 = vadd.f32 %v4658_v12, %v4657_v5  ;;  %v4670_v49 = vrot.slane %v4669_v48, 4 }
0x1021   :  { %v4660_v47 = vrot.slane %v4659_v29, 2  ;;  %v4671_v4 = vadd.f32 %v4670_v49, %v4669_v48  ;;  %v4784_v49 = vld [vmem:[%s13400_s6 + $0x48] sm:$0xff] }
0x1023   :  { %v4661_v38 = vadd.f32 %v4660_v47, %v4659_v29  ;;  %v4672_v14 = vrot.slane %v4671_v4, 2  ;;  %v4783_v29 = vld [vmem:[%s13400_s6 + $0x40] sm:$0xff] }
0x1025   :  { %v4662_v53 = vrot.slane %v4661_v38, 1  ;;  %v4673_v3 = vadd.f32 %v4672_v14, %v4671_v4  ;;  %v12336_v14 = vpack.c.bf16 %v4784_v49, %v4783_v29  ;;  %v5148_v29 = vld [vmem:[%s16489_s9 + $0xc8] sm:$0xff] }
0x1027   :  { %v4663_v57 = vadd.f32 %v4662_v53, %v4661_v38  ;;  %v4674_v39 = vrot.slane %v4673_v3, 1  ;;  %v4785_v53 = vld [vmem:[%s13400_s6 + $0x50] sm:$0xff] }
0x1029   :  { %v4664_v10 = vmul.f32 0.0625, %v4663_v57  ;;  %v4675_v18 = vadd.f32 %v4674_v39, %v4673_v3  ;;  %v4787_v3 = vld [vmem:[%s13400_s6 + $0x60] sm:$0xff]  ;;  %v4788_v57 = vld [vmem:[%s13400_s6 + $0x68] sm:$0xff] }
0x102a   :  { %v12344_v39 = vpack.c.bf16 %v4788_v57, %v4787_v3  ;;  %v5151_v3 = vld [vmem:[%s16489_s9 + $0xe0] sm:$0xff]  ;;  %v5152_v57 = vld [vmem:[%s16489_s9 + $0xe8] sm:$0xff] }
0x102b   :  { %v4676_v17 = vmul.f32 0.0625, %v4675_v18  ;;  %v4677_v22 = vmul.f32 %v4664_v10, %v4664_v10  ;;  %v4790_v18 = vld [vmem:[%s13400_s6 + $0x78] sm:$0xff] }
0x102d   :  { %v4678_v55 = vsub.f32 %v4676_v17, %v4677_v22  ;;  %v4775_v22 = vld [vmem:[%s13400_s6] sm:$0xff] }
0x102f   :  { %v4679_v0 = vadd.f32 1e-05, %v4678_v55  ;;  %v4776_v55 = vld [vmem:[%s13400_s6 + $0x8] sm:$0xff] }
0x1031   :  { %13174 = vrsqrt.f32 %v4679_v0  ;;  %v12352_v0 = vpack.c.bf16 %v4776_v55, %v4775_v22  ;;  %v5156_v22 = vld [vmem:[%s16489_s9 + $0x108] sm:$0xff] }
0x103b   :  { %v13175_v27 = vpop.eup %13174 }
0x103c   :  { %v4682_v9 = vmul.f32 %v13175_v27, %v4681_v25  ;;  %v4777_v25 = vld [vmem:[%s13400_s6 + $0x10] sm:$0xff]  ;;  %v4778_v27 = vld [vmem:[%s13400_s6 + $0x18] sm:$0xff] }
0x103e   :  { %v4689_v54 = vrot.slane %v4682_v9, %v13774_v56  ;;  %v4684_v63 = vmul.f32 %v4682_v9, %v4664_v10  ;;  %v4789_v10 = vld [vmem:[%s13400_s6 + $0x70] sm:$0xff]  ;;  %v12356_v9 = vpack.c.bf16 %v4778_v27, %v4777_v25  ;;  %v5158_v25 = vld [vmem:[%s16489_s9 + $0x118] sm:$0xff] }
0x103f   :  { %v12348_v17 = vpack.c.bf16 %v4790_v18, %v4789_v10  ;;  %v5153_v10 = vld [vmem:[%s16489_s9 + $0xf0] sm:$0xff]  ;;  %v5154_v18 = vld [vmem:[%s16489_s9 + $0xf8] sm:$0xff] }
0x1040   :  { %v4690_v5 = vmul.f32 %v4689_v54, %v4653_v45  ;;  %v4685_v11 = vsub.f32 %v4683_v16, %v4684_v63  ;;  %v4691_v12 = vmul.f32 %v4689_v54, %v4654_v32  ;;  %v4786_v45 = vld [vmem:[%s13400_s6 + $0x58] sm:$0xff]  ;;  %v4779_v16 = vld [vmem:[%s13400_s6 + $0x20] sm:$0xff]  ;;  %v4780_v54 = vld [vmem:[%s13400_s6 + $0x28] sm:$0xff] }
0x1041   :  { %v12340_v32 = vpack.c.bf16 %v4786_v45, %v4785_v53  ;;  %v12360_v63 = vpack.c.bf16 %v4780_v54, %v4779_v16  ;;  %v5149_v53 = vld [vmem:[%s16489_s9 + $0xd0] sm:$0xff]  ;;  %v5150_v45 = vld [vmem:[%s16489_s9 + $0xd8] sm:$0xff]  ;;  %v5160_v16 = vld [vmem:[%s16489_s9 + $0x128] sm:$0xff] }
0x1042   :  { %v4695_v48 = vrot.slane %v4685_v11, %v13774_v56  ;;  %v4782_v11 = vld [vmem:[%s13400_s6 + $0x38] sm:$0xff] }
0x1044   :  { %v4697_v47 = vadd.f32 %v4695_v48, %v4691_v12  ;;  %v4696_v4 = vadd.f32 %v4695_v48, %v4690_v5  ;;  %v4781_v5 = vld [vmem:[%s13400_s6 + $0x30] sm:$0xff]  ;;  %v5147_v48 = vld [vmem:[%s16489_s9 + $0xc0] sm:$0xff]  ;;  %s13325_s6 = smov 9  }
0x1045   :  { %v12364_v12 = vpack.c.bf16 %v4782_v11, %v4781_v5  ;;  %v5162_v5 = vld [vmem:[%s16489_s9 + $0x138] sm:$0xff] }
0x1046   :  { %5008 = vrot.lane.b32.xlu0 %v4697_v47, %s13317_s0  ;;  %5006 = vrot.lane.b32.xlu1 %v4696_v4, %s13317_s0  ;;  %v12332_v38 = vpack.c.bf16 %v4697_v47, %v4696_v4 }
0x1048   :  { %12333 = vmatprep.subr.bf16.mxu1 %v12332_v38 }
0x1049   :  { %12335 = vmatpush3.bf16.msra.mxu1 %v12332_v38  ;;  %v12393_v38 = vpack.c.bf16 %v5148_v29, %v5147_v48  ;;  %v5164_v48 = vld [vmem:[%s16489_s9 + $0x148] sm:$0xff] }
0x104a   :  { %12337 = vmatprep.subr.bf16.mxu1 %v12336_v14 }
0x104c   :  { %11402 = vmatmul.mubr.msk.f32.vlgmr.msra.gmra.mrb[68].mxu1 %vm3838_vm12, %v14920_v15 }
0x104d   :  { %12339 = vmatpush3.bf16.msra.mxu1 %v12336_v14  ;;  %11420 = vmatprep.mubr.msk.f32.mxu1 %vm180_vm1, %v4696_v4 }
0x104e   :  { %12341 = vmatprep.subr.bf16.mxu1 %v12340_v32 }
0x1051   :  { %12343 = vmatpush3.bf16.msra.mxu1 %v12340_v32  ;;  %v12396_v32 = vpack.c.bf16 %v5150_v45, %v5149_v53  ;;  %v5169_v45 = vld [vmem:[%s16489_s9 + $0x170] sm:$0xff] }
0x1052   :  { %12345 = vmatprep.subr.bf16.mxu1 %v12344_v39 }
0x1055   :  { %12347 = vmatpush3.bf16.msra.mxu1 %v12344_v39  ;;  %v12399_v39 = vpack.c.bf16 %v5152_v57, %v5151_v3  ;;  %v5014_v57 = vld [vmem:[%s16490_s13] sm:$0xff] }
0x1056   :  { %12349 = vmatprep.subr.bf16.mxu1 %v12348_v17 }
0x1059   :  { %12351 = vmatpush3.bf16.msra.mxu1 %v12348_v17  ;;  %v12402_v17 = vpack.c.bf16 %v5154_v18, %v5153_v10  ;;  %v5016_v18 = vld [vmem:[%s16490_s13 + $0x10] sm:$0xff] }
0x105a   :  { %12353 = vmatprep.subr.bf16.mxu1 %v12352_v0 }
0x105c   :  { %11421 = vmatmul.mubr.msk.f32.vlgmr.msra.gmra.mrb[70].mxu1 %vm180_vm1, %v4697_v47 }
0x105d   :  { %12355 = vmatpush3.bf16.msra.mxu1 %v12352_v0  ;;  %v5157_v0 = vld [vmem:[%s16489_s9 + $0x110] sm:$0xff] }
0x105e   :  { %12357 = vmatprep.subr.bf16.mxu1 %v12356_v9  ;;  %v12408_v27 = vpack.c.bf16 %v5158_v25, %v5157_v0  ;;  %v5022_v25 = vld [vmem:[%s16490_s13 + $0x40] sm:$0xff] }
0x1061   :  { %12359 = vmatpush3.bf16.msra.mxu1 %v12356_v9  ;;  %v5159_v9 = vld [vmem:[%s16489_s9 + $0x120] sm:$0xff] }
0x1062   :  { %12361 = vmatprep.subr.bf16.mxu1 %v12360_v63  ;;  %v12411_v54 = vpack.c.bf16 %v5160_v16, %v5159_v9  ;;  %v5024_v16 = vld [vmem:[%s16490_s13 + $0x50] sm:$0xff] }
0x1065   :  { %12363 = vmatpush3.bf16.msra.mxu1 %v12360_v63  ;;  %v5161_v63 = vld [vmem:[%s16489_s9 + $0x130] sm:$0xff] }
0x1066   :  { %12365 = vmatprep.subr.bf16.mxu1 %v12364_v12  ;;  %v12414_v11 = vpack.c.bf16 %v5162_v5, %v5161_v63  ;;  %v5026_v5 = vld [vmem:[%s16490_s13 + $0x60] sm:$0xff] }
0x1069   :  { %12367 = vmatpush3.bf16.msra.mxu1 %v12364_v12  ;;  %v5163_v12 = vld [vmem:[%s16489_s9 + $0x140] sm:$0xff] }
0x106a   :  { %12392 = vmatprep.subr.bf16.mxu1 %v16488_v34  ;;  %v12417_v29 = vpack.c.bf16 %v5164_v48, %v5163_v12  ;;  %v5028_v48 = vld [vmem:[%s16490_s13 + $0x70] sm:$0xff] }
0x111f   :  { %v11403_v49 = vpop.f32.mrb[68].mxu1 }
0x1120   :  { %v4764_v47 = vpop.f32.mrb[69].mxu1  ;;  %v4774_v14 = vmul.f32 %v15021_v44, %v11403_v49  ;;  %v5165_v49 = vld [vmem:[%s16489_s9 + $0x150] sm:$0xff] }
0x1121   :  { %v4773_v4 = vmul.f32 %v15011_v60, %v4764_v47  ;;  %v5166_v47 = vld [vmem:[%s16489_s9 + $0x158] sm:$0xff] }
0x1123   :  { %11439 = vmatprep.mubr.msk.f32.mxu1 %vm180_vm1, %v4773_v4  ;;  %v12420_v4 = vpack.c.bf16 %v5166_v47, %v5165_v49  ;;  %v5030_v47 = vld [vmem:[%s16490_s13 + $0x80] sm:$0x3] }
0x1124   :  { %11440 = vmatmul.mubr.msk.f32.vlgmr.msra.gmra.mrb[70].mxu1 %vm180_vm1, %v4774_v14  ;;  %v5168_v14 = vld [vmem:[%s16489_s9 + $0x168] sm:$0xff] }
0x1125   :  { %12394 = vmatpush1.bf16.msra.mxu1 %v12393_v38  ;;  %10226 = vmatprep.mubr.msk.f32.mxu1 %vm180_vm1, %v14900_v61  ;;  %v5155_v61 = vld [vmem:[%s16489_s9 + $0x100] sm:$0xff] }
0x1126   :  { %12395 = vmatprep.subr.bf16.mxu1 %v16488_v34  ;;  %v12405_v55 = vpack.c.bf16 %v5156_v22, %v5155_v61  ;;  %v5167_v38 = vld [vmem:[%s16489_s9 + $0x160] sm:$0xff]  ;;  %v5020_v22 = vld [vmem:[%s16490_s13 + $0x30] sm:$0xff] }
0x1127   :  { %v12423_v53 = vpack.c.bf16 %v5168_v14, %v5167_v38 }
0x1129   :  { %12397 = vmatpush1.bf16.msra.mxu1 %v12396_v32  ;;  %v5170_v32 = vld [vmem:[%s16489_s9 + $0x178] sm:$0xff] }
0x112a   :  { %12398 = vmatprep.subr.bf16.mxu1 %v16488_v34  ;;  %v12426_v3 = vpack.c.bf16 %v5170_v32, %v5169_v45 }
0x112d   :  { %12400 = vmatpush1.bf16.msra.mxu1 %v12399_v39  ;;  %v5015_v39 = vld [vmem:[%s16490_s13 + $0x8] sm:$0xff] }
0x112e   :  { %12401 = vmatprep.subr.bf16.mxu1 %v16488_v34  ;;  %v12369_v10 = vpack.c.bf16 %v5015_v39, %v5014_v57 }
0x1130   :  { %12370 = vmatpush1.bf16.msra.mxu0 %v12369_v10 }
0x1131   :  { %12403 = vmatpush1.bf16.msra.mxu1 %v12402_v17  ;;  %12371 = vmatprep.subr.bf16.mxu0 %v16488_v34 }
0x1132   :  { %12404 = vmatprep.subr.bf16.mxu1 %v16488_v34 }
0x1135   :  { %12406 = vmatpush1.bf16.msra.mxu1 %v12405_v55  ;;  %v5021_v55 = vld [vmem:[%s16490_s13 + $0x38] sm:$0xff] }
0x1136   :  { %12407 = vmatprep.subr.bf16.mxu1 %v16488_v34  ;;  %v12378_v0 = vpack.c.bf16 %v5021_v55, %v5020_v22 }
0x1139   :  { %12409 = vmatpush1.bf16.msra.mxu1 %v12408_v27  ;;  %v5023_v27 = vld [vmem:[%s16490_s13 + $0x48] sm:$0xff] }
0x113a   :  { %12410 = vmatprep.subr.bf16.mxu1 %v16488_v34  ;;  %v12381_v9 = vpack.c.bf16 %v5023_v27, %v5022_v25 }
0x113d   :  { %12412 = vmatpush1.bf16.msra.mxu1 %v12411_v54  ;;  %v5025_v54 = vld [vmem:[%s16490_s13 + $0x58] sm:$0xff] }
0x113e   :  { %12413 = vmatprep.subr.bf16.mxu1 %v16488_v34  ;;  %v12384_v63 = vpack.c.bf16 %v5025_v54, %v5024_v16 }
0x1141   :  { %12415 = vmatpush1.bf16.msra.mxu1 %v12414_v11  ;;  %v5027_v11 = vld [vmem:[%s16490_s13 + $0x68] sm:$0xff] }
0x1142   :  { %12416 = vmatprep.subr.bf16.mxu1 %v16488_v34  ;;  %v12387_v12 = vpack.c.bf16 %v5027_v11, %v5026_v5 }
0x1145   :  { %12418 = vmatpush1.bf16.msra.mxu1 %v12417_v29  ;;  %v5029_v29 = vld [vmem:[%s16490_s13 + $0x78] sm:$0xff] }
0x1146   :  { %12419 = vmatprep.subr.bf16.mxu1 %v16488_v34  ;;  %v12390_v49 = vpack.c.bf16 %v5029_v29, %v5028_v48 }
0x1149   :  { %12421 = vmatpush1.bf16.msra.mxu1 %v12420_v4  ;;  %v10221_v4 = vld [vmem:[%s13350_s17 + $0x19] ss:$0 sm:$0xff] }
0x114a   :  { %12422 = vmatprep.subr.bf16.mxu1 %v16488_v34 }
0x114d   :  { %12424 = vmatpush1.bf16.msra.mxu1 %v12423_v53 }
0x114e   :  { %12425 = vmatprep.subr.bf16.mxu1 %v16488_v34 }
0x1151   :  { %12427 = vmatpush1.bf16.msra.mxu1 %v12426_v3 }
0x1154   :  { %5236 = vmatmul.mubr.f32.vlgmr.msra.gmra.mrb[72].mxu1 %v14898_v8  ;;  %v5017_v8 = vld [vmem:[%s16490_s13 + $0x18] sm:$0xff] }
0x1155   :  { %10227 = vmatprep.mubr.msk.f32.mxu1 %vm180_vm1, %v14906_v58  ;;  %v12372_v17 = vpack.c.bf16 %v5017_v8, %v5016_v18  ;;  %v5019_v58 = vld [vmem:[%s16490_s13 + $0x28] sm:$0xff] }
0x1157   :  { %12373 = vmatpush1.bf16.msra.mxu0 %v12372_v17 }
0x1158   :  { %5241 = vmatmul.mubr.f32.gmra.mrb[74].mxu1 %v14902_v51  ;;  %12374 = vmatprep.subr.bf16.mxu0 %v16488_v34  ;;  %v5018_v51 = vld [vmem:[%s16490_s13 + $0x20] sm:$0xff] }
0x1159   :  { %11446 = vmatprep.mubr.msk.f32.mxu1 %vm3838_vm12, %v14924_v26  ;;  %v12375_v61 = vpack.c.bf16 %v5019_v58, %v5018_v51 }
0x115b   :  { %12376 = vmatpush1.bf16.msra.mxu0 %v12375_v61 }
0x115c   :  { %12377 = vmatprep.subr.bf16.mxu0 %v16488_v34 }
0x115f   :  { %12379 = vmatpush1.bf16.msra.mxu0 %v12378_v0 }
0x1160   :  { %12380 = vmatprep.subr.bf16.mxu0 %v16488_v34 }
0x1163   :  { %12382 = vmatpush1.bf16.msra.mxu0 %v12381_v9 }
0x1164   :  { %12383 = vmatprep.subr.bf16.mxu0 %v16488_v34 }
0x1167   :  { %12385 = vmatpush1.bf16.msra.mxu0 %v12384_v63 }
0x1168   :  { %12386 = vmatprep.subr.bf16.mxu0 %v16488_v34 }
0x116b   :  { %12388 = vmatpush1.bf16.msra.mxu0 %v12387_v12 }
0x116c   :  { %12389 = vmatprep.subr.bf16.mxu0 %v16488_v34 }
0x116f   :  { %12391 = vmatpush1.bf16.msra.mxu0 %v12390_v49 }
0x1170   :  { %5078 = vmatprep.subr.mxu0 %v16483_v40 }
0x1173   :  { %10223 = vmatpush1.msk.msra.mxu0 %vm5042_vm13, %v5030_v47 }
0x1174   :  { %12428 = vmatprep.subr.bf16.mxu0 %v16488_v34 }
0x11f7   :  { %v11441_v38 = vpop.f32.mrb[70].mxu1 }
0x11f8   :  { %v4959_v14 = vadd.f32 %v11441_v38, %v10221_v4  ;;  %v4944_v53 = vpop.f32.mrb[71].mxu1 }
0x11f9   :  { %v4958_v45 = vadd.f32 %v10221_v4, %v4944_v53  ;;  %v4989_v4 = vld [vmem:[%s13350_s17 + $0x1a] sm:$0x1]  ;;  %v4991_v53 = vld [vmem:[%s13350_s17 + $0x1b] sm:$0x1] }
0x11fa   :  { %v4961_v32 = vmax.f32 %v4959_v14, 0.0 }
0x11fb   :  { %v4960_v3 = vmax.f32 %v4958_v45, 0.0 }
0x11fc   :  { %v4964_v57 = vsel %vm4962_vm14, %v4961_v32, 0.0  ;;  %v4974_v39 = vmul.f32 %v4961_v32, %v4961_v32 }
0x11fd   :  { %v4963_v10 = vsel %vm4962_vm14, %v4960_v3, 0.0  ;;  %v4973_v18 = vmul.f32 %v4960_v3, %v4960_v3 }
0x11fe   :  { %v4976_v8 = vsel %vm4962_vm14, %v4974_v39, 0.0  ;;  %v4965_v17 = vadd.f32 %v4964_v57, %v4963_v10 }
0x11ff   :  { %v4975_v51 = vsel %vm4962_vm14, %v4973_v18, 0.0 }
0x1200   :  { %v4966_v58 = vrot.slane %v4965_v17, 4  ;;  %v4977_v61 = vadd.f32 %v4976_v8, %v4975_v51  ;;  %v5123_v8 = vld [vmem:[%s16489_s9] sm:$0xff] }
0x1202   :  { %v4967_v22 = vadd.f32 %v4966_v58, %v4965_v17  ;;  %v4978_v55 = vrot.slane %v4977_v61, 4  ;;  %v5124_v17 = vld [vmem:[%s16489_s9 + $0x8] sm:$0xff]  ;;  %v5007_v58 = vpop.permute.xlu1 %5006 }
0x1204   :  { %v4968_v0 = vrot.slane %v4967_v22, 2  ;;  %v4979_v25 = vadd.f32 %v4978_v55, %v4977_v61  ;;  %v12429_v55 = vpack.c.bf16 %v5124_v17, %v5123_v8  ;;  %v5139_v8 = vld [vmem:[%s16489_s9 + $0x80] sm:$0xff]  ;;  %v5140_v17 = vld [vmem:[%s16489_s9 + $0x88] sm:$0xff] }
0x1206   :  { %v4969_v27 = vadd.f32 %v4968_v0, %v4967_v22  ;;  %v4980_v9 = vrot.slane %v4979_v25, 2 }
0x1208   :  { %v4970_v16 = vrot.slane %v4969_v27, 1  ;;  %v4981_v54 = vadd.f32 %v4980_v9, %v4979_v25  ;;  %v5126_v9 = vld [vmem:[%s16489_s9 + $0x18] sm:$0xff] }
0x120a   :  { %v4971_v63 = vadd.f32 %v4970_v16, %v4969_v27  ;;  %v4982_v5 = vrot.slane %v4981_v54, 1  ;;  %v5125_v27 = vld [vmem:[%s16489_s9 + $0x10] sm:$0xff] }
0x120c   :  { %v4972_v11 = vmul.f32 0.0625, %v4971_v63  ;;  %v4983_v12 = vadd.f32 %v4982_v5, %v4981_v54  ;;  %v12432_v54 = vpack.c.bf16 %v5126_v9, %v5125_v27  ;;  %v5127_v5 = vld [vmem:[%s16489_s9 + $0x20] sm:$0xff]  ;;  %v5145_v9 = vld [vmem:[%s16489_s9 + $0xb0] sm:$0xff] }
0x120e   :  { %v4984_v48 = vmul.f32 0.0625, %v4983_v12  ;;  %v4985_v29 = vmul.f32 %v4972_v11, %v4972_v11 }
0x1210   :  { %v4986_v49 = vsub.f32 %v4984_v48, %v4985_v29  ;;  %v5129_v48 = vld [vmem:[%s16489_s9 + $0x30] sm:$0xff]  ;;  %v5130_v29 = vld [vmem:[%s16489_s9 + $0x38] sm:$0xff] }
0x1212   :  { %v4987_v47 = vadd.f32 1e-05, %v4986_v49  ;;  %v12438_v49 = vpack.c.bf16 %v5130_v29, %v5129_v48  ;;  %v5462_v48 = vld [vmem:[%s16491_s21 + $0x60] sm:$0xff] }
0x1214   :  { %13176 = vrsqrt.f32 %v4987_v47  ;;  %v5132_v47 = vld [vmem:[%s16489_s9 + $0x48] sm:$0xff] }
0x121e   :  { %v13177_v38 = vpop.eup %13176 }
0x121f   :  { %v4990_v14 = vmul.f32 %v13177_v38, %v4989_v4  ;;  %v5134_v38 = vld [vmem:[%s16489_s9 + $0x58] sm:$0xff] }
0x1221   :  { %v4992_v45 = vmul.f32 %v4990_v14, %v4972_v11  ;;  %v4997_v57 = vrot.slane %v4990_v14, %v13774_v56  ;;  %v5128_v11 = vld [vmem:[%s16489_s9 + $0x28] sm:$0xff] }
0x1222   :  { %v12435_v12 = vpack.c.bf16 %v5128_v11, %v5127_v5  ;;  %v5460_v11 = vld [vmem:[%s16491_s21 + $0x50] sm:$0xff] }
0x1223   :  { %v4998_v39 = vmul.f32 %v4997_v57, %v4960_v3  ;;  %v4993_v10 = vsub.f32 %v4991_v53, %v4992_v45  ;;  %v4999_v18 = vmul.f32 %v4997_v57, %v4961_v32  ;;  %v5012_v3 = vsel %vm180_vm1, %v15056_v33, %v5007_v58  ;;  %v5009_v32 = vpop.permute.xlu0 %5008  ;;  %v5135_v53 = vld [vmem:[%s16489_s9 + $0x60] sm:$0xff]  ;;  %v5136_v45 = vld [vmem:[%s16489_s9 + $0x68] sm:$0xff]  ;;  %v5141_v58 = vld [vmem:[%s16489_s9 + $0x90] sm:$0xff] }
0x1224   :  { %v5013_v33 = vsel %vm180_vm1, %v15054_v50, %v5009_v32  ;;  %v5131_v50 = vld [vmem:[%s16489_s9 + $0x40] sm:$0xff]  ;;  %v12447_v57 = vpack.c.bf16 %v5136_v45, %v5135_v53 }
0x1225   :  { %v5003_v51 = vrot.slane %v4993_v10, %v13774_v56  ;;  %v12441_v4 = vpack.c.bf16 %v5132_v47, %v5131_v50  ;;  %v5138_v10 = vld [vmem:[%s16489_s9 + $0x78] sm:$0xff] }
0x1226   :  { %v10222_v50 = vld [vmem:[%s13350_s17 + $0x1c] ss:$0 sm:$0xff] }
0x1227   :  { %v15194_v61 = vpop.f32.mrb[72].mxu1  ;;  %v5004_v22 = vadd.f32 %v5003_v51, %v4998_v39  ;;  %v5005_v0 = vadd.f32 %v5003_v51, %v4999_v18  ;;  %v5137_v39 = vld [vmem:[%s16489_s9 + $0x70] sm:$0xff]  ;;  %v12453_v51 = vpack.c.bf16 %v5140_v17, %v5139_v8  ;;  %v10230_v8 = vld [vmem:[%s13350_s17 + $0x1d] ss:$0 sm:$0xff] }
0x1228   :  { %v5239_v25 = vpop.f32.mrb[73].mxu1  ;;  %v12450_v18 = vpack.c.bf16 %v5138_v10, %v5137_v39 }
0x1229   :  { %10224 = vmatprep.mubr.msk.f32.mxu0 %vm4962_vm14, %v5004_v22  ;;  %v5142_v22 = vld [vmem:[%s16489_s9 + $0x98] sm:$0xff]  ;;  %v5144_v25 = vld [vmem:[%s16489_s9 + $0xa8] sm:$0xff] }
0x122a   :  { %5111 = vmatmul.mubr.f32.vlgmr.msra.gmra.mrb[62].mxu0 %v5012_v3  ;;  %v5146_v3 = vld [vmem:[%s16489_s9 + $0xb8] sm:$0xff] }
0x122b   :  { %v15201_v16 = vpop.f32.mrb[74].mxu1  ;;  %12430 = vmatpush1.bf16.msra.mxu0 %v12429_v55  ;;  %10225 = vmatprep.mubr.msk.f32.mxu0 %vm4962_vm14, %v5005_v0  ;;  %v12456_v55 = vpack.c.bf16 %v5142_v22, %v5141_v58  ;;  %v5143_v0 = vld [vmem:[%s16489_s9 + $0xa0] sm:$0xff]  ;;  %v12462_v32 = vpack.c.bf16 %v5146_v3, %v5145_v9 }
0x122c   :  { %v5244_v63 = vpop.f32.mrb[75].mxu1  ;;  %12431 = vmatprep.subr.bf16.mxu0 %v16488_v34  ;;  %v12459_v27 = vpack.c.bf16 %v5144_v25, %v5143_v0 }
0x122d   :  { %v5459_v63 = vld [vmem:[%s16491_s21 + $0x48] sm:$0xff] }
0x122e   :  { %5116 = vmatmul.mubr.f32.gmra.mrb[64].mxu0 %v5013_v33  ;;  %v5461_v33 = vld [vmem:[%s16491_s21 + $0x58] sm:$0xff] }
0x122f   :  { %12433 = vmatpush1.bf16.msra.mxu0 %v12432_v54  ;;  %10228 = vmatprep.mubr.msk.f32.mxu0 %vm180_vm1, %v15014_v62  ;;  %v5133_v62 = vld [vmem:[%s16489_s9 + $0x50] sm:$0xff]  ;;  %v5458_v54 = vld [vmem:[%s16491_s21 + $0x40] sm:$0xff] }
0x1230   :  { %12434 = vmatprep.subr.bf16.mxu0 %v16488_v34  ;;  %v12444_v14 = vpack.c.bf16 %v5134_v38, %v5133_v62  ;;  %v12468_v5 = vpack.c.bf16 %v5459_v63, %v5458_v54 }
0x1233   :  { %12436 = vmatpush1.bf16.msra.mxu0 %v12435_v12  ;;  %v12472_v12 = vpack.c.bf16 %v5461_v33, %v5460_v11 }
0x1234   :  { %12437 = vmatprep.subr.bf16.mxu0 %v16488_v34 }
0x1237   :  { %12439 = vmatpush1.bf16.msra.mxu0 %v12438_v49 }
0x1238   :  { %12440 = vmatprep.subr.bf16.mxu0 %v16488_v34 }
0x123b   :  { %12442 = vmatpush1.bf16.msra.mxu0 %v12441_v4 }
0x123c   :  { %12443 = vmatprep.subr.bf16.mxu0 %v16488_v34 }
0x123f   :  { %12445 = vmatpush1.bf16.msra.mxu0 %v12444_v14 }
0x1240   :  { %12446 = vmatprep.subr.bf16.mxu0 %v16488_v34 }
0x1243   :  { %12448 = vmatpush1.bf16.msra.mxu0 %v12447_v57 }
0x1244   :  { %12449 = vmatprep.subr.bf16.mxu0 %v16488_v34 }
0x1247   :  { %12451 = vmatpush1.bf16.msra.mxu0 %v12450_v18 }
0x1248   :  { %12452 = vmatprep.subr.bf16.mxu0 %v16488_v34 }
0x124b   :  { %12454 = vmatpush1.bf16.msra.mxu0 %v12453_v51 }
0x124c   :  { %12455 = vmatprep.subr.bf16.mxu0 %v16488_v34 }
0x124f   :  { %12457 = vmatpush1.bf16.msra.mxu0 %v12456_v55 }
0x1250   :  { %12458 = vmatprep.subr.bf16.mxu0 %v16488_v34 }
0x1253   :  { %12460 = vmatpush1.bf16.msra.mxu0 %v12459_v27 }
0x1254   :  { %12461 = vmatprep.subr.bf16.mxu0 %v16488_v34 }
0x1257   :  { %12463 = vmatpush1.bf16.msra.mxu0 %v12462_v32 }
0x1258   :  { %12469 = vmatprep.subr.bf16.mxu0 %v12468_v5 }
0x125a   :  { %5311 = vmatmul.mubr.f32.vlgmr.msra.gmra.mrb[66].mxu0 %v15017_v59  ;;  %v5463_v59 = vld [vmem:[%s16491_s21 + $0x68] sm:$0xff] }
0x125b   :  { %10229 = vmatprep.mubr.msk.f32.mxu0 %vm180_vm1, %v15025_v28  ;;  %12471 = vmatpush3.bf16.msra.mxu0 %v12468_v5  ;;  %v12476_v29 = vpack.c.bf16 %v5463_v59, %v5462_v48  ;;  %v5464_v28 = vld [vmem:[%s16491_s21 + $0x70] sm:$0xff] }
0x125c   :  { %12473 = vmatprep.subr.bf16.mxu0 %v12472_v12 }
0x125e   :  { %5316 = vmatmul.mubr.f32.gmra.mrb[68].mxu0 %v15028_v35  ;;  %v5465_v35 = vld [vmem:[%s16491_s21 + $0x78] sm:$0xff] }
0x125f   :  { %12475 = vmatpush3.bf16.msra.mxu0 %v12472_v12  ;;  %v12480_v49 = vpack.c.bf16 %v5465_v35, %v5464_v28 }
0x1260   :  { %12477 = vmatprep.subr.bf16.mxu0 %v12476_v29 }
0x1263   :  { %12479 = vmatpush3.bf16.msra.mxu0 %v12476_v29 }
0x1264   :  { %12481 = vmatprep.subr.bf16.mxu0 %v12480_v49 }
0x1267   :  { %12483 = vmatpush3.bf16.msra.mxu0 %v12480_v49 }
0x12fd   :  { %v5112_v47 = vpop.f32.mrb[62].mxu0 }
0x12fe   :  { %v15252_v4 = vadd.f32 %v10222_v50, %v5112_v47  ;;  %v5114_v62 = vpop.f32.mrb[63].mxu0 }
0x1300   :  { %v5121_v38 = vmax.f32 %v15252_v4, 0.0 }
0x1301   :  { %v5117_v14 = vpop.f32.mrb[64].mxu0 }
0x1302   :  { %v15255_v53 = vadd.f32 %v10222_v50, %v5117_v14  ;;  %v5119_v45 = vpop.f32.mrb[65].mxu0  ;;  %v5995_v57 = vsel %vm4962_vm14, %v5121_v38, -inf }
0x1303   :  { %5996 = vmax.xlane.f32.xlu1 %v5995_v57 }
0x1304   :  { %v5122_v39 = vmax.f32 %v15255_v53, 0.0  ;;  %v5452_v53 = vld [vmem:[%s16491_s21 + $0x10] sm:$0xff] }
0x1306   :  { %v5998_v10 = vsel %vm4962_vm14, %v5122_v39, -inf }
0x1307   :  { %5999 = vmax.xlane.f32.xlu1 %v5998_v10 }
0x132d   :  { %v5312_v18 = vpop.f32.mrb[66].mxu0 }
0x132e   :  { %v5313_v17 = vadd.f32 %v5312_v18, %v15194_v61  ;;  %v5314_v51 = vpop.f32.mrb[67].mxu0 }
0x1330   :  { %v5326_v58 = vadd.f32 %v10230_v8, %v5313_v17  ;;  %v5356_v17 = vld [vmem:[%s13350_s17 + $0x1e] sm:$0x1] }
0x1331   :  { %v5317_v22 = vpop.f32.mrb[68].mxu0 }
0x1332   :  { %v5328_v55 = vmax.f32 %v5326_v58, 0.0  ;;  %v5318_v0 = vadd.f32 %v5317_v22, %v15201_v16  ;;  %v5319_v25 = vpop.f32.mrb[69].mxu0  ;;  %v5358_v22 = vld [vmem:[%s13350_s17 + $0x1f] sm:$0x1] }
0x1334   :  { %v5327_v27 = vadd.f32 %v10230_v8, %v5318_v0  ;;  %v5340_v9 = vmul.f32 %v5328_v55, %v5328_v55  ;;  %v5330_v32 = vsel %vm180_vm1, %v5328_v55, 0.0 }
0x1336   :  { %v5329_v3 = vmax.f32 %v5327_v27, 0.0  ;;  %v5342_v11 = vsel %vm180_vm1, %v5340_v9, 0.0 }
0x1338   :  { %v5331_v54 = vsel %vm180_vm1, %v5329_v3, 0.0  ;;  %v5341_v63 = vmul.f32 %v5329_v3, %v5329_v3 }
0x1339   :  { %v5332_v5 = vadd.f32 %v5331_v54, %v5330_v32 }
0x133a   :  { %v5343_v61 = vsel %vm180_vm1, %v5341_v63, 0.0 }
0x133b   :  { %v5333_v33 = vrot.slane %v5332_v5, 4  ;;  %v5344_v12 = vadd.f32 %v5343_v61, %v5342_v11 }
0x133d   :  { %v5334_v48 = vadd.f32 %v5333_v33, %v5332_v5  ;;  %v5345_v59 = vrot.slane %v5344_v12, 4 }
0x133f   :  { %v5335_v16 = vrot.slane %v5334_v48, 2  ;;  %v5346_v29 = vadd.f32 %v5345_v59, %v5344_v12 }
0x1341   :  { %v5336_v28 = vadd.f32 %v5335_v16, %v5334_v48  ;;  %v5347_v35 = vrot.slane %v5346_v29, 2 }
0x1343   :  { %v5337_v49 = vrot.slane %v5336_v28, 1  ;;  %v5348_v50 = vadd.f32 %v5347_v35, %v5346_v29 }
0x1345   :  { %v5338_v47 = vadd.f32 %v5337_v49, %v5336_v28  ;;  %v5349_v62 = vrot.slane %v5348_v50, 1  ;;  %v5451_v28 = vld [vmem:[%s16491_s21 + $0x8] sm:$0xff] }
0x1347   :  { %v5339_v14 = vmul.f32 0.0625, %v5338_v47  ;;  %v5350_v45 = vadd.f32 %v5349_v62, %v5348_v50  ;;  %v5454_v50 = vld [vmem:[%s16491_s21 + $0x20] sm:$0xff]  ;;  %v5455_v47 = vld [vmem:[%s16491_s21 + $0x28] sm:$0xff] }
0x1348   :  { %v12492_v62 = vpack.c.bf16 %v5455_v47, %v5454_v50 }
0x1349   :  { %v5351_v57 = vmul.f32 0.0625, %v5350_v45  ;;  %v5352_v10 = vmul.f32 %v5339_v14, %v5339_v14  ;;  %v5457_v45 = vld [vmem:[%s16491_s21 + $0x38] sm:$0xff] }
0x134b   :  { %v5353_v18 = vsub.f32 %v5351_v57, %v5352_v10 }
0x134d   :  { %v5354_v8 = vadd.f32 1e-05, %v5353_v18 }
0x134f   :  { %13178 = vrsqrt.f32 %v5354_v8 }
0x1359   :  { %v13179_v51 = vpop.eup %13178 }
0x135a   :  { %v5357_v58 = vmul.f32 %v13179_v51, %v5356_v17 }
0x135c   :  { %v5359_v0 = vmul.f32 %v5357_v58, %v5339_v14  ;;  %v5364_v25 = vrot.slane %v5357_v58, %v13774_v56  ;;  %v5456_v14 = vld [vmem:[%s16491_s21 + $0x30] sm:$0xff] }
0x135d   :  { %v12496_v57 = vpack.c.bf16 %v5457_v45, %v5456_v14 }
0x135e   :  { %v5360_v27 = vsub.f32 %v5358_v22, %v5359_v0  ;;  %v5366_v9 = vmul.f32 %v5364_v25, %v5329_v3  ;;  %v5365_v32 = vmul.f32 %v5364_v25, %v5328_v55 }
0x1360   :  { %v5370_v54 = vrot.slane %v5360_v27, %v13774_v56 }
0x1362   :  { %v15275_v63 = vadd.f32 %v5370_v54, %v5366_v9  ;;  %v15277_v5 = vadd.f32 %v5370_v54, %v5365_v32 }
0x1364   :  { %11465 = vmatprep.mubr.msk.f32.mxu0 %vm180_vm1, %v15277_v5  ;;  %v12464_v11 = vpack.c.bf16 %v15275_v63, %v15277_v5 }
0x1365   :  { %11466 = vmatmul.mubr.msk.f32.vlgmr.msra.gmra.mrb[70].mxu0 %vm180_vm1, %v15275_v63 }
0x1366   :  { %12465 = vmatprep.subr.bf16.mxu1 %v12464_v11  ;;  %11491 = vmatprep.mubr.msk.f32.mxu0 %vm3838_vm12, %v14924_v26 }
0x1367   :  { %12467 = vmatpush3.bf16.msra.mxu1 %v12464_v11 }
0x136a   :  { %11447 = vmatmul.mubr.msk.f32.vlgmr.msra.gmra.mrb[76].mxu1 %vm3838_vm12, %v14920_v15 }
0x1390   :  { %v5997_v55 = vpop.xlane.xlu1 %5996 }
0x1391   :  { %v6001_v3 = vsub.f32 %v5121_v38, %v5997_v55  ;;  %v5450_v38 = vld [vmem:[%s16491_s21] sm:$0xff] }
0x1392   :  { %v12484_v35 = vpack.c.bf16 %v5451_v28, %v5450_v38 }
0x1393   :  { %v6003_v61 = vmul.f32 1.442695, %v6001_v3 }
0x1394   :  { %v6000_v33 = vpop.xlane.xlu1 %5999  ;;  %12485 = vmatprep.subr.bf16.mxu1 %v12484_v35 }
0x1395   :  { %13180 = vpow2.f32 %v6003_v61  ;;  %v6002_v12 = vsub.f32 %v5122_v39, %v6000_v33  ;;  %12487 = vmatpush3.bf16.msra.mxu1 %v12484_v35  ;;  %v5453_v39 = vld [vmem:[%s16491_s21 + $0x18] sm:$0xff]  ;;  %v6027_v33 = vsel %vm4962_vm14, 0, %v13321_v24 }
0x1396   :  { %v12488_v49 = vpack.c.bf16 %v5453_v39, %v5452_v53 }
0x1397   :  { %v6005_v48 = vmul.f32 1.442695, %v6002_v12  ;;  %v15319_v12 = vrot.slane %v6027_v33, %v13774_v56 }
0x1398   :  { %12489 = vmatprep.subr.bf16.mxu1 %v12488_v49 }
0x1399   :  { %13182 = vpow2.f32 %v6005_v48  ;;  %12491 = vmatpush3.bf16.msra.mxu1 %v12488_v49  ;;  %vm10246_vm15 = vcmp.eq.s32.totalorder %v15319_v12, 1  ;;  %vm10245_vm0 = vcmp.eq.s32.totalorder %v15319_v12, 0  ;;  %v10244_v12 = vld [vmem:[%s13350_s17 + $0x23] ss:$0 sm:$0xff] }
0x139a   :  { %12493 = vmatprep.subr.bf16.mxu1 %v12492_v62  ;;  %vm15327_vm2 = vmpackc.low %vm10246_vm15, %vm10245_vm0 }
0x139d   :  { %12495 = vmatpush3.bf16.msra.mxu1 %v12492_v62 }
0x139e   :  { %12497 = vmatprep.subr.bf16.mxu1 %v12496_v57 }
0x139f   :  { %v13181_v59 = vpop.eup %13180 }
0x13a0   :  { %v6007_v16 = vsel %vm4962_vm14, %v13181_v59, 0.0 }
0x13a1   :  { %6008 = vadd.xlane.f32.xlu0 %v6007_v16  ;;  %12499 = vmatpush3.bf16.msra.mxu1 %v12496_v57  ;;  %v10237_v16 = vld [vmem:[%s13350_s17 + $0x20] ss:$0 sm:$0xff] }
0x13a3   :  { %v13183_v29 = vpop.eup %13182 }
0x13a4   :  { %v6010_v4 = vsel %vm4962_vm14, %v13183_v29, 0.0 }
0x13a5   :  { %6011 = vadd.xlane.f32.xlu1 %v6010_v4 }
0x142e   :  { %v6009_v10 = vpop.xlane.xlu0 %6008 }
0x142f   :  { %13184 = vrcp.f32 %v6009_v10 }
0x1432   :  { %v6012_v18 = vpop.xlane.xlu1 %6011 }
0x1433   :  { %13186 = vrcp.f32 %v6012_v18 }
0x1438   :  { %v11467_v8 = vpop.f32.mrb[70].mxu0 }
0x1439   :  { %v13185_v17 = vpop.eup %13184  ;;  %v5538_v51 = vpop.f32.mrb[71].mxu0 }
0x143a   :  { %v6015_v58 = vmul.f32 %v13185_v17, %v13181_v59 }
0x143c   :  { %6019 = vrot.lane.b32.xlu1 %v6015_v58, %s13322_s25 }
0x143d   :  { %v13187_v22 = vpop.eup %13186  ;;  %v11448_v0 = vpop.f32.mrb[76].mxu1 }
0x143e   :  { %v5439_v25 = vpop.f32.mrb[77].mxu1  ;;  %v6016_v27 = vmul.f32 %v13187_v22, %v13183_v29  ;;  %v5449_v32 = vmul.f32 %v15021_v44, %v11448_v0 }
0x143f   :  { %v5448_v9 = vmul.f32 %v15011_v60, %v5439_v25 }
0x1440   :  { %6021 = vrot.lane.b32.xlu1 %v6016_v27, %s13322_s25 }
0x1441   :  { %11484 = vmatprep.mubr.msk.f32.mxu1 %vm180_vm1, %v5448_v9 }
0x1442   :  { %11485 = vmatmul.mubr.msk.f32.vlgmr.msra.gmra.mrb[78].mxu1 %vm180_vm1, %v5449_v32 }
0x1443   :  { %6135 = vmatprep.mubr.f32.mxu1 %v16483_v40 }
0x14ae   :  { %v6020_v54 = vpop.permute.xlu1 %6019 }
0x14af   :  { %v15309_v55 = vsel %vm4962_vm14, %v6015_v58, %v6020_v54 }
0x14b2   :  { %v6022_v11 = vpop.permute.xlu1 %6021 }
0x14b3   :  { %v15312_v3 = vsel %vm4962_vm14, %v6016_v27, %v6022_v11  ;;  %vm7132_vm14 = vcmask 68608  }
0x14b4   :  { %v12544_v61 = vpack.c.bf16 %v15312_v3, %v15309_v55 }
0x1515   :  { %v11486_v59 = vpop.f32.mrb[78].mxu1 }
0x1516   :  { %v5625_v29 = vadd.f32 %v11486_v59, %v11467_v8  ;;  %v5619_v4 = vpop.f32.mrb[79].mxu1 }
0x1517   :  { %v5620_v38 = vadd.f32 %v5619_v4, %v5538_v51  ;;  %v5663_v4 = vld [vmem:[%s13350_s17 + $0x21] sm:$0x1] }
0x1518   :  { %v5634_v28 = vadd.f32 %v10237_v16, %v5625_v29 }
0x1519   :  { %v5633_v35 = vadd.f32 %v10237_v16, %v5620_v38 }
0x151a   :  { %v5636_v53 = vmax.f32 %v5634_v28, 0.0 }
0x151b   :  { %v5635_v39 = vmax.f32 %v5633_v35, 0.0  ;;  %v5665_v35 = vld [vmem:[%s13350_s17 + $0x22] sm:$0x1] }
0x151c   :  { %v5638_v49 = vsel %vm180_vm1, %v5636_v53, 0.0  ;;  %v5648_v50 = vmul.f32 %v5636_v53, %v5636_v53 }
0x151d   :  { %v5637_v47 = vsel %vm180_vm1, %v5635_v39, 0.0  ;;  %v5647_v62 = vmul.f32 %v5635_v39, %v5635_v39 }
0x151e   :  { %v5650_v14 = vsel %vm180_vm1, %v5648_v50, 0.0  ;;  %v5639_v45 = vadd.f32 %v5638_v49, %v5637_v47 }
0x151f   :  { %v5649_v57 = vsel %vm180_vm1, %v5647_v62, 0.0 }
0x1520   :  { %v5640_v10 = vrot.slane %v5639_v45, 4  ;;  %v5651_v18 = vadd.f32 %v5650_v14, %v5649_v57  ;;  %v5765_v57 = vld [vmem:[%s16494_s29 + $0x40] sm:$0xff] }
0x1522   :  { %v5641_v8 = vadd.f32 %v5640_v10, %v5639_v45  ;;  %v5652_v17 = vrot.slane %v5651_v18, 4  ;;  %v5766_v10 = vld [vmem:[%s16494_s29 + $0x48] sm:$0xff] }
0x1524   :  { %v5642_v51 = vrot.slane %v5641_v8, 2  ;;  %v5653_v58 = vadd.f32 %v5652_v17, %v5651_v18 }
0x1526   :  { %v5643_v22 = vadd.f32 %v5642_v51, %v5641_v8  ;;  %v5654_v0 = vrot.slane %v5653_v58, 2 }
0x1528   :  { %v5644_v25 = vrot.slane %v5643_v22, 1  ;;  %v5655_v27 = vadd.f32 %v5654_v0, %v5653_v58  ;;  %v12504_v58 = vpack.c.bf16 %v5766_v10, %v5765_v57  ;;  %v5768_v0 = vld [vmem:[%s16494_s29 + $0x58] sm:$0xff] }
0x152a   :  { %v5645_v9 = vadd.f32 %v5644_v25, %v5643_v22  ;;  %v5656_v32 = vrot.slane %v5655_v27, 1  ;;  %v5767_v22 = vld [vmem:[%s16494_s29 + $0x50] sm:$0xff]  ;;  %v5770_v25 = vld [vmem:[%s16494_s29 + $0x68] sm:$0xff] }
0x152c   :  { %v5646_v54 = vmul.f32 0.0625, %v5645_v9  ;;  %v5657_v11 = vadd.f32 %v5656_v32, %v5655_v27  ;;  %v5771_v9 = vld [vmem:[%s16494_s29 + $0x70] sm:$0xff]  ;;  %v5772_v32 = vld [vmem:[%s16494_s29 + $0x78] sm:$0xff] }
0x152e   :  { %v5658_v33 = vmul.f32 0.0625, %v5657_v11  ;;  %v5659_v59 = vmul.f32 %v5646_v54, %v5646_v54  ;;  %v5757_v11 = vld [vmem:[%s16494_s29] sm:$0xff] }
0x1530   :  { %v5660_v16 = vsub.f32 %v5658_v33, %v5659_v59  ;;  %v5758_v33 = vld [vmem:[%s16494_s29 + $0x8] sm:$0xff] }
0x1531   :  { %v12520_v59 = vpack.c.bf16 %v5758_v33, %v5757_v11 }
0x1532   :  { %v5661_v29 = vadd.f32 1e-05, %v5660_v16  ;;  %v5759_v16 = vld [vmem:[%s16494_s29 + $0x10] sm:$0xff] }
0x1534   :  { %13188 = vrsqrt.f32 %v5661_v29  ;;  %v5760_v29 = vld [vmem:[%s16494_s29 + $0x18] sm:$0xff] }
0x153e   :  { %v13189_v38 = vpop.eup %13188 }
0x153f   :  { %v5664_v28 = vmul.f32 %v13189_v38, %v5663_v4  ;;  %v12524_v4 = vpack.c.bf16 %v5760_v29, %v5759_v16  ;;  %v5761_v38 = vld [vmem:[%s16494_s29 + $0x20] sm:$0xff] }
0x1541   :  { %v5666_v49 = vmul.f32 %v5664_v28, %v5646_v54  ;;  %v5671_v50 = vrot.slane %v5664_v28, %v13774_v56  ;;  %v12516_v54 = vpack.c.bf16 %v5772_v32, %v5771_v9  ;;  %v5762_v28 = vld [vmem:[%s16494_s29 + $0x28] sm:$0xff] }
0x1543   :  { %v5672_v47 = vmul.f32 %v5671_v50, %v5635_v39  ;;  %v5667_v62 = vsub.f32 %v5665_v35, %v5666_v49  ;;  %v5673_v14 = vmul.f32 %v5671_v50, %v5636_v53  ;;  %v12508_v53 = vpack.c.bf16 %v5768_v0, %v5767_v22  ;;  %v5769_v39 = vld [vmem:[%s16494_s29 + $0x60] sm:$0xff] }
0x1544   :  { %v12512_v27 = vpack.c.bf16 %v5770_v25, %v5769_v39  ;;  %v12528_v35 = vpack.c.bf16 %v5762_v28, %v5761_v38  ;;  %v6034_v49 = vsel %vm10245_vm0, %v15309_v55, 0.0  ;;  %v6035_v50 = vsel %vm10246_vm15, %v15312_v3, 0.0  ;;  %v6399_v3 = vld [vmem:[%s16495_s3 + $0xc0] sm:$0xff] }
0x1545   :  { %v5677_v45 = vrot.slane %v5667_v62, %v13774_v56  ;;  %v5764_v62 = vld [vmem:[%s16494_s29 + $0x38] sm:$0xff]  ;;  %vm7196_vm15 = vcmask 72704  }
0x1547   :  { %v5678_v18 = vadd.f32 %v5677_v45, %v5672_v47  ;;  %v5679_v8 = vadd.f32 %v5677_v45, %v5673_v14  ;;  %v5763_v47 = vld [vmem:[%s16494_s29 + $0x30] sm:$0xff] }
0x1548   :  { %v12532_v14 = vpack.c.bf16 %v5764_v62, %v5763_v47 }
0x1549   :  { %v12500_v17 = vpack.c.bf16 %v5679_v8, %v5678_v18  ;;  %v13098_v51 = vpack.i.bf16 %v5679_v8, %v5678_v18 }
0x154b   :  { %12501 = vmatprep.subr.bf16.mxu0 %v12500_v17  ;;  %13099 = vrot.lane.b32.xlu1 %v13098_v51, %s13317_s0 }
0x154c   :  { %12503 = vmatpush3.bf16.msra.mxu0 %v12500_v17 }
0x154d   :  { %12505 = vmatprep.subr.bf16.mxu0 %v12504_v58 }
0x154f   :  { %11492 = vmatmul.mubr.msk.f32.vlgmr.msra.gmra.mrb[72].mxu0 %vm3838_vm12, %v14920_v15 }
0x1550   :  { %12507 = vmatpush3.bf16.msra.mxu0 %v12504_v58  ;;  %11510 = vmatprep.mubr.msk.f32.mxu0 %vm180_vm1, %v5678_v18 }
0x1551   :  { %12509 = vmatprep.subr.bf16.mxu0 %v12508_v53 }
0x1554   :  { %12511 = vmatpush3.bf16.msra.mxu0 %v12508_v53 }
0x1555   :  { %12513 = vmatprep.subr.bf16.mxu0 %v12512_v27 }
0x1558   :  { %12515 = vmatpush3.bf16.msra.mxu0 %v12512_v27 }
0x1559   :  { %12517 = vmatprep.subr.bf16.mxu0 %v12516_v54 }
0x155c   :  { %12519 = vmatpush3.bf16.msra.mxu0 %v12516_v54 }
0x155d   :  { %12521 = vmatprep.subr.bf16.mxu0 %v12520_v59 }
0x155f   :  { %11511 = vmatmul.mubr.msk.f32.vlgmr.msra.gmra.mrb[74].mxu0 %vm180_vm1, %v5679_v8 }
0x1560   :  { %12523 = vmatpush3.bf16.msra.mxu0 %v12520_v59 }
0x1561   :  { %12525 = vmatprep.subr.bf16.mxu0 %v12524_v4 }
0x1564   :  { %12527 = vmatpush3.bf16.msra.mxu0 %v12524_v4 }
0x1565   :  { %12529 = vmatprep.subr.bf16.mxu0 %v12528_v35 }
0x1568   :  { %12531 = vmatpush3.bf16.msra.mxu0 %v12528_v35 }
0x1569   :  { %12533 = vmatprep.subr.bf16.mxu0 %v12532_v14 }
0x156c   :  { %12535 = vmatpush3.bf16.msra.mxu0 %v12532_v14 }
0x156d   :  { %12583 = vmatprep.subr.bf16.mxu0 %v16488_v34 }
0x1574   :  { %6036 = vxpose.xlu1.b32.start [1/2] (short) (narrow) %v6034_v49, 8 }
0x1578   :  { %6037 = vxpose.xlu1.b32.end [2/2] (short) (narrow) %v6035_v50, 8 }
0x1622   :  { %v11493_v45 = vpop.f32.mrb[72].mxu0 }
0x1623   :  { %v5746_v57 = vpop.f32.mrb[73].mxu0  ;;  %v5756_v18 = vmul.f32 %v15021_v44, %v11493_v45 }
0x1624   :  { %v5755_v10 = vmul.f32 %v15011_v60, %v5746_v57 }
0x1626   :  { %11529 = vmatprep.mubr.msk.f32.mxu0 %vm180_vm1, %v5755_v10  ;;  %v5970_v10 = vld [vmem:[%s13350_s17 + $0x24] sm:$0x1] }
0x1627   :  { %11530 = vmatmul.mubr.msk.f32.vlgmr.msra.gmra.mrb[74].mxu0 %vm180_vm1, %v5756_v18 }
0x16fa   :  { %v11531_v8 = vpop.f32.mrb[74].mxu0 }
0x16fb   :  { %v5941_v17 = vadd.f32 %v11531_v8, %v10244_v12  ;;  %v5926_v51 = vpop.f32.mrb[75].mxu0 }
0x16fc   :  { %v5940_v58 = vadd.f32 %v10244_v12, %v5926_v51  ;;  %v13100_v12 = vpop.permute.xlu1 %13099 }
0x16fd   :  { %v5943_v22 = vmax.f32 %v5941_v17, 0.0  ;;  %v5972_v17 = vld [vmem:[%s13350_s17 + $0x25] sm:$0x1] }
0x16fe   :  { %v5942_v0 = vmax.f32 %v5940_v58, 0.0 }
0x16ff   :  { %v5945_v53 = vsel %vm180_vm1, %v5943_v22, 0.0  ;;  %v5955_v39 = vmul.f32 %v5943_v22, %v5943_v22 }
0x1700   :  { %v5944_v25 = vsel %vm180_vm1, %v5942_v0, 0.0  ;;  %v5954_v27 = vmul.f32 %v5942_v0, %v5942_v0 }
0x1701   :  { %v5957_v60 = vsel %vm180_vm1, %v5955_v39, 0.0  ;;  %v5946_v44 = vadd.f32 %v5945_v53, %v5944_v25  ;;  %v13102_v53 = vunpack.i.h.bf16 %v13100_v12  ;;  %v13101_v39 = vunpack.i.l.bf16 %v13100_v12 }
0x1702   :  { %v5956_v9 = vsel %vm180_vm1, %v5954_v27, 0.0 }
0x1703   :  { %v5947_v32 = vrot.slane %v5946_v44, 4  ;;  %v5958_v54 = vadd.f32 %v5957_v60, %v5956_v9  ;;  %v5994_v9 = vsel %vm180_vm1, %v15275_v63, %v13102_v53  ;;  %v6412_v53 = vld [vmem:[%s16495_s3 + $0x128] sm:$0xff] }
0x1705   :  { %v5948_v11 = vadd.f32 %v5947_v32, %v5946_v44  ;;  %v5959_v33 = vrot.slane %v5958_v54, 4  ;;  %v5993_v32 = vsel %vm180_vm1, %v15277_v5, %v13101_v39  ;;  %v6375_v39 = vld [vmem:[%s16495_s3] sm:$0xff] }
0x1707   :  { %v5949_v59 = vrot.slane %v5948_v11, 2  ;;  %v5960_v16 = vadd.f32 %v5959_v33, %v5958_v54 }
0x1709   :  { %v5950_v29 = vadd.f32 %v5949_v59, %v5948_v11  ;;  %v5961_v4 = vrot.slane %v5960_v16, 2  ;;  %v12538_v59 = vpack.c.bf16 %v5994_v9, %v5993_v32  ;;  %v6413_v32 = vld [vmem:[%s16495_s3 + $0x130] sm:$0xff] }
0x170b   :  { %v5951_v38 = vrot.slane %v5950_v29, 1  ;;  %v5962_v28 = vadd.f32 %v5961_v4, %v5960_v16  ;;  %v6052_v16 = vpop.trf.xlu1 }
0x170d   :  { %v5952_v35 = vadd.f32 %v5951_v38, %v5950_v29  ;;  %v5963_v49 = vrot.slane %v5962_v28, 1 }
0x170f   :  { %v5953_v50 = vmul.f32 0.0625, %v5952_v35  ;;  %v5964_v47 = vadd.f32 %v5963_v49, %v5962_v28  ;;  %v6403_v49 = vld [vmem:[%s16495_s3 + $0xe0] sm:$0xff] }
0x1711   :  { %v5965_v62 = vmul.f32 0.0625, %v5964_v47  ;;  %v5966_v14 = vmul.f32 %v5953_v50, %v5953_v50 }
0x1713   :  { %v5967_v45 = vsub.f32 %v5965_v62, %v5966_v14  ;;  %v6405_v14 = vld [vmem:[%s16495_s3 + $0xf0] sm:$0xff] }
0x1715   :  { %v5968_v57 = vadd.f32 1e-05, %v5967_v45  ;;  %v6406_v45 = vld [vmem:[%s16495_s3 + $0xf8] sm:$0xff] }
0x1717   :  { %13190 = vrsqrt.f32 %v5968_v57  ;;  %v12557_v57 = vpack.c.bf16 %v6406_v45, %v6405_v14  ;;  %v6420_v14 = vld [vmem:[%s16495_s3 + $0x168] sm:$0xff]  ;;  %v6385_v45 = vld [vmem:[%s16495_s3 + $0x50] sm:$0xff] }
0x1721   :  { %v13191_v18 = vpop.eup %13190 }
0x1722   :  { %v5971_v8 = vmul.f32 %v13191_v18, %v5970_v10  ;;  %v6407_v10 = vld [vmem:[%s16495_s3 + $0x100] sm:$0xff]  ;;  %v6408_v18 = vld [vmem:[%s16495_s3 + $0x108] sm:$0xff] }
0x1723   :  { %v12560_v12 = vpack.c.bf16 %v6408_v18, %v6407_v10  ;;  %v6421_v18 = vld [vmem:[%s16495_s3 + $0x170] sm:$0xff] }
0x1724   :  { %v5973_v51 = vmul.f32 %v5971_v8, %v5953_v50  ;;  %v5978_v58 = vrot.slane %v5971_v8, %v13774_v56  ;;  %v6404_v50 = vld [vmem:[%s16495_s3 + $0xe8] sm:$0xff]  ;;  %v6409_v8 = vld [vmem:[%s16495_s3 + $0x110] sm:$0xff] }
0x1725   :  { %v12554_v62 = vpack.c.bf16 %v6404_v50, %v6403_v49  ;;  %v6419_v50 = vld [vmem:[%s16495_s3 + $0x160] sm:$0xff] }
0x1726   :  { %v5979_v25 = vmul.f32 %v5978_v58, %v5942_v0  ;;  %v5974_v27 = vsub.f32 %v5972_v17, %v5973_v51  ;;  %v5980_v60 = vmul.f32 %v5978_v58, %v5943_v22  ;;  %v6401_v22 = vld [vmem:[%s16495_s3 + $0xd0] sm:$0xff]  ;;  %v6402_v0 = vld [vmem:[%s16495_s3 + $0xd8] sm:$0xff]  ;;  %v6411_v58 = vld [vmem:[%s16495_s3 + $0x120] sm:$0xff]  ;;  %v12578_v10 = vpack.c.bf16 %v6420_v14, %v6419_v50 }
0x1727   :  { %v12551_v35 = vpack.c.bf16 %v6402_v0, %v6401_v22  ;;  %v6410_v17 = vld [vmem:[%s16495_s3 + $0x118] sm:$0xff]  ;;  %v12566_v9 = vpack.c.bf16 %v6412_v53, %v6411_v58  ;;  %v6417_v0 = vld [vmem:[%s16495_s3 + $0x150] sm:$0xff]  ;;  %v6686_v50 = vld [vmem:[%s16496_s8] sm:$0xff] }
0x1728   :  { %v5984_v44 = vrot.slane %v5974_v27, %v13774_v56  ;;  %v12563_v51 = vpack.c.bf16 %v6410_v17, %v6409_v8  ;;  %v6377_v27 = vld [vmem:[%s16495_s3 + $0x10] sm:$0xff]  ;;  %v6422_v8 = vld [vmem:[%s16495_s3 + $0x178] sm:$0xff]  ;;  %v6387_v17 = vld [vmem:[%s16495_s3 + $0x60] sm:$0xff] }
0x1729   :  { %v12581_v58 = vpack.c.bf16 %v6422_v8, %v6421_v18  ;;  %v6688_v14 = vld [vmem:[%s16496_s8 + $0x10] sm:$0xff]  ;;  %v6690_v18 = vld [vmem:[%s16496_s8 + $0x20] sm:$0xff] }
0x172a   :  { %v5985_v54 = vadd.f32 %v5984_v44, %v5979_v25  ;;  %v5986_v11 = vadd.f32 %v5984_v44, %v5980_v60  ;;  %v6376_v25 = vld [vmem:[%s16495_s3 + $0x8] sm:$0xff]  ;;  %v6378_v44 = vld [vmem:[%s16495_s3 + $0x18] sm:$0xff] }
0x172b   :  { %v12584_v60 = vpack.c.bf16 %v6376_v25, %v6375_v39  ;;  %v6389_v39 = vld [vmem:[%s16495_s3 + $0x70] sm:$0xff]  ;;  %v6390_v25 = vld [vmem:[%s16495_s3 + $0x78] sm:$0xff] }
0x172c   :  { %v12536_v33 = vpack.c.bf16 %v5986_v11, %v5985_v54  ;;  %v12587_v54 = vpack.c.bf16 %v6378_v44, %v6377_v27  ;;  %v6414_v11 = vld [vmem:[%s16495_s3 + $0x138] sm:$0xff]  ;;  %v12605_v27 = vpack.c.bf16 %v6390_v25, %v6389_v39  ;;  %v6392_v44 = vld [vmem:[%s16495_s3 + $0x88] sm:$0xff] }
0x172d   :  { %12585 = vmatpush1.bf16.msra.mxu0 %v12584_v60  ;;  %v6391_v60 = vld [vmem:[%s16495_s3 + $0x80] sm:$0xff] }
0x172e   :  { %12537 = vmatprep.subr.bf16.mxu1 %v12536_v33  ;;  %12586 = vmatprep.subr.bf16.mxu0 %v16488_v34  ;;  %v6379_v33 = vld [vmem:[%s16495_s3 + $0x20] sm:$0xff] }
0x172f   :  { %12539 = vmatpush1.bf16.msra.mxu1 %v12538_v59  ;;  %v6380_v59 = vld [vmem:[%s16495_s3 + $0x28] sm:$0xff] }
0x1730   :  { %12540 = vmatprep.subr.bf16.mxu1 %v16488_v34 }
0x1731   :  { %12588 = vmatpush1.bf16.msra.mxu0 %v12587_v54  ;;  %v6394_v54 = vld [vmem:[%s16495_s3 + $0x98] sm:$0xff] }
0x1732   :  { %10247 = vmatmul.mubr.msk.f32.vlgmr.msra.gmra.mrb[80].mxu1 %vm3838_vm12, %v6052_v16  ;;  %12589 = vmatprep.subr.bf16.mxu0 %v16488_v34 }
0x1733   :  { %12542 = vmatpush3.bf16.msra.mxu1 %v12541_v1  ;;  %11536 = vmatprep.mubr.msk.f32.mxu1 %vm13323_vm3, %v16483_v40 }
0x1734   :  { %12543 = vmatprep.subr.bf16.mxu1 %v16488_v34 }
0x1736   :  { %11537 = vmatmul.mubr.msk.f32.vlgmr.msra.gmra.mrb[82].mxu1 %vm3838_vm12, %v6052_v16  ;;  %v12569_v16 = vpack.c.bf16 %v6414_v11, %v6413_v32  ;;  %v6393_v32 = vld [vmem:[%s16495_s3 + $0x90] sm:$0xff] }
0x1737   :  { %12546 = vmatpush3.bf16.msk.msra.mxu1 %vm15327_vm2, %v12544_v61  ;;  %11543 = vmatprep.mubr.msk.f32.mxu1 %vm13323_vm3, %v16483_v40  ;;  %v6400_v61 = vld [vmem:[%s16495_s3 + $0xc8] sm:$0xff]  ;;  %v12611_v11 = vpack.c.bf16 %v6394_v54, %v6393_v32  ;;  %vm8413_vm2 = vcmask 146432  }
0x1738   :  { %v12548_v48 = vpack.c.bf16 %v6400_v61, %v6399_v3  ;;  %v6416_v3 = vld [vmem:[%s16495_s3 + $0x148] sm:$0xff]  ;;  %v6381_v61 = vld [vmem:[%s16495_s3 + $0x30] sm:$0xff] }
0x1805   :  { %v15401_v1 = vpop.f32.mrb[80].mxu1 }
0x1806   :  { %v15403_v63 = vpop.f32.mrb[81].mxu1 }
0x1807   :  { %10252 = vmatprep.subr.msk.mxu1 %vm6295_vm5, %v15403_v63 }
0x1809   :  { %v6208_v5 = vpop.f32.mrb[82].mxu1 }
0x180a   :  { %11544 = vmatmul.mubr.msk.f32.vlgmr.msra.gmra.mrb[84].mxu1 %vm3838_vm12, %v6208_v5  ;;  %v11538_v55 = vpop.f32.mrb[83].mxu1  ;;  %v6415_v5 = vld [vmem:[%s16495_s3 + $0x140] sm:$0xff] }
0x180b   :  { %10253 = vmatpush1.msk.msra.mxu1 %vm6295_vm5, %v15401_v1  ;;  %6366 = vmatprep.mubr.f32.mxu1 %v16483_v40  ;;  %v12590_v55 = vpack.c.bf16 %v6380_v59, %v6379_v33  ;;  %v12572_v22 = vpack.c.bf16 %v6416_v3, %v6415_v5  ;;  %v6395_v33 = vld [vmem:[%s16495_s3 + $0xa0] sm:$0xff]  ;;  %v6396_v59 = vld [vmem:[%s16495_s3 + $0xa8] sm:$0xff]  ;;  %v6397_v5 = vld [vmem:[%s16495_s3 + $0xb0] sm:$0xff] }
0x180c   :  { %12547 = vmatprep.subr.bf16.mxu1 %v16488_v34 }
0x180d   :  { %12591 = vmatpush1.bf16.msra.mxu0 %v12590_v55  ;;  %v6398_v55 = vld [vmem:[%s16495_s3 + $0xb8] sm:$0xff] }
0x180e   :  { %12592 = vmatprep.subr.bf16.mxu0 %v16488_v34  ;;  %v12617_v3 = vpack.c.bf16 %v6398_v55, %v6397_v5 }
0x18dd   :  { %v15416_v29 = vpop.f32.mrb[84].mxu1 }
0x18de   :  { %10254 = vmatmul.mubr.msk.f32.vlgmr.msra.gmra.mrb[86].mxu1 %vm6291_vm6, %v15416_v29  ;;  %v11545_v4 = vpop.f32.mrb[85].mxu1  ;;  %v6286_v38 = vsel %vm6285_vm7, %v15416_v29, 0.0  ;;  %v8397_v28 = vmul.f32 %v15416_v29, %v15416_v29 }
0x18df   :  { %12549 = vmatpush1.bf16.msra.mxu1 %v12548_v48  ;;  %10255 = vmatprep.mubr.msk.f32.mxu1 %vm180_vm1, %v15403_v63  ;;  %v6382_v48 = vld [vmem:[%s16495_s3 + $0x38] sm:$0xff] }
0x18e0   :  { %12550 = vmatprep.subr.bf16.mxu1 %v16488_v34  ;;  %6287 = vadd.xlane.f32.xlu0 %v6286_v38  ;;  %v15428_v47 = vsel %vm6285_vm7, %v8397_v28, 0.0  ;;  %v12593_v4 = vpack.c.bf16 %v6382_v48, %v6381_v61  ;;  %v6418_v38 = vld [vmem:[%s16495_s3 + $0x158] sm:$0xff]  ;;  %v6383_v28 = vld [vmem:[%s16495_s3 + $0x40] sm:$0xff]  ;;  %vm8920_vm7 = vcmask 517120  }
0x18e1   :  { %v12575_v49 = vpack.c.bf16 %v6418_v38, %v6417_v0 }
0x18e2   :  { %12594 = vmatpush1.bf16.msra.mxu0 %v12593_v4 }
0x18e3   :  { %12552 = vmatpush1.bf16.msra.mxu1 %v12551_v35  ;;  %v6384_v35 = vld [vmem:[%s16495_s3 + $0x48] sm:$0xff]  ;;  %12595 = vmatprep.subr.bf16.mxu0 %v16488_v34 }
0x18e4   :  { %12553 = vmatprep.subr.bf16.mxu1 %v16488_v34 }
0x18e7   :  { %12555 = vmatpush1.bf16.msra.mxu1 %v12554_v62  ;;  %v12596_v62 = vpack.c.bf16 %v6384_v35, %v6383_v28 }
0x18e8   :  { %12556 = vmatprep.subr.bf16.mxu1 %v16488_v34 }
0x18e9   :  { %12597 = vmatpush1.bf16.msra.mxu0 %v12596_v62  ;;  %v6687_v62 = vld [vmem:[%s16496_s8 + $0x8] sm:$0xff] }
0x18ea   :  { %12598 = vmatprep.subr.bf16.mxu0 %v16488_v34 }
0x18eb   :  { %12558 = vmatpush1.bf16.msra.mxu1 %v12557_v57  ;;  %v6386_v57 = vld [vmem:[%s16495_s3 + $0x58] sm:$0xff] }
0x18ec   :  { %12559 = vmatprep.subr.bf16.mxu1 %v16488_v34 }
0x18ef   :  { %12561 = vmatpush1.bf16.msra.mxu1 %v12560_v12  ;;  %v12599_v12 = vpack.c.bf16 %v6386_v57, %v6385_v45  ;;  %v12632_v45 = vpack.c.bf16 %v6687_v62, %v6686_v50  ;;  %v6689_v57 = vld [vmem:[%s16496_s8 + $0x18] sm:$0xff]  ;;  %v6597_v62 = vld [vmem:[%s13350_s17 + $0x27] sm:$0x1] }
0x18f0   :  { %12562 = vmatprep.subr.bf16.mxu1 %v16488_v34 }
0x18f1   :  { %12600 = vmatpush1.bf16.msra.mxu0 %v12599_v12  ;;  %v6691_v12 = vld [vmem:[%s16496_s8 + $0x28] sm:$0xff] }
0x18f2   :  { %12601 = vmatprep.subr.bf16.mxu0 %v16488_v34  ;;  %v12638_v8 = vpack.c.bf16 %v6691_v12, %v6690_v18 }
0x18f3   :  { %12564 = vmatpush1.bf16.msra.mxu1 %v12563_v51  ;;  %v6388_v51 = vld [vmem:[%s16495_s3 + $0x68] sm:$0xff] }
0x18f4   :  { %12565 = vmatprep.subr.bf16.mxu1 %v16488_v34  ;;  %v12602_v53 = vpack.c.bf16 %v6388_v51, %v6387_v17  ;;  %v10257_v51 = vld [vmem:[%s13350_s17 + $0x26] ss:$0 sm:$0xff] }
0x18f6   :  { %12603 = vmatpush1.bf16.msra.mxu0 %v12602_v53 }
0x18f7   :  { %12567 = vmatpush1.bf16.msra.mxu1 %v12566_v9  ;;  %12604 = vmatprep.subr.bf16.mxu0 %v16488_v34  ;;  %v12608_v9 = vpack.c.bf16 %v6392_v44, %v6391_v60 }
0x18f8   :  { %12568 = vmatprep.subr.bf16.mxu1 %v16488_v34 }
0x18fa   :  { %12606 = vmatpush1.bf16.msra.mxu0 %v12605_v27 }
0x18fb   :  { %12570 = vmatpush1.bf16.msra.mxu1 %v12569_v16  ;;  %12607 = vmatprep.subr.bf16.mxu0 %v16488_v34  ;;  %v12614_v16 = vpack.c.bf16 %v6396_v59, %v6395_v33 }
0x18fc   :  { %12571 = vmatprep.subr.bf16.mxu1 %v16488_v34 }
0x18fe   :  { %12609 = vmatpush1.bf16.msra.mxu0 %v12608_v9 }
0x18ff   :  { %12573 = vmatpush1.bf16.msra.mxu1 %v12572_v22  ;;  %12610 = vmatprep.subr.bf16.mxu0 %v16488_v34 }
0x1900   :  { %12574 = vmatprep.subr.bf16.mxu1 %v16488_v34 }
0x1902   :  { %12612 = vmatpush1.bf16.msra.mxu0 %v12611_v11 }
0x1903   :  { %12576 = vmatpush1.bf16.msra.mxu1 %v12575_v49  ;;  %12613 = vmatprep.subr.bf16.mxu0 %v16488_v34 }
0x1904   :  { %12577 = vmatprep.subr.bf16.mxu1 %v16488_v34 }
0x1906   :  { %12615 = vmatpush1.bf16.msra.mxu0 %v12614_v16 }
0x1907   :  { %12579 = vmatpush1.bf16.msra.mxu1 %v12578_v10  ;;  %12616 = vmatprep.subr.bf16.mxu0 %v16488_v34  ;;  %v12635_v10 = vpack.c.bf16 %v6689_v57, %v6688_v14  ;;  %v6599_v57 = vld [vmem:[%s13350_s17 + $0x28] sm:$0x1] }
0x1908   :  { %12580 = vmatprep.subr.bf16.mxu1 %v16488_v34 }
0x190a   :  { %12618 = vmatpush1.bf16.msra.mxu0 %v12617_v3 }
0x190b   :  { %12582 = vmatpush1.bf16.msra.mxu1 %v12581_v58  ;;  %12631 = vmatprep.subr.bf16.mxu0 %v16488_v34 }
0x190c   :  { %11546 = vmatprep.subr.mxu1 %v16483_v40 }
0x190e   :  { %6490 = vmatmul.mubr.f32.vlgmr.msra.gmra.mrb[88].mxu1 %v15401_v1 }
0x190f   :  { %11548 = vmatprep.mubr.msk.f32.mxu1 %vm13323_vm3, %v16483_v40 }
0x196d   :  { %v6288_v61 = vpop.xlane.xlu0 %6287 }
0x196e   :  { %v6289_v48 = vmax.f32 %v6288_v61, 1.0 }
0x1970   :  { %13192 = vrcp.f32 %v6289_v48 }
0x197a   :  { %v15498_v0 = vpop.eup %13192 }
0x19b1   :  { %v6368_v22 = vpop.f32.mrb[86].mxu1 }
0x19b2   :  { %v6370_v4 = vpop.f32.mrb[87].mxu1  ;;  %v15504_v28 = vmul.f32 %v15498_v0, %v6368_v22 }
0x19b3   :  { %v15501_v38 = vmul.f32 %v15498_v0, %v6370_v4 }
0x19b5   :  { %10256 = vmatprep.mubr.msk.f32.mxu0 %vm180_vm1, %v15501_v38 }
0x19b6   :  { %6563 = vmatmul.mubr.f32.vlgmr.msra.gmra.mrb[76].mxu0 %v15504_v28 }
0x19b7   :  { %11586 = vmatprep.mubr.msk.f32.mxu0 %vm13323_vm3, %v16483_v40  ;;  %12633 = vmatpush3.bf16.msra.mxu0 %v12632_v45 }
0x19b8   :  { %12634 = vmatprep.subr.bf16.mxu0 %v16488_v34 }
0x19bb   :  { %12636 = vmatpush3.bf16.msra.mxu0 %v12635_v10 }
0x19bc   :  { %12637 = vmatprep.subr.bf16.mxu0 %v16488_v34 }
0x19bf   :  { %12639 = vmatpush3.bf16.msra.mxu0 %v12638_v8  ;;  %v6694_v8 = vld [vmem:[%s16496_s8 + $0x40] sm:$0xff] }
0x19c0   :  { %12640 = vmatprep.subr.bf16.mxu0 %v16488_v34 }
0x19e1   :  { %v6491_v35 = vpop.f32.mrb[88].mxu1 }
0x19e2   :  { %v6493_v49 = vpop.f32.mrb[89].mxu1 }
0x1a89   :  { %v6564_v17 = vpop.f32.mrb[76].mxu0 }
0x1a8a   :  { %v6565_v58 = vadd.f32 %v6564_v17, %v6491_v35  ;;  %v6566_v53 = vpop.f32.mrb[77].mxu0  ;;  %v6695_v17 = vld [vmem:[%s16496_s8 + $0x48] sm:$0xff] }
0x1a8c   :  { %v6573_v39 = vadd.f32 %v10257_v51, %v6565_v58 }
0x1a8e   :  { %v6574_v25 = vmax.f32 %v6573_v39, 0.0  ;;  %v12620_v39 = vpack.c.bf16 %v6695_v17, %v6694_v8 }
0x1a90   :  { %v6576_v27 = vsel %vm6575_vm8, %v6574_v25, 0.0  ;;  %v6584_v60 = vmul.f32 %v6574_v25, %v6574_v25 }
0x1a91   :  { %v6577_v44 = vrot.slane %v6576_v27, 4 }
0x1a92   :  { %v6585_v9 = vsel %vm6575_vm8, %v6584_v60, 0.0  ;;  %v6697_v60 = vld [vmem:[%s16496_s8 + $0x58] sm:$0xff] }
0x1a93   :  { %v6578_v32 = vadd.f32 %v6577_v44, %v6576_v27  ;;  %v6586_v54 = vrot.slane %v6585_v9, 4  ;;  %v6696_v27 = vld [vmem:[%s16496_s8 + $0x50] sm:$0xff] }
0x1a94   :  { %v12623_v44 = vpack.c.bf16 %v6697_v60, %v6696_v27 }
0x1a95   :  { %v6579_v11 = vrot.slane %v6578_v32, 2  ;;  %v6587_v33 = vadd.f32 %v6586_v54, %v6585_v9  ;;  %v6699_v9 = vld [vmem:[%s16496_s8 + $0x68] sm:$0xff]  ;;  %v6700_v54 = vld [vmem:[%s16496_s8 + $0x70] sm:$0xff] }
0x1a97   :  { %v6580_v59 = vadd.f32 %v6579_v11, %v6578_v32  ;;  %v6588_v16 = vrot.slane %v6587_v33, 2  ;;  %v6701_v11 = vld [vmem:[%s16496_s8 + $0x78] sm:$0xff] }
0x1a99   :  { %v6581_v5 = vrot.slane %v6580_v59, 1  ;;  %v6589_v55 = vadd.f32 %v6588_v16, %v6587_v33  ;;  %v12629_v33 = vpack.c.bf16 %v6701_v11, %v6700_v54  ;;  %v6693_v16 = vld [vmem:[%s16496_s8 + $0x38] sm:$0xff] }
0x1a9b   :  { %v6582_v3 = vadd.f32 %v6581_v5, %v6580_v59  ;;  %v6590_v61 = vrot.slane %v6589_v55, 1  ;;  %v6692_v59 = vld [vmem:[%s16496_s8 + $0x30] sm:$0xff] }
0x1a9c   :  { %v12641_v5 = vpack.c.bf16 %v6693_v16, %v6692_v59  ;;  %v6875_v16 = vld [vmem:[%s13350_s17 + $0x2a] sm:$0x1] }
0x1a9d   :  { %v6583_v48 = vmul.f32 0.25, %v6582_v3  ;;  %v6591_v22 = vadd.f32 %v6590_v61, %v6589_v55 }
0x1a9e   :  { %12642 = vmatpush3.bf16.msra.mxu0 %v12641_v5  ;;  %v6964_v5 = vld [vmem:[%s16497_s14] sm:$0xff] }
0x1a9f   :  { %v6592_v4 = vmul.f32 0.25, %v6591_v22  ;;  %v6593_v35 = vmul.f32 %v6583_v48, %v6583_v48  ;;  %12655 = vmatprep.subr.bf16.mxu0 %v16488_v34 }
0x1aa1   :  { %v6594_v49 = vsub.f32 %v6592_v4, %v6593_v35  ;;  %v10262_v35 = vld [vmem:[%s13350_s17 + $0x29] ss:$0 sm:$0xff] }
0x1aa3   :  { %v6595_v50 = vadd.f32 1e-05, %v6594_v49 }
0x1aa5   :  { %13194 = vrsqrt.f32 %v6595_v50 }
0x1aaf   :  { %v13195_v14 = vpop.eup %13194 }
0x1ab0   :  { %v6598_v45 = vmul.f32 %v13195_v14, %v6597_v62 }
0x1ab2   :  { %v6600_v10 = vmul.f32 %v6598_v45, %v6583_v48  ;;  %v6605_v18 = vrot.slane %v6598_v45, %v13774_v56 }
0x1ab4   :  { %v6601_v12 = vsub.f32 %v6599_v57, %v6600_v10  ;;  %v6606_v51 = vmul.f32 %v6605_v18, %v6574_v25  ;;  %v6698_v25 = vld [vmem:[%s16496_s8 + $0x60] sm:$0xff] }
0x1ab5   :  { %v12626_v32 = vpack.c.bf16 %v6699_v9, %v6698_v25 }
0x1ab6   :  { %v6610_v58 = vrot.slane %v6601_v12, %v13774_v56 }
0x1ab8   :  { %v15529_v53 = vadd.f32 %v6610_v58, %v6606_v51 }
0x1aba   :  { %11547 = vmatpush3.msk.msra.mxu1 %vm6295_vm5, %v15529_v53 }
0x1abb   :  { %11549 = vmatmul.mubr.msk.f32.vlgmr.msra.gmra.mrb[90].mxu1 %vm6291_vm6, %v15416_v29  ;;  %12619 = vmatprep.subr.bf16.mxu1 %v16488_v34 }
0x1abc   :  { %12621 = vmatpush3.bf16.msra.mxu1 %v12620_v39  ;;  %11567 = vmatprep.mubr.msk.f32.mxu1 %vm13323_vm3, %v16483_v40 }
0x1abd   :  { %12622 = vmatprep.subr.bf16.mxu1 %v16488_v34 }
0x1ac0   :  { %12624 = vmatpush3.bf16.msra.mxu1 %v12623_v44 }
0x1ac1   :  { %12625 = vmatprep.subr.bf16.mxu1 %v16488_v34 }
0x1ac4   :  { %12627 = vmatpush3.bf16.msra.mxu1 %v12626_v32 }
0x1ac5   :  { %12628 = vmatprep.subr.bf16.mxu1 %v16488_v34 }
0x1ac8   :  { %12630 = vmatpush3.bf16.msra.mxu1 %v12629_v33 }
0x1ac9   :  { %11589 = vmatprep.subr.mxu1 %v16483_v40 }
0x1acb   :  { %11568 = vmatmul.mubr.msk.f32.vlgmr.msra.gmra.mrb[92].mxu1 %vm180_vm1, %v15529_v53 }
0x1acc   :  { %11591 = vmatprep.mubr.msk.f32.mxu1 %vm13323_vm3, %v16483_v40 }
0x1b8e   :  { %v6681_v55 = vpop.f32.mrb[90].mxu1 }
0x1b8f   :  { %v6685_v3 = vmul.f32 %v15498_v0, %v6681_v55  ;;  %v11550_v61 = vpop.f32.mrb[91].mxu1  ;;  %v6965_v55 = vld [vmem:[%s16497_s14 + $0x8] sm:$0xff] }
0x1b90   :  { %v12656_v61 = vpack.c.bf16 %v6965_v55, %v6964_v5  ;;  %v7299_v5 = vld [vmem:[%s16498_s19 + $0xc0] sm:$0xff]  ;;  %v7300_v55 = vld [vmem:[%s16498_s19 + $0xc8] sm:$0xff] }
0x1b91   :  { %11587 = vmatmul.mubr.msk.f32.vlgmr.msra.gmra.mrb[78].mxu0 %vm180_vm1, %v6685_v3  ;;  %v6966_v3 = vld [vmem:[%s16497_s14 + $0x10] sm:$0xff] }
0x1b92   :  { %11629 = vmatprep.mubr.msk.f32.mxu0 %vm13323_vm3, %v16483_v40  ;;  %12657 = vmatpush3.bf16.msra.mxu0 %v12656_v61  ;;  %v12696_v61 = vpack.c.bf16 %v7300_v55, %v7299_v5  ;;  %v7319_v55 = vld [vmem:[%s16498_s19 + $0x160] sm:$0xff] }
0x1b93   :  { %12658 = vmatprep.subr.bf16.mxu0 %v16488_v34 }
0x1b9e   :  { %v6770_v48 = vpop.f32.mrb[92].mxu1 }
0x1b9f   :  { %v11569_v22 = vpop.f32.mrb[93].mxu1 }
0x1c64   :  { %v6843_v4 = vpop.f32.mrb[78].mxu0 }
0x1c65   :  { %v6844_v49 = vadd.f32 %v6843_v4, %v6770_v48  ;;  %v11588_v50 = vpop.f32.mrb[79].mxu0  ;;  %v6967_v48 = vld [vmem:[%s16497_s14 + $0x18] sm:$0xff] }
0x1c66   :  { %v6968_v50 = vld [vmem:[%s16497_s14 + $0x20] sm:$0xff] }
0x1c67   :  { %v6852_v62 = vadd.f32 %v10262_v35, %v6844_v49  ;;  %v12659_v35 = vpack.c.bf16 %v6967_v48, %v6966_v3  ;;  %v6877_v49 = vld [vmem:[%s13350_s17 + $0x2b] sm:$0x1] }
0x1c69   :  { %v6853_v14 = vmax.f32 %v6852_v62, 0.0  ;;  %v6969_v62 = vld [vmem:[%s16497_s14 + $0x28] sm:$0xff]  ;;  %12660 = vmatpush3.bf16.msra.mxu0 %v12659_v35  ;;  %v7302_v35 = vld [vmem:[%s16498_s19 + $0xd8] sm:$0xff] }
0x1c6a   :  { %12661 = vmatprep.subr.bf16.mxu0 %v16488_v34 }
0x1c6b   :  { %v6854_v45 = vsel %vm6575_vm8, %v6853_v14, 0.0  ;;  %v6862_v57 = vmul.f32 %v6853_v14, %v6853_v14 }
0x1c6c   :  { %v6855_v10 = vrot.slane %v6854_v45, 4 }
0x1c6d   :  { %v6863_v18 = vsel %vm6575_vm8, %v6862_v57, 0.0 }
0x1c6e   :  { %v6856_v12 = vadd.f32 %v6855_v10, %v6854_v45  ;;  %v6864_v8 = vrot.slane %v6863_v18, 4 }
0x1c70   :  { %v6857_v17 = vrot.slane %v6856_v12, 2  ;;  %v6865_v51 = vadd.f32 %v6864_v8, %v6863_v18  ;;  %v12662_v18 = vpack.c.bf16 %v6969_v62, %v6968_v50  ;;  %v6973_v8 = vld [vmem:[%s16497_s14 + $0x48] sm:$0xff]  ;;  %v7303_v50 = vld [vmem:[%s16498_s19 + $0xe0] sm:$0xff] }
0x1c71   :  { %v7304_v62 = vld [vmem:[%s16498_s19 + $0xe8] sm:$0xff] }
0x1c72   :  { %v6858_v58 = vadd.f32 %v6857_v17, %v6856_v12  ;;  %v6866_v39 = vrot.slane %v6865_v51, 2  ;;  %v6972_v12 = vld [vmem:[%s16497_s14 + $0x40] sm:$0xff]  ;;  %12663 = vmatpush3.bf16.msra.mxu0 %v12662_v18 }
0x1c73   :  { %12664 = vmatprep.subr.bf16.mxu0 %v16488_v34 }
0x1c74   :  { %v6859_v27 = vrot.slane %v6858_v58, 1  ;;  %v6867_v60 = vadd.f32 %v6866_v39, %v6865_v51  ;;  %v6971_v39 = vld [vmem:[%s16497_s14 + $0x38] sm:$0xff] }
0x1c76   :  { %v6868_v44 = vrot.slane %v6867_v60, 1  ;;  %v6860_v25 = vadd.f32 %v6859_v27, %v6858_v58  ;;  %v6970_v58 = vld [vmem:[%s16497_s14 + $0x30] sm:$0xff] }
0x1c78   :  { %v6869_v9 = vadd.f32 %v6868_v44, %v6867_v60  ;;  %v6861_v32 = vmul.f32 0.25, %v6860_v25  ;;  %v12644_v60 = vpack.c.bf16 %v6973_v8, %v6972_v12  ;;  %v6974_v44 = vld [vmem:[%s16497_s14 + $0x50] sm:$0xff]  ;;  %v6975_v25 = vld [vmem:[%s16497_s14 + $0x58] sm:$0xff]  ;;  %v7308_v12 = vld [vmem:[%s16498_s19 + $0x108] sm:$0xff] }
0x1c7a   :  { %v6870_v54 = vmul.f32 0.25, %v6869_v9  ;;  %v6871_v11 = vmul.f32 %v6861_v32, %v6861_v32  ;;  %v12665_v9 = vpack.c.bf16 %v6971_v39, %v6970_v58  ;;  %v7309_v58 = vld [vmem:[%s16498_s19 + $0x110] sm:$0xff]  ;;  %v7310_v39 = vld [vmem:[%s16498_s19 + $0x118] sm:$0xff] }
0x1c7c   :  { %v6872_v33 = vsub.f32 %v6870_v54, %v6871_v11  ;;  %v6977_v54 = vld [vmem:[%s16497_s14 + $0x68] sm:$0xff]  ;;  %12666 = vmatpush3.bf16.msra.mxu0 %v12665_v9  ;;  %v7313_v9 = vld [vmem:[%s16498_s19 + $0x130] sm:$0xff] }
0x1c7d   :  { %12695 = vmatprep.subr.bf16.mxu0 %v16488_v34 }
0x1c7e   :  { %v6873_v59 = vadd.f32 1e-05, %v6872_v33  ;;  %v6978_v33 = vld [vmem:[%s16497_s14 + $0x70] sm:$0xff] }
0x1c80   :  { %13196 = vrsqrt.f32 %v6873_v59  ;;  %v6979_v59 = vld [vmem:[%s16497_s14 + $0x78] sm:$0xff] }
0x1c8a   :  { %v13197_v22 = vpop.eup %13196 }
0x1c8b   :  { %v6876_v4 = vmul.f32 %v13197_v22, %v6875_v16  ;;  %v12653_v16 = vpack.c.bf16 %v6979_v59, %v6978_v33  ;;  %v7317_v59 = vld [vmem:[%s16498_s19 + $0x150] sm:$0xff] }
0x1c8d   :  { %v6878_v45 = vmul.f32 %v6876_v4, %v6861_v32  ;;  %v6883_v57 = vrot.slane %v6876_v4, %v13774_v56  ;;  %v6976_v32 = vld [vmem:[%s16497_s14 + $0x60] sm:$0xff]  ;;  %v7301_v4 = vld [vmem:[%s16498_s19 + $0xd0] sm:$0xff] }
0x1c8e   :  { %v12650_v11 = vpack.c.bf16 %v6977_v54, %v6976_v32  ;;  %v7315_v54 = vld [vmem:[%s16498_s19 + $0x140] sm:$0xff] }
0x1c8f   :  { %v6879_v10 = vsub.f32 %v6877_v49, %v6878_v45  ;;  %v6884_v17 = vmul.f32 %v6883_v57, %v6853_v14  ;;  %v12647_v14 = vpack.c.bf16 %v6975_v25, %v6974_v44  ;;  %v12699_v49 = vpack.c.bf16 %v7302_v35, %v7301_v4  ;;  %v7305_v57 = vld [vmem:[%s16498_s19 + $0xf0] sm:$0xff]  ;;  %v7312_v44 = vld [vmem:[%s16498_s19 + $0x128] sm:$0xff]  ;;  %v7173_v35 = vld [vmem:[%s16499_s24] sm:$0xff] }
0x1c90   :  { %v12702_v45 = vpack.c.bf16 %v7304_v62, %v7303_v50  ;;  %v7175_v62 = vld [vmem:[%s16499_s24 + $0x10] sm:$0xff] }
0x1c91   :  { %v6888_v51 = vrot.slane %v6879_v10, %v13774_v56  ;;  %v7306_v10 = vld [vmem:[%s16498_s19 + $0xf8] sm:$0xff] }
0x1c92   :  { %v12705_v18 = vpack.c.bf16 %v7306_v10, %v7305_v57  ;;  %v7178_v10 = vld [vmem:[%s16499_s24 + $0x28] sm:$0xff] }
0x1c93   :  { %v6889_v27 = vadd.f32 %v6888_v51, %v6884_v17 }
0x1c95   :  { %7169 = vrot.lane.b32.xlu0 %v6889_v27, %s13317_s0  ;;  %11590 = vmatpush3.msk.msra.mxu1 %vm6295_vm5, %v6889_v27 }
0x1c96   :  { %11592 = vmatmul.mubr.msk.f32.vlgmr.msra.gmra.mrb[94].mxu1 %vm6291_vm6, %v15416_v29  ;;  %12643 = vmatprep.subr.bf16.mxu1 %v16488_v34 }
0x1c97   :  { %12645 = vmatpush3.bf16.msra.mxu1 %v12644_v60  ;;  %11610 = vmatprep.mubr.msk.f32.mxu1 %vm13323_vm3, %v16483_v40  ;;  %v7311_v60 = vld [vmem:[%s16498_s19 + $0x120] sm:$0xff] }
0x1c98   :  { %12646 = vmatprep.subr.bf16.mxu1 %v16488_v34  ;;  %v12714_v25 = vpack.c.bf16 %v7312_v44, %v7311_v60  ;;  %v7184_v60 = vld [vmem:[%s16499_s24 + $0x58] sm:$0xff] }
0x1c9b   :  { %12648 = vmatpush3.bf16.msra.mxu1 %v12647_v14  ;;  %v7314_v14 = vld [vmem:[%s16498_s19 + $0x138] sm:$0xff] }
0x1c9c   :  { %12649 = vmatprep.subr.bf16.mxu1 %v16488_v34  ;;  %v12717_v32 = vpack.c.bf16 %v7314_v14, %v7313_v9  ;;  %v7186_v9 = vld [vmem:[%s16499_s24 + $0x68] sm:$0xff] }
0x1c9f   :  { %12651 = vmatpush3.bf16.msra.mxu1 %v12650_v11  ;;  %v7316_v11 = vld [vmem:[%s16498_s19 + $0x148] sm:$0xff] }
0x1ca0   :  { %12652 = vmatprep.subr.bf16.mxu1 %v16488_v34  ;;  %v12720_v33 = vpack.c.bf16 %v7316_v11, %v7315_v54  ;;  %v7188_v54 = vld [vmem:[%s16499_s24 + $0x78] sm:$0xff] }
0x1ca3   :  { %12654 = vmatpush3.bf16.msra.mxu1 %v12653_v16  ;;  %v7318_v16 = vld [vmem:[%s16498_s19 + $0x158] sm:$0xff] }
0x1ca4   :  { %12667 = vmatprep.subr.bf16.mxu1 %v16488_v34  ;;  %v12723_v5 = vpack.c.bf16 %v7318_v16, %v7317_v59  ;;  %v7190_v59 = vld [vmem:[%s16499_s24 + $0x88] sm:$0x1] }
0x1ca6   :  { %11611 = vmatmul.mubr.msk.f32.vlgmr.msra.gmra.mrb[96].mxu1 %vm180_vm1, %v6889_v27  ;;  %v12711_v27 = vpack.c.bf16 %v7310_v39, %v7309_v58  ;;  %v7182_v58 = vld [vmem:[%s16499_s24 + $0x48] sm:$0xff] }
0x1d69   :  { %v6959_v3 = vpop.f32.mrb[94].mxu1 }
0x1d6a   :  { %v6963_v48 = vmul.f32 %v15498_v0, %v6959_v3  ;;  %v11593_v22 = vpop.f32.mrb[95].mxu1  ;;  %v7320_v3 = vld [vmem:[%s16498_s19 + $0x168] sm:$0xff] }
0x1d6b   :  { %v7322_v22 = vld [vmem:[%s16498_s19 + $0x178] sm:$0xff] }
0x1d6c   :  { %11630 = vmatmul.mubr.msk.f32.vlgmr.msra.gmra.mrb[80].mxu0 %vm180_vm1, %v6963_v48  ;;  %v7321_v48 = vld [vmem:[%s16498_s19 + $0x170] sm:$0xff] }
0x1d6d   :  { %12697 = vmatpush1.bf16.msra.mxu0 %v12696_v61  ;;  %10271 = vmatprep.mubr.msk.f32.mxu0 %vm180_vm1, %v15403_v63  ;;  %v7307_v63 = vld [vmem:[%s16498_s19 + $0x100] sm:$0xff]  ;;  %v12726_v61 = vpack.c.bf16 %v7320_v3, %v7319_v55  ;;  %v12729_v4 = vpack.c.bf16 %v7322_v22, %v7321_v48  ;;  %v10267_v55 = vld [vmem:[%s13350_s17 + $0x2c] ss:$0 sm:$0xff] }
0x1d6e   :  { %12698 = vmatprep.subr.bf16.mxu0 %v16488_v34  ;;  %v12708_v17 = vpack.c.bf16 %v7308_v12, %v7307_v63  ;;  %v7179_v63 = vld [vmem:[%s16499_s24 + $0x30] sm:$0xff]  ;;  %v7180_v12 = vld [vmem:[%s16499_s24 + $0x38] sm:$0xff] }
0x1d71   :  { %12700 = vmatpush1.bf16.msra.mxu0 %v12699_v49  ;;  %v7174_v49 = vld [vmem:[%s16499_s24 + $0x8] sm:$0xff] }
0x1d72   :  { %12701 = vmatprep.subr.bf16.mxu0 %v16488_v34  ;;  %v12668_v50 = vpack.c.bf16 %v7174_v49, %v7173_v35 }
0x1d74   :  { %12669 = vmatpush1.bf16.msra.mxu1 %v12668_v50 }
0x1d75   :  { %12703 = vmatpush1.bf16.msra.mxu0 %v12702_v45  ;;  %12670 = vmatprep.subr.bf16.mxu1 %v16488_v34  ;;  %v7176_v45 = vld [vmem:[%s16499_s24 + $0x18] sm:$0xff] }
0x1d76   :  { %12704 = vmatprep.subr.bf16.mxu0 %v16488_v34  ;;  %v12671_v57 = vpack.c.bf16 %v7176_v45, %v7175_v62 }
0x1d78   :  { %12672 = vmatpush1.bf16.msra.mxu1 %v12671_v57 }
0x1d79   :  { %12706 = vmatpush1.bf16.msra.mxu0 %v12705_v18  ;;  %v15615_v8 = vpop.f32.mrb[96].mxu1  ;;  %12673 = vmatprep.subr.bf16.mxu1 %v16488_v34 }
0x1d7a   :  { %v11612_v51 = vpop.f32.mrb[97].mxu1  ;;  %12707 = vmatprep.subr.bf16.mxu0 %v16488_v34 }
0x1d7b   :  { %v7181_v51 = vld [vmem:[%s16499_s24 + $0x40] sm:$0xff] }
0x1d7c   :  { %v12680_v39 = vpack.c.bf16 %v7182_v58, %v7181_v51 }
0x1d7d   :  { %12709 = vmatpush1.bf16.msra.mxu0 %v12708_v17  ;;  %v12677_v17 = vpack.c.bf16 %v7180_v12, %v7179_v63 }
0x1d7e   :  { %12710 = vmatprep.subr.bf16.mxu0 %v16488_v34 }
0x1d81   :  { %12712 = vmatpush1.bf16.msra.mxu0 %v12711_v27  ;;  %v7183_v27 = vld [vmem:[%s16499_s24 + $0x50] sm:$0xff] }
0x1d82   :  { %12713 = vmatprep.subr.bf16.mxu0 %v16488_v34  ;;  %v12683_v44 = vpack.c.bf16 %v7184_v60, %v7183_v27 }
0x1d85   :  { %12715 = vmatpush1.bf16.msra.mxu0 %v12714_v25  ;;  %v7185_v25 = vld [vmem:[%s16499_s24 + $0x60] sm:$0xff] }
0x1d86   :  { %12716 = vmatprep.subr.bf16.mxu0 %v16488_v34  ;;  %v12686_v14 = vpack.c.bf16 %v7186_v9, %v7185_v25  ;;  %v7154_v25 = vld [vmem:[%s13350_s17 + $0x2d] sm:$0x1] }
0x1d89   :  { %12718 = vmatpush1.bf16.msra.mxu0 %v12717_v32  ;;  %v7187_v32 = vld [vmem:[%s16499_s24 + $0x70] sm:$0xff] }
0x1d8a   :  { %12719 = vmatprep.subr.bf16.mxu0 %v16488_v34  ;;  %v12689_v11 = vpack.c.bf16 %v7188_v54, %v7187_v32  ;;  %v7156_v32 = vld [vmem:[%s13350_s17 + $0x2e] sm:$0x1] }
0x1d8d   :  { %12721 = vmatpush1.bf16.msra.mxu0 %v12720_v33  ;;  %v7189_v33 = vld [vmem:[%s16499_s24 + $0x80] sm:$0xff] }
0x1d8e   :  { %12722 = vmatprep.subr.bf16.mxu0 %v16488_v34  ;;  %v12692_v16 = vpack.c.bf16 %v7190_v59, %v7189_v33  ;;  %v7275_v59 = vld [vmem:[%s16498_s19] sm:$0xff] }
0x1d91   :  { %12724 = vmatpush1.bf16.msra.mxu0 %v12723_v5 }
0x1d92   :  { %12725 = vmatprep.subr.bf16.mxu0 %v16488_v34 }
0x1d95   :  { %12727 = vmatpush1.bf16.msra.mxu0 %v12726_v61 }
0x1d96   :  { %12728 = vmatprep.subr.bf16.mxu0 %v16488_v34 }
0x1d99   :  { %12730 = vmatpush1.bf16.msra.mxu0 %v12729_v4 }
0x1d9a   :  { %11632 = vmatprep.subr.mxu0 %v16483_v40 }
0x1d9c   :  { %7388 = vmatmul.mubr.f32.vlgmr.msra.gmra.mrb[82].mxu0 %v15401_v1  ;;  %v7177_v1 = vld [vmem:[%s16499_s24 + $0x20] sm:$0xff] }
0x1d9d   :  { %11634 = vmatprep.mubr.msk.f32.mxu0 %vm13323_vm3, %v16483_v40  ;;  %v12674_v18 = vpack.c.bf16 %v7178_v10, %v7177_v1 }
0x1d9f   :  { %12675 = vmatpush1.bf16.msra.mxu1 %v12674_v18 }
0x1da0   :  { %12676 = vmatprep.subr.bf16.mxu1 %v16488_v34 }
0x1da3   :  { %12678 = vmatpush1.bf16.msra.mxu1 %v12677_v17 }
0x1da4   :  { %12679 = vmatprep.subr.bf16.mxu1 %v16488_v34 }
0x1da7   :  { %12681 = vmatpush1.bf16.msra.mxu1 %v12680_v39 }
0x1da8   :  { %12682 = vmatprep.subr.bf16.mxu1 %v16488_v34 }
0x1dab   :  { %12684 = vmatpush1.bf16.msra.mxu1 %v12683_v44 }
0x1dac   :  { %12685 = vmatprep.subr.bf16.mxu1 %v16488_v34 }
0x1daf   :  { %12687 = vmatpush1.bf16.msra.mxu1 %v12686_v14 }
0x1db0   :  { %12688 = vmatprep.subr.bf16.mxu1 %v16488_v34 }
0x1db3   :  { %12690 = vmatpush1.bf16.msra.mxu1 %v12689_v11 }
0x1db4   :  { %12691 = vmatprep.subr.bf16.mxu1 %v16488_v34 }
0x1db7   :  { %12694 = vmatpush1.bf16.msk.msra.mxu1 %vm12693_vm11, %v12692_v16  ;;  %v7276_v16 = vld [vmem:[%s16498_s19 + $0x8] sm:$0xff] }
0x1db8   :  { %12731 = vmatprep.subr.bf16.mxu1 %v16488_v34 }
0x1e3f   :  { %v7121_v5 = vpop.f32.mrb[80].mxu0 }
0x1e40   :  { %v7122_v3 = vadd.f32 %v7121_v5, %v15615_v8  ;;  %v11631_v61 = vpop.f32.mrb[81].mxu0 }
0x1e42   :  { %v7130_v48 = vadd.f32 %v10267_v55, %v7122_v3  ;;  %v7170_v3 = vpop.permute.xlu0 %7169 }
0x1e44   :  { %v7131_v22 = vmax.f32 %v7130_v48, 0.0  ;;  %v12732_v48 = vpack.c.bf16 %v7276_v16, %v7275_v59  ;;  %v7295_v59 = vld [vmem:[%s16498_s19 + $0xa0] sm:$0xff]  ;;  %v7296_v16 = vld [vmem:[%s16498_s19 + $0xa8] sm:$0xff] }
0x1e46   :  { %v7133_v4 = vsel %vm7132_vm14, %v7131_v22, 0.0  ;;  %v7141_v35 = vmul.f32 %v7131_v22, %v7131_v22 }
0x1e47   :  { %v7134_v49 = vrot.slane %v7133_v4, 4 }
0x1e48   :  { %v7142_v50 = vsel %vm7132_vm14, %v7141_v35, 0.0  ;;  %v7277_v35 = vld [vmem:[%s16498_s19 + $0x10] sm:$0xff] }
0x1e49   :  { %v7135_v62 = vadd.f32 %v7134_v49, %v7133_v4  ;;  %v7143_v45 = vrot.slane %v7142_v50, 4  ;;  %v7278_v49 = vld [vmem:[%s16498_s19 + $0x18] sm:$0xff] }
0x1e4b   :  { %v7136_v57 = vrot.slane %v7135_v62, 2  ;;  %v7144_v1 = vadd.f32 %v7143_v45, %v7142_v50  ;;  %v7172_v50 = vsel %vm180_vm1, %v15529_v53, %v7170_v3  ;;  %v7279_v45 = vld [vmem:[%s16498_s19 + $0x20] sm:$0xff]  ;;  %v7281_v53 = vld [vmem:[%s16498_s19 + $0x30] sm:$0xff]  ;;  %v7298_v3 = vld [vmem:[%s16498_s19 + $0xb8] sm:$0xff] }
0x1e4d   :  { %v7137_v10 = vadd.f32 %v7136_v57, %v7135_v62  ;;  %v7145_v18 = vrot.slane %v7144_v1, 2  ;;  %v7280_v57 = vld [vmem:[%s16498_s19 + $0x28] sm:$0xff] }
0x1e4f   :  { %v7138_v63 = vrot.slane %v7137_v10, 1  ;;  %v7146_v8 = vadd.f32 %v7145_v18, %v7144_v1  ;;  %v12738_v1 = vpack.c.bf16 %v7280_v57, %v7279_v45  ;;  %v8082_v45 = vsel %vm5042_vm13, 0, %v13321_v24  ;;  %v10273_v57 = vld [vmem:[%s13350_s17 + $0x30] ss:$0 sm:$0xff] }
0x1e51   :  { %v7139_v12 = vadd.f32 %v7138_v63, %v7137_v10  ;;  %v7147_v17 = vrot.slane %v7146_v8, 1  ;;  %v7282_v10 = vld [vmem:[%s16498_s19 + $0x38] sm:$0xff]  ;;  %v7284_v63 = vld [vmem:[%s16498_s19 + $0x48] sm:$0xff] }
0x1e52   :  { %v12741_v18 = vpack.c.bf16 %v7282_v10, %v7281_v53 }
0x1e53   :  { %v7140_v51 = vmul.f32 0.25, %v7139_v12  ;;  %v7148_v58 = vadd.f32 %v7147_v17, %v7146_v8  ;;  %v7285_v12 = vld [vmem:[%s16498_s19 + $0x50] sm:$0xff]  ;;  %v7286_v17 = vld [vmem:[%s16498_s19 + $0x58] sm:$0xff] }
0x1e55   :  { %v7149_v39 = vmul.f32 0.25, %v7148_v58  ;;  %v7150_v27 = vmul.f32 %v7140_v51, %v7140_v51  ;;  %v7287_v58 = vld [vmem:[%s16498_s19 + $0x60] sm:$0xff] }
0x1e57   :  { %v7151_v60 = vsub.f32 %v7149_v39, %v7150_v27  ;;  %v7288_v39 = vld [vmem:[%s16498_s19 + $0x68] sm:$0xff] }
0x1e58   :  { %v12750_v27 = vpack.c.bf16 %v7288_v39, %v7287_v58 }
0x1e59   :  { %v7152_v44 = vadd.f32 1e-05, %v7151_v60  ;;  %v7289_v60 = vld [vmem:[%s16498_s19 + $0x70] sm:$0xff] }
0x1e5b   :  { %13198 = vrsqrt.f32 %v7152_v44  ;;  %v7290_v44 = vld [vmem:[%s16498_s19 + $0x78] sm:$0xff] }
0x1e65   :  { %v13199_v9 = vpop.eup %13198 }
0x1e66   :  { %v7155_v14 = vmul.f32 %v13199_v9, %v7154_v25  ;;  %v12753_v25 = vpack.c.bf16 %v7290_v44, %v7289_v60  ;;  %v7291_v9 = vld [vmem:[%s16498_s19 + $0x80] sm:$0xff] }
0x1e68   :  { %v7162_v54 = vrot.slane %v7155_v14, %v13774_v56  ;;  %v7157_v11 = vmul.f32 %v7155_v14, %v7140_v51  ;;  %v12747_v51 = vpack.c.bf16 %v7286_v17, %v7285_v12  ;;  %v7292_v14 = vld [vmem:[%s16498_s19 + $0x88] sm:$0xff] }
0x1e6a   :  { %v7158_v33 = vsub.f32 %v7156_v32, %v7157_v11  ;;  %v7163_v5 = vmul.f32 %v7162_v54, %v7131_v22  ;;  %v12735_v22 = vpack.c.bf16 %v7278_v49, %v7277_v35  ;;  %v12756_v32 = vpack.c.bf16 %v7292_v14, %v7291_v9  ;;  %v7293_v54 = vld [vmem:[%s16498_s19 + $0x90] sm:$0xff]  ;;  %v7294_v11 = vld [vmem:[%s16498_s19 + $0x98] sm:$0xff] }
0x1e6c   :  { %v7167_v55 = vrot.slane %v7158_v33, %v13774_v56  ;;  %v12759_v33 = vpack.c.bf16 %v7294_v11, %v7293_v54 }
0x1e6e   :  { %v7168_v61 = vadd.f32 %v7167_v55, %v7163_v5  ;;  %v12762_v5 = vpack.c.bf16 %v7296_v16, %v7295_v59  ;;  %v7297_v55 = vld [vmem:[%s16498_s19 + $0xb0] sm:$0xff] }
0x1e6f   :  { %v15680_v4 = vpop.f32.mrb[82].mxu0  ;;  %v7491_v16 = vld [vmem:[%s13350_s17 + $0x31] sm:$0x1] }
0x1e70   :  { %v7391_v62 = vpop.f32.mrb[83].mxu0  ;;  %10270 = vmatprep.mubr.msk.f32.mxu1 %vm7196_vm15, %v7168_v61  ;;  %v12765_v61 = vpack.c.bf16 %v7298_v3, %v7297_v55  ;;  %v7493_v3 = vld [vmem:[%s13350_s17 + $0x32] sm:$0x1] }
0x1e71   :  { %7269 = vmatmul.mubr.f32.vlgmr.msra.gmra.mrb[98].mxu1 %v7172_v50 }
0x1e72   :  { %12733 = vmatpush1.bf16.msra.mxu1 %v12732_v48  ;;  %10272 = vmatprep.mubr.msk.f32.mxu1 %vm180_vm1, %v15501_v38  ;;  %v7283_v38 = vld [vmem:[%s16498_s19 + $0x40] sm:$0xff]  ;;  %v10268_v48 = vld [vmem:[%s13350_s17 + $0x2f] ss:$0 sm:$0xff] }
0x1e73   :  { %12734 = vmatprep.subr.bf16.mxu1 %v16488_v34  ;;  %v12744_v8 = vpack.c.bf16 %v7284_v63, %v7283_v38 }
0x1e76   :  { %12736 = vmatpush1.bf16.msra.mxu1 %v12735_v22 }
0x1e77   :  { %12737 = vmatprep.subr.bf16.mxu1 %v16488_v34 }
0x1e7a   :  { %12739 = vmatpush1.bf16.msra.mxu1 %v12738_v1 }
0x1e7b   :  { %12740 = vmatprep.subr.bf16.mxu1 %v16488_v34 }
0x1e7e   :  { %12742 = vmatpush1.bf16.msra.mxu1 %v12741_v18 }
0x1e7f   :  { %12743 = vmatprep.subr.bf16.mxu1 %v16488_v34 }
0x1e82   :  { %12745 = vmatpush1.bf16.msra.mxu1 %v12744_v8 }
0x1e83   :  { %12746 = vmatprep.subr.bf16.mxu1 %v16488_v34 }
0x1e86   :  { %12748 = vmatpush1.bf16.msra.mxu1 %v12747_v51 }
0x1e87   :  { %12749 = vmatprep.subr.bf16.mxu1 %v16488_v34 }
0x1e8a   :  { %12751 = vmatpush1.bf16.msra.mxu1 %v12750_v27 }
0x1e8b   :  { %12752 = vmatprep.subr.bf16.mxu1 %v16488_v34 }
0x1e8e   :  { %12754 = vmatpush1.bf16.msra.mxu1 %v12753_v25 }
0x1e8f   :  { %12755 = vmatprep.subr.bf16.mxu1 %v16488_v34 }
0x1e92   :  { %12757 = vmatpush1.bf16.msra.mxu1 %v12756_v32 }
0x1e93   :  { %12758 = vmatprep.subr.bf16.mxu1 %v16488_v34 }
0x1e96   :  { %12760 = vmatpush1.bf16.msra.mxu1 %v12759_v33 }
0x1e97   :  { %12761 = vmatprep.subr.bf16.mxu1 %v16488_v34 }
0x1e9a   :  { %12763 = vmatpush1.bf16.msra.mxu1 %v12762_v5 }
0x1e9b   :  { %12764 = vmatprep.subr.bf16.mxu1 %v16488_v34 }
0x1e9e   :  { %12766 = vmatpush1.bf16.msra.mxu1 %v12765_v61 }
0x1e9f   :  { %11675 = vmatprep.subr.mxu1 %v16483_v40 }
0x1ea1   :  { %7458 = vmatmul.mubr.f32.vlgmr.msra.gmra.mrb[100].mxu1 %v15504_v28 }
0x1ea2   :  { %11677 = vmatprep.mubr.msk.f32.mxu1 %vm13323_vm3, %v16483_v40 }
0x1f44   :  { %v7270_v35 = vpop.f32.mrb[98].mxu1 }
0x1f45   :  { %v15725_v49 = vadd.f32 %v10268_v48, %v7270_v35  ;;  %v7272_v50 = vpop.f32.mrb[99].mxu1 }
0x1f46   :  { %v7588_v50 = vld [vmem:[%s16500_s30 + $0x40] sm:$0xff] }
0x1f47   :  { %v7274_v62 = vmax.f32 %v15725_v49, 0.0 }
0x1f49   :  { %v8066_v22 = vsel %vm7132_vm14, %v7274_v62, -inf }
0x1f4a   :  { %8067 = vmax.xlane.f32.xlu0 %v8066_v22  ;;  %v7589_v22 = vld [vmem:[%s16500_s30 + $0x48] sm:$0xff] }
0x1f60   :  { %8085 = vperm.xlu0 %13097, %v8082_v45  }
0x1f74   :  { %v7459_v28 = vpop.f32.mrb[100].mxu1 }
0x1f75   :  { %v7460_v1 = vadd.f32 %v7459_v28, %v15680_v4  ;;  %v7461_v53 = vpop.f32.mrb[101].mxu1 }
0x1f76   :  { %v7590_v53 = vld [vmem:[%s16500_s30 + $0x50] sm:$0xff] }
0x1f77   :  { %v7468_v10 = vadd.f32 %v10273_v57, %v7460_v1  ;;  %v12768_v1 = vpack.c.bf16 %v7589_v22, %v7588_v50 }
0x1f79   :  { %v7469_v18 = vmax.f32 %v7468_v10, 0.0  ;;  %v7591_v10 = vld [vmem:[%s16500_s30 + $0x58] sm:$0xff] }
0x1f7b   :  { %v7470_v38 = vsel %vm6575_vm8, %v7469_v18, 0.0  ;;  %v7478_v63 = vmul.f32 %v7469_v18, %v7469_v18 }
0x1f7c   :  { %v7471_v8 = vrot.slane %v7470_v38, 4 }
0x1f7d   :  { %v7479_v12 = vsel %vm6575_vm8, %v7478_v63, 0.0  ;;  %v7593_v63 = vld [vmem:[%s16500_s30 + $0x68] sm:$0xff] }
0x1f7e   :  { %v7472_v17 = vadd.f32 %v7471_v8, %v7470_v38  ;;  %v7480_v51 = vrot.slane %v7479_v12, 4  ;;  %v7592_v38 = vld [vmem:[%s16500_s30 + $0x60] sm:$0xff] }
0x1f7f   :  { %v12774_v8 = vpack.c.bf16 %v7593_v63, %v7592_v38  ;;  %v10278_v63 = vld [vmem:[%s13350_s17 + $0x33] ss:$0 sm:$0xff] }
0x1f80   :  { %v7473_v58 = vrot.slane %v7472_v17, 2  ;;  %v7481_v39 = vadd.f32 %v7480_v51, %v7479_v12  ;;  %v7594_v12 = vld [vmem:[%s16500_s30 + $0x70] sm:$0xff] }
0x1f82   :  { %v7474_v27 = vadd.f32 %v7473_v58, %v7472_v17  ;;  %v7482_v60 = vrot.slane %v7481_v39, 2  ;;  %v7595_v17 = vld [vmem:[%s16500_s30 + $0x78] sm:$0xff]  ;;  %v7580_v58 = vld [vmem:[%s16500_s30] sm:$0xff] }
0x1f83   :  { %v12777_v51 = vpack.c.bf16 %v7595_v17, %v7594_v12 }
0x1f84   :  { %v7475_v44 = vrot.slane %v7474_v27, 1  ;;  %v7483_v25 = vadd.f32 %v7482_v60, %v7481_v39  ;;  %v7581_v39 = vld [vmem:[%s16500_s30 + $0x8] sm:$0xff]  ;;  %v7582_v60 = vld [vmem:[%s16500_s30 + $0x10] sm:$0xff] }
0x1f86   :  { %v7476_v4 = vadd.f32 %v7475_v44, %v7474_v27  ;;  %v7484_v9 = vrot.slane %v7483_v25, 1  ;;  %v12780_v27 = vpack.c.bf16 %v7581_v39, %v7580_v58  ;;  %v7583_v44 = vld [vmem:[%s16500_s30 + $0x18] sm:$0xff] }
0x1f88   :  { %v7477_v14 = vmul.f32 0.25, %v7476_v4  ;;  %v7485_v32 = vadd.f32 %v7484_v9, %v7483_v25  ;;  %v12783_v25 = vpack.c.bf16 %v7583_v44, %v7582_v60  ;;  %v7584_v4 = vld [vmem:[%s16500_s30 + $0x20] sm:$0xff]  ;;  %v7585_v9 = vld [vmem:[%s16500_s30 + $0x28] sm:$0xff] }
0x1f8a   :  { %v7486_v54 = vmul.f32 0.25, %v7485_v32  ;;  %v7487_v11 = vmul.f32 %v7477_v14, %v7477_v14 }
0x1f8c   :  { %v7488_v33 = vsub.f32 %v7486_v54, %v7487_v11 }
0x1f8e   :  { %v7489_v59 = vadd.f32 1e-05, %v7488_v33 }
0x1f90   :  { %13200 = vrsqrt.f32 %v7489_v59 }
0x1f9a   :  { %v13201_v5 = vpop.eup %13200 }
0x1f9b   :  { %v7492_v55 = vmul.f32 %v13201_v5, %v7491_v16  ;;  %v7586_v16 = vld [vmem:[%s16500_s30 + $0x30] sm:$0xff]  ;;  %v7587_v5 = vld [vmem:[%s16500_s30 + $0x38] sm:$0xff] }
0x1f9d   :  { %v7494_v61 = vmul.f32 %v7492_v55, %v7477_v14  ;;  %v7499_v48 = vrot.slane %v7492_v55, %v13774_v56  ;;  %v12786_v14 = vpack.c.bf16 %v7585_v9, %v7584_v4  ;;  %v12789_v55 = vpack.c.bf16 %v7587_v5, %v7586_v16 }
0x1f9f   :  { %v7495_v35 = vsub.f32 %v7493_v3, %v7494_v61  ;;  %v7500_v45 = vmul.f32 %v7499_v48, %v7469_v18  ;;  %v12771_v18 = vpack.c.bf16 %v7591_v10, %v7590_v53 }
0x1fa1   :  { %v7504_v28 = vrot.slane %v7495_v35, %v13774_v56 }
0x1fa3   :  { %v15743_v57 = vadd.f32 %v7504_v28, %v7500_v45  ;;  %v8083_v45 = vsel %vm7196_vm15, 0, %v13321_v24 }
0x1fa5   :  { %11633 = vmatpush3.msk.msra.mxu0 %vm6295_vm5, %v15743_v57 }
0x1fa6   :  { %11635 = vmatmul.mubr.msk.f32.vlgmr.msra.gmra.mrb[84].mxu0 %vm6291_vm6, %v15416_v29  ;;  %12767 = vmatprep.subr.bf16.mxu0 %v16488_v34 }
0x1fa7   :  { %12769 = vmatpush3.bf16.msra.mxu0 %v12768_v1  ;;  %11653 = vmatprep.mubr.msk.f32.mxu0 %vm13323_vm3, %v16483_v40  ;;  %v8090_v1 = vrot.slane %v8083_v45, %v13774_v56  ;;  %v7861_v45 = vld [vmem:[%s16501_s23 + $0x18] sm:$0xff] }
0x1fa8   :  { %12770 = vmatprep.subr.bf16.mxu0 %v16488_v34 }
0x1fab   :  { %12772 = vmatpush3.bf16.msra.mxu0 %v12771_v18 }
0x1fac   :  { %12773 = vmatprep.subr.bf16.mxu0 %v16488_v34 }
0x1faf   :  { %12775 = vmatpush3.bf16.msra.mxu0 %v12774_v8 }
0x1fb0   :  { %12776 = vmatprep.subr.bf16.mxu0 %v16488_v34 }
0x1fb3   :  { %12778 = vmatpush3.bf16.msra.mxu0 %v12777_v51 }
0x1fb4   :  { %12779 = vmatprep.subr.bf16.mxu0 %v16488_v34 }
0x1fb6   :  { %11654 = vmatmul.mubr.msk.f32.vlgmr.msra.gmra.mrb[86].mxu0 %vm180_vm1, %v15743_v57 }
0x1fb7   :  { %12781 = vmatpush3.bf16.msra.mxu0 %v12780_v27  ;;  %11672 = vmatprep.mubr.msk.f32.mxu0 %vm13323_vm3, %v16483_v40 }
0x1fb8   :  { %12782 = vmatprep.subr.bf16.mxu0 %v16488_v34 }
0x1fbb   :  { %12784 = vmatpush3.bf16.msra.mxu0 %v12783_v25 }
0x1fbc   :  { %12785 = vmatprep.subr.bf16.mxu0 %v16488_v34 }
0x1fbf   :  { %12787 = vmatpush3.bf16.msra.mxu0 %v12786_v14 }
0x1fc0   :  { %12788 = vmatprep.subr.bf16.mxu0 %v16488_v34 }
0x1fc3   :  { %12790 = vmatpush3.bf16.msra.mxu0 %v12789_v55 }
0x1fc4   :  { %12803 = vmatprep.subr.bf16.mxu0 %v16488_v34 }
0x1fd7   :  { %v8068_v32 = vpop.xlane.xlu0 %8067 }
0x1fd8   :  { %v8069_v54 = vsub.f32 %v7274_v62, %v8068_v32 }
0x1fda   :  { %v8070_v11 = vmul.f32 1.442695, %v8069_v54 }
0x1fdc   :  { %13202 = vpow2.f32 %v8070_v11 }
0x1fdf   :  { %v8086_v28 = vpop.permute.xlu0 %8085 }
0x1fe0   :  { %vm8091_vm0 = vcmp.eq.s32.totalorder %v8086_v28, %v8090_v1 }
0x1fe6   :  { %v13203_v33 = vpop.eup %13202 }
0x1fe7   :  { %v8072_v59 = vsel %vm7132_vm14, %v13203_v33, 0.0 }
0x1fe8   :  { %8073 = vadd.xlane.f32.xlu1 %v8072_v59 }
0x2075   :  { %v8074_v3 = vpop.xlane.xlu1 %8073 }
0x2076   :  { %13204 = vrcp.f32 %v8074_v3 }
0x2079   :  { %v7575_v61 = vpop.f32.mrb[84].mxu0 }
0x207a   :  { %v7579_v48 = vmul.f32 %v15498_v0, %v7575_v61  ;;  %v11636_v35 = vpop.f32.mrb[85].mxu0 }
0x207b   :  { %v7858_v35 = vld [vmem:[%s16501_s23] sm:$0xff] }
0x207c   :  { %11673 = vmatmul.mubr.msk.f32.vlgmr.msra.gmra.mrb[88].mxu0 %vm180_vm1, %v7579_v48  ;;  %v7769_v48 = vld [vmem:[%s13350_s17 + $0x34] sm:$0x1] }
0x207d   :  { %11715 = vmatprep.mubr.msk.f32.mxu0 %vm13323_vm3, %v16483_v40 }
0x2080   :  { %v13205_v49 = vpop.eup %13204 }
0x2081   :  { %v15785_v62 = vmul.f32 %v13205_v49, %v13203_v33  ;;  %v7859_v49 = vld [vmem:[%s16501_s23 + $0x8] sm:$0xff] }
0x2083   :  { %8078 = vrot.lane.b32.xlu0 %v15785_v62, %s13325_s6 }
0x2089   :  { %v7664_v50 = vpop.f32.mrb[86].mxu0 }
0x208a   :  { %v11655_v22 = vpop.f32.mrb[87].mxu0 }
0x208b   :  { %v12804_v22 = vpack.c.bf16 %v7859_v49, %v7858_v35 }
0x208d   :  { %12805 = vmatpush3.bf16.msra.mxu0 %v12804_v22  ;;  %v8705_v22 = vld [vmem:[%s16502_s26 + $0xc0] sm:$0xff] }
0x208e   :  { %12806 = vmatprep.subr.bf16.mxu0 %v16488_v34 }
0x20f5   :  { %v8079_v53 = vpop.permute.xlu0 %8078 }
0x20f6   :  { %v8081_v10 = vsel %vm7196_vm15, %v15785_v62, %v8079_v53 }
0x20f7   :  { %v15793_v18 = vsel %vm8091_vm0, %v8081_v10, 0.0  ;;  %v7771_v10 = vld [vmem:[%s13350_s17 + $0x35] sm:$0x1]  ;;  %vm9953_vm0 = vcmask 8192  }
0x20f8   :  { %8093 = vxpose.xlu1.b32.start.end [1/1] (short) (narrow) %v15793_v18, 24 }
0x214f   :  { %v7737_v38 = vpop.f32.mrb[88].mxu0 }
0x2150   :  { %v7738_v8 = vadd.f32 %v7737_v38, %v7664_v50  ;;  %v11674_v12 = vpop.f32.mrb[89].mxu0  ;;  %v7860_v50 = vld [vmem:[%s16501_s23 + $0x10] sm:$0xff]  ;;  %v7862_v38 = vld [vmem:[%s16501_s23 + $0x20] sm:$0xff] }
0x2151   :  { %v12807_v53 = vpack.c.bf16 %v7861_v45, %v7860_v50  ;;  %v8706_v45 = vld [vmem:[%s16502_s26 + $0xc8] sm:$0xff] }
0x2152   :  { %v7746_v17 = vadd.f32 %v10278_v63, %v7738_v8  ;;  %v7863_v63 = vld [vmem:[%s16501_s23 + $0x28] sm:$0xff] }
0x2153   :  { %12808 = vmatpush3.bf16.msra.mxu0 %v12807_v53  ;;  %v8708_v53 = vld [vmem:[%s16502_s26 + $0xd8] sm:$0xff] }
0x2154   :  { %v7747_v51 = vmax.f32 %v7746_v17, 0.0  ;;  %12809 = vmatprep.subr.bf16.mxu0 %v16488_v34 }
0x2156   :  { %v7748_v24 = vsel %vm6575_vm8, %v7747_v51, 0.0  ;;  %v7756_v58 = vmul.f32 %v7747_v51, %v7747_v51 }
0x2157   :  { %v7749_v39 = vrot.slane %v7748_v24, 4 }
0x2158   :  { %v7757_v27 = vsel %vm6575_vm8, %v7756_v58, 0.0  ;;  %v7866_v58 = vld [vmem:[%s16501_s23 + $0x40] sm:$0xff] }
0x2159   :  { %v7750_v60 = vadd.f32 %v7749_v39, %v7748_v24  ;;  %v7758_v44 = vrot.slane %v7757_v27, 4  ;;  %v12810_v24 = vpack.c.bf16 %v7863_v63, %v7862_v38  ;;  %v7867_v39 = vld [vmem:[%s16501_s23 + $0x48] sm:$0xff]  ;;  %v8709_v38 = vld [vmem:[%s16502_s26 + $0xe0] sm:$0xff] }
0x215a   :  { %v8710_v63 = vld [vmem:[%s16502_s26 + $0xe8] sm:$0xff] }
0x215b   :  { %v7751_v25 = vrot.slane %v7750_v60, 2  ;;  %v7759_v4 = vadd.f32 %v7758_v44, %v7757_v27  ;;  %v7864_v44 = vld [vmem:[%s16501_s23 + $0x30] sm:$0xff]  ;;  %12811 = vmatpush3.bf16.msra.mxu0 %v12810_v24 }
0x215c   :  { %12812 = vmatprep.subr.bf16.mxu0 %v16488_v34 }
0x215d   :  { %v7752_v9 = vadd.f32 %v7751_v25, %v7750_v60  ;;  %v7760_v14 = vrot.slane %v7759_v4, 2  ;;  %v7865_v25 = vld [vmem:[%s16501_s23 + $0x38] sm:$0xff] }
0x215f   :  { %v7753_v32 = vrot.slane %v7752_v9, 1  ;;  %v7761_v54 = vadd.f32 %v7760_v14, %v7759_v4  ;;  %v7868_v14 = vld [vmem:[%s16501_s23 + $0x50] sm:$0xff] }
0x2161   :  { %v7754_v11 = vadd.f32 %v7753_v32, %v7752_v9  ;;  %v7762_v33 = vrot.slane %v7761_v54, 1  ;;  %v12792_v9 = vpack.c.bf16 %v7867_v39, %v7866_v58  ;;  %v7869_v32 = vld [vmem:[%s16501_s23 + $0x58] sm:$0xff]  ;;  %v8713_v58 = vld [vmem:[%s16502_s26 + $0x100] sm:$0xff]  ;;  %v8714_v39 = vld [vmem:[%s16502_s26 + $0x108] sm:$0xff] }
0x2163   :  { %v7755_v59 = vmul.f32 0.25, %v7754_v11  ;;  %v7763_v16 = vadd.f32 %v7762_v33, %v7761_v54  ;;  %v12813_v54 = vpack.c.bf16 %v7865_v25, %v7864_v44  ;;  %v7870_v11 = vld [vmem:[%s16501_s23 + $0x60] sm:$0xff]  ;;  %v7871_v33 = vld [vmem:[%s16501_s23 + $0x68] sm:$0xff]  ;;  %v8716_v44 = vld [vmem:[%s16502_s26 + $0x118] sm:$0xff] }
0x2165   :  { %v7764_v5 = vmul.f32 0.25, %v7763_v16  ;;  %v7765_v55 = vmul.f32 %v7755_v59, %v7755_v59  ;;  %12814 = vmatpush3.bf16.msra.mxu0 %v12813_v54  ;;  %v7872_v16 = vld [vmem:[%s16501_s23 + $0x70] sm:$0xff]  ;;  %v8720_v54 = vld [vmem:[%s16502_s26 + $0x138] sm:$0xff] }
0x2166   :  { %11718 = vmatprep.subr.mxu0 %v16483_v40 }
0x2167   :  { %v7766_v3 = vsub.f32 %v7764_v5, %v7765_v55  ;;  %v7873_v5 = vld [vmem:[%s16501_s23 + $0x78] sm:$0xff] }
0x2168   :  { %v12801_v55 = vpack.c.bf16 %v7873_v5, %v7872_v16  ;;  %v8723_v16 = vld [vmem:[%s16502_s26 + $0x150] sm:$0xff]  ;;  %v8724_v5 = vld [vmem:[%s16502_s26 + $0x158] sm:$0xff] }
0x2169   :  { %v7767_v61 = vadd.f32 1e-05, %v7766_v3 }
0x216b   :  { %13206 = vrsqrt.f32 %v7767_v61 }
0x2175   :  { %v13207_v28 = vpop.eup %13206 }
0x2176   :  { %v7770_v1 = vmul.f32 %v13207_v28, %v7769_v48  ;;  %v8707_v28 = vld [vmem:[%s16502_s26 + $0xd0] sm:$0xff] }
0x2178   :  { %v7772_v8 = vmul.f32 %v7770_v1, %v7755_v59  ;;  %v7777_v12 = vrot.slane %v7770_v1, %v13774_v56  ;;  %v12798_v59 = vpack.c.bf16 %v7871_v33, %v7870_v11  ;;  %v15836_v35 = vpop.trf.xlu1  ;;  %v12820_v1 = vpack.c.bf16 %v8706_v45, %v8705_v22  ;;  %v8721_v11 = vld [vmem:[%s16502_s26 + $0x140] sm:$0xff]  ;;  %v8722_v33 = vld [vmem:[%s16502_s26 + $0x148] sm:$0xff]  ;;  %v10283_v22 = vld [vmem:[%s13350_s17 + $0x36] ss:$0 sm:$0xff] }
0x217a   :  { %v7773_v17 = vsub.f32 %v7771_v10, %v7772_v8  ;;  %v7778_v27 = vmul.f32 %v7777_v12, %v7747_v51  ;;  %v12795_v51 = vpack.c.bf16 %v7869_v32, %v7868_v14  ;;  %v12823_v10 = vpack.c.bf16 %v8708_v53, %v8707_v28  ;;  %v8711_v12 = vld [vmem:[%s16502_s26 + $0xf0] sm:$0xff] }
0x217b   :  { %v12826_v8 = vpack.c.bf16 %v8710_v63, %v8709_v38  ;;  %v8719_v32 = vld [vmem:[%s16502_s26 + $0x130] sm:$0xff] }
0x217c   :  { %v7782_v60 = vrot.slane %v7773_v17, %v13774_v56  ;;  %v15844_v49 = vpop.trf.xlu1  ;;  %v8712_v17 = vld [vmem:[%s16502_s26 + $0xf8] sm:$0xff] }
0x217d   :  { %v12829_v24 = vpack.c.bf16 %v8712_v17, %v8711_v12 }
0x217e   :  { %v7783_v4 = vadd.f32 %v7782_v60, %v7778_v27  ;;  %v12832_v27 = vpack.c.bf16 %v8714_v39, %v8713_v58  ;;  %v8715_v60 = vld [vmem:[%s16502_s26 + $0x110] sm:$0xff] }
0x217f   :  { %v12835_v25 = vpack.c.bf16 %v8716_v44, %v8715_v60 }
0x2180   :  { %11676 = vmatpush3.msk.msra.mxu1 %vm6295_vm5, %v7783_v4  ;;  %8062 = vrot.lane.b32.xlu0 %v7783_v4, %s13317_s0 }
0x2181   :  { %11678 = vmatmul.mubr.msk.f32.vlgmr.msra.gmra.mrb[102].mxu1 %vm6291_vm6, %v15416_v29  ;;  %12791 = vmatprep.subr.bf16.mxu1 %v16488_v34 }
0x2182   :  { %12793 = vmatpush3.bf16.msra.mxu1 %v12792_v9  ;;  %11696 = vmatprep.mubr.msk.f32.mxu1 %vm13323_vm3, %v16483_v40  ;;  %v8718_v9 = vld [vmem:[%s16502_s26 + $0x128] sm:$0xff] }
0x2183   :  { %12794 = vmatprep.subr.bf16.mxu1 %v16488_v34 }
0x2186   :  { %12796 = vmatpush3.bf16.msra.mxu1 %v12795_v51  ;;  %v12841_v51 = vpack.c.bf16 %v8720_v54, %v8719_v32 }
0x2187   :  { %12797 = vmatprep.subr.bf16.mxu1 %v16488_v34 }
0x218a   :  { %12799 = vmatpush3.bf16.msra.mxu1 %v12798_v59  ;;  %v12844_v59 = vpack.c.bf16 %v8722_v33, %v8721_v11 }
0x218b   :  { %12800 = vmatprep.subr.bf16.mxu1 %v16488_v34 }
0x218e   :  { %12802 = vmatpush3.bf16.msra.mxu1 %v12801_v55  ;;  %v12847_v55 = vpack.c.bf16 %v8724_v5, %v8723_v16 }
0x2191   :  { %11697 = vmatmul.mubr.msk.f32.vlgmr.msra.gmra.mrb[104].mxu1 %vm180_vm1, %v7783_v4  ;;  %v8717_v4 = vld [vmem:[%s16502_s26 + $0x120] sm:$0xff] }
0x2192   :  { %8204 = vmatprep.mubr.f32.mxu1 %v16483_v40  ;;  %v12838_v14 = vpack.c.bf16 %v8718_v9, %v8717_v4 }
0x2254   :  { %v7853_v3 = vpop.f32.mrb[102].mxu1 }
0x2255   :  { %v7857_v61 = vmul.f32 %v15498_v0, %v7853_v3  ;;  %v11679_v48 = vpop.f32.mrb[103].mxu1  ;;  %v8725_v3 = vld [vmem:[%s16502_s26 + $0x160] sm:$0xff] }
0x2257   :  { %11716 = vmatmul.mubr.msk.f32.vlgmr.msra.gmra.mrb[90].mxu0 %vm180_vm1, %v7857_v61  ;;  %v8726_v61 = vld [vmem:[%s16502_s26 + $0x168] sm:$0xff] }
0x2258   :  { %11719 = vmatpush3.msk.msra.mxu0 %vm6295_vm5, %v15416_v29  ;;  %11720 = vmatprep.mubr.msk.f32.mxu0 %vm13323_vm3, %v16483_v40  ;;  %v15857_v29 = vpop.trf.xlu1  ;;  %v12850_v48 = vpack.c.bf16 %v8726_v61, %v8725_v3 }
0x2259   :  { %11740 = vmatprep.subr.mxu0 %v16483_v40 }
0x225b   :  { %11721 = vmatmul.mubr.msk.f32.vlgmr.msra.gmra.mrb[92].mxu0 %vm6291_vm6, %v15836_v35 }
0x225c   :  { %11741 = vmatpush3.msk.msra.mxu0 %vm6295_vm5, %v15793_v18  ;;  %11723 = vmatprep.mubr.msk.f32.mxu0 %vm13323_vm3, %v16483_v40 }
0x225d   :  { %12819 = vmatprep.subr.bf16.mxu0 %v16488_v34 }
0x225f   :  { %11724 = vmatmul.mubr.msk.f32.gmra.mrb[94].mxu0 %vm6291_vm6, %v15844_v49 }
0x2260   :  { %11726 = vmatprep.mubr.msk.f32.mxu0 %vm13323_vm3, %v16483_v40 }
0x2263   :  { %11727 = vmatmul.mubr.msk.f32.gmra.mrb[96].mxu0 %vm6291_vm6, %v15857_v29 }
0x2264   :  { %v15861_v0 = vpop.f32.mrb[104].mxu1  ;;  %11742 = vmatprep.mubr.msk.f32.mxu0 %vm13323_vm3, %v16483_v40 }
0x2265   :  { %v11698_v50 = vpop.f32.mrb[105].mxu1 }
0x2267   :  { %11743 = vmatmul.mubr.msk.f32.vlgmr.msra.gmra.mrb[98].mxu0 %vm6291_vm6, %v15836_v35 }
0x2268   :  { %11745 = vmatprep.mubr.msk.f32.mxu0 %vm13323_vm3, %v16483_v40  ;;  %12821 = vmatpush1.bf16.msra.mxu0 %v12820_v1 }
0x2269   :  { %12822 = vmatprep.subr.bf16.mxu0 %v16488_v34 }
0x226b   :  { %11746 = vmatmul.mubr.msk.f32.gmra.mrb[100].mxu0 %vm6291_vm6, %v15844_v49 }
0x226c   :  { %11748 = vmatprep.mubr.msk.f32.mxu0 %vm13323_vm3, %v16483_v40  ;;  %12824 = vmatpush1.bf16.msra.mxu0 %v12823_v10 }
0x226d   :  { %12825 = vmatprep.subr.bf16.mxu0 %v16488_v34 }
0x226f   :  { %11749 = vmatmul.mubr.msk.f32.gmra.mrb[102].mxu0 %vm6291_vm6, %v15857_v29 }
0x2270   :  { %12827 = vmatpush1.bf16.msra.mxu0 %v12826_v8 }
0x2271   :  { %12828 = vmatprep.subr.bf16.mxu0 %v16488_v34 }
0x2274   :  { %12830 = vmatpush1.bf16.msra.mxu0 %v12829_v24 }
0x2275   :  { %12831 = vmatprep.subr.bf16.mxu0 %v16488_v34 }
0x2278   :  { %12833 = vmatpush1.bf16.msra.mxu0 %v12832_v27 }
0x2279   :  { %12834 = vmatprep.subr.bf16.mxu0 %v16488_v34 }
0x227c   :  { %12836 = vmatpush1.bf16.msra.mxu0 %v12835_v25 }
0x227d   :  { %12837 = vmatprep.subr.bf16.mxu0 %v16488_v34 }
0x2280   :  { %12839 = vmatpush1.bf16.msra.mxu0 %v12838_v14 }
0x2281   :  { %12840 = vmatprep.subr.bf16.mxu0 %v16488_v34 }
0x2284   :  { %12842 = vmatpush1.bf16.msra.mxu0 %v12841_v51 }
0x2285   :  { %12843 = vmatprep.subr.bf16.mxu0 %v16488_v34 }
0x2288   :  { %12845 = vmatpush1.bf16.msra.mxu0 %v12844_v59 }
0x2289   :  { %12846 = vmatprep.subr.bf16.mxu0 %v16488_v34 }
0x228c   :  { %12848 = vmatpush1.bf16.msra.mxu0 %v12847_v55 }
0x228d   :  { %12849 = vmatprep.subr.bf16.mxu0 %v16488_v34 }
0x2290   :  { %12851 = vmatpush1.bf16.msra.mxu0 %v12850_v48 }
0x2291   :  { %12852 = vmatprep.subr.bf16.mxu0 %v16488_v34 }
0x232a   :  { %v8015_v50 = vpop.f32.mrb[90].mxu0 }
0x232b   :  { %v8016_v45 = vadd.f32 %v8015_v50, %v15861_v0  ;;  %v11717_v28 = vpop.f32.mrb[91].mxu0 }
0x232c   :  { %v8047_v28 = vld [vmem:[%s13350_s17 + $0x37] sm:$0x1] }
0x232d   :  { %v8024_v1 = vadd.f32 %v10283_v22, %v8016_v45 }
0x232e   :  { %v8291_v53 = vpop.f32.mrb[92].mxu0 }
0x232f   :  { %v8025_v10 = vmax.f32 %v8024_v1, 0.0  ;;  %v11722_v38 = vpop.f32.mrb[93].mxu0 }
0x2331   :  { %v8026_v63 = vsel %vm6575_vm8, %v8025_v10, 0.0  ;;  %v8034_v8 = vmul.f32 %v8025_v10, %v8025_v10 }
0x2332   :  { %v8027_v12 = vrot.slane %v8026_v63, 4  ;;  %v8296_v17 = vpop.f32.mrb[94].mxu0 }
0x2333   :  { %v8035_v24 = vsel %vm6575_vm8, %v8034_v8, 0.0  ;;  %v11725_v58 = vpop.f32.mrb[95].mxu0 }
0x2334   :  { %v8028_v39 = vadd.f32 %v8027_v12, %v8026_v63  ;;  %v8036_v27 = vrot.slane %v8035_v24, 4  ;;  %v8049_v63 = vld [vmem:[%s13350_s17 + $0x38] sm:$0x1] }
0x2336   :  { %v8029_v60 = vrot.slane %v8028_v39, 2  ;;  %v8037_v44 = vadd.f32 %v8036_v27, %v8035_v24  ;;  %v8301_v25 = vpop.f32.mrb[96].mxu0  ;;  %v8063_v27 = vpop.permute.xlu0 %8062 }
0x2337   :  { %v11728_v4 = vpop.f32.mrb[97].mxu0 }
0x2338   :  { %v8030_v0 = vadd.f32 %v8029_v60, %v8028_v39  ;;  %v8038_v9 = vrot.slane %v8037_v44, 2 }
0x233a   :  { %v8031_v14 = vrot.slane %v8030_v0, 1  ;;  %v8039_v32 = vadd.f32 %v8038_v9, %v8037_v44  ;;  %v15912_v54 = vpop.f32.mrb[98].mxu0  ;;  %v8065_v44 = vsel %vm180_vm1, %v15743_v57, %v8063_v27  ;;  %v8727_v57 = vld [vmem:[%s16502_s26 + $0x170] sm:$0xff] }
0x233b   :  { %v11744_v51 = vpop.f32.mrb[99].mxu0 }
0x233c   :  { %v8032_v11 = vadd.f32 %v8031_v14, %v8030_v0  ;;  %v8040_v33 = vrot.slane %v8039_v32, 1 }
0x233e   :  { %v8033_v59 = vmul.f32 0.25, %v8032_v11  ;;  %v8041_v16 = vadd.f32 %v8040_v33, %v8039_v32  ;;  %v15914_v5 = vpop.f32.mrb[100].mxu0 }
0x233f   :  { %v11747_v55 = vpop.f32.mrb[101].mxu0 }
0x2340   :  { %v8042_v3 = vmul.f32 0.25, %v8041_v16  ;;  %v8043_v61 = vmul.f32 %v8033_v59, %v8033_v59 }
0x2342   :  { %v8044_v48 = vsub.f32 %v8042_v3, %v8043_v61  ;;  %v15916_v50 = vpop.f32.mrb[102].mxu0  ;;  %v8681_v3 = vld [vmem:[%s16502_s26] sm:$0xff]  ;;  %v8682_v61 = vld [vmem:[%s16502_s26 + $0x8] sm:$0xff] }
0x2343   :  { %v11750_v22 = vpop.f32.mrb[103].mxu0 }
0x2344   :  { %v8045_v45 = vadd.f32 1e-05, %v8044_v48  ;;  %v8683_v48 = vld [vmem:[%s16502_s26 + $0x10] sm:$0xff]  ;;  %v12856_v22 = vpack.c.bf16 %v8682_v61, %v8681_v3  ;;  %v8704_v3 = vld [vmem:[%s16502_s26 + $0xb8] sm:$0xff] }
0x2346   :  { %13208 = vrsqrt.f32 %v8045_v45  ;;  %v8684_v45 = vld [vmem:[%s16502_s26 + $0x18] sm:$0xff] }
0x2350   :  { %v13209_v1 = vpop.eup %13208 }
0x2351   :  { %v8048_v38 = vmul.f32 %v13209_v1, %v8047_v28  ;;  %v12859_v28 = vpack.c.bf16 %v8684_v45, %v8683_v48  ;;  %v8685_v1 = vld [vmem:[%s16502_s26 + $0x20] sm:$0xff] }
0x2353   :  { %v8055_v8 = vrot.slane %v8048_v38, %v13774_v56  ;;  %v8050_v12 = vmul.f32 %v8048_v38, %v8033_v59  ;;  %v8686_v38 = vld [vmem:[%s16502_s26 + $0x28] sm:$0xff] }
0x2355   :  { %v8051_v24 = vsub.f32 %v8049_v63, %v8050_v12  ;;  %v8056_v58 = vmul.f32 %v8055_v8, %v8025_v10  ;;  %v12862_v63 = vpack.c.bf16 %v8686_v38, %v8685_v1  ;;  %v8687_v8 = vld [vmem:[%s16502_s26 + $0x30] sm:$0xff]  ;;  %v8688_v12 = vld [vmem:[%s16502_s26 + $0x38] sm:$0xff] }
0x2357   :  { %v8060_v39 = vrot.slane %v8051_v24, %v13774_v56  ;;  %v12865_v24 = vpack.c.bf16 %v8688_v12, %v8687_v8 }
0x2359   :  { %v8061_v60 = vadd.f32 %v8060_v39, %v8056_v58  ;;  %v8689_v58 = vld [vmem:[%s16502_s26 + $0x40] sm:$0xff]  ;;  %v8690_v39 = vld [vmem:[%s16502_s26 + $0x48] sm:$0xff] }
0x235a   :  { %v12868_v27 = vpack.c.bf16 %v8690_v39, %v8689_v58 }
0x235b   :  { %10284 = vmatprep.subr.msk.mxu1 %vm6295_vm5, %v8061_v60  ;;  %v8691_v60 = vld [vmem:[%s16502_s26 + $0x50] sm:$0xff] }
0x235c   :  { %10285 = vmatpush1.msk.msra.mxu1 %vm6295_vm5, %v8065_v44  ;;  %v8692_v44 = vld [vmem:[%s16502_s26 + $0x58] sm:$0xff] }
0x235d   :  { %10286 = vmatmul.mubr.msk.f32.vlgmr.msra.gmra.mrb[106].mxu1 %vm6291_vm6, %v15836_v35  ;;  %11729 = vmatprep.subr.mxu1 %v16483_v40 }
0x235e   :  { %11730 = vmatpush3.msk.msra.mxu1 %vm6295_vm5, %v15793_v18  ;;  %8210 = vmatprep.mubr.f32.mxu1 %v16483_v40  ;;  %v8728_v18 = vld [vmem:[%s16502_s26 + $0x178] sm:$0xff] }
0x235f   :  { %v12853_v35 = vpack.c.bf16 %v8728_v18, %v8727_v57  ;;  %v12871_v57 = vpack.c.bf16 %v8692_v44, %v8691_v60  ;;  %v8693_v18 = vld [vmem:[%s16502_s26 + $0x60] sm:$0xff] }
0x2361   :  { %10287 = vmatmul.mubr.msk.f32.gmra.mrb[108].mxu1 %vm6291_vm6, %v15844_v49  ;;  %12854 = vmatpush1.bf16.msra.mxu0 %v12853_v35  ;;  %v8694_v35 = vld [vmem:[%s16502_s26 + $0x68] sm:$0xff] }
0x2362   :  { %8216 = vmatprep.mubr.f32.mxu1 %v16483_v40  ;;  %12891 = vmatprep.subr.bf16.mxu0 %v16488_v34 }
0x2365   :  { %10288 = vmatmul.mubr.msk.f32.gmra.mrb[110].mxu1 %vm6291_vm6, %v15857_v29 }
0x2366   :  { %11731 = vmatprep.mubr.msk.f32.mxu1 %vm13323_vm3, %v16483_v40 }
0x2369   :  { %11732 = vmatmul.mubr.msk.f32.vlgmr.msra.gmra.mrb[112].mxu1 %vm6291_vm6, %v8291_v53 }
0x236a   :  { %11734 = vmatprep.mubr.msk.f32.mxu1 %vm13323_vm3, %v16483_v40 }
0x236d   :  { %11735 = vmatmul.mubr.msk.f32.gmra.mrb[114].mxu1 %vm6291_vm6, %v8296_v17 }
0x236e   :  { %11737 = vmatprep.mubr.msk.f32.mxu1 %vm13323_vm3, %v16483_v40 }
0x2371   :  { %11738 = vmatmul.mubr.msk.f32.gmra.mrb[116].mxu1 %vm6291_vm6, %v8301_v25  ;;  %vm8420_vm6 = vcmask 140288  }
0x2372   :  { %8656 = vmatprep.mubr.f32.mxu1 %v16483_v40 }
0x2430   :  { %v8206_v49 = vpop.f32.mrb[106].mxu1 }
0x2431   :  { %v8208_v29 = vpop.f32.mrb[107].mxu1 }
0x2432   :  { %10306 = vmatprep.mubr.msk.f32.mxu0 %vm180_vm1, %v8208_v29 }
0x2433   :  { %8802 = vmatmul.mubr.f32.vlgmr.msra.gmra.mrb[104].mxu0 %v8206_v49 }
0x2434   :  { %v8212_v53 = vpop.f32.mrb[108].mxu1 }
0x2435   :  { %v12817_v10 = vpack.c.bf16 %v8212_v53, %v8206_v49  ;;  %v8214_v17 = vpop.f32.mrb[109].mxu1  ;;  %v12874_v49 = vpack.c.bf16 %v8694_v35, %v8693_v18 }
0x2436   :  { %v12815_v4 = vpack.c.bf16 %v8214_v17, %v8208_v29  ;;  %10307 = vmatprep.mubr.msk.f32.mxu0 %vm180_vm1, %v8214_v17  ;;  %v8695_v29 = vld [vmem:[%s16502_s26 + $0x70] sm:$0xff]  ;;  %v8697_v17 = vld [vmem:[%s16502_s26 + $0x80] sm:$0xff] }
0x2437   :  { %8807 = vmatmul.mubr.f32.gmra.mrb[106].mxu0 %v8212_v53  ;;  %v8696_v53 = vld [vmem:[%s16502_s26 + $0x78] sm:$0xff] }
0x2438   :  { %v8218_v25 = vpop.f32.mrb[110].mxu1  ;;  %12816 = vmatprep.subr.bf16.mxu1 %v12815_v4  ;;  %v8698_v4 = vld [vmem:[%s16502_s26 + $0x88] sm:$0xff] }
0x2439   :  { %v8220_v0 = vpop.f32.mrb[111].mxu1  ;;  %12818 = vmatpush1.bf16.msra.mxu1 %v12817_v10  ;;  %v12877_v10 = vpack.c.bf16 %v8696_v53, %v8695_v29 }
0x243a   :  { %10301 = vmatprep.subr.msk.mxu1 %vm5042_vm13, %v8220_v0  ;;  %10308 = vmatprep.mubr.msk.f32.mxu0 %vm180_vm1, %v8220_v0  ;;  %v8699_v0 = vld [vmem:[%s16502_s26 + $0x90] sm:$0xff] }
0x243b   :  { %8812 = vmatmul.mubr.f32.gmra.mrb[108].mxu0 %v8218_v25 }
0x243c   :  { %v15954_v9 = vpop.f32.mrb[112].mxu1  ;;  %11757 = vmatprep.mubr.msk.f32.mxu0 %vm13323_vm3, %v16483_v40 }
0x243d   :  { %10302 = vmatpush1.msk.msra.mxu1 %vm5042_vm13, %v8218_v25  ;;  %v11733_v14 = vpop.f32.mrb[113].mxu1  ;;  %v8562_v32 = vsel %vm8413_vm2, %v15954_v9, 0.0  ;;  %v12880_v25 = vpack.c.bf16 %v8698_v4, %v8697_v17 }
0x243e   :  { %10303 = vmatmul.mubr.msk.f32.vlgmr.msra.gmra.mrb[118].mxu1 %vm8413_vm2, %v15954_v9  ;;  %8563 = vadd.xlane.f32.xlu0 %v8562_v32  ;;  %v8700_v14 = vld [vmem:[%s16502_s26 + $0x98] sm:$0xff] }
0x243f   :  { %8662 = vmatprep.mubr.f32.mxu1 %v16483_v40  ;;  %12855 = vmatprep.subr.bf16.mxu1 %v16488_v34  ;;  %v12883_v32 = vpack.c.bf16 %v8700_v14, %v8699_v0 }
0x2440   :  { %v15965_v51 = vpop.f32.mrb[114].mxu1  ;;  %12857 = vmatpush1.bf16.msra.mxu1 %v12856_v22 }
0x2441   :  { %v11736_v11 = vpop.f32.mrb[115].mxu1  ;;  %v8565_v33 = vsel %vm8413_vm2, %v15965_v51, 0.0  ;;  %12858 = vmatprep.subr.bf16.mxu1 %v16488_v34 }
0x2442   :  { %10304 = vmatmul.mubr.msk.f32.gmra.mrb[120].mxu1 %vm8413_vm2, %v15965_v51  ;;  %8566 = vadd.xlane.f32.xlu0 %v8565_v33  ;;  %v8701_v11 = vld [vmem:[%s16502_s26 + $0xa0] sm:$0xff]  ;;  %v8702_v33 = vld [vmem:[%s16502_s26 + $0xa8] sm:$0xff] }
0x2443   :  { %8668 = vmatprep.mubr.f32.mxu1 %v16483_v40 }
0x2444   :  { %v15972_v59 = vpop.f32.mrb[116].mxu1  ;;  %12860 = vmatpush1.bf16.msra.mxu1 %v12859_v28 }
0x2445   :  { %v11739_v16 = vpop.f32.mrb[117].mxu1  ;;  %v8568_v55 = vsel %vm8420_vm6, %v15972_v59, 0.0  ;;  %12861 = vmatprep.subr.bf16.mxu1 %v16488_v34 }
0x2446   :  { %10305 = vmatmul.mubr.msk.f32.gmra.mrb[122].mxu1 %vm8413_vm2, %v15972_v59  ;;  %8569 = vadd.xlane.f32.xlu0 %v8568_v55  ;;  %v12886_v16 = vpack.c.bf16 %v8702_v33, %v8701_v11  ;;  %v8703_v55 = vld [vmem:[%s16502_s26 + $0xb0] sm:$0xff]  ;;  %v9063_v11 = vld [vmem:[%s16503_s28 + $0x48] sm:$0xff] }
0x2447   :  { %v12889_v61 = vpack.c.bf16 %v8704_v3, %v8703_v55  ;;  %v9065_v55 = vld [vmem:[%s16503_s28 + $0x58] sm:$0xff] }
0x2448   :  { %12863 = vmatpush1.bf16.msra.mxu1 %v12862_v63 }
0x2449   :  { %12864 = vmatprep.subr.bf16.mxu1 %v16488_v34 }
0x244c   :  { %12866 = vmatpush1.bf16.msra.mxu1 %v12865_v24 }
0x244d   :  { %12867 = vmatprep.subr.bf16.mxu1 %v16488_v34 }
0x2450   :  { %12869 = vmatpush1.bf16.msra.mxu1 %v12868_v27 }
0x2451   :  { %12870 = vmatprep.subr.bf16.mxu1 %v16488_v34 }
0x2454   :  { %12872 = vmatpush1.bf16.msra.mxu1 %v12871_v57 }
0x2455   :  { %12873 = vmatprep.subr.bf16.mxu1 %v16488_v34 }
0x2458   :  { %12875 = vmatpush1.bf16.msra.mxu1 %v12874_v49 }
0x2459   :  { %12876 = vmatprep.subr.bf16.mxu1 %v16488_v34 }
0x245c   :  { %12878 = vmatpush1.bf16.msra.mxu1 %v12877_v10 }
0x245d   :  { %12879 = vmatprep.subr.bf16.mxu1 %v16488_v34 }
0x2460   :  { %12881 = vmatpush1.bf16.msra.mxu1 %v12880_v25 }
0x2461   :  { %12882 = vmatprep.subr.bf16.mxu1 %v16488_v34 }
0x2464   :  { %12884 = vmatpush1.bf16.msra.mxu1 %v12883_v32  ;;  %v9062_v32 = vld [vmem:[%s16503_s28 + $0x40] sm:$0xff] }
0x2465   :  { %12885 = vmatprep.subr.bf16.mxu1 %v16488_v34  ;;  %v12895_v33 = vpack.c.bf16 %v9063_v11, %v9062_v32 }
0x2468   :  { %12887 = vmatpush1.bf16.msra.mxu1 %v12886_v16  ;;  %v9064_v16 = vld [vmem:[%s16503_s28 + $0x50] sm:$0xff] }
0x2469   :  { %12888 = vmatprep.subr.bf16.mxu1 %v16488_v34  ;;  %v12898_v3 = vpack.c.bf16 %v9065_v55, %v9064_v16 }
0x246c   :  { %12890 = vmatpush1.bf16.msra.mxu1 %v12889_v61  ;;  %v9066_v61 = vld [vmem:[%s16503_s28 + $0x60] sm:$0xff] }
0x246d   :  { %12894 = vmatprep.subr.bf16.mxu1 %v16488_v34 }
0x24cb   :  { %v8564_v48 = vpop.xlane.xlu0 %8563 }
0x24cc   :  { %v8571_v45 = vmax.f32 %v8564_v48, 1.0  ;;  %v9067_v48 = vld [vmem:[%s16503_s28 + $0x68] sm:$0xff] }
0x24ce   :  { %13210 = vrcp.f32 %v8571_v45  ;;  %v9068_v45 = vld [vmem:[%s16503_s28 + $0x70] sm:$0xff] }
0x24cf   :  { %v8567_v22 = vpop.xlane.xlu0 %8566 }
0x24d0   :  { %v8572_v38 = vmax.f32 %v8567_v22, 1.0  ;;  %v12901_v22 = vpack.c.bf16 %v9067_v48, %v9066_v61 }
0x24d2   :  { %13212 = vrcp.f32 %v8572_v38 }
0x24d3   :  { %v8570_v63 = vpop.xlane.xlu0 %8569 }
0x24d4   :  { %v8573_v24 = vmax.f32 %v8570_v63, 1.0 }
0x24d6   :  { %13214 = vrcp.f32 %v8573_v24 }
0x24d8   :  { %v16014_v60 = vpop.eup %13210 }
0x24dc   :  { %v16019_v49 = vpop.eup %13212 }
0x24e0   :  { %v16024_v4 = vpop.eup %13214 }
0x2506   :  { %v8803_v28 = vpop.f32.mrb[104].mxu0 }
0x2507   :  { %v8805_v1 = vpop.f32.mrb[105].mxu0 }
0x2508   :  { %v9069_v1 = vld [vmem:[%s16503_s28 + $0x78] sm:$0xff] }
0x2509   :  { %v12904_v38 = vpack.c.bf16 %v9069_v1, %v9068_v45 }
0x250a   :  { %v8808_v8 = vpop.f32.mrb[106].mxu0 }
0x250b   :  { %v8810_v12 = vpop.f32.mrb[107].mxu0 }
0x250c   :  { %v10312_v12 = vld [vmem:[%s13350_s17 + $0x39] ss:$0 sm:$0xff] }
0x250e   :  { %v8813_v58 = vpop.f32.mrb[108].mxu0 }
0x250f   :  { %v8815_v39 = vpop.f32.mrb[109].mxu0 }
0x2511   :  { %v8658_v27 = vpop.f32.mrb[118].mxu1 }
0x2512   :  { %v8660_v44 = vpop.f32.mrb[119].mxu1  ;;  %v8675_v18 = vmul.f32 %v16014_v60, %v8658_v27 }
0x2513   :  { %v8676_v57 = vmul.f32 %v16014_v60, %v8660_v44 }
0x2515   :  { %v8664_v35 = vpop.f32.mrb[120].mxu1  ;;  %10309 = vmatprep.mubr.msk.f32.mxu1 %vm180_vm1, %v8676_v57 }
0x2516   :  { %v8666_v29 = vpop.f32.mrb[121].mxu1  ;;  %8891 = vmatmul.mubr.f32.vlgmr.msra.gmra.mrb[124].mxu1 %v8675_v18  ;;  %v8677_v10 = vmul.f32 %v16019_v49, %v8664_v35 }
0x2517   :  { %v8678_v53 = vmul.f32 %v16019_v49, %v8666_v29  ;;  %12896 = vmatpush3.bf16.msra.mxu1 %v12895_v33 }
0x2518   :  { %12897 = vmatprep.subr.bf16.mxu1 %v16488_v34 }
0x2519   :  { %v8670_v17 = vpop.f32.mrb[122].mxu1  ;;  %10310 = vmatprep.mubr.msk.f32.mxu1 %vm180_vm1, %v8678_v53 }
0x251a   :  { %v8672_v25 = vpop.f32.mrb[123].mxu1  ;;  %8896 = vmatmul.mubr.f32.gmra.mrb[126].mxu1 %v8677_v10  ;;  %v8679_v14 = vmul.f32 %v16024_v4, %v8670_v17 }
0x251b   :  { %v8680_v0 = vmul.f32 %v16024_v4, %v8672_v25  ;;  %12899 = vmatpush3.bf16.msra.mxu1 %v12898_v3 }
0x251c   :  { %12900 = vmatprep.subr.bf16.mxu1 %v16488_v34 }
0x251d   :  { %10311 = vmatprep.mubr.msk.f32.mxu1 %vm180_vm1, %v8680_v0 }
0x251e   :  { %8901 = vmatmul.mubr.f32.gmra.mrb[128].mxu1 %v8679_v14 }
0x251f   :  { %11782 = vmatprep.mubr.msk.f32.mxu1 %vm13323_vm3, %v16483_v40  ;;  %12902 = vmatpush3.bf16.msra.mxu1 %v12901_v22 }
0x2520   :  { %12903 = vmatprep.subr.bf16.mxu1 %v16488_v34 }
0x2523   :  { %12905 = vmatpush3.bf16.msra.mxu1 %v12904_v38 }
0x2524   :  { %12918 = vmatprep.subr.bf16.mxu1 %v16488_v34 }
0x25e9   :  { %v8892_v63 = vpop.f32.mrb[124].mxu1 }
0x25ea   :  { %v8893_v24 = vadd.f32 %v8892_v63, %v8803_v28  ;;  %v8894_v39 = vpop.f32.mrb[125].mxu1 }
0x25ec   :  { %v8911_v27 = vadd.f32 %v10312_v12, %v8893_v24 }
0x25ed   :  { %v8897_v44 = vpop.f32.mrb[126].mxu1 }
0x25ee   :  { %v8914_v57 = vmax.f32 %v8911_v27, 0.0  ;;  %v8898_v18 = vadd.f32 %v8897_v44, %v8808_v8  ;;  %v8899_v35 = vpop.f32.mrb[127].mxu1 }
0x25f0   :  { %v8912_v29 = vadd.f32 %v10312_v12, %v8898_v18  ;;  %v8930_v10 = vmul.f32 %v8914_v57, %v8914_v57  ;;  %v8917_v14 = vsel %vm180_vm1, %v8914_v57, 0.0 }
0x25f1   :  { %v8902_v53 = vpop.f32.mrb[128].mxu1 }
0x25f2   :  { %v8915_v17 = vmax.f32 %v8912_v29, 0.0  ;;  %v8903_v25 = vadd.f32 %v8902_v53, %v8813_v58  ;;  %v8904_v0 = vpop.f32.mrb[129].mxu1  ;;  %v8933_v28 = vsel %vm180_vm1, %v8930_v10, 0.0 }
0x25f4   :  { %v8918_v32 = vsel %vm180_vm1, %v8915_v17, 0.0  ;;  %v8931_v11 = vmul.f32 %v8915_v17, %v8915_v17  ;;  %v8913_v33 = vadd.f32 %v10312_v12, %v8903_v25 }
0x25f5   :  { %v8919_v16 = vadd.f32 %v8918_v32, %v8917_v14 }
0x25f6   :  { %v8934_v55 = vsel %vm180_vm1, %v8931_v11, 0.0  ;;  %v8916_v8 = vmax.f32 %v8913_v33, 0.0  ;;  %v8949_v11 = vld [vmem:[%s13350_s17 + $0x3a] sm:$0x1] }
0x25f7   :  { %v8935_v3 = vadd.f32 %v8934_v55, %v8933_v28  ;;  %v8951_v28 = vld [vmem:[%s13350_s17 + $0x3b] sm:$0x1] }
0x25f8   :  { %v8921_v61 = vsel %vm8920_vm7, %v8916_v8, 0.0  ;;  %v8932_v48 = vmul.f32 %v8916_v8, %v8916_v8 }
0x25f9   :  { %v8922_v22 = vadd.f32 %v8921_v61, %v8919_v16 }
0x25fa   :  { %v8936_v58 = vsel %vm8920_vm7, %v8932_v48, 0.0 }
0x25fb   :  { %v8923_v45 = vrot.slane %v8922_v22, 4  ;;  %v8937_v1 = vadd.f32 %v8936_v58, %v8935_v3 }
0x25fd   :  { %v8924_v38 = vadd.f32 %v8923_v45, %v8922_v22  ;;  %v8938_v63 = vrot.slane %v8937_v1, 4 }
0x25ff   :  { %v8925_v12 = vrot.slane %v8924_v38, 2  ;;  %v8939_v24 = vadd.f32 %v8938_v63, %v8937_v1 }
0x2601   :  { %v8926_v39 = vadd.f32 %v8925_v12, %v8924_v38  ;;  %v8940_v27 = vrot.slane %v8939_v24, 2 }
0x2603   :  { %v8927_v44 = vrot.slane %v8926_v39, 1  ;;  %v8941_v18 = vadd.f32 %v8940_v27, %v8939_v24  ;;  %v9056_v24 = vld [vmem:[%s16503_s28 + $0x10] sm:$0xff] }
0x2605   :  { %v8928_v35 = vadd.f32 %v8927_v44, %v8926_v39  ;;  %v8942_v29 = vrot.slane %v8941_v18, 1  ;;  %v9057_v39 = vld [vmem:[%s16503_s28 + $0x18] sm:$0xff]  ;;  %v9058_v44 = vld [vmem:[%s16503_s28 + $0x20] sm:$0xff] }
0x2606   :  { %v12910_v27 = vpack.c.bf16 %v9057_v39, %v9056_v24  ;;  %v9405_v24 = vld [vmem:[%s16504_s1 + $0x58] sm:$0xff] }
0x2607   :  { %v8929_v53 = vmul.f32 0.055555556, %v8928_v35  ;;  %v8943_v10 = vadd.f32 %v8942_v29, %v8941_v18  ;;  %v9059_v18 = vld [vmem:[%s16503_s28 + $0x28] sm:$0xff]  ;;  %v9060_v29 = vld [vmem:[%s16503_s28 + $0x30] sm:$0xff] }
0x2608   :  { %v12913_v35 = vpack.c.bf16 %v9059_v18, %v9058_v44  ;;  %v9407_v44 = vld [vmem:[%s16504_s1 + $0x68] sm:$0xff] }
0x2609   :  { %v8944_v25 = vmul.f32 0.055555556, %v8943_v10  ;;  %v8945_v0 = vmul.f32 %v8929_v53, %v8929_v53 }
0x260b   :  { %v8946_v14 = vsub.f32 %v8944_v25, %v8945_v0 }
0x260d   :  { %v8947_v32 = vadd.f32 1e-05, %v8946_v14 }
0x260f   :  { %13216 = vrsqrt.f32 %v8947_v32 }
0x2619   :  { %v13217_v33 = vpop.eup %13216 }
0x261a   :  { %v8950_v16 = vmul.f32 %v13217_v33, %v8949_v11 }
0x261c   :  { %v8952_v55 = vmul.f32 %v8950_v16, %v8929_v53  ;;  %v8957_v3 = vrot.slane %v8950_v16, %v13774_v56  ;;  %v9061_v53 = vld [vmem:[%s16503_s28 + $0x38] sm:$0xff] }
0x261d   :  { %v12916_v10 = vpack.c.bf16 %v9061_v53, %v9060_v29  ;;  %v9409_v29 = vld [vmem:[%s16504_s1 + $0x78] sm:$0xff] }
0x261e   :  { %v8953_v61 = vsub.f32 %v8951_v28, %v8952_v55  ;;  %v8958_v48 = vmul.f32 %v8957_v3, %v8914_v57  ;;  %v8960_v22 = vmul.f32 %v8957_v3, %v8916_v8  ;;  %v8959_v58 = vmul.f32 %v8957_v3, %v8915_v17  ;;  %v9054_v57 = vld [vmem:[%s16503_s28] sm:$0xff]  ;;  %v9055_v17 = vld [vmem:[%s16503_s28 + $0x8] sm:$0xff] }
0x261f   :  { %v12907_v8 = vpack.c.bf16 %v9055_v17, %v9054_v57  ;;  %v9403_v57 = vld [vmem:[%s16504_s1 + $0x48] sm:$0xff]  ;;  %v9404_v17 = vld [vmem:[%s16504_s1 + $0x50] sm:$0xff] }
0x2620   :  { %v8964_v45 = vrot.slane %v8953_v61, %v13774_v56  ;;  %v12925_v39 = vpack.c.bf16 %v9405_v24, %v9404_v17 }
0x2622   :  { %v16054_v1 = vadd.f32 %v8964_v45, %v8960_v22  ;;  %v16056_v38 = vadd.f32 %v8964_v45, %v8958_v48  ;;  %v16058_v63 = vadd.f32 %v8964_v45, %v8959_v58 }
0x2624   :  { %11783 = vmatmul.mubr.msk.f32.vlgmr.msra.gmra.mrb[130].mxu1 %vm180_vm1, %v16056_v38  ;;  %v12892_v12 = vpack.c.bf16 %v16058_v63, %v16056_v38 }
0x2625   :  { %11785 = vmatprep.mubr.msk.f32.mxu1 %vm13323_vm3, %v16483_v40 }
0x2626   :  { %12893 = vmatpush3.bf16.msra.mxu0 %v12892_v12  ;;  %v9402_v12 = vld [vmem:[%s16504_s1 + $0x40] sm:$0xff] }
0x2627   :  { %11755 = vmatprep.subr.mxu0 %v16483_v40 }
0x2628   :  { %11786 = vmatmul.mubr.msk.f32.gmra.mrb[132].mxu1 %vm180_vm1, %v16058_v63 }
0x2629   :  { %11788 = vmatprep.mubr.msk.f32.mxu1 %vm13323_vm3, %v16483_v40 }
0x262a   :  { %11756 = vmatpush3.msk.msra.mxu0 %vm5042_vm13, %v16054_v1 }
0x262b   :  { %11758 = vmatmul.mubr.msk.f32.vlgmr.msra.gmra.mrb[110].mxu0 %vm8413_vm2, %v15954_v9  ;;  %12906 = vmatprep.subr.bf16.mxu0 %v16488_v34 }
0x262c   :  { %11789 = vmatmul.mubr.msk.f32.gmra.mrb[134].mxu1 %vm180_vm1, %v16054_v1  ;;  %11760 = vmatprep.mubr.msk.f32.mxu0 %vm13323_vm3, %v16483_v40 }
0x262d   :  { %12908 = vmatpush3.bf16.msra.mxu0 %v12907_v8  ;;  %11822 = vmatprep.mubr.msk.f32.mxu1 %vm13323_vm3, %v16483_v40  ;;  %v12922_v8 = vpack.c.bf16 %v9403_v57, %v9402_v12 }
0x262e   :  { %12909 = vmatprep.subr.bf16.mxu0 %v16488_v34 }
0x262f   :  { %11761 = vmatmul.mubr.msk.f32.gmra.mrb[112].mxu0 %vm8413_vm2, %v15965_v51 }
0x2630   :  { %11763 = vmatprep.mubr.msk.f32.mxu0 %vm13323_vm3, %v16483_v40 }
0x2631   :  { %12911 = vmatpush3.bf16.msra.mxu0 %v12910_v27  ;;  %v9406_v27 = vld [vmem:[%s16504_s1 + $0x60] sm:$0xff] }
0x2632   :  { %12912 = vmatprep.subr.bf16.mxu0 %v16488_v34  ;;  %v12928_v18 = vpack.c.bf16 %v9407_v44, %v9406_v27 }
0x2633   :  { %11764 = vmatmul.mubr.msk.f32.gmra.mrb[114].mxu0 %vm8413_vm2, %v15972_v59 }
0x2634   :  { %11807 = vmatprep.mubr.msk.f32.mxu0 %vm13323_vm3, %v16483_v40 }
0x2635   :  { %12914 = vmatpush3.bf16.msra.mxu0 %v12913_v35  ;;  %v9408_v35 = vld [vmem:[%s16504_s1 + $0x70] sm:$0xff] }
0x2636   :  { %12915 = vmatprep.subr.bf16.mxu0 %v16488_v34  ;;  %v12931_v53 = vpack.c.bf16 %v9409_v29, %v9408_v35 }
0x2639   :  { %12917 = vmatpush3.bf16.msra.mxu0 %v12916_v10 }
0x263a   :  { %12921 = vmatprep.subr.bf16.mxu0 %v16488_v34 }
0x26f7   :  { %v9144_v25 = vpop.f32.mrb[130].mxu1 }
0x26f8   :  { %v11784_v0 = vpop.f32.mrb[131].mxu1 }
0x26f9   :  { %v10323_v0 = vld [vmem:[%s13350_s17 + $0x3c] ss:$0 sm:$0xff] }
0x26fb   :  { %v9149_v14 = vpop.f32.mrb[132].mxu1 }
0x26fc   :  { %v11787_v32 = vpop.f32.mrb[133].mxu1 }
0x26fe   :  { %v9037_v11 = vpop.f32.mrb[110].mxu0 }
0x26ff   :  { %v9051_v33 = vmul.f32 %v16014_v60, %v9037_v11  ;;  %v11759_v16 = vpop.f32.mrb[111].mxu0  ;;  %v9154_v28 = vpop.f32.mrb[134].mxu1 }
0x2700   :  { %v11790_v55 = vpop.f32.mrb[135].mxu1 }
0x2701   :  { %11808 = vmatmul.mubr.msk.f32.vlgmr.msra.gmra.mrb[116].mxu0 %vm180_vm1, %v9051_v33 }
0x2702   :  { %v9042_v3 = vpop.f32.mrb[112].mxu0  ;;  %11810 = vmatprep.mubr.msk.f32.mxu0 %vm13323_vm3, %v16483_v40  ;;  %12923 = vmatpush3.bf16.msra.mxu0 %v12922_v8 }
0x2703   :  { %v9052_v61 = vmul.f32 %v16019_v49, %v9042_v3  ;;  %v11762_v48 = vpop.f32.mrb[113].mxu0  ;;  %12924 = vmatprep.subr.bf16.mxu0 %v16488_v34 }
0x2705   :  { %11811 = vmatmul.mubr.msk.f32.gmra.mrb[118].mxu0 %vm180_vm1, %v9052_v61 }
0x2706   :  { %v9047_v22 = vpop.f32.mrb[114].mxu0  ;;  %11813 = vmatprep.mubr.msk.f32.mxu0 %vm13323_vm3, %v16483_v40  ;;  %12926 = vmatpush3.bf16.msra.mxu0 %v12925_v39 }
0x2707   :  { %v9053_v58 = vmul.f32 %v16024_v4, %v9047_v22  ;;  %v11765_v45 = vpop.f32.mrb[115].mxu0  ;;  %12927 = vmatprep.subr.bf16.mxu0 %v16488_v34 }
0x2709   :  { %11814 = vmatmul.mubr.msk.f32.gmra.mrb[120].mxu0 %vm180_vm1, %v9053_v58 }
0x270a   :  { %11847 = vmatprep.mubr.msk.f32.mxu0 %vm13323_vm3, %v16483_v40  ;;  %12929 = vmatpush3.bf16.msra.mxu0 %v12928_v18 }
0x270b   :  { %12930 = vmatprep.subr.bf16.mxu0 %v16488_v34 }
0x270e   :  { %12932 = vmatpush3.bf16.msra.mxu0 %v12931_v53 }
0x27d4   :  { %v9233_v10 = vpop.f32.mrb[116].mxu0 }
0x27d5   :  { %v9234_v32 = vadd.f32 %v9233_v10, %v9144_v25  ;;  %v11809_v11 = vpop.f32.mrb[117].mxu0 }
0x27d7   :  { %v9252_v33 = vadd.f32 %v10323_v0, %v9234_v32 }
0x27d8   :  { %v9238_v16 = vpop.f32.mrb[118].mxu0 }
0x27d9   :  { %v9255_v55 = vmax.f32 %v9252_v33, 0.0  ;;  %v9239_v3 = vadd.f32 %v9238_v16, %v9149_v14  ;;  %v11812_v61 = vpop.f32.mrb[119].mxu0 }
0x27db   :  { %v9253_v48 = vadd.f32 %v10323_v0, %v9239_v3  ;;  %v9270_v58 = vmul.f32 %v9255_v55, %v9255_v55  ;;  %v9258_v17 = vsel %vm180_vm1, %v9255_v55, 0.0 }
0x27dc   :  { %v9243_v22 = vpop.f32.mrb[120].mxu0 }
0x27dd   :  { %v9256_v45 = vmax.f32 %v9253_v48, 0.0  ;;  %v9244_v12 = vadd.f32 %v9243_v22, %v9154_v28  ;;  %v11815_v57 = vpop.f32.mrb[121].mxu0  ;;  %v9273_v25 = vsel %vm180_vm1, %v9270_v58, 0.0 }
0x27df   :  { %v9259_v8 = vsel %vm180_vm1, %v9256_v45, 0.0  ;;  %v9271_v24 = vmul.f32 %v9256_v45, %v9256_v45  ;;  %v9254_v39 = vadd.f32 %v10323_v0, %v9244_v12 }
0x27e0   :  { %v9260_v27 = vadd.f32 %v9259_v8, %v9258_v17 }
0x27e1   :  { %v9274_v44 = vsel %vm180_vm1, %v9271_v24, 0.0  ;;  %v9257_v18 = vmax.f32 %v9254_v39, 0.0 }
0x27e2   :  { %v9275_v14 = vadd.f32 %v9274_v44, %v9273_v25  ;;  %v9289_v25 = vld [vmem:[%s13350_s17 + $0x3d] sm:$0x1] }
0x27e3   :  { %v9261_v35 = vsel %vm8920_vm7, %v9257_v18, 0.0  ;;  %v9272_v29 = vmul.f32 %v9257_v18, %v9257_v18 }
0x27e4   :  { %v9262_v53 = vadd.f32 %v9261_v35, %v9260_v27  ;;  %v9291_v35 = vld [vmem:[%s13350_s17 + $0x3e] sm:$0x1] }
0x27e5   :  { %v9276_v28 = vsel %vm8920_vm7, %v9272_v29, 0.0 }
0x27e6   :  { %v9263_v10 = vrot.slane %v9262_v53, 4  ;;  %v9277_v32 = vadd.f32 %v9276_v28, %v9275_v14 }
0x27e8   :  { %v9264_v11 = vadd.f32 %v9263_v10, %v9262_v53  ;;  %v9278_v33 = vrot.slane %v9277_v32, 4 }
0x27ea   :  { %v9265_v16 = vrot.slane %v9264_v11, 2  ;;  %v9279_v0 = vadd.f32 %v9278_v33, %v9277_v32 }
0x27ec   :  { %v9266_v3 = vadd.f32 %v9265_v16, %v9264_v11  ;;  %v9280_v61 = vrot.slane %v9279_v0, 2 }
0x27ee   :  { %v9267_v48 = vrot.slane %v9266_v3, 1  ;;  %v9281_v22 = vadd.f32 %v9280_v61, %v9279_v0 }
0x27f0   :  { %v9268_v58 = vadd.f32 %v9267_v48, %v9266_v3  ;;  %v9282_v12 = vrot.slane %v9281_v22, 1 }
0x27f2   :  { %v9283_v57 = vadd.f32 %v9282_v12, %v9281_v22  ;;  %v9269_v17 = vmul.f32 0.055555556, %v9268_v58  ;;  %v16506_v22 = vld [vmem:[#allocation25_spill] sm:$0xff]  ;;  %v16507_v12 = vlaneseq }
0x27f3   :  { %v16165_v58 = vadd.s32 8, %v16506_v22 }
0x27f4   :  { %v9284_v8 = vmul.f32 0.055555556, %v9283_v57  ;;  %v9285_v24 = vmul.f32 %v9269_v17, %v9269_v17  ;;  %v16168_v57 = vand.u32 127, %v16507_v12  ;;  %v3960_v12 = vsub.f32 0.0, %v14589_v6 }
0x27f6   :  { %v9286_v39 = vsub.f32 %v9284_v8, %v9285_v24  ;;  %v3790_v8 = vmul.f32 %v13560_v30, %v13560_v30  ;;  %vm3835_vm8 = vcmp.eq.s32.totalorder %v16165_v58, %v16168_v57  ;;  %v3964_v24 = vadd.f32 1e-15, %v14532_v43 }
0x27f7   :  { %v8515_v30 = vmul.f32 %v15912_v54, %v15912_v54  ;;  %v3954_v54 = vsub.f32 0.0, %v14517_v42 }
0x27f8   :  { %v9287_v27 = vadd.f32 1e-05, %v9286_v39  ;;  %v3810_v39 = vsel %vm180_vm1, %v3790_v8, 0.0 }
0x27fa   :  { %13218 = vrsqrt.f32 %v9287_v27  ;;  %v3837_v27 = vsel %vm3835_vm8, %v14920_v15, 0.0  ;;  %v3929_v15 = vmul.f32 %v14916_v46, %v14916_v46 }
0x2804   :  { %v13219_v44 = vpop.eup %13218 }
0x2805   :  { %v9290_v14 = vmul.f32 %v13219_v44, %v9289_v25  ;;  %v3966_v25 = vadd.f32 1e-15, %v14575_v7  ;;  %v3842_v44 = vsel %vm3838_vm12, %v3837_v27, 0.0 }
0x2807   :  { %v9292_v29 = vmul.f32 %v9290_v14, %v9269_v17  ;;  %v9297_v53 = vrot.slane %v9290_v14, %v13774_v56  ;;  %v3962_v17 = vadd.f32 1e-15, %v14517_v42  ;;  %v3968_v14 = vadd.f32 1e-15, %v14589_v6  ;;  %v9394_v6 = vld [vmem:[%s16504_s1] sm:$0xff] }
0x2809   :  { %v9293_v28 = vsub.f32 %v9291_v35, %v9292_v29  ;;  %v9298_v10 = vmul.f32 %v9297_v53, %v9255_v55  ;;  %v9300_v32 = vmul.f32 %v9297_v53, %v9257_v18  ;;  %v9299_v11 = vmul.f32 %v9297_v53, %v9256_v45  ;;  %v16505_v55 = vld [vmem:[#allocation19_spill] sm:$0xff] }
0x280a   :  { %v3784_v45 = vmul.f32 %v16505_v55, %v16505_v55  ;;  %13220 = vlog2.f32 %v3962_v17  ;;  %v8518_v35 = vsel %vm8413_vm2, %v8515_v30, 0.0  ;;  %v8547_v53 = vadd.f32 1e-15, %v15785_v62 }
0x280b   :  { %v9304_v33 = vrot.slane %v9293_v28, %v13774_v56  ;;  %13222 = vlog2.f32 %v3964_v24  ;;  %v3958_v55 = vsub.f32 0.0, %v14575_v7  ;;  %v8546_v24 = vsub.f32 0.0, %v15785_v62 }
0x280c   :  { %v3792_v18 = vsel %vm180_vm1, %v3784_v45, 0.0  ;;  %13224 = vlog2.f32 %v3966_v25  ;;  %v9395_v25 = vld [vmem:[%s16504_s1 + $0x8] sm:$0xff] }
0x280d   :  { %v9307_v16 = vadd.f32 %v9304_v33, %v9300_v32  ;;  %v9305_v0 = vadd.f32 %v9304_v33, %v9298_v10  ;;  %v9306_v3 = vadd.f32 %v9304_v33, %v9299_v11  ;;  %13226 = vlog2.f32 %v3968_v14  ;;  %v9397_v14 = vld [vmem:[%s16504_s1 + $0x18] sm:$0xff] }
0x280e   :  { %13228 = vlog2.f32 %v8547_v53  ;;  %v3931_v32 = vsel %vm3838_vm12, %v3929_v15, 0.0  ;;  %v12934_v30 = vpack.c.bf16 %v9395_v25, %v9394_v6  ;;  %v9400_v15 = vld [vmem:[%s16504_s1 + $0x30] sm:$0xff]  ;;  %v9754_v25 = vld [vmem:[%s13475_s27 + $0x40] sm:$0xff] }
0x280f   :  { %9652 = vrot.lane.b32.xlu1 %v9307_v16, %s13317_s0  ;;  %11848 = vmatmul.mubr.msk.f32.vlgmr.msra.gmra.mrb[122].mxu0 %vm180_vm1, %v9305_v0  ;;  %v13103_v61 = vpack.i.bf16 %v9306_v3, %v9305_v0  ;;  %v12919_v48 = vpack.c.bf16 %v9306_v3, %v9305_v0  ;;  %v3956_v0 = vsub.f32 0.0, %v14532_v43 }
0x2810   :  { %11850 = vmatprep.mubr.msk.f32.mxu0 %vm13323_vm3, %v16483_v40 }
0x2811   :  { %13104 = vrot.lane.b32.xlu0 %v13103_v61, %s13317_s0  ;;  %12920 = vmatpush3.bf16.msra.mxu1 %v12919_v48 }
0x2812   :  { %11820 = vmatprep.subr.mxu1 %v16483_v40 }
0x2813   :  { %11851 = vmatmul.mubr.msk.f32.gmra.mrb[124].mxu0 %vm180_vm1, %v9306_v3 }
0x2814   :  { %11853 = vmatprep.mubr.msk.f32.mxu0 %vm13323_vm3, %v16483_v40  ;;  %v13221_v29 = vpop.eup %13220 }
0x2815   :  { %11821 = vmatpush3.msk.msra.mxu1 %vm5042_vm13, %v9307_v16  ;;  %v3971_v28 = vmul.f32 0.6931472, %v13221_v29  ;;  %v13223_v10 = vpop.eup %13222  ;;  %v9399_v29 = vld [vmem:[%s16504_s1 + $0x28] sm:$0xff] }
0x2816   :  { %11823 = vmatmul.mubr.msk.f32.vlgmr.msra.gmra.mrb[136].mxu1 %vm8413_vm2, %v15954_v9  ;;  %12933 = vmatprep.subr.bf16.mxu1 %v16488_v34  ;;  %v3975_v33 = vmul.f32 0.6931472, %v13223_v10 }
0x2817   :  { %11854 = vmatmul.mubr.msk.f32.gmra.mrb[126].mxu0 %vm180_vm1, %v9307_v16  ;;  %11825 = vmatprep.mubr.msk.f32.mxu1 %vm13323_vm3, %v16483_v40  ;;  %v3986_v11 = vmul.f32 %v3971_v28, %v3954_v54  ;;  %v13225_v16 = vpop.eup %13224  ;;  %v9401_v28 = vld [vmem:[%s16504_s1 + $0x38] sm:$0xff] }
0x2818   :  { %9739 = vmatprep.mubr.f32.mxu0 %v16483_v40  ;;  %v3988_v61 = vmul.f32 %v3975_v33, %v3956_v0  ;;  %v3979_v48 = vmul.f32 0.6931472, %v13225_v16  ;;  %v13227_v46 = vpop.eup %13226  ;;  %12935 = vmatpush3.bf16.msra.mxu1 %v12934_v30  ;;  %v12943_v10 = vpack.c.bf16 %v9401_v28, %v9400_v15  ;;  %v9755_v30 = vld [vmem:[%s13475_s27 + $0x48] sm:$0xff]  ;;  %v9760_v28 = vld [vmem:[%s13475_s27 + $0x70] sm:$0xff] }
0x2819   :  { %v3994_v3 = vsel %vm1697_vm4, %v3986_v11, 0.0  ;;  %v3983_v45 = vmul.f32 0.6931472, %v13227_v46  ;;  %12936 = vmatprep.subr.bf16.mxu1 %v16488_v34 }
0x281a   :  { %11826 = vmatmul.mubr.msk.f32.gmra.mrb[138].mxu1 %vm8413_vm2, %v15965_v51  ;;  %v3990_v42 = vmul.f32 %v3979_v48, %v3958_v55 }
0x281b   :  { %11828 = vmatprep.mubr.msk.f32.mxu1 %vm13323_vm3, %v16483_v40  ;;  %v3992_v17 = vmul.f32 %v3983_v45, %v3960_v12  ;;  %v9747_v12 = vld [vmem:[%s13475_s27 + $0x8] sm:$0xff] }
0x281c   :  { %v4006_v43 = vsel %vm1697_vm4, %v3990_v42, 0.0 }
0x281d   :  { %v4012_v7 = vsel %vm1697_vm4, %v3992_v17, 0.0  ;;  %v9749_v17 = vld [vmem:[%s13475_s27 + $0x18] sm:$0xff] }
0x281e   :  { %11829 = vmatmul.mubr.msk.f32.gmra.mrb[140].mxu1 %vm8413_vm2, %v15972_v59 }
0x281f   :  { %11872 = vmatprep.mubr.msk.f32.mxu1 %vm13323_vm3, %v16483_v40 }
0x2833   :  { %3793 = vadd.xlane.f32.xlu1 %v3792_v18  ;;  %v13229_v18 = vpop.eup %13228 }
0x2834   :  { %v8549_v8 = vmul.f32 0.6931472, %v13229_v18  ;;  %v9746_v18 = vld [vmem:[%s13475_s27] sm:$0xff] }
0x2837   :  { %3811 = vadd.xlane.f32.xlu1 %v3810_v39  ;;  %v8550_v39 = vmul.f32 %v8549_v8, %v8546_v24  ;;  %v9750_v24 = vld [vmem:[%s13475_s27 + $0x20] sm:$0xff] }
0x2839   :  { %v8551_v27 = vsel %vm7132_vm14, %v8550_v39, 0.0  ;;  %v9752_v39 = vld [vmem:[%s13475_s27 + $0x30] sm:$0xff]  ;;  %vm3834_vm14 = vcmp.eq.s32.totalorder %v16506_v22, %v16168_v57 }
0x283b   :  { %3843 = vadd.xlane.f32.xlu1 %v3842_v44  ;;  %v9396_v44 = vld [vmem:[%s16504_s1 + $0x10] sm:$0xff] }
0x283c   :  { %v12937_v62 = vpack.c.bf16 %v9397_v14, %v9396_v44  ;;  %v12962_v44 = vpack.c.bf16 %v9755_v30, %v9754_v25  ;;  %v9756_v14 = vld [vmem:[%s13475_s27 + $0x50] sm:$0xff] }
0x283e   :  { %12938 = vmatpush3.bf16.msra.mxu1 %v12937_v62  ;;  %v9757_v62 = vld [vmem:[%s13475_s27 + $0x58] sm:$0xff] }
0x283f   :  { %8519 = vadd.xlane.f32.xlu1 %v8518_v35  ;;  %12939 = vmatprep.subr.bf16.mxu1 %v16488_v34  ;;  %v9398_v35 = vld [vmem:[%s16504_s1 + $0x20] sm:$0xff] }
0x2840   :  { %v12940_v53 = vpack.c.bf16 %v9399_v29, %v9398_v35  ;;  %v12965_v35 = vpack.c.bf16 %v9757_v62, %v9756_v14  ;;  %v9758_v29 = vld [vmem:[%s13475_s27 + $0x60] sm:$0xff] }
0x2842   :  { %12941 = vmatpush3.bf16.msra.mxu1 %v12940_v53  ;;  %v9759_v53 = vld [vmem:[%s13475_s27 + $0x68] sm:$0xff] }
0x2843   :  { %8399 = vadd.xlane.f32.xlu1 %v15428_v47  ;;  %v4000_v47 = vsel %vm1697_vm4, %v3988_v61, 0.0  ;;  %12942 = vmatprep.subr.bf16.mxu1 %v16488_v34  ;;  %v12968_v15 = vpack.c.bf16 %v9759_v53, %v9758_v29 }
0x2846   :  { %12944 = vmatpush3.bf16.msra.mxu1 %v12943_v10  ;;  %v9761_v10 = vld [vmem:[%s13475_s27 + $0x78] sm:$0xff] }
0x2847   :  { %3932 = vadd.xlane.f32.xlu1 %v3931_v32  ;;  %12949 = vmatprep.subr.bf16.mxu1 %v16488_v34 }
0x284b   :  { %3995 = vadd.xlane.f32.xlu1 %v3994_v3 }
0x284f   :  { %4001 = vadd.xlane.f32.xlu1 %v4000_v47 }
0x2853   :  { %4007 = vadd.xlane.f32.xlu1 %v4006_v43  ;;  %v9748_v43 = vld [vmem:[%s13475_s27 + $0x10] sm:$0xff] }
0x2854   :  { %v12953_v8 = vpack.c.bf16 %v9749_v17, %v9748_v43 }
0x2857   :  { %4013 = vadd.xlane.f32.xlu1 %v4012_v7 }
0x285b   :  { %8552 = vadd.xlane.f32.xlu1 %v8551_v27  ;;  %v9753_v27 = vld [vmem:[%s13475_s27 + $0x38] sm:$0xff] }
0x285c   :  { %v12959_v6 = vpack.c.bf16 %v9753_v27, %v9752_v39 }
0x28e2   :  { %v16214_v54 = vpop.f32.mrb[122].mxu0 }
0x28e3   :  { %v11849_v32 = vpop.f32.mrb[123].mxu0 }
0x28e4   :  { %v12971_v32 = vpack.c.bf16 %v9761_v10, %v9760_v28 }
0x28e6   :  { %v16216_v11 = vpop.f32.mrb[124].mxu0 }
0x28e7   :  { %v11852_v33 = vpop.f32.mrb[125].mxu0 }
0x28e8   :  { %v9762_v33 = vld [vmem:[%s13475_s27 + $0x80] sm:$0xff] }
0x28e9   :  { %v9377_v16 = vpop.f32.mrb[136].mxu1 }
0x28ea   :  { %v9391_v0 = vmul.f32 %v16014_v60, %v9377_v16  ;;  %v11824_v3 = vpop.f32.mrb[137].mxu1  ;;  %v16219_v61 = vpop.f32.mrb[126].mxu0  ;;  %v9763_v16 = vld [vmem:[%s13475_s27 + $0x88] sm:$0xff] }
0x28eb   :  { %v11855_v48 = vpop.f32.mrb[127].mxu0  ;;  %v9764_v3 = vld [vmem:[%s13475_s27 + $0x90] sm:$0xff] }
0x28ec   :  { %11873 = vmatmul.mubr.msk.f32.vlgmr.msra.gmra.mrb[142].mxu1 %vm180_vm1, %v9391_v0  ;;  %v12974_v0 = vpack.c.bf16 %v9763_v16, %v9762_v33  ;;  %v9765_v48 = vld [vmem:[%s13475_s27 + $0x98] sm:$0xff] }
0x28ed   :  { %v9382_v46 = vpop.f32.mrb[138].mxu1  ;;  %11875 = vmatprep.mubr.msk.f32.mxu1 %vm13323_vm3, %v16483_v40 }
0x28ee   :  { %v9392_v55 = vmul.f32 %v16019_v49, %v9382_v46  ;;  %v11827_v47 = vpop.f32.mrb[139].mxu1  ;;  %v12950_v49 = vpack.c.bf16 %v9747_v12, %v9746_v18  ;;  %v12977_v46 = vpack.c.bf16 %v9765_v48, %v9764_v3 }
0x28ef   :  { %v9767_v47 = vld [vmem:[%s13475_s27 + $0xa8] sm:$0xff] }
0x28f0   :  { %11876 = vmatmul.mubr.msk.f32.gmra.mrb[144].mxu1 %vm180_vm1, %v9392_v55  ;;  %v9766_v55 = vld [vmem:[%s13475_s27 + $0xa0] sm:$0xff] }
0x28f1   :  { %v9387_v60 = vpop.f32.mrb[140].mxu1  ;;  %11878 = vmatprep.mubr.msk.f32.mxu1 %vm13323_vm3, %v16483_v40  ;;  %12951 = vmatpush1.bf16.msra.mxu1 %v12950_v49 }
0x28f2   :  { %v9393_v42 = vmul.f32 %v16024_v4, %v9387_v60  ;;  %v11830_v45 = vpop.f32.mrb[141].mxu1  ;;  %12952 = vmatprep.subr.bf16.mxu1 %v16488_v34  ;;  %v9751_v4 = vld [vmem:[%s13475_s27 + $0x28] sm:$0xff]  ;;  %v12980_v60 = vpack.c.bf16 %v9767_v47, %v9766_v55 }
0x28f3   :  { %v12956_v7 = vpack.c.bf16 %v9751_v4, %v9750_v24  ;;  %v10334_v45 = vld [vmem:[%s13350_s17 + $0x3f] ss:$0 sm:$0xff] }
0x28f4   :  { %11879 = vmatmul.mubr.msk.f32.gmra.mrb[146].mxu1 %vm180_vm1, %v9393_v42 }
0x28f5   :  { %12954 = vmatpush1.bf16.msra.mxu1 %v12953_v8 }
0x28f6   :  { %12955 = vmatprep.subr.bf16.mxu1 %v16488_v34 }
0x28f9   :  { %12957 = vmatpush1.bf16.msra.mxu1 %v12956_v7 }
0x28fa   :  { %12958 = vmatprep.subr.bf16.mxu1 %v16488_v34 }
0x28fd   :  { %12960 = vmatpush1.bf16.msra.mxu1 %v12959_v6 }
0x28fe   :  { %12961 = vmatprep.subr.bf16.mxu1 %v16488_v34 }
0x2901   :  { %12963 = vmatpush1.bf16.msra.mxu1 %v12962_v44 }
0x2902   :  { %12964 = vmatprep.subr.bf16.mxu1 %v16488_v34 }
0x2905   :  { %12966 = vmatpush1.bf16.msra.mxu1 %v12965_v35 }
0x2906   :  { %12967 = vmatprep.subr.bf16.mxu1 %v16488_v34 }
0x2909   :  { %12969 = vmatpush1.bf16.msra.mxu1 %v12968_v15 }
0x290a   :  { %12970 = vmatprep.subr.bf16.mxu1 %v16488_v34 }
0x290d   :  { %12972 = vmatpush1.bf16.msra.mxu1 %v12971_v32 }
0x290e   :  { %12973 = vmatprep.subr.bf16.mxu1 %v16488_v34 }
0x2911   :  { %12975 = vmatpush1.bf16.msra.mxu1 %v12974_v0 }
0x2912   :  { %12976 = vmatprep.subr.bf16.mxu1 %v16488_v34 }
0x2915   :  { %12978 = vmatpush1.bf16.msra.mxu1 %v12977_v46 }
0x2916   :  { %12979 = vmatprep.subr.bf16.mxu1 %v16488_v34 }
0x2919   :  { %12981 = vmatpush1.bf16.msra.mxu1 %v12980_v60 }
0x291a   :  { %12982 = vmatprep.subr.bf16.mxu1 %v16488_v34 }
0x29bf   :  { %v9573_v42 = vpop.f32.mrb[142].mxu1 }
0x29c0   :  { %v9574_v18 = vadd.f32 %v9573_v42, %v16214_v54  ;;  %v11874_v12 = vpop.f32.mrb[143].mxu1 }
0x29c2   :  { %v9592_v43 = vadd.f32 %v10334_v45, %v9574_v18 }
0x29c3   :  { %v9578_v49 = vpop.f32.mrb[144].mxu1 }
0x29c4   :  { %v9595_v17 = vmax.f32 %v9592_v43, 0.0  ;;  %v9579_v8 = vadd.f32 %v9578_v49, %v16216_v11  ;;  %v11877_v24 = vpop.f32.mrb[145].mxu1 }
0x29c6   :  { %v9593_v4 = vadd.f32 %v10334_v45, %v9579_v8  ;;  %v9610_v39 = vmul.f32 %v9595_v17, %v9595_v17  ;;  %v9598_v30 = vsel %vm180_vm1, %v9595_v17, 0.0 }
0x29c7   :  { %v9583_v7 = vpop.f32.mrb[146].mxu1 }
0x29c8   :  { %v9596_v27 = vmax.f32 %v9593_v4, 0.0  ;;  %v9584_v6 = vadd.f32 %v9583_v7, %v16219_v61  ;;  %v11880_v25 = vpop.f32.mrb[147].mxu1  ;;  %v9613_v35 = vsel %vm180_vm1, %v9610_v39, 0.0  ;;  %v9629_v4 = vld [vmem:[%s13350_s17 + $0x40] sm:$0x1]  ;;  %v13105_v39 = vpop.permute.xlu0 %13104 }
0x29c9   :  { %v9631_v25 = vld [vmem:[%s13350_s17 + $0x41] sm:$0x1] }
0x29ca   :  { %v9599_v44 = vsel %vm180_vm1, %v9596_v27, 0.0  ;;  %v9611_v14 = vmul.f32 %v9596_v27, %v9596_v27  ;;  %v9594_v54 = vadd.f32 %v10334_v45, %v9584_v6 }
0x29cb   :  { %v9600_v62 = vadd.f32 %v9599_v44, %v9598_v30  ;;  %v9660_v30 = vmul.u32 9, %v16506_v22 }
0x29cc   :  { %v9614_v29 = vsel %vm180_vm1, %v9611_v14, 0.0  ;;  %v9597_v11 = vmax.f32 %v9594_v54, 0.0  ;;  %v13107_v54 = vunpack.i.h.bf16 %v13105_v39 }
0x29cd   :  { %v9615_v53 = vadd.f32 %v9614_v29, %v9613_v35 }
0x29ce   :  { %v9601_v15 = vsel %vm8920_vm7, %v9597_v11, 0.0  ;;  %v9612_v28 = vmul.f32 %v9597_v11, %v9597_v11 }
0x29cf   :  { %v9602_v10 = vadd.f32 %v9601_v15, %v9600_v62  ;;  %v13106_v62 = vunpack.i.l.bf16 %v13105_v39 }
0x29d0   :  { %v9616_v61 = vsel %vm8920_vm7, %v9612_v28, 0.0  ;;  %v9661_v28 = vsub.s32 %v16168_v57, %v9660_v30  ;;  %v10340_v30 = vld [vmem:[%s13350_s17 + $0x43] ss:$0 sm:$0xff] }
0x29d1   :  { %v9603_v32 = vrot.slane %v9602_v10, 4  ;;  %v9617_v33 = vadd.f32 %v9616_v61, %v9615_v53  ;;  %v9658_v61 = vsel %vm180_vm1, %v16058_v63, %v13107_v54 }
0x29d2   :  { %vm9662_vm9 = vcmp.ge.s32.totalorder %v9661_v28, 0  ;;  %vm9663_vm10 = vcmp.lt.s32.totalorder %v9661_v28, 9 }
0x29d3   :  { %v9604_v16 = vadd.f32 %v9603_v32, %v9602_v10  ;;  %v9618_v0 = vrot.slane %v9617_v33, 4  ;;  %v9657_v32 = vsel %vm180_vm1, %v16056_v38, %v13106_v62  ;;  %vm9664_vm11 = vmand %vm9662_vm9, %vm9663_vm10 }
0x29d4   :  { %v9665_v38 = vsel %vm9664_vm11, 0.11111111, %v16483_v40 }
0x29d5   :  { %v9605_v3 = vrot.slane %v9604_v16, 2  ;;  %v9619_v48 = vadd.f32 %v9618_v0, %v9617_v33 }
0x29d7   :  { %v9606_v46 = vadd.f32 %v9605_v3, %v9604_v16  ;;  %v9620_v55 = vrot.slane %v9619_v48, 2  ;;  %v9769_v3 = vld [vmem:[%s13475_s27 + $0xb8] sm:$0xff] }
0x29d9   :  { %v9607_v47 = vrot.slane %v9606_v46, 1  ;;  %v9621_v60 = vadd.f32 %v9620_v55, %v9619_v48  ;;  %v9850_v55 = vld [vmem:[%s13480_s4 + $0x8] sm:$0xff] }
0x29db   :  { %v9608_v42 = vadd.f32 %v9607_v47, %v9606_v46  ;;  %v9622_v45 = vrot.slane %v9621_v60, 1  ;;  %v9849_v46 = vld [vmem:[%s13480_s4] sm:$0xff]  ;;  %v9851_v47 = vld [vmem:[%s13480_s4 + $0x10] sm:$0xff] }
0x29dd   :  { %v9609_v18 = vmul.f32 0.055555556, %v9608_v42  ;;  %v9623_v12 = vadd.f32 %v9622_v45, %v9621_v60  ;;  %v12986_v60 = vpack.c.bf16 %v9850_v55, %v9849_v46  ;;  %v9853_v45 = vld [vmem:[%s13480_s4 + $0x20] sm:$0xff] }
0x29df   :  { %v9624_v43 = vmul.f32 0.055555556, %v9623_v12  ;;  %v9625_v49 = vmul.f32 %v9609_v18, %v9609_v18 }
0x29e1   :  { %v9626_v8 = vsub.f32 %v9624_v43, %v9625_v49  ;;  %v9855_v49 = vld [vmem:[%s13480_s4 + $0x30] sm:$0xff] }
0x29e3   :  { %v9627_v24 = vadd.f32 1e-05, %v9626_v8  ;;  %v9856_v8 = vld [vmem:[%s13480_s4 + $0x38] sm:$0xff] }
0x29e5   :  { %13230 = vrsqrt.f32 %v9627_v24  ;;  %v12995_v24 = vpack.c.bf16 %v9856_v8, %v9855_v49 }
0x29ef   :  { %v13231_v7 = vpop.eup %13230 }
0x29f0   :  { %v9630_v6 = vmul.f32 %v13231_v7, %v9629_v4  ;;  %v10338_v4 = vld [vmem:[%s13350_s17 + $0x42] ss:$0 sm:$0xff]  ;;  %s13326_s17 = smov [#allocation2]  }
0x29f2   :  { %v9637_v44 = vrot.slane %v9630_v6, %v13774_v56  ;;  %v9632_v14 = vmul.f32 %v9630_v6, %v9609_v18  ;;  %v9854_v18 = vld [vmem:[%s13480_s4 + $0x28] sm:$0xff] }
0x29f4   :  { %v9640_v35 = vmul.f32 %v9637_v44, %v9597_v11  ;;  %v9633_v29 = vsub.f32 %v9631_v25, %v9632_v14  ;;  %v9638_v53 = vmul.f32 %v9637_v44, %v9595_v17  ;;  %v9639_v15 = vmul.f32 %v9637_v44, %v9596_v27  ;;  %v9768_v27 = vld [vmem:[%s13475_s27 + $0xb0] sm:$0xff]  ;;  %s9961_s27 = sshll.u32 %s13326_s17, 4  ;;  %s9962_s27 = int_to_ptr.vmem [resolvable:$true] %s9961_s27 }
0x29f5   :  { %v12947_v17 = vpack.c.bf16 %v9658_v61, %v9657_v32  ;;  %v12983_v48 = vpack.c.bf16 %v9769_v3, %v9768_v27  ;;  %v3785_v14 = vmul.f32 %v13531_v20, %v13531_v20  ;;  %v3788_v20 = vmul.f32 %v13564_v31, %v13564_v31  ;;  %p13265_p1 = scmp.lt.s32.totalorder %s9962_s27, %s9962_s27 }
0x29f6   :  { %v9644_v10 = vrot.slane %v9633_v29, %v13774_v56  ;;  %v9653_v56 = vpop.permute.xlu1 %9652  ;;  %v3786_v29 = vmul.f32 %v13534_v21, %v13534_v21  ;;  %v3789_v61 = vmul.f32 %v13582_v37, %v13582_v37  ;;  %v8408_v32 = vadd.s32 16, %v16506_v22 }
0x29f7   :  { %v9659_v63 = vsel %vm180_vm1, %v16054_v1, %v9653_v56  ;;  %12984 = vmatpush1.bf16.msra.mxu1 %v12983_v48  ;;  %v9852_v1 = vld [vmem:[%s13480_s4 + $0x18] sm:$0xff]  ;;  %v8411_v31 = vsel %vm3835_vm8, %v15965_v51, 0.0  ;;  %v3836_v22 = vsel %vm3834_vm14, %v14924_v26, 0.0  ;;  %v3791_v51 = vmul.f32 %v13578_v36, %v13578_v36  ;;  %s13260_s4 = scalar_lea.vmem %s9962_s27, 32 }
0x29f8   :  { %v9645_v33 = vadd.f32 %v9644_v10, %v9638_v53  ;;  %v9646_v16 = vadd.f32 %v9644_v10, %v9639_v15  ;;  %v9647_v0 = vadd.f32 %v9644_v10, %v9640_v35  ;;  %v12989_v42 = vpack.c.bf16 %v9852_v1, %v9851_v47  ;;  %p13261_p0 = scmp.ne.s32.totalorder %s9962_s27, %s13260_s4  ;;  %p13266_p2 = scmp.lt.s32.totalorder %s13260_s4, %s13260_s4 }
0x29f9   :  { %v3795_v35 = vsel %vm180_vm1, %v3785_v14, 0.0  ;;  %v3798_v53 = vsel %vm180_vm1, %v3786_v29, 0.0  ;;  %v3787_v15 = vmul.f32 %v13542_v23, %v13542_v23  ;;  %v3804_v10 = vsel %vm180_vm1, %v3788_v20, 0.0 }
0x29fa   :  { %v12945_v11 = vpack.c.bf16 %v9646_v16, %v9645_v33  ;;  %v3807_v21 = vsel %vm180_vm1, %v3789_v61, 0.0  ;;  %v8410_v23 = vsel %vm3834_vm14, %v15954_v9, 0.0  ;;  %vm8409_vm15 = vcmp.eq.s32.totalorder %v8408_v32, %v16168_v57  ;;  %p13267_p3 = por %p13266_p2, %p13265_p1 }
0x29fb   :  { %v3801_v28 = vsel %vm180_vm1, %v3787_v15, 0.0  ;;  %v8414_v33 = vsel %vm8413_vm2, %v8410_v23, 0.0  ;;  %v8417_v37 = vsel %vm8413_vm2, %v8411_v31, 0.0  ;;  %v8412_v16 = vsel %vm8409_vm15, %v15972_v59, 0.0 }
0x29fc   :  { %12946 = vmatprep.subr.bf16.mxu0 %v12945_v11  ;;  %v8421_v9 = vsel %vm8420_vm6, %v8412_v16, 0.0  ;;  %v3965_v11 = vadd.f32 1e-15, %v14551_v52  ;;  %v3839_v58 = vsel %vm3838_vm12, %v3836_v22, 0.0  ;;  %v3967_v57 = vadd.f32 1e-15, %v14581_v2  ;;  %p13268_p4 = pnand %p13267_p3, %p13261_p0 }
0x29fd   :  { %12948 = vmatpush1.bf16.msra.mxu0 %v12947_v17  ;;  %v8516_v59 = vmul.f32 %v15914_v5, %v15914_v5  ;;  %v3813_v17 = vsel %vm180_vm1, %v3791_v51, 0.0  ;;  %v3969_v26 = vadd.f32 1e-15, %v14597_v41  ;;  %v8517_v56 = vmul.f32 %v15916_v50, %v15916_v50 }
0x29fe   :  { %10335 = vmatprep.subr.msk.mxu0 %vm5042_vm13, %v9647_v0  ;;  %v3963_v0 = vadd.f32 1e-15, %v14524_v13  ;;  %v3930_v36 = vmul.f32 %v14914_v19, %v14914_v19  ;;  %v3955_v48 = vsub.f32 0.0, %v14524_v13 }
0x29ff   :  { %v8524_v27 = vsel %vm8420_vm6, %v8517_v56, 0.0 }
0x2a00   :  { %13232 = vlog2.f32 %v3963_v0  ;;  %v3934_v46 = vsel %vm3838_vm12, %v3930_v36, 0.0 }
0x2a01   :  { %10336 = vmatpush1.msk.msra.mxu0 %vm5042_vm13, %v9659_v63  ;;  %13234 = vlog2.f32 %v3965_v11 }
0x2a02   :  { %10337 = vmatmul.mubr.msk.f32.vlgmr.msra.gmra.mrb[128].mxu0 %vm8413_vm2, %v9665_v38  ;;  %12985 = vmatprep.subr.bf16.mxu0 %v16488_v34  ;;  %13236 = vlog2.f32 %v3967_v57  ;;  %v8521_v38 = vsel %vm8413_vm2, %v8516_v59, 0.0 }
0x2a03   :  { %11897 = vmatprep.mubr.msk.f32.mxu0 %vm13323_vm3, %v16483_v40  ;;  %12987 = vmatpush3.bf16.msra.mxu0 %v12986_v60  ;;  %v12992_v40 = vpack.c.bf16 %v9854_v18, %v9853_v45  ;;  %vm9935_vm3 = vcmask 66560   ;;  %13238 = vlog2.f32 %v3969_v26  ;;  %v3957_v60 = vsub.f32 0.0, %v14551_v52 }
0x2a04   :  { %12988 = vmatprep.subr.bf16.mxu0 %v16488_v34  ;;  %v3959_v18 = vsub.f32 0.0, %v14581_v2 }
0x2a07   :  { %12990 = vmatpush3.bf16.msra.mxu0 %v12989_v42 }
0x2a08   :  { %12991 = vmatprep.subr.bf16.mxu0 %v16488_v34 }
0x2a0a   :  { %v13233_v63 = vpop.eup %13232 }
0x2a0b   :  { %12993 = vmatpush3.bf16.msra.mxu0 %v12992_v40  ;;  %v3973_v5 = vmul.f32 0.6931472, %v13233_v63  ;;  %v13235_v3 = vpop.eup %13234 }
0x2a0c   :  { %12994 = vmatprep.subr.bf16.mxu0 %v16488_v34  ;;  %v3977_v47 = vmul.f32 0.6931472, %v13235_v3  ;;  %v13237_v50 = vpop.eup %13236 }
0x2a0d   :  { %v3987_v55 = vmul.f32 %v3973_v5, %v3955_v48  ;;  %v3981_v45 = vmul.f32 0.6931472, %v13237_v50  ;;  %v13239_v19 = vpop.eup %13238 }
0x2a0e   :  { %v3989_v42 = vmul.f32 %v3977_v47, %v3957_v60  ;;  %v3985_v13 = vmul.f32 0.6931472, %v13239_v19 }
0x2a0f   :  { %12996 = vmatpush3.bf16.msra.mxu0 %v12995_v24  ;;  %v3997_v1 = vsel %vm1697_vm4, %v3987_v55, 0.0  ;;  %v3794_v24 = vpop.xlane.xlu1 %3793 }
0x2a10   :  { %v4003_v40 = vsel %vm1697_vm4, %v3989_v42, 0.0 }
0x2a13   :  { %v3812_v2 = vpop.xlane.xlu1 %3811 }
0x2ad5   :  { %v9741_v12 = vpop.f32.mrb[128].mxu0 }
0x2ad6   :  { %v9743_v43 = vpop.f32.mrb[129].mxu0 }
0x2ad7   :  { %10339 = vmatprep.mubr.msk.f32.mxu1 %vm180_vm1, %v9743_v43  ;;  %v3961_v43 = vsub.f32 0.0, %v14597_v41 }
0x2ad8   :  { %9843 = vmatmul.mubr.f32.vlgmr.msra.gmra.mrb[148].mxu1 %v9741_v12  ;;  %v3991_v12 = vmul.f32 %v3981_v45, %v3959_v18 }
0x2ad9   :  { %v3993_v8 = vmul.f32 %v3985_v13, %v3961_v43 }
0x2ada   :  { %v4009_v49 = vsel %vm1697_vm4, %v3991_v12, 0.0 }
0x2adb   :  { %v4015_v52 = vsel %vm1697_vm4, %v3993_v8, 0.0 }
0x2bab   :  { %v9844_v7 = vpop.f32.mrb[148].mxu1 }
0x2bac   :  { %v9845_v39 = vadd.f32 %v10338_v4, %v9844_v7  ;;  %v9846_v6 = vpop.f32.mrb[149].mxu1 }
0x2bae   :  { %v9848_v25 = vmax.f32 %v9845_v39, 0.0 }
0x2bb0   :  { %11898 = vmatmul.mubr.msk.f32.vlgmr.msra.gmra.mrb[130].mxu0 %vm180_vm1, %v9848_v25  ;;  %v3844_v25 = vpop.xlane.xlu1 %3843 }
0x2c83   :  { %v9931_v44 = vpop.f32.mrb[130].mxu0 }
0x2c84   :  { %v16309_v34 = vadd.f32 %v10340_v30, %v9931_v44  ;;  %v11899_v54 = vpop.f32.mrb[131].mxu0  ;;  %v8520_v44 = vpop.xlane.xlu1 %8519 }
0x2c86   :  { %v9936_v62 = vsel %vm9935_vm3, %v16309_v34, -inf }
0x2c87   :  { %9937 = vmax.xlane.f32.xlu0 %v9936_v62 }
0x2c8b   :  { %3796 = vadd.xlane.f32.xlu0 %v3795_v35  ;;  %v8400_v35 = vpop.xlane.xlu1 %8399 }
0x2c8f   :  { %3799 = vadd.xlane.f32.xlu0 %v3798_v53 }
0x2c93   :  { %3802 = vadd.xlane.f32.xlu0 %v3801_v28  ;;  %v3933_v28 = vpop.xlane.xlu1 %3932 }
0x2c97   :  { %3805 = vadd.xlane.f32.xlu0 %v3804_v10  ;;  %v3996_v61 = vpop.xlane.xlu1 %3995 }
0x2c9b   :  { %3808 = vadd.xlane.f32.xlu0 %v3807_v21  ;;  %v4002_v11 = vpop.xlane.xlu1 %4001 }
0x2c9f   :  { %8415 = vadd.xlane.f32.xlu0 %v8414_v33 }
0x2ca3   :  { %8418 = vadd.xlane.f32.xlu0 %v8417_v37 }
0x2ca7   :  { %8422 = vadd.xlane.f32.xlu0 %v8421_v9  ;;  %v8401_v9 = vsel %vm6295_vm5, %v8400_v35, 0.0 }
0x2ca8   :  { %v8402_v59 = vrot.slane %v8401_v9, 4 }
0x2caa   :  { %v8403_v36 = vadd.f32 %v8402_v59, %v8401_v9 }
0x2cab   :  { %3840 = vadd.xlane.f32.xlu0 %v3839_v58 }
0x2cac   :  { %v8404_v55 = vrot.slane %v8403_v36, 2 }
0x2caf   :  { %3814 = vadd.xlane.f32.xlu0 %v3813_v17 }
0x2cb3   :  { %8522 = vadd.xlane.f32.xlu0 %v8521_v38 }
0x2cb7   :  { %8525 = vadd.xlane.f32.xlu0 %v8524_v27  ;;  %v4008_v27 = vpop.xlane.xlu1 %4007 }
0x2cbb   :  { %3935 = vadd.xlane.f32.xlu0 %v3934_v46  ;;  %v4014_v42 = vpop.xlane.xlu1 %4013 }
0x2cbf   :  { %3998 = vadd.xlane.f32.xlu0 %v3997_v1 }
0x2cc3   :  { %4004 = vadd.xlane.f32.xlu0 %v4003_v40  ;;  %v8405_v40 = vadd.f32 %v8404_v55, %v8403_v36 }
0x2cc7   :  { %4010 = vadd.xlane.f32.xlu0 %v4009_v49 }
0x2ccb   :  { %4016 = vadd.xlane.f32.xlu0 %v4015_v52 }
0x2d14   :  { %v9938_v4 = vpop.xlane.xlu0 %9937 }
0x2d15   :  { %v16368_v7 = vsub.f32 %v16309_v34, %v9938_v4 }
0x2d17   :  { %v9940_v39 = vmul.f32 1.442695, %v16368_v7 }
0x2d18   :  { %v3797_v6 = vpop.xlane.xlu0 %3796 }
0x2d19   :  { %13240 = vpow2.f32 %v9940_v39  ;;  %v3816_v53 = vadd.f32 %v3797_v6, %v3794_v24  ;;  %v8553_v39 = vpop.xlane.xlu1 %8552 }
0x2d1c   :  { %v3800_v30 = vpop.xlane.xlu0 %3799 }
0x2d1d   :  { %v3817_v34 = vadd.f32 %v3816_v53, %v3800_v30 }
0x2d20   :  { %v3803_v41 = vpop.xlane.xlu0 %3802 }
0x2d21   :  { %v3818_v10 = vadd.f32 %v3817_v34, %v3803_v41 }
0x2d23   :  { %v13241_v14 = vpop.eup %13240 }
0x2d24   :  { %v3806_v54 = vpop.xlane.xlu0 %3805  ;;  %v9942_v62 = vsel %vm9935_vm3, %v13241_v14, 0.0 }
0x2d25   :  { %9943 = vadd.xlane.f32.xlu0 %v9942_v62  ;;  %v3819_v32 = vadd.f32 %v3818_v10, %v3806_v54  ;;  %v8554_v62 = vsel %vm6295_vm5, %v8553_v39, 0.0  ;;  %vm9951_vm5 = vcmask 7168  }
0x2d28   :  { %v3809_v29 = vpop.xlane.xlu0 %3808 }
0x2d29   :  { %v3820_v37 = vadd.f32 %v3819_v32, %v3809_v29 }
0x2d2b   :  { %v3821_v57 = vadd.f32 %v3820_v37, %v3812_v2  ;;  %v8406_v2 = vrot.slane %v8405_v40, 1 }
0x2d2c   :  { %v8416_v15 = vpop.xlane.xlu0 %8415 }
0x2d30   :  { %v8419_v20 = vpop.xlane.xlu0 %8418 }
0x2d31   :  { %v8424_v21 = vadd.f32 %v8419_v20, %v8416_v15  ;;  %v8407_v15 = vadd.f32 %v8406_v2, %v8405_v40 }
0x2d34   :  { %v8423_v23 = vpop.xlane.xlu0 %8422 }
0x2d35   :  { %v8425_v33 = vsel %vm5042_vm13, %v8423_v23, 0.0  ;;  %v8555_v23 = vrot.slane %v8554_v62, 4 }
0x2d36   :  { %v8426_v31 = vadd.f32 %v8425_v33, %v8424_v21 }
0x2d38   :  { %v8427_v16 = vrot.slane %v8426_v31, 4  ;;  %v3841_v0 = vpop.xlane.xlu0 %3840 }
0x2d39   :  { %v3845_v22 = vadd.f32 %v3844_v25, %v3841_v0 }
0x2d3a   :  { %v8428_v58 = vadd.f32 %v8427_v16, %v8426_v31 }
0x2d3b   :  { %v3846_v51 = vrot.slane %v3845_v22, 4 }
0x2d3c   :  { %v3815_v17 = vpop.xlane.xlu0 %3814  ;;  %v8429_v56 = vrot.slane %v8428_v58, 2 }
0x2d3d   :  { %v3822_v26 = vadd.f32 %v3821_v57, %v3815_v17  ;;  %v3847_v38 = vadd.f32 %v3846_v51, %v3845_v22  ;;  %v8556_v51 = vadd.f32 %v8555_v23, %v8554_v62 }
0x2d3e   :  { %v8430_v48 = vadd.f32 %v8429_v56, %v8428_v58 }
0x2d3f   :  { %v3823_v63 = vrot.slane %v3822_v26, 4  ;;  %v3848_v46 = vrot.slane %v3847_v38, 2 }
0x2d40   :  { %v8523_v5 = vpop.xlane.xlu0 %8522  ;;  %v8431_v45 = vrot.slane %v8430_v48, 1 }
0x2d41   :  { %v3824_v3 = vadd.f32 %v3823_v63, %v3822_v26  ;;  %v8527_v47 = vadd.f32 %v8523_v5, %v8520_v44  ;;  %v3849_v18 = vadd.f32 %v3848_v46, %v3847_v38  ;;  %v8557_v38 = vrot.slane %v8556_v51, 2 }
0x2d42   :  { %v8432_v8 = vadd.f32 %v8431_v45, %v8430_v48 }
0x2d43   :  { %v3825_v60 = vrot.slane %v3824_v3, 2  ;;  %v3850_v24 = vrot.slane %v3849_v18, 1  ;;  %v8558_v36 = vadd.f32 %v8557_v38, %v8556_v51 }
0x2d44   :  { %v8526_v50 = vpop.xlane.xlu0 %8525  ;;  %v8513_v14 = vmul.f32 2.0, %v8432_v8 }
0x2d45   :  { %v8528_v1 = vsel %vm5042_vm13, %v8526_v50, 0.0  ;;  %v3826_v43 = vadd.f32 %v3825_v60, %v3824_v3  ;;  %v3851_v35 = vadd.f32 %v3850_v24, %v3849_v18  ;;  %v8559_v48 = vrot.slane %v8558_v36, 1 }
0x2d46   :  { %v8529_v19 = vadd.f32 %v8528_v1, %v8527_v47  ;;  %v8514_v32 = vsub.f32 %v8407_v15, %v8513_v14 }
0x2d47   :  { %v3827_v30 = vrot.slane %v3826_v43, 1  ;;  %v3927_v31 = vmul.f32 2.0, %v3851_v35 }
0x2d48   :  { %v8530_v12 = vrot.slane %v8529_v19, 4  ;;  %v3936_v13 = vpop.xlane.xlu0 %3935 }
0x2d49   :  { %v3937_v49 = vadd.f32 %v3936_v13, %v3933_v28  ;;  %v3828_v20 = vadd.f32 %v3827_v30, %v3826_v43 }
0x2d4a   :  { %v8531_v52 = vadd.f32 %v8530_v12, %v8529_v19 }
0x2d4b   :  { %v3938_v4 = vrot.slane %v3937_v49, 4  ;;  %v3928_v9 = vsub.f32 %v3828_v20, %v3927_v31 }
0x2d4c   :  { %v8532_v6 = vrot.slane %v8531_v52, 2  ;;  %v3999_v25 = vpop.xlane.xlu0 %3998 }
0x2d4d   :  { %v3939_v41 = vadd.f32 %v3938_v4, %v3937_v49  ;;  %v4018_v44 = vadd.f32 %v3999_v25, %v3996_v61 }
0x2d4e   :  { %v8533_v54 = vadd.f32 %v8532_v6, %v8531_v52 }
0x2d4f   :  { %v3940_v29 = vrot.slane %v3939_v41, 2  ;;  %v4019_v53 = vadd.f32 %v4018_v44, %v4002_v11 }
0x2d50   :  { %v8534_v34 = vrot.slane %v8533_v54, 1  ;;  %v4005_v28 = vpop.xlane.xlu0 %4004 }
0x2d51   :  { %v3941_v10 = vadd.f32 %v3940_v29, %v3939_v41  ;;  %v4020_v21 = vadd.f32 %v4019_v53, %v4005_v28 }
0x2d52   :  { %v8535_v33 = vadd.f32 %v8534_v34, %v8533_v54 }
0x2d53   :  { %v3942_v37 = vrot.slane %v3941_v10, 1  ;;  %v4021_v16 = vadd.f32 %v4020_v21, %v4008_v27 }
0x2d54   :  { %v8536_v61 = vadd.f32 %v8535_v33, %v8514_v32  ;;  %v4011_v0 = vpop.xlane.xlu0 %4010 }
0x2d55   :  { %v3943_v22 = vadd.f32 %v3942_v37, %v3941_v10  ;;  %v4022_v58 = vadd.f32 %v4021_v16, %v4011_v0 }
0x2d56   :  { %v8537_v57 = vmax.f32 %v8536_v61, 0.0 }
0x2d57   :  { %v3944_v11 = vadd.f32 %v3943_v22, %v3928_v9  ;;  %v4023_v59 = vadd.f32 %v4022_v58, %v4014_v42  ;;  %v8560_v42 = vadd.f32 %v8559_v48, %v8558_v36 }
0x2d58   :  { %13242 = vrsqrt.f32 %v8537_v57  ;;  %v4017_v17 = vpop.xlane.xlu0 %4016  ;;  %vm8540_vm1 = vcmp.eq.f32.partialorder %v8537_v57, inf  ;;  %v8543_v1 = vand.u32 2147483648, %v8537_v57  ;;  %vm8542_vm4 = vcmp.eq.f32.partialorder %v8537_v57, 0.0 }
0x2d59   :  { %v3945_v26 = vmax.f32 %v3944_v11, 0.0  ;;  %v4024_v56 = vadd.f32 %v4023_v59, %v4017_v17  ;;  %v8561_v49 = vmul.f32 0.25, %v8560_v42 }
0x2d5b   :  { %13244 = vrsqrt.f32 %v3945_v26  ;;  %v4025_v63 = vrot.slane %v4024_v56, 4  ;;  %vm3948_vm12 = vcmp.eq.f32.partialorder %v3945_v26, inf  ;;  %v3951_v18 = vand.u32 2147483648, %v3945_v26 }
0x2d5c   :  { %vm3950_vm13 = vcmp.eq.f32.partialorder %v3945_v26, 0.0 }
0x2d5d   :  { %v4026_v5 = vadd.f32 %v4025_v63, %v4024_v56 }
0x2d5f   :  { %v4027_v3 = vrot.slane %v4026_v5, 2 }
0x2d61   :  { %v4028_v46 = vadd.f32 %v4027_v3, %v4026_v5 }
0x2d62   :  { %v13243_v27 = vpop.eup %13242 }
0x2d63   :  { %v8539_v55 = vmul.f32 %v13243_v27, %v8537_v57  ;;  %v4029_v47 = vrot.slane %v4028_v46, 1 }
0x2d65   :  { %v13245_v50 = vpop.eup %13244  ;;  %v8541_v60 = vsel %vm8540_vm1, %v8537_v57, %v8539_v55  ;;  %v4030_v19 = vadd.f32 %v4029_v47, %v4028_v46 }
0x2d66   :  { %v3947_v45 = vmul.f32 %v13245_v50, %v3945_v26  ;;  %v8544_v40 = vsel %vm8542_vm4, %v8543_v1, %v8541_v60 }
0x2d67   :  { %v4031_v13 = vmul.f32 0.015625, %v4030_v19  ;;  %v8545_v52 = vmul.f32 0.125, %v8544_v40 }
0x2d68   :  { %v3949_v12 = vsel %vm3948_vm12, %v3945_v26, %v3947_v45 }
0x2d69   :  { %v3952_v43 = vsel %vm3950_vm13, %v3951_v18, %v3949_v12  ;;  %v9950_v4 = vadd.f32 %v8561_v49, %v4031_v13 }
0x2d6a   :  { %v3953_v8 = vmul.f32 0.00048828125, %v3952_v43 }
0x2d6c   :  { %v9949_v24 = vadd.f32 %v8545_v52, %v3953_v8 }
0x2d6e   :  { %v9952_v2 = vsel %vm9951_vm5, %v9949_v24, %v9950_v4 }
0x2d6f   :  { %9954 = vst.msk [vmem:[%s13490_s20] sm:$0x1] %vm9953_vm0, %v9952_v2 }
0x2db2   :  { %v9944_v39 = vpop.xlane.xlu0 %9943 }
0x2db3   :  { %13246 = vlog2.f32 %v9944_v39 }
0x2dbd   :  { %v13247_v6 = vpop.eup %13246 }
0x2dbe   :  { %v9946_v25 = vmul.f32 0.6931472, %v13247_v6 }
0x2dc0   :  { %v9947_v30 = vsub.f32 %v16368_v7, %v9946_v25 }
0x2dc2   :  { %9948 = vst.msk [vmem:[#allocation2] sm:$0x3] %vm9935_vm3, %v9947_v30 }
0x2dc3   :  { %13271 = shalt.err (!%p13268_p4)
}
0x2dc4   :  { %s13272_s20 = scalar_lea.hbm %s13485_s12, 32 }
0x2dc5   :  { %p13273_p5 = scmp.ne.s32.totalorder %s13485_s12, %s13272_s20  ;;  %p13276_p6 = scmp.lt.u32.totalorder %s13272_s20, %s13485_s12 }
0x2dc7   :  { %p13278_p7 = pnand %p13276_p6, %p13273_p5 }
0x2dc9   :  { %13281 = shalt.err (!%p13278_p7)
}
0x2dca   :  { %9964 = dma.vmem_to_hbm [thread:$0]  %s9962_s27, 32, %s13485_s12, [#allocation3]  }
0x2dcb   :  { %13282 = dma.done.wait [#allocation3], 32  }
0x2dcc   :  { %13283 = vsyncadd [#allocation3], 4294967264 }
0x2dcd   :  { %9972 = vsyncpa [#allocation3], 1 }

</bundles_post_ra>
